<compile_context>
chip_gen: v5e
topology: v5e:2x2
jax: 0.10.0
libtpu: 0.0.40
codegen_flags: <defaults>
</compile_context>

<pallas_src>
import functools

import jax
import jax.numpy as jnp
from jax.experimental import pallas as pl
from jax.experimental.pallas import tpu as pltpu


# ----------------------------------------------------------------------------
# Pallas kernel: y = act((x @ W) * scale + shift)   (bias pre-folded into shift)
# grid = (M/tm, N/tn, K/tk); K is the innermost ("arbitrary") reduction axis,
# accumulated in an f32 VMEM scratch that stays resident across K steps.
# ----------------------------------------------------------------------------
def _linear_kernel(x_ref, w_ref, s_ref, t_ref, o_ref, acc_ref, *, relu):
    k = pl.program_id(2)

    @pl.when(k == 0)
    def _():
        acc_ref[...] = jnp.zeros_like(acc_ref)

    # bf16 x bf16 MXU matmul with f32 accumulation.
    acc_ref[...] += jnp.dot(
        x_ref[...].astype(jnp.bfloat16),
        w_ref[...],
        preferred_element_type=jnp.float32,
    )

    @pl.when(k == pl.num_programs(2) - 1)
    def _():
        y = acc_ref[...] * s_ref[...] + t_ref[...]
        if relu:
            y = jnp.maximum(y, 0.0)
        o_ref[...] = y.astype(o_ref.dtype)


def linear_pallas(x, w, b, scale=None, shift=None, *, relu, tn=2048, tk=2048):
    """Fused (x @ w + b) * scale + shift with optional ReLU, as a Pallas kernel.

    x: (M, K) f32.  w: (K, N) bf16.  b/scale/shift: (N,) f32.
    tn/tk: weight tile sizes; pass None to use the full dimension.
    """
    M, K = x.shape
    Kw, N = w.shape
    assert K == Kw, (K, Kw)

    if scale is None:
        scale = jnp.ones((N,), jnp.float32)
    if shift is None:
        shift = jnp.zeros((N,), jnp.float32)
    # Fold the bias into the shift: (acc + b)*s + t == acc*s + (b*s + t).
    shift = b.astype(jnp.float32) * scale + shift

    s2 = scale.reshape(1, N).astype(jnp.float32)
    t2 = shift.reshape(1, N).astype(jnp.float32)

    # Tile sizes: M is tiny (<= 72) -> keep whole.  N/K tiled at 2048 when they
    # divide evenly (8 MiB bf16 weight tiles), otherwise full dimension.
    tm = M
    tn = N if (tn is None or N % tn != 0) else tn
    tk = K if (tk is None or K % tk != 0) else tk
    grid = (M // tm, N // tn, K // tk)

    kernel = functools.partial(_linear_kernel, relu=relu)
    return pl.pallas_call(
        kernel,
        out_shape=jax.ShapeDtypeStruct((M, N), jnp.float32),
        grid_spec=pltpu.PrefetchScalarGridSpec(
            num_scalar_prefetch=0,
            grid=grid,
            in_specs=[
                pl.BlockSpec((tm, tk), lambda i, j, k: (i, k)),   # x (f32)
                pl.BlockSpec((tk, tn), lambda i, j, k: (k, j)),   # W (bf16)
                pl.BlockSpec((1, tn), lambda i, j, k: (0, j)),    # scale
                pl.BlockSpec((1, tn), lambda i, j, k: (0, j)),    # shift (+bias)
            ],
            out_specs=pl.BlockSpec((tm, tn), lambda i, j, k: (i, j)),
            scratch_shapes=[pltpu.VMEM((tm, tn), jnp.float32)],
        ),
        compiler_params=pltpu.CompilerParams(
            dimension_semantics=("parallel", "parallel", "arbitrary"),
            vmem_limit_bytes=48 * 1024 * 1024,   # fits v7x's 64 MiB VMEM
        ),
    )(x, w, s2, t2)


# ----------------------------------------------------------------------------
# Parameter init (deterministic, PyTorch-default-like uniform(+-1/sqrt(fan_in)))
# Weights are stored in bf16 (streamed as-is by the kernel); bias / BN are f32.
# ----------------------------------------------------------------------------
def init_params(key, num_features=2048, n_classes=50):
    layer_dims = {
        "fc1": (num_features, 512),
        "fc2": (36 * 512, 16384),
        "fc3": (16384, 4096),
        "fc4": (4096, n_classes),
    }
    keys = jax.random.split(key, 2 * len(layer_dims) + 4)
    params = {}
    i = 0
    for name, (fan_in, fan_out) in layer_dims.items():
        bound = 1.0 / jnp.sqrt(jnp.float32(fan_in))
        params[f"{name}_w"] = jax.random.uniform(
            keys[i], (fan_in, fan_out), jnp.float32, -bound, bound
        ).astype(jnp.bfloat16)
        params[f"{name}_b"] = jax.random.uniform(
            keys[i + 1], (fan_out,), jnp.float32, -bound, bound)
        i += 2
    # BatchNorm1d(n_classes) parameters (nontrivial deterministic values).
    params["bn4_gamma"] = jax.random.uniform(
        keys[i], (n_classes,), jnp.float32, 0.5, 1.5)
    params["bn4_beta"] = 0.1 * jax.random.normal(keys[i + 1], (n_classes,), jnp.float32)
    params["bn4_mean"] = 0.1 * jax.random.normal(keys[i + 2], (n_classes,), jnp.float32)
    params["bn4_var"] = jax.random.uniform(
        keys[i + 3], (n_classes,), jnp.float32, 0.5, 1.5)
    return params


# ----------------------------------------------------------------------------
# Forward pass (mirrors JigsawNet.forward with default flags)
# ----------------------------------------------------------------------------
def jigsaw_forward(params, x, *, relu_in_last_fc=True, include_softmax=False,
                   bn_eps=1e-5):
    num_features = params["fc1_w"].shape[0]
    if x.ndim == 2 and x.shape[1] == num_features:
        x = x[None]  # single-sample branch: (36, F) -> (1, 36, F)
    B, T, F = x.shape
    assert T == 36 and F == num_features

    # process_features: fc1 per tile; torch.cat + view(B, -1) == reshape here.
    # The subsequent F.relu(p) is elementwise, so it is fused into fc1's
    # epilogue.  fc1's whole weight fits in one VMEM tile -> single K tile.
    p = linear_pallas(x.reshape(B * T, F), params["fc1_w"], params["fc1_b"],
                      relu=True, tk=None)
    p = p.reshape(B, T * params["fc1_w"].shape[1])          # (B, 18432)

    h = linear_pallas(p, params["fc2_w"], params["fc2_b"], relu=True)   # (B, 16384)
    h = linear_pallas(h, params["fc3_w"], params["fc3_b"], relu=True)   # (B, 4096)

    # bn4 in eval/inference mode, folded into fc4's epilogue as scale/shift.
    # TODO(synk): training-mode BatchNorm1d (batch statistics) is not reproduced.
    scale = params["bn4_gamma"] / jnp.sqrt(params["bn4_var"] + bn_eps)
    shift = params["bn4_beta"] - params["bn4_mean"] * scale

    # fc4: N=50 < 128 lanes -> pad to 128 for lane-dense stores, slice after.
    n_classes = params["fc4_w"].shape[1]
    n_pad = 128
    w4 = jnp.zeros((params["fc4_w"].shape[0], n_pad), jnp.bfloat16)
    w4 = w4.at[:, :n_classes].set(params["fc4_w"])
    b4 = jnp.zeros((n_pad,), jnp.float32).at[:n_classes].set(params["fc4_b"])
    s4 = jnp.ones((n_pad,), jnp.float32).at[:n_classes].set(scale)
    t4 = jnp.zeros((n_pad,), jnp.float32).at[:n_classes].set(shift)

    y = linear_pallas(h, w4, b4, scale=s4, shift=t4,
                      relu=relu_in_last_fc, tk=None)                     # (B, 128)
    y = y[:, :n_classes]                                                 # (B, 50)

    if include_softmax:
        y = jax.nn.softmax(y, axis=1)
    return y


def reference_forward(params, x, *, relu_in_last_fc=True, include_softmax=False,
                      bn_eps=1e-5):
    """Pure-JAX reference using the same bf16-weight / f32-accumulate math."""
    def lin(a, w, b):
        return jnp.dot(a.astype(jnp.bfloat16), w.astype(jnp.bfloat16),
                       preferred_element_type=jnp.float32) + b

    B = x.shape[0]
    p = jnp.maximum(lin(x.reshape(B * 36, -1), params["fc1_w"], params["fc1_b"]), 0.0)
    p = p.reshape(B, -1)
    h = jnp.maximum(lin(p, params["fc2_w"], params["fc2_b"]), 0.0)
    h = jnp.maximum(lin(h, params["fc3_w"], params["fc3_b"]), 0.0)
    y = lin(h, params["fc4_w"], params["fc4_b"])
    y = ((y - params["bn4_mean"]) / jnp.sqrt(params["bn4_var"] + bn_eps)
         * params["bn4_gamma"] + params["bn4_beta"])
    if relu_in_last_fc:
        y = jnp.maximum(y, 0.0)
    if include_softmax:
        y = jax.nn.softmax(y, axis=1)
    return y


if __name__ == "__main__":
    key = jax.random.PRNGKey(0)
    k_params, k_x = jax.random.split(key)

    n_classes = 50
    num_features = 2048
    params = init_params(k_params, num_features=num_features, n_classes=n_classes)

    # Small batch; per-sample shape (36, 2048) is what the module's forward implies.
    B = 2
    x = jax.random.normal(k_x, (B, 36, num_features), jnp.float32)

    out = jigsaw_forward(params, x)
    out = jax.block_until_ready(out)

    assert out.shape == (B, n_classes), out.shape
    ref = reference_forward(params, x)
    assert bool(jnp.all(jnp.isfinite(out)))
    assert bool(jnp.allclose(out, ref, rtol=2e-2, atol=2e-2)), (
        float(jnp.max(jnp.abs(out - ref))))

    print("KERNEL_OK")
</pallas_src>

<mosaic_0001>
module attributes {stable_mosaic.version = 11 : i64} {
  func.func @_linear_kernel(%arg0: i32, %arg1: i32, %arg2: i32, %arg3: memref<72x2048xf32, #tpu.memory_space<vmem>>, %arg4: memref<2048x512xbf16, #tpu.memory_space<vmem>>, %arg5: memref<1x512xf32, #tpu.memory_space<vmem>>, %arg6: memref<1x512xf32, #tpu.memory_space<vmem>>, %arg7: memref<72x512xf32, #tpu.memory_space<vmem>>, %arg8: memref<72x512xf32, #tpu.memory_space<vmem>>) attributes {dimension_semantics = [#tpu.dimension_semantics<parallel>, #tpu.dimension_semantics<parallel>, #tpu.dimension_semantics<arbitrary>], iteration_bounds = array<i64: 1, 1, 1>, scalar_prefetch = 0 : i64, scratch_operands = 1 : i64, tpu.core_type = #tpu.core_type<tc>, window_params = [{transform_indices = @transform_0, window_bounds = array<i64: 72, 2048>}, {transform_indices = @transform_1, window_bounds = array<i64: 2048, 512>}, {transform_indices = @transform_2, window_bounds = array<i64: 1, 512>}, {transform_indices = @transform_3, window_bounds = array<i64: 1, 512>}, {transform_indices = @transform_4, window_bounds = array<i64: 72, 512>}]} {
    %c0_i32 = arith.constant 0 : i32
    %0 = arith.cmpi eq, %arg2, %c0_i32 : i32
    %1 = arith.extui %0 : i1 to i32
    %c0_i32_0 = arith.constant 0 : i32
    %2 = arith.cmpi ne, %1, %c0_i32_0 : i32
    scf.if %2 {
      %cst_10 = arith.constant 0.000000e+00 : f32
      %13 = vector.broadcast %cst_10 : f32 to vector<72x512xf32>
      %c0_11 = arith.constant 0 : index
      %c0_12 = arith.constant 0 : index
      %14 = vector.load %arg8[%c0_11, %c0_12] : memref<72x512xf32, #tpu.memory_space<vmem>>, vector<72x512xf32>
      tpu.vector_store %arg8[%c0_11, %c0_12], %13 {strides = array<i32>} : memref<72x512xf32, #tpu.memory_space<vmem>>, vector<72x512xf32>,
    } else {
    }
    %c0 = arith.constant 0 : index
    %c0_1 = arith.constant 0 : index
    %3 = vector.load %arg8[%c0, %c0_1] : memref<72x512xf32, #tpu.memory_space<vmem>>, vector<72x512xf32>
    %c0_2 = arith.constant 0 : index
    %c0_3 = arith.constant 0 : index
    %4 = vector.load %arg3[%c0_2, %c0_3] : memref<72x2048xf32, #tpu.memory_space<vmem>>, vector<72x2048xf32>
    %5 = arith.truncf %4 : vector<72x2048xf32> to vector<72x2048xbf16>
    %c0_4 = arith.constant 0 : index
    %c0_5 = arith.constant 0 : index
    %6 = vector.load %arg4[%c0_4, %c0_5] : memref<2048x512xbf16, #tpu.memory_space<vmem>>, vector<2048x512xbf16>
    %cst = arith.constant dense<0.000000e+00> : vector<72x512xf32>
    %7 = tpu.matmul %5, %6, %cst {dimension_numbers = #tpu.dot_dimension_numbers<[1], [0], [0], [1], [0, 0, 1, 1], [], []>} : vector<72x2048xbf16>, vector<2048x512xbf16>, vector<72x512xf32> -> vector<72x512xf32>
    %8 = arith.addf %3, %7 : vector<72x512xf32>
    %c0_6 = arith.constant 0 : index
    %c0_7 = arith.constant 0 : index
    %9 = vector.load %arg8[%c0_6, %c0_7] : memref<72x512xf32, #tpu.memory_space<vmem>>, vector<72x512xf32>
    tpu.vector_store %arg8[%c0_6, %c0_7], %8 {strides = array<i32>} : memref<72x512xf32, #tpu.memory_space<vmem>>, vector<72x512xf32>,
    %c0_i32_8 = arith.constant 0 : i32
    %10 = arith.cmpi eq, %arg2, %c0_i32_8 : i32
    %11 = arith.extui %10 : i1 to i32
    %c0_i32_9 = arith.constant 0 : i32
    %12 = arith.cmpi ne, %11, %c0_i32_9 : i32
    scf.if %12 {
      %c0_10 = arith.constant 0 : index
      %c0_11 = arith.constant 0 : index
      %13 = vector.load %arg8[%c0_10, %c0_11] : memref<72x512xf32, #tpu.memory_space<vmem>>, vector<72x512xf32>
      %c0_12 = arith.constant 0 : index
      %c0_13 = arith.constant 0 : index
      %14 = vector.load %arg5[%c0_12, %c0_13] : memref<1x512xf32, #tpu.memory_space<vmem>>, vector<1x512xf32>
      %15 = vector.broadcast %14 : vector<1x512xf32> to vector<72x512xf32>
      %16 = arith.mulf %13, %15 : vector<72x512xf32>
      %c0_14 = arith.constant 0 : index
      %c0_15 = arith.constant 0 : index
      %17 = vector.load %arg6[%c0_14, %c0_15] : memref<1x512xf32, #tpu.memory_space<vmem>>, vector<1x512xf32>
      %18 = vector.broadcast %17 : vector<1x512xf32> to vector<72x512xf32>
      %19 = arith.addf %16, %18 : vector<72x512xf32>
      %cst_16 = arith.constant 0.000000e+00 : f32
      %20 = vector.broadcast %cst_16 : f32 to vector<72x512xf32>
      %21 = arith.maximumf %19, %20 : vector<72x512xf32>
      %c0_17 = arith.constant 0 : index
      %c0_18 = arith.constant 0 : index
      %22 = vector.load %arg7[%c0_17, %c0_18] : memref<72x512xf32, #tpu.memory_space<vmem>>, vector<72x512xf32>
      tpu.vector_store %arg7[%c0_17, %c0_18], %21 {strides = array<i32>} : memref<72x512xf32, #tpu.memory_space<vmem>>, vector<72x512xf32>,
    } else {
    }
    return
  }
  func.func @transform_0(%arg0: i32, %arg1: i32, %arg2: i32) -> (i32, i32) {
    %c0_i32 = arith.constant 0 : i32
    return %arg0, %arg2 : i32, i32
  }
  func.func @transform_1(%arg0: i32, %arg1: i32, %arg2: i32) -> (i32, i32) {
    %c0_i32 = arith.constant 0 : i32
    return %arg2, %arg1 : i32, i32
  }
  func.func @transform_2(%arg0: i32, %arg1: i32, %arg2: i32) -> (i32, i32) {
    %c0_i32 = arith.constant 0 : i32
    %c0_i32_0 = arith.constant 0 : i32
    return %c0_i32, %arg1 : i32, i32
  }
  func.func @transform_3(%arg0: i32, %arg1: i32, %arg2: i32) -> (i32, i32) {
    %c0_i32 = arith.constant 0 : i32
    %c0_i32_0 = arith.constant 0 : i32
    return %c0_i32, %arg1 : i32, i32
  }
  func.func @transform_4(%arg0: i32, %arg1: i32, %arg2: i32) -> (i32, i32) {
    %c0_i32 = arith.constant 0 : i32
    return %arg0, %arg1 : i32, i32
  }
}

</mosaic_0001>

<bundles_post_ra>
// kernel: tpu_custom_call.1
= control target key start
LH: loop header
LB: loop body
LE: loop exit
PB: predicated region body
PF: predicated region fallthrough
CT: control target
= control target key end

     0   :  { %9 = vsyncpa [#allocation4], 0  ;;  %s9505_s0 = inlined_call_operand.hbm [shape: f32[72,2048], index: 0, kind: input, shape index: {}]   ;;  %s9506_s1 = inlined_call_operand.hbm [shape: bf16[2048,512], index: 1, kind: input, shape index: {}]   ;;  %s9507_s2 = inlined_call_operand.hbm [shape: f32[1,512], index: 2, kind: input, shape index: {}]   ;;  %s9508_s3 = inlined_call_operand.hbm [shape: f32[1,512], index: 3, kind: input, shape index: {}]   ;;  %s9509_s4 = inlined_call_operand.hbm [shape: f32[72,512], index: 4, kind: output, shape index: {}]  }
   0x1   :  { %10 = vsyncpa [#allocation7], 0 }
   0x2   :  { %11 = vsyncpa [#allocation10], 0  ;;  %s30_s17 = sshll.u32 %s9506_s1, 4  ;;  %s31_s17 = int_to_ptr.hbm [resolvable:$true] %s30_s17 }
   0x3   :  { %12 = vsyncpa [#allocation5], 0  ;;  %s8562_s18 = smov [#allocation6]   ;;  %s17_s22 = sshll.u32 %s9505_s0, 4  ;;  %s18_s22 = int_to_ptr.hbm [resolvable:$true] %s17_s22 }
   0x4   :  { %s32_s19 = sshll.u32 %s8562_s18, 4  ;;  %s8563_s23 = smov 256   ;;  %s33_s19 = int_to_ptr.vmem [resolvable:$true] %s32_s19 }
   0x5   :  { %s8564_s24 = smov 16   ;;  %s8565_s25 = smov [#allocation3]  }
   0x6   :  { %38 = dma.hbm_to_vmem [thread:$0]  %s31_s17, 65536, %s33_s19, [#allocation7], %s8563_s23, %s8563_s23, %s8564_s24  }
   0x7   :  { %s19_s26 = sshll.u32 %s8565_s25, 4  ;;  %s8566_s27 = smov 2048   ;;  %s20_s26 = int_to_ptr.vmem [resolvable:$true] %s19_s26 }
   0x8   :  { %s8567_s28 = smov 128   ;;  %s44_s30 = sshll.u32 %s9507_s2, 4  ;;  %s45_s30 = int_to_ptr.hbm [resolvable:$true] %s44_s30 }
   0x9   :  { %25 = dma.hbm_to_vmem [thread:$0]  %s18_s22, 18432, %s20_s26, [#allocation4], %s8566_s27, %s8566_s27, %s8567_s28  }
   0xa   :  { %s8568_s5 = smov [#allocation8]   ;;  %s55_s8 = sshll.u32 %s9508_s3, 4  ;;  %s56_s8 = int_to_ptr.hbm [resolvable:$true] %s55_s8 }
   0xb   :  { %s46_s6 = sshll.u32 %s8568_s5, 4  ;;  %s8569_s9 = smov [#allocation9]   ;;  %s47_s6 = int_to_ptr.vmem [resolvable:$true] %s46_s6 }
   0xc   :  { %49 = dma.hbm_to_vmem [thread:$0]  %s45_s30, 64, %s47_s6, [#allocation7]  }
   0xd   :  { %s57_s10 = sshll.u32 %s8569_s9, 4  ;;  %s58_s10 = int_to_ptr.vmem [resolvable:$true] %s57_s10 }
   0xe   :  { %60 = dma.hbm_to_vmem [thread:$0]  %s56_s8, 64, %s58_s10, [#allocation10]  }
   0xf   :  { %8554 = dma.done.wait [#allocation4], 18432  }
  0x10   :  { %8555 = vsyncadd [#allocation4], 4294948864 }
  0x11   :  { %8556 = dma.done.wait [#allocation7], 65600  }
  0x12   :  { %8557 = vsyncadd [#allocation7], 4294901696 }
  0x13   :  { %8558 = dma.done.wait [#allocation10], 64  }
  0x14   :  { %8559 = vsyncadd [#allocation10], 4294967232  ;;  %v5971_v0 = vld [vmem:[#allocation6 + $0xe0] sm:$0xf]  ;;  %v7935_v1 = vld [vmem:[#allocation6 + $0xec] sm:$0xf0] }
  0x15   :  { %v6099_v2 = vld [vmem:[#allocation6 + $0x1e0] sm:$0xf]  ;;  %v5972_v3 = vor.u32 %v7935_v1, %v5971_v0  ;;  %v7967_v4 = vld [vmem:[#allocation6 + $0x1ec] sm:$0xf0]  ;;  %s8570_s2 = smov [#allocation11]   ;;  %s5842_s13 = sshll.u32 %s9509_s4, 4  ;;  %s5843_s13 = int_to_ptr.hbm [resolvable:$true] %s5842_s13 }
  0x16   :  { %v6227_v5 = vld [vmem:[#allocation6 + $0x2e0] sm:$0xf]  ;;  %v7999_v6 = vld [vmem:[#allocation6 + $0x2ec] sm:$0xf0]  ;;  %v6100_v7 = vor.u32 %v7967_v4, %v6099_v2  ;;  %s5840_s3 = sshll.u32 %s8570_s2, 4  ;;  %s8571_s14 = smov 512   ;;  %s5841_s3 = int_to_ptr.vmem [resolvable:$true] %s5840_s3 }
  0x17   :  { %v6228_v8 = vor.u32 %v7999_v6, %v6227_v5  ;;  %v6355_v9 = vld [vmem:[#allocation6 + $0x3e0] sm:$0xf]  ;;  %v8031_v10 = vld [vmem:[#allocation6 + $0x3ec] sm:$0xf0]  ;;  %3449 = vmatpush.bf16.msra.mxu0 %v5972_v3  ;;  %s8572_s15 = smov 32  }
  0x18   :  { %v5955_v11 = vld [vmem:[#allocation6 + $0xc0] sm:$0xf]  ;;  %v6356_v12 = vor.u32 %v8031_v10, %v6355_v9  ;;  %v7931_v13 = vld [vmem:[#allocation6 + $0xcc] sm:$0xf0]  ;;  %3482 = vmatpush.bf16.msra.mxu1 %v6100_v7 }
  0x19   :  { %v6083_v14 = vld [vmem:[#allocation6 + $0x1c0] sm:$0xf]  ;;  %v7963_v15 = vld [vmem:[#allocation6 + $0x1cc] sm:$0xf0]  ;;  %3515 = vmatpush.bf16.msra.mxu2 %v6228_v8  ;;  %v5956_v16 = vor.u32 %v7931_v13, %v5955_v11 }
  0x1a   :  { %v6084_v17 = vor.u32 %v7963_v15, %v6083_v14  ;;  %v6211_v18 = vld [vmem:[#allocation6 + $0x2c0] sm:$0xf]  ;;  %v7995_v19 = vld [vmem:[#allocation6 + $0x2cc] sm:$0xf0]  ;;  %3548 = vmatpush.bf16.msra.mxu3 %v6356_v12 }
  0x1b   :  { %v6339_v20 = vld [vmem:[#allocation6 + $0x3c0] sm:$0xf]  ;;  %v6212_v21 = vor.u32 %v7995_v19, %v6211_v18  ;;  %v8027_v22 = vld [vmem:[#allocation6 + $0x3cc] sm:$0xf0]  ;;  %3450 = vmatpush.bf16.msra.mxu0 %v5956_v16 }
  0x1c   :  { %v5939_v23 = vld [vmem:[#allocation6 + $0xa0] sm:$0xf]  ;;  %v7927_v24 = vld [vmem:[#allocation6 + $0xac] sm:$0xf0]  ;;  %v6340_v25 = vor.u32 %v8027_v22, %v6339_v20  ;;  %3483 = vmatpush.bf16.msra.mxu1 %v6084_v17 }
  0x1d   :  { %v6067_v26 = vld [vmem:[#allocation6 + $0x1a0] sm:$0xf]  ;;  %v7959_v27 = vld [vmem:[#allocation6 + $0x1ac] sm:$0xf0]  ;;  %v5940_v29 = vor.u32 %v7927_v24, %v5939_v23  ;;  %3516 = vmatpush.bf16.msra.mxu2 %v6212_v21 }
  0x1e   :  { %v6195_v28 = vld [vmem:[#allocation6 + $0x2a0] sm:$0xf]  ;;  %v7991_v30 = vld [vmem:[#allocation6 + $0x2ac] sm:$0xf0]  ;;  %v6068_v33 = vor.u32 %v7959_v27, %v6067_v26  ;;  %3549 = vmatpush.bf16.msra.mxu3 %v6340_v25 }
  0x1f   :  { %v6323_v31 = vld [vmem:[#allocation6 + $0x3a0] sm:$0xf]  ;;  %v8023_v32 = vld [vmem:[#allocation6 + $0x3ac] sm:$0xf0]  ;;  %v6196_v34 = vor.u32 %v7991_v30, %v6195_v28  ;;  %3451 = vmatpush.bf16.msra.mxu0 %v5940_v29  ;;  %v154_v30 = vld [vmem:[#allocation3 + $0x8] sm:$0xff] }
  0x20   :  { %v5923_v35 = vld [vmem:[#allocation6 + $0x80] sm:$0xf]  ;;  %v7923_v36 = vld [vmem:[#allocation6 + $0x8c] sm:$0xf0]  ;;  %v6324_v38 = vor.u32 %v8023_v32, %v6323_v31  ;;  %3484 = vmatpush.bf16.msra.mxu1 %v6068_v33  ;;  %v170_v31 = vld [vmem:[#allocation3 + $0x88] sm:$0xff] }
  0x21   :  { %v6051_v37 = vld [vmem:[#allocation6 + $0x180] sm:$0xf]  ;;  %v7955_v39 = vld [vmem:[#allocation6 + $0x18c] sm:$0xf0]  ;;  %v5924_v44 = vor.u32 %v7923_v36, %v5923_v35  ;;  %3517 = vmatpush.bf16.msra.mxu2 %v6196_v34 }
  0x22   :  { %v6179_v40 = vld [vmem:[#allocation6 + $0x280] sm:$0xf]  ;;  %v7987_v41 = vld [vmem:[#allocation6 + $0x28c] sm:$0xf0]  ;;  %v6052_v45 = vor.u32 %v7955_v39, %v6051_v37  ;;  %3550 = vmatpush.bf16.msra.mxu3 %v6324_v38 }
  0x23   :  { %v6307_v42 = vld [vmem:[#allocation6 + $0x380] sm:$0xf]  ;;  %v8019_v43 = vld [vmem:[#allocation6 + $0x38c] sm:$0xf0]  ;;  %v6180_v46 = vor.u32 %v7987_v41, %v6179_v40  ;;  %3452 = vmatpush.bf16.msra.mxu0 %v5924_v44  ;;  %v156_v41 = vld [vmem:[#allocation3 + $0x18] sm:$0xff] }
  0x24   :  { %v5907_v47 = vld [vmem:[#allocation6 + $0x60] sm:$0xf]  ;;  %v7919_v48 = vld [vmem:[#allocation6 + $0x6c] sm:$0xf0]  ;;  %v6308_v50 = vor.u32 %v8019_v43, %v6307_v42  ;;  %3485 = vmatpush.bf16.msra.mxu1 %v6052_v45  ;;  %v172_v42 = vld [vmem:[#allocation3 + $0x98] sm:$0xff] }
  0x25   :  { %v6035_v49 = vld [vmem:[#allocation6 + $0x160] sm:$0xf]  ;;  %v7951_v51 = vld [vmem:[#allocation6 + $0x16c] sm:$0xf0]  ;;  %v5908_v56 = vor.u32 %v7919_v48, %v5907_v47  ;;  %3518 = vmatpush.bf16.msra.mxu2 %v6180_v46 }
  0x26   :  { %v6163_v52 = vld [vmem:[#allocation6 + $0x260] sm:$0xf]  ;;  %v7983_v53 = vld [vmem:[#allocation6 + $0x26c] sm:$0xf0]  ;;  %v6036_v57 = vor.u32 %v7951_v51, %v6035_v49  ;;  %3551 = vmatpush.bf16.msra.mxu3 %v6308_v50 }
  0x27   :  { %v6291_v54 = vld [vmem:[#allocation6 + $0x360] sm:$0xf]  ;;  %v8015_v55 = vld [vmem:[#allocation6 + $0x36c] sm:$0xf0]  ;;  %v6164_v58 = vor.u32 %v7983_v53, %v6163_v52  ;;  %3453 = vmatpush.bf16.msra.mxu0 %v5908_v56  ;;  %v8612_v53 = vpack.c.bf16 %v170_v31, %v154_v30  ;;  %v202_v31 = vld [vmem:[#allocation3 + $0x188] sm:$0xff] }
  0x28   :  { %v5891_v59 = vld [vmem:[#allocation6 + $0x40] sm:$0xf]  ;;  %v7915_v60 = vld [vmem:[#allocation6 + $0x4c] sm:$0xf0]  ;;  %v6292_v62 = vor.u32 %v8015_v55, %v6291_v54  ;;  %3486 = vmatpush.bf16.msra.mxu1 %v6036_v57  ;;  %v8616_v57 = vpack.c.bf16 %v172_v42, %v156_v41 }
  0x29   :  { %v6019_v61 = vld [vmem:[#allocation6 + $0x140] sm:$0xf]  ;;  %v7947_v63 = vld [vmem:[#allocation6 + $0x14c] sm:$0xf0]  ;;  %v5892_v4 = vor.u32 %v7915_v60, %v5891_v59  ;;  %3519 = vmatpush.bf16.msra.mxu2 %v6164_v58  ;;  %9611 = vst [vmem:[#allocation17_spill] sm:$0xff] %v8612_v53 }
  0x2a   :  { %v6147_v0 = vld [vmem:[#allocation6 + $0x240] sm:$0xf]  ;;  %v7979_v1 = vld [vmem:[#allocation6 + $0x24c] sm:$0xf0]  ;;  %v6020_v5 = vor.u32 %v7947_v63, %v6019_v61  ;;  %3552 = vmatpush.bf16.msra.mxu3 %v6292_v62  ;;  %9613 = vst [vmem:[#allocation19_spill] sm:$0xff] %v8616_v57 }
  0x2b   :  { %v6275_v2 = vld [vmem:[#allocation6 + $0x340] sm:$0xf]  ;;  %v8011_v3 = vld [vmem:[#allocation6 + $0x34c] sm:$0xf0]  ;;  %v6148_v6 = vor.u32 %v7979_v1, %v6147_v0  ;;  %3454 = vmatpush.bf16.msra.mxu0 %v5892_v4 }
  0x2c   :  { %v5875_v7 = vld [vmem:[#allocation6 + $0x20] sm:$0xf]  ;;  %v7911_v8 = vld [vmem:[#allocation6 + $0x2c] sm:$0xf0]  ;;  %v6276_v10 = vor.u32 %v8011_v3, %v6275_v2  ;;  %3487 = vmatpush.bf16.msra.mxu1 %v6020_v5 }
  0x2d   :  { %v6003_v9 = vld [vmem:[#allocation6 + $0x120] sm:$0xf]  ;;  %v7943_v11 = vld [vmem:[#allocation6 + $0x12c] sm:$0xf0]  ;;  %v5876_v17 = vor.u32 %v7911_v8, %v5875_v7  ;;  %3520 = vmatpush.bf16.msra.mxu2 %v6148_v6 }
  0x2e   :  { %v6131_v12 = vld [vmem:[#allocation6 + $0x220] sm:$0xf]  ;;  %v7975_v13 = vld [vmem:[#allocation6 + $0x22c] sm:$0xf0]  ;;  %v6004_v21 = vor.u32 %v7943_v11, %v6003_v9  ;;  %3553 = vmatpush.bf16.msra.mxu3 %v6276_v10 }
  0x2f   :  { %v6259_v14 = vld [vmem:[#allocation6 + $0x320] sm:$0xf]  ;;  %v8007_v15 = vld [vmem:[#allocation6 + $0x32c] sm:$0xf0]  ;;  %v6132_v22 = vor.u32 %v7975_v13, %v6131_v12  ;;  %3455 = vmatpush.bf16.msra.mxu0 %v5876_v17 }
  0x30   :  { %v5859_v16 = vld [vmem:[#allocation6] sm:$0xf]  ;;  %v7907_v18 = vld [vmem:[#allocation6 + $0xc] sm:$0xf0]  ;;  %v6260_v26 = vor.u32 %v8007_v15, %v6259_v14  ;;  %3488 = vmatpush.bf16.msra.mxu1 %v6004_v21 }
  0x31   :  { %v5987_v19 = vld [vmem:[#allocation6 + $0x100] sm:$0xf]  ;;  %v7939_v20 = vld [vmem:[#allocation6 + $0x10c] sm:$0xf0]  ;;  %v5860_v34 = vor.u32 %v7907_v18, %v5859_v16  ;;  %3521 = vmatpush.bf16.msra.mxu2 %v6132_v22 }
  0x32   :  { %v6115_v23 = vld [vmem:[#allocation6 + $0x200] sm:$0xf]  ;;  %v7971_v24 = vld [vmem:[#allocation6 + $0x20c] sm:$0xf0]  ;;  %v5988_v38 = vor.u32 %v7939_v20, %v5987_v19  ;;  %3554 = vmatpush.bf16.msra.mxu3 %v6260_v26  ;;  %v186_v26 = vld [vmem:[#allocation3 + $0x108] sm:$0xff] }
  0x33   :  { %v6243_v25 = vld [vmem:[#allocation6 + $0x300] sm:$0xf]  ;;  %v8003_v27 = vld [vmem:[#allocation6 + $0x30c] sm:$0xf0]  ;;  %v6116_v39 = vor.u32 %v7971_v24, %v6115_v23  ;;  %3456 = vmatpush.bf16.msra.mxu0 %v5860_v34 }
  0x34   :  { %v153_v28 = vld [vmem:[#allocation3] sm:$0xff]  ;;  %v8127_v33 = vld [vmem:[#allocation6 + $0x6ec] sm:$0xf0]  ;;  %v6244_v43 = vor.u32 %v8003_v27, %v6243_v25  ;;  %3489 = vmatpush.bf16.msra.mxu1 %v5988_v38  ;;  %v204_v38 = vld [vmem:[#allocation3 + $0x198] sm:$0xff] }
  0x35   :  { %v169_v29 = vld [vmem:[#allocation3 + $0x80] sm:$0xff]  ;;  %v155_v35 = vld [vmem:[#allocation3 + $0x10] sm:$0xff]  ;;  %3522 = vmatpush.bf16.msra.mxu2 %v6116_v39 }
  0x36   :  { %v6739_v32 = vld [vmem:[#allocation6 + $0x6e0] sm:$0xf]  ;;  %v8159_v37 = vld [vmem:[#allocation6 + $0x7ec] sm:$0xf0]  ;;  %v8610_v48 = vpack.c.bf16 %v169_v29, %v153_v28  ;;  %3555 = vmatpush.bf16.msra.mxu3 %v6244_v43 }
  0x37   :  { %v6867_v36 = vld [vmem:[#allocation6 + $0x7e0] sm:$0xf]  ;;  %v171_v40 = vld [vmem:[#allocation3 + $0x90] sm:$0xff]  ;;  %v6740_v44 = vor.u32 %v8127_v33, %v6739_v32  ;;  %3490 = vmatmul.bf16.vlgmr.msra.gmra.mxu1 %v8612_v53 }
  0x38   :  { %v6483_v45 = vld [vmem:[#allocation6 + $0x4e0] sm:$0xf]  ;;  %v8063_v46 = vld [vmem:[#allocation6 + $0x4ec] sm:$0xf0]  ;;  %9610 = vst [vmem:[#allocation16_spill] sm:$0xff] %v8610_v48  ;;  %v6868_v49 = vor.u32 %v8159_v37, %v6867_v36  ;;  %v8614_v54 = vpack.c.bf16 %v171_v40, %v155_v35  ;;  %3457 = vmatmul.bf16.vlgmr.msra.gmra.mxu0 %v8610_v48  ;;  %v188_v36 = vld [vmem:[#allocation3 + $0x118] sm:$0xff] }
  0x39   :  { %v6611_v47 = vld [vmem:[#allocation6 + $0x5e0] sm:$0xf]  ;;  %v8095_v50 = vld [vmem:[#allocation6 + $0x5ec] sm:$0xf0]  ;;  %v6484_v58 = vor.u32 %v8063_v46, %v6483_v45  ;;  %3647 = vmatpush.bf16.msrb.mxu2 %v6740_v44  ;;  %3556 = vmatmul.bf16.vlgmr.msra.gmra.mxu3 %v8616_v57 }
  0x3a   :  { %v6723_v51 = vld [vmem:[#allocation6 + $0x6c0] sm:$0xf]  ;;  %v8123_v52 = vld [vmem:[#allocation6 + $0x6cc] sm:$0xf0]  ;;  %9612 = vst [vmem:[#allocation18_spill] sm:$0xff] %v8614_v54  ;;  %v6612_v59 = vor.u32 %v8095_v50, %v6611_v47  ;;  %3680 = vmatpush.bf16.msrb.mxu3 %v6868_v49  ;;  %3523 = vmatmul.bf16.vlgmr.msra.gmra.mxu2 %v8614_v54  ;;  %v8624_v47 = vpack.c.bf16 %v202_v31, %v186_v26 }
  0x3b   :  { %v6851_v55 = vld [vmem:[#allocation6 + $0x7c0] sm:$0xf]  ;;  %v8155_v56 = vld [vmem:[#allocation6 + $0x7cc] sm:$0xf0]  ;;  %v6724_v60 = vor.u32 %v8123_v52, %v6723_v51  ;;  %3581 = vmatpush.bf16.msrb.mxu0 %v6484_v58  ;;  %v8628_v50 = vpack.c.bf16 %v204_v38, %v188_v36 }
  0x3c   :  { %v6467_v61 = vld [vmem:[#allocation6 + $0x4c0] sm:$0xf]  ;;  %v8059_v62 = vld [vmem:[#allocation6 + $0x4cc] sm:$0xf0]  ;;  %v6852_v0 = vor.u32 %v8155_v56, %v6851_v55  ;;  %3614 = vmatpush.bf16.msrb.mxu1 %v6612_v59 }
  0x3d   :  { %v6595_v63 = vld [vmem:[#allocation6 + $0x5c0] sm:$0xf]  ;;  %v8091_v1 = vld [vmem:[#allocation6 + $0x5cc] sm:$0xf0]  ;;  %v6468_v6 = vor.u32 %v8059_v62, %v6467_v61  ;;  %3648 = vmatpush.bf16.msrb.mxu2 %v6724_v60 }
  0x3e   :  { %v6707_v2 = vld [vmem:[#allocation6 + $0x6a0] sm:$0xf]  ;;  %v8119_v3 = vld [vmem:[#allocation6 + $0x6ac] sm:$0xf0]  ;;  %v6596_v7 = vor.u32 %v8091_v1, %v6595_v63  ;;  %3681 = vmatpush.bf16.msrb.mxu3 %v6852_v0 }
  0x3f   :  { %v6835_v4 = vld [vmem:[#allocation6 + $0x7a0] sm:$0xf]  ;;  %v8151_v5 = vld [vmem:[#allocation6 + $0x7ac] sm:$0xf0]  ;;  %v6708_v8 = vor.u32 %v8119_v3, %v6707_v2  ;;  %3582 = vmatpush.bf16.msrb.mxu0 %v6468_v6 }
  0x40   :  { %v6451_v9 = vld [vmem:[#allocation6 + $0x4a0] sm:$0xf]  ;;  %v8055_v10 = vld [vmem:[#allocation6 + $0x4ac] sm:$0xf0]  ;;  %v6836_v12 = vor.u32 %v8151_v5, %v6835_v4  ;;  %3615 = vmatpush.bf16.msrb.mxu1 %v6596_v7 }
  0x41   :  { %v6579_v11 = vld [vmem:[#allocation6 + $0x5a0] sm:$0xf]  ;;  %v8087_v13 = vld [vmem:[#allocation6 + $0x5ac] sm:$0xf0]  ;;  %v6452_v18 = vor.u32 %v8055_v10, %v6451_v9  ;;  %3649 = vmatpush.bf16.msrb.mxu2 %v6708_v8 }
  0x42   :  { %v6691_v14 = vld [vmem:[#allocation6 + $0x680] sm:$0xf]  ;;  %v8115_v15 = vld [vmem:[#allocation6 + $0x68c] sm:$0xf0]  ;;  %v6580_v21 = vor.u32 %v8087_v13, %v6579_v11  ;;  %3682 = vmatpush.bf16.msrb.mxu3 %v6836_v12 }
  0x43   :  { %v6819_v16 = vld [vmem:[#allocation6 + $0x780] sm:$0xf]  ;;  %v8147_v17 = vld [vmem:[#allocation6 + $0x78c] sm:$0xf0]  ;;  %v6692_v22 = vor.u32 %v8115_v15, %v6691_v14  ;;  %3583 = vmatpush.bf16.msrb.mxu0 %v6452_v18  ;;  %v218_v15 = vld [vmem:[#allocation3 + $0x208] sm:$0xff] }
  0x44   :  { %v185_v19 = vld [vmem:[#allocation3 + $0x100] sm:$0xff]  ;;  %v8051_v24 = vld [vmem:[#allocation6 + $0x48c] sm:$0xf0]  ;;  %v6820_v27 = vor.u32 %v8147_v17, %v6819_v16  ;;  %3616 = vmatpush.bf16.msrb.mxu1 %v6580_v21  ;;  %v234_v16 = vld [vmem:[#allocation3 + $0x288] sm:$0xff] }
  0x45   :  { %v201_v20 = vld [vmem:[#allocation3 + $0x180] sm:$0xff]  ;;  %v8083_v28 = vld [vmem:[#allocation6 + $0x58c] sm:$0xf0]  ;;  %3650 = vmatpush.bf16.msrb.mxu2 %v6692_v22  ;;  %v8636_v22 = vpack.c.bf16 %v234_v16, %v218_v15 }
  0x46   :  { %v6435_v23 = vld [vmem:[#allocation6 + $0x480] sm:$0xf]  ;;  %v8111_v30 = vld [vmem:[#allocation6 + $0x66c] sm:$0xf0]  ;;  %v8622_v43 = vpack.c.bf16 %v201_v20, %v185_v19  ;;  %3683 = vmatpush.bf16.msrb.mxu3 %v6820_v27  ;;  %v220_v19 = vld [vmem:[#allocation3 + $0x218] sm:$0xff] }
  0x47   :  { %v6563_v25 = vld [vmem:[#allocation6 + $0x580] sm:$0xf]  ;;  %v8143_v33 = vld [vmem:[#allocation6 + $0x76c] sm:$0xf0]  ;;  %v6436_v37 = vor.u32 %v8051_v24, %v6435_v23  ;;  %3495 = vmatmul.bf16.gmra.mxu1 %v8624_v47  ;;  %v236_v20 = vld [vmem:[#allocation3 + $0x298] sm:$0xff] }
  0x48   :  { %v6675_v29 = vld [vmem:[#allocation6 + $0x660] sm:$0xf]  ;;  %v187_v34 = vld [vmem:[#allocation3 + $0x110] sm:$0xff]  ;;  %v6564_v39 = vor.u32 %v8083_v28, %v6563_v25  ;;  %3462 = vmatmul.bf16.gmra.mxu0 %v8622_v43  ;;  %v8640_v24 = vpack.c.bf16 %v236_v20, %v220_v19 }
  0x49   :  { %v6803_v32 = vld [vmem:[#allocation6 + $0x760] sm:$0xf]  ;;  %v203_v35 = vld [vmem:[#allocation3 + $0x190] sm:$0xff]  ;;  %v6676_v40 = vor.u32 %v8111_v30, %v6675_v29  ;;  %3584 = vmatpush.bf16.msrb.mxu0 %v6436_v37  ;;  %3561 = vmatmul.bf16.gmra.mxu3 %v8628_v50 }
  0x4a   :  { %v6419_v41 = vld [vmem:[#allocation6 + $0x460] sm:$0xf]  ;;  %v8047_v42 = vld [vmem:[#allocation6 + $0x46c] sm:$0xf0]  ;;  %v6804_v44 = vor.u32 %v8143_v33, %v6803_v32  ;;  %v8626_v49 = vpack.c.bf16 %v203_v35, %v187_v34  ;;  %3617 = vmatpush.bf16.msrb.mxu1 %v6564_v39 }
  0x4b   :  { %v6547_v45 = vld [vmem:[#allocation6 + $0x560] sm:$0xf]  ;;  %v8079_v46 = vld [vmem:[#allocation6 + $0x56c] sm:$0xf0]  ;;  %v6420_v51 = vor.u32 %v8047_v42, %v6419_v41  ;;  %3651 = vmatpush.bf16.msrb.mxu2 %v6676_v40  ;;  %v250_v42 = vld [vmem:[#allocation3 + $0x308] sm:$0xff] }
  0x4c   :  { %v6548_v52 = vor.u32 %v8079_v46, %v6547_v45  ;;  %3684 = vmatpush.bf16.msrb.mxu3 %v6804_v44  ;;  %3528 = vmatmul.bf16.gmra.mxu2 %v8626_v49  ;;  %v6659_v55 = vld [vmem:[#allocation6 + $0x640] sm:$0xf]  ;;  %v8107_v56 = vld [vmem:[#allocation6 + $0x64c] sm:$0xf0]  ;;  %v266_v44 = vld [vmem:[#allocation3 + $0x388] sm:$0xff] }
  0x4d   :  { %3585 = vmatpush.bf16.msrb.mxu0 %v6420_v51  ;;  %v6403_v58 = vld [vmem:[#allocation6 + $0x440] sm:$0xf]  ;;  %v6660_v59 = vor.u32 %v8107_v56, %v6659_v55  ;;  %v8043_v60 = vld [vmem:[#allocation6 + $0x44c] sm:$0xf0]  ;;  %v252_v51 = vld [vmem:[#allocation3 + $0x318] sm:$0xff]  ;;  %v8648_v56 = vpack.c.bf16 %v266_v44, %v250_v42 }
  0x4e   :  { %3618 = vmatpush.bf16.msrb.mxu1 %v6548_v52  ;;  %v6787_v61 = vld [vmem:[#allocation6 + $0x740] sm:$0xf]  ;;  %v8139_v62 = vld [vmem:[#allocation6 + $0x74c] sm:$0xf0]  ;;  %v6404_v63 = vor.u32 %v8043_v60, %v6403_v58  ;;  %v268_v52 = vld [vmem:[#allocation3 + $0x398] sm:$0xff] }
  0x4f   :  { %v6788_v0 = vor.u32 %v8139_v62, %v6787_v61  ;;  %v6531_v1 = vld [vmem:[#allocation6 + $0x540] sm:$0xf]  ;;  %v8075_v2 = vld [vmem:[#allocation6 + $0x54c] sm:$0xf0]  ;;  %3652 = vmatpush.bf16.msrb.mxu2 %v6660_v59  ;;  %v8652_v59 = vpack.c.bf16 %v268_v52, %v252_v51 }
  0x50   :  { %v6643_v3 = vld [vmem:[#allocation6 + $0x620] sm:$0xf]  ;;  %v6532_v4 = vor.u32 %v8075_v2, %v6531_v1  ;;  %v8103_v5 = vld [vmem:[#allocation6 + $0x62c] sm:$0xf0] }
  0x51   :  { %v6387_v6 = vld [vmem:[#allocation6 + $0x420] sm:$0xf]  ;;  %v8039_v7 = vld [vmem:[#allocation6 + $0x42c] sm:$0xf0]  ;;  %3586 = vmatpush.bf16.msrb.mxu0 %v6404_v63  ;;  %3685 = vmatpush.bf16.msrb.mxu3 %v6788_v0  ;;  %v6644_v8 = vor.u32 %v8103_v5, %v6643_v3  ;;  %9615 = vst [vmem:[#allocation21_spill] sm:$0xff] %v8652_v59 }
  0x52   :  { %v6388_v9 = vor.u32 %v8039_v7, %v6387_v6  ;;  %v6771_v10 = vld [vmem:[#allocation6 + $0x720] sm:$0xf]  ;;  %v8135_v11 = vld [vmem:[#allocation6 + $0x72c] sm:$0xf0]  ;;  %3619 = vmatpush.bf16.msrb.mxu1 %v6532_v4 }
  0x53   :  { %v6772_v12 = vor.u32 %v8135_v11, %v6771_v10  ;;  %v217_v13 = vld [vmem:[#allocation3 + $0x200] sm:$0xff]  ;;  %3653 = vmatpush.bf16.msrb.mxu2 %v6644_v8  ;;  %v219_v17 = vld [vmem:[#allocation3 + $0x210] sm:$0xff] }
  0x54   :  { %v233_v14 = vld [vmem:[#allocation3 + $0x280] sm:$0xff]  ;;  %v235_v18 = vld [vmem:[#allocation3 + $0x290] sm:$0xff] }
  0x55   :  { %3587 = vmatpush.bf16.msrb.mxu0 %v6388_v9  ;;  %3686 = vmatpush.bf16.msrb.mxu3 %v6772_v12  ;;  %v8634_v21 = vpack.c.bf16 %v233_v14, %v217_v13  ;;  %v8638_v23 = vpack.c.bf16 %v235_v18, %v219_v17  ;;  %v6515_v25 = vld [vmem:[#allocation6 + $0x520] sm:$0xf]  ;;  %v8071_v26 = vld [vmem:[#allocation6 + $0x52c] sm:$0xf0] }
  0x56   :  { %v6627_v27 = vld [vmem:[#allocation6 + $0x600] sm:$0xf]  ;;  %v6516_v28 = vor.u32 %v8071_v26, %v6515_v25  ;;  %v8099_v29 = vld [vmem:[#allocation6 + $0x60c] sm:$0xf0]  ;;  %v282_v25 = vld [vmem:[#allocation3 + $0x408] sm:$0xff] }
  0x57   :  { %3500 = vmatmul.bf16.gmra.mxu1 %v8636_v22  ;;  %v6371_v30 = vld [vmem:[#allocation6 + $0x400] sm:$0xf]  ;;  %v8035_v31 = vld [vmem:[#allocation6 + $0x40c] sm:$0xf0]  ;;  %v6628_v32 = vor.u32 %v8099_v29, %v6627_v27  ;;  %v284_v27 = vld [vmem:[#allocation3 + $0x418] sm:$0xff]  ;;  %v8660_v29 = vpack.c.bf16 %v282_v25, %v282_v25 }
  0x58   :  { %3467 = vmatmul.bf16.gmra.mxu0 %v8634_v21  ;;  %v6372_v33 = vor.u32 %v8035_v31, %v6371_v30  ;;  %v6755_v34 = vld [vmem:[#allocation6 + $0x700] sm:$0xf]  ;;  %v8131_v35 = vld [vmem:[#allocation6 + $0x70c] sm:$0xf0]  ;;  %3620 = vmatpush.bf16.msrb.mxu1 %v6516_v28  ;;  %v8664_v31 = vpack.c.bf16 %v284_v27, %v284_v27 }
  0x59   :  { %3566 = vmatmul.bf16.gmra.mxu3 %v8640_v24  ;;  %v6499_v36 = vld [vmem:[#allocation6 + $0x500] sm:$0xf]  ;;  %v6756_v37 = vor.u32 %v8131_v35, %v6755_v34  ;;  %v8067_v38 = vld [vmem:[#allocation6 + $0x50c] sm:$0xf0]  ;;  %3654 = vmatpush.bf16.msrb.mxu2 %v6628_v32 }
  0x5a   :  { %3588 = vmatpush.bf16.msrb.mxu0 %v6372_v33  ;;  %v6500_v39 = vor.u32 %v8067_v38, %v6499_v36  ;;  %v249_v40 = vld [vmem:[#allocation3 + $0x300] sm:$0xff]  ;;  %v251_v45 = vld [vmem:[#allocation3 + $0x310] sm:$0xff] }
  0x5b   :  { %3687 = vmatpush.bf16.msrb.mxu3 %v6756_v37  ;;  %v265_v41 = vld [vmem:[#allocation3 + $0x380] sm:$0xff]  ;;  %v267_v46 = vld [vmem:[#allocation3 + $0x390] sm:$0xff] }
  0x5c   :  { %3533 = vmatmul.bf16.gmra.mxu2 %v8638_v23  ;;  %3621 = vmatpush.bf16.msrb.mxu1 %v6500_v39  ;;  %v8646_v55 = vpack.c.bf16 %v265_v41, %v249_v40  ;;  %v8650_v58 = vpack.c.bf16 %v267_v46, %v251_v45  ;;  %v7251_v60 = vld [vmem:[#allocation6 + $0xae0] sm:$0xf]  ;;  %v8255_v61 = vld [vmem:[#allocation6 + $0xaec] sm:$0xf0] }
  0x5d   :  { %v6995_v62 = vld [vmem:[#allocation6 + $0x8e0] sm:$0xf]  ;;  %v7252_v63 = vor.u32 %v8255_v61, %v7251_v60  ;;  %v8191_v0 = vld [vmem:[#allocation6 + $0x8ec] sm:$0xf0]  ;;  %v158_v61 = vld [vmem:[#allocation3 + $0x28] sm:$0xff] }
  0x5e   :  { %9614 = vst [vmem:[#allocation20_spill] sm:$0xff] %v8650_v58  ;;  %v7379_v1 = vld [vmem:[#allocation6 + $0xbe0] sm:$0xf]  ;;  %v8287_v2 = vld [vmem:[#allocation6 + $0xbec] sm:$0xf0]  ;;  %v6996_v3 = vor.u32 %v8191_v0, %v6995_v62  ;;  %v174_v62 = vld [vmem:[#allocation3 + $0xa8] sm:$0xff] }
  0x5f   :  { %v7380_v4 = vor.u32 %v8287_v2, %v7379_v1  ;;  %v7123_v5 = vld [vmem:[#allocation6 + $0x9e0] sm:$0xf]  ;;  %v8223_v6 = vld [vmem:[#allocation6 + $0x9ec] sm:$0xf0]  ;;  %3779 = vmatpush.bf16.msra.mxu2 %v7252_v63  ;;  %v160_v1 = vld [vmem:[#allocation3 + $0x38] sm:$0xff] }
  0x60   :  { %v7235_v7 = vld [vmem:[#allocation6 + $0xac0] sm:$0xf]  ;;  %v7124_v8 = vor.u32 %v8223_v6, %v7123_v5  ;;  %v8251_v9 = vld [vmem:[#allocation6 + $0xacc] sm:$0xf0]  ;;  %3713 = vmatpush.bf16.msra.mxu0 %v6996_v3  ;;  %v176_v2 = vld [vmem:[#allocation3 + $0xb8] sm:$0xff] }
  0x61   :  { %v6979_v10 = vld [vmem:[#allocation6 + $0x8c0] sm:$0xf]  ;;  %v8187_v11 = vld [vmem:[#allocation6 + $0x8cc] sm:$0xf0]  ;;  %3812 = vmatpush.bf16.msra.mxu3 %v7380_v4  ;;  %v7236_v12 = vor.u32 %v8251_v9, %v7235_v7  ;;  %v8672_v4 = vpack.c.bf16 %v174_v62, %v158_v61  ;;  %v8676_v6 = vpack.c.bf16 %v176_v2, %v160_v1 }
  0x62   :  { %v6980_v13 = vor.u32 %v8187_v11, %v6979_v10  ;;  %v7363_v14 = vld [vmem:[#allocation6 + $0xbc0] sm:$0xf]  ;;  %v8283_v15 = vld [vmem:[#allocation6 + $0xbcc] sm:$0xf0]  ;;  %3746 = vmatpush.bf16.msra.mxu1 %v7124_v8 }
  0x63   :  { %v7107_v16 = vld [vmem:[#allocation6 + $0x9c0] sm:$0xf]  ;;  %v7364_v17 = vor.u32 %v8283_v15, %v7363_v14  ;;  %v8219_v18 = vld [vmem:[#allocation6 + $0x9cc] sm:$0xf0]  ;;  %3780 = vmatpush.bf16.msra.mxu2 %v7236_v12 }
  0x64   :  { %v7108_v19 = vor.u32 %v8219_v18, %v7107_v16  ;;  %v281_v20 = vld [vmem:[#allocation3 + $0x400] sm:$0xff]  ;;  %v283_v26 = vld [vmem:[#allocation3 + $0x410] sm:$0xff]  ;;  %3714 = vmatpush.bf16.msra.mxu0 %v6980_v13 }
  0x65   :  { %3813 = vmatpush.bf16.msra.mxu3 %v7364_v17  ;;  %v8658_v28 = vpack.c.bf16 %v281_v20, %v281_v20  ;;  %v8662_v30 = vpack.c.bf16 %v283_v26, %v283_v26  ;;  %v7219_v32 = vld [vmem:[#allocation6 + $0xaa0] sm:$0xf]  ;;  %v8247_v33 = vld [vmem:[#allocation6 + $0xaac] sm:$0xf0] }
  0x66   :  { %3747 = vmatpush.bf16.msra.mxu1 %v7108_v19  ;;  %v6963_v34 = vld [vmem:[#allocation6 + $0x8a0] sm:$0xf]  ;;  %v7220_v35 = vor.u32 %v8247_v33, %v7219_v32  ;;  %v8183_v36 = vld [vmem:[#allocation6 + $0x8ac] sm:$0xf0] }
  0x67   :  { %3505 = vmatmul.bf16.gmra.mxu1 %v8648_v56  ;;  %v7347_v37 = vld [vmem:[#allocation6 + $0xba0] sm:$0xf]  ;;  %v8279_v38 = vld [vmem:[#allocation6 + $0xbac] sm:$0xf0]  ;;  %v6964_v39 = vor.u32 %v8183_v36, %v6963_v34 }
  0x68   :  { %3472 = vmatmul.bf16.gmra.mxu0 %v8646_v55  ;;  %v7348_v40 = vor.u32 %v8279_v38, %v7347_v37  ;;  %v7091_v41 = vld [vmem:[#allocation6 + $0x9a0] sm:$0xf]  ;;  %v8215_v42 = vld [vmem:[#allocation6 + $0x9ac] sm:$0xf0]  ;;  %3781 = vmatpush.bf16.msra.mxu2 %v7220_v35  ;;  %v190_v38 = vld [vmem:[#allocation3 + $0x128] sm:$0xff] }
  0x69   :  { %3571 = vmatmul.bf16.gmra.mxu3 %v8652_v59  ;;  %v7203_v44 = vld [vmem:[#allocation6 + $0xa80] sm:$0xf]  ;;  %v7092_v45 = vor.u32 %v8215_v42, %v7091_v41  ;;  %v8243_v46 = vld [vmem:[#allocation6 + $0xa8c] sm:$0xf0]  ;;  %3715 = vmatpush.bf16.msra.mxu0 %v6964_v39  ;;  %v206_v39 = vld [vmem:[#allocation3 + $0x1a8] sm:$0xff] }
  0x6a   :  { %3814 = vmatpush.bf16.msra.mxu3 %v7348_v40  ;;  %v7204_v51 = vor.u32 %v8243_v46, %v7203_v44  ;;  %v157_v52 = vld [vmem:[#allocation3 + $0x20] sm:$0xff]  ;;  %v159_v63 = vld [vmem:[#allocation3 + $0x30] sm:$0xff]  ;;  %v192_v42 = vld [vmem:[#allocation3 + $0x138] sm:$0xff]  ;;  %v8684_v46 = vpack.c.bf16 %v206_v39, %v190_v38 }
  0x6b   :  { %3748 = vmatpush.bf16.msra.mxu1 %v7092_v45  ;;  %v173_v60 = vld [vmem:[#allocation3 + $0xa0] sm:$0xff]  ;;  %v175_v0 = vld [vmem:[#allocation3 + $0xb0] sm:$0xff]  ;;  %v208_v44 = vld [vmem:[#allocation3 + $0x1b8] sm:$0xff] }
  0x6c   :  { %3538 = vmatmul.bf16.gmra.mxu2 %v8650_v58  ;;  %v8670_v3 = vpack.c.bf16 %v173_v60, %v157_v52  ;;  %v8674_v5 = vpack.c.bf16 %v175_v0, %v159_v63  ;;  %v6947_v7 = vld [vmem:[#allocation6 + $0x880] sm:$0xf]  ;;  %v8179_v8 = vld [vmem:[#allocation6 + $0x88c] sm:$0xf0]  ;;  %v8688_v52 = vpack.c.bf16 %v208_v44, %v192_v42 }
  0x6d   :  { %3782 = vmatpush.bf16.msra.mxu2 %v7204_v51  ;;  %v7331_v9 = vld [vmem:[#allocation6 + $0xb80] sm:$0xf]  ;;  %v6948_v10 = vor.u32 %v8179_v8, %v6947_v7  ;;  %v8275_v11 = vld [vmem:[#allocation6 + $0xb8c] sm:$0xf0] }
  0x6e   :  { %v7075_v12 = vld [vmem:[#allocation6 + $0x980] sm:$0xf]  ;;  %v8211_v13 = vld [vmem:[#allocation6 + $0x98c] sm:$0xf0]  ;;  %v7332_v14 = vor.u32 %v8275_v11, %v7331_v9 }
  0x6f   :  { %v7076_v15 = vor.u32 %v8211_v13, %v7075_v12  ;;  %v7187_v16 = vld [vmem:[#allocation6 + $0xa60] sm:$0xf]  ;;  %v8239_v17 = vld [vmem:[#allocation6 + $0xa6c] sm:$0xf0]  ;;  %3716 = vmatpush.bf16.msra.mxu0 %v6948_v10  ;;  %v222_v12 = vld [vmem:[#allocation3 + $0x228] sm:$0xff] }
  0x70   :  { %v6931_v18 = vld [vmem:[#allocation6 + $0x860] sm:$0xf]  ;;  %v7188_v19 = vor.u32 %v8239_v17, %v7187_v16  ;;  %v8175_v20 = vld [vmem:[#allocation6 + $0x86c] sm:$0xf0]  ;;  %3815 = vmatpush.bf16.msra.mxu3 %v7332_v14 }
  0x71   :  { %v7315_v25 = vld [vmem:[#allocation6 + $0xb60] sm:$0xf]  ;;  %v8271_v26 = vld [vmem:[#allocation6 + $0xb6c] sm:$0xf0]  ;;  %3749 = vmatpush.bf16.msra.mxu1 %v7076_v15  ;;  %v6932_v27 = vor.u32 %v8175_v20, %v6931_v18  ;;  %v238_v15 = vld [vmem:[#allocation3 + $0x2a8] sm:$0xff] }
  0x72   :  { %v7316_v32 = vor.u32 %v8271_v26, %v7315_v25  ;;  %v7059_v33 = vld [vmem:[#allocation6 + $0x960] sm:$0xf]  ;;  %v8207_v34 = vld [vmem:[#allocation6 + $0x96c] sm:$0xf0]  ;;  %3783 = vmatpush.bf16.msra.mxu2 %v7188_v19  ;;  %v224_v18 = vld [vmem:[#allocation3 + $0x238] sm:$0xff]  ;;  %v8696_v25 = vpack.c.bf16 %v238_v15, %v222_v12 }
  0x73   :  { %v7060_v35 = vor.u32 %v8207_v34, %v7059_v33  ;;  %v189_v36 = vld [vmem:[#allocation3 + $0x120] sm:$0xff]  ;;  %3717 = vmatpush.bf16.msra.mxu0 %v6932_v27  ;;  %v191_v40 = vld [vmem:[#allocation3 + $0x130] sm:$0xff]  ;;  %v240_v19 = vld [vmem:[#allocation3 + $0x2b8] sm:$0xff] }
  0x74   :  { %v205_v37 = vld [vmem:[#allocation3 + $0x1a0] sm:$0xff]  ;;  %v207_v41 = vld [vmem:[#allocation3 + $0x1b0] sm:$0xff]  ;;  %3816 = vmatpush.bf16.msra.mxu3 %v7316_v32  ;;  %v8700_v27 = vpack.c.bf16 %v240_v19, %v224_v18  ;;  %v256_v18 = vld [vmem:[#allocation3 + $0x338] sm:$0xff] }
  0x75   :  { %3750 = vmatpush.bf16.msra.mxu1 %v7060_v35  ;;  %v8682_v45 = vpack.c.bf16 %v205_v37, %v189_v36  ;;  %v8686_v51 = vpack.c.bf16 %v207_v41, %v191_v40  ;;  %v7171_v60 = vld [vmem:[#allocation6 + $0xa40] sm:$0xf]  ;;  %v8235_v61 = vld [vmem:[#allocation6 + $0xa4c] sm:$0xf0]  ;;  %v272_v19 = vld [vmem:[#allocation3 + $0x3b8] sm:$0xff] }
  0x76   :  { %v7172_v62 = vor.u32 %v8235_v61, %v7171_v60  ;;  %v6915_v63 = vld [vmem:[#allocation6 + $0x840] sm:$0xf]  ;;  %v8171_v0 = vld [vmem:[#allocation6 + $0x84c] sm:$0xf0]  ;;  %9616 = vst [vmem:[#allocation22_spill] sm:$0xff] %v8700_v27 }
  0x77   :  { %3510 = vmatmul.bf16.gmra.mxu1 %v8660_v29  ;;  %v7299_v1 = vld [vmem:[#allocation6 + $0xb40] sm:$0xf]  ;;  %v6916_v2 = vor.u32 %v8171_v0, %v6915_v63  ;;  %v8267_v7 = vld [vmem:[#allocation6 + $0xb4c] sm:$0xf0] }
  0x78   :  { %3477 = vmatmul.bf16.gmra.mxu0 %v8658_v28  ;;  %3784 = vmatpush.bf16.msra.mxu2 %v7172_v62  ;;  %v7043_v8 = vld [vmem:[#allocation6 + $0x940] sm:$0xf]  ;;  %v8203_v9 = vld [vmem:[#allocation6 + $0x94c] sm:$0xf0]  ;;  %v7300_v13 = vor.u32 %v8267_v7, %v7299_v1 }
  0x79   :  { %3576 = vmatmul.bf16.gmra.mxu3 %v8664_v31  ;;  %v221_v10 = vld [vmem:[#allocation3 + $0x220] sm:$0xff]  ;;  %v7044_v14 = vor.u32 %v8203_v9, %v7043_v8  ;;  %v223_v16 = vld [vmem:[#allocation3 + $0x230] sm:$0xff]  ;;  %3718 = vmatpush.bf16.msra.mxu0 %v6916_v2  ;;  %v254_v9 = vld [vmem:[#allocation3 + $0x328] sm:$0xff] }
  0x7a   :  { %v237_v11 = vld [vmem:[#allocation3 + $0x2a0] sm:$0xff]  ;;  %v239_v17 = vld [vmem:[#allocation3 + $0x2b0] sm:$0xff]  ;;  %3817 = vmatpush.bf16.msra.mxu3 %v7300_v13 }
  0x7b   :  { %3751 = vmatpush.bf16.msra.mxu1 %v7044_v14  ;;  %v8694_v20 = vpack.c.bf16 %v237_v11, %v221_v10  ;;  %v8698_v26 = vpack.c.bf16 %v239_v17, %v223_v16  ;;  %v7155_v32 = vld [vmem:[#allocation6 + $0xa20] sm:$0xf]  ;;  %v8231_v33 = vld [vmem:[#allocation6 + $0xa2c] sm:$0xf0]  ;;  %v270_v14 = vld [vmem:[#allocation3 + $0x3a8] sm:$0xff] }
  0x7c   :  { %3543 = vmatmul.bf16.gmra.mxu2 %v8662_v30  ;;  %v6899_v34 = vld [vmem:[#allocation6 + $0x820] sm:$0xf]  ;;  %v7156_v35 = vor.u32 %v8231_v33, %v7155_v32  ;;  %v8167_v36 = vld [vmem:[#allocation6 + $0x82c] sm:$0xf0] }
  0x7d   :  { %v7283_v37 = vld [vmem:[#allocation6 + $0xb20] sm:$0xf]  ;;  %v8263_v38 = vld [vmem:[#allocation6 + $0xb2c] sm:$0xf0]  ;;  %v6900_v39 = vor.u32 %v8167_v36, %v6899_v34  ;;  %v8708_v34 = vpack.c.bf16 %v270_v14, %v254_v9 }
  0x7e   :  { %v7284_v40 = vor.u32 %v8263_v38, %v7283_v37  ;;  %3785 = vmatpush.bf16.msra.mxu2 %v7156_v35  ;;  %v7027_v41 = vld [vmem:[#allocation6 + $0x920] sm:$0xf]  ;;  %v8199_v42 = vld [vmem:[#allocation6 + $0x92c] sm:$0xf0]  ;;  %v8712_v37 = vpack.c.bf16 %v272_v19, %v256_v18  ;;  %v286_v18 = vld [vmem:[#allocation3 + $0x428] sm:$0xff] }
  0x7f   :  { %3719 = vmatpush.bf16.msra.mxu0 %v6900_v39  ;;  %v7028_v44 = vor.u32 %v8199_v42, %v7027_v41  ;;  %v253_v60 = vld [vmem:[#allocation3 + $0x320] sm:$0xff]  ;;  %v8227_v63 = vld [vmem:[#allocation6 + $0xa0c] sm:$0xf0]  ;;  %9618 = vst [vmem:[#allocation24_spill] sm:$0xff] %v8708_v34 }
  0x80   :  { %3818 = vmatpush.bf16.msra.mxu3 %v7284_v40  ;;  %v269_v61 = vld [vmem:[#allocation3 + $0x3a0] sm:$0xff]  ;;  %v8163_v2 = vld [vmem:[#allocation6 + $0x80c] sm:$0xf0]  ;;  %9620 = vst [vmem:[#allocation26_spill] sm:$0xff] %v8712_v37 }
  0x81   :  { %3752 = vmatpush.bf16.msra.mxu1 %v7028_v44  ;;  %v7139_v62 = vld [vmem:[#allocation6 + $0xa00] sm:$0xf]  ;;  %v8259_v8 = vld [vmem:[#allocation6 + $0xb0c] sm:$0xf0]  ;;  %v8706_v32 = vpack.c.bf16 %v269_v61, %v253_v60 }
  0x82   :  { %v6883_v0 = vld [vmem:[#allocation6 + $0x800] sm:$0xf]  ;;  %v7140_v1 = vor.u32 %v8227_v63, %v7139_v62  ;;  %v8195_v13 = vld [vmem:[#allocation6 + $0x90c] sm:$0xf0] }
  0x83   :  { %v7267_v7 = vld [vmem:[#allocation6 + $0xb00] sm:$0xf]  ;;  %v6884_v10 = vor.u32 %v8163_v2, %v6883_v0  ;;  %v255_v15 = vld [vmem:[#allocation3 + $0x330] sm:$0xff]  ;;  %9617 = vst [vmem:[#allocation23_spill] sm:$0xff] %v8706_v32 }
  0x84   :  { %v7268_v11 = vor.u32 %v8259_v8, %v7267_v7  ;;  %v7011_v12 = vld [vmem:[#allocation6 + $0x900] sm:$0xf]  ;;  %v271_v16 = vld [vmem:[#allocation3 + $0x3b0] sm:$0xff]  ;;  %3786 = vmatpush.bf16.msra.mxu2 %v7140_v1 }
  0x85   :  { %v7012_v17 = vor.u32 %v8195_v13, %v7011_v12  ;;  %3720 = vmatpush.bf16.msra.mxu0 %v6884_v10  ;;  %v8710_v35 = vpack.c.bf16 %v271_v16, %v255_v15  ;;  %v7763_v39 = vld [vmem:[#allocation6 + $0xee0] sm:$0xf]  ;;  %v8383_v40 = vld [vmem:[#allocation6 + $0xeec] sm:$0xf0] }
  0x86   :  { %3819 = vmatpush.bf16.msra.mxu3 %v7268_v11  ;;  %v7507_v41 = vld [vmem:[#allocation6 + $0xce0] sm:$0xf]  ;;  %v7764_v42 = vor.u32 %v8383_v40, %v7763_v39  ;;  %v8319_v44 = vld [vmem:[#allocation6 + $0xcec] sm:$0xf0] }
  0x87   :  { %3622 = vmatmul.bf16.vlgmr.msrb.gmra.mxu1 %v8672_v4  ;;  %9619 = vst [vmem:[#allocation25_spill] sm:$0xff] %v8710_v35  ;;  %v7891_v60 = vld [vmem:[#allocation6 + $0xfe0] sm:$0xf]  ;;  %v8415_v61 = vld [vmem:[#allocation6 + $0xfec] sm:$0xf0]  ;;  %v7508_v63 = vor.u32 %v8319_v44, %v7507_v41 }
  0x88   :  { %3589 = vmatmul.bf16.vlgmr.msrb.gmra.mxu0 %v8670_v3  ;;  %3753 = vmatpush.bf16.msra.mxu1 %v7012_v17  ;;  %v7892_v0 = vor.u32 %v8415_v61, %v7891_v60  ;;  %v7635_v11 = vld [vmem:[#allocation6 + $0xde0] sm:$0xf]  ;;  %v8351_v12 = vld [vmem:[#allocation6 + $0xdec] sm:$0xf0] }
  0x89   :  { %3688 = vmatmul.bf16.vlgmr.msrb.gmra.mxu3 %v8676_v6  ;;  %3845 = vmatpush.bf16.msrb.mxu0 %v7508_v63  ;;  %v7747_v13 = vld [vmem:[#allocation6 + $0xec0] sm:$0xf]  ;;  %v7636_v14 = vor.u32 %v8351_v12, %v7635_v11  ;;  %v8379_v15 = vld [vmem:[#allocation6 + $0xecc] sm:$0xf0] }
  0x8a   :  { %3944 = vmatpush.bf16.msrb.mxu3 %v7892_v0  ;;  %v285_v16 = vld [vmem:[#allocation3 + $0x420] sm:$0xff]  ;;  %v7748_v17 = vor.u32 %v8379_v15, %v7747_v13  ;;  %v287_v19 = vld [vmem:[#allocation3 + $0x430] sm:$0xff] }
  0x8b   :  { %v8724_v44 = vpack.c.bf16 %v287_v19, %v287_v19  ;;  %v7491_v0 = vld [vmem:[#allocation6 + $0xcc0] sm:$0xf]  ;;  %v8347_v11 = vld [vmem:[#allocation6 + $0xdcc] sm:$0xf0] }
  0x8c   :  { %3655 = vmatmul.bf16.vlgmr.msrb.gmra.mxu2 %v8674_v5  ;;  %3878 = vmatpush.bf16.msrb.mxu1 %v7636_v14 }
  0x8d   :  { %3911 = vmatpush.bf16.msrb.mxu2 %v7764_v42  ;;  %v8722_v42 = vpack.c.bf16 %v286_v18, %v286_v18  ;;  %9623 = vst [vmem:[#allocation29_spill] sm:$0xff] %v8724_v44 }
  0x8f   :  { %9622 = vst [vmem:[#allocation28_spill] sm:$0xff] %v8722_v42 }
  0x91   :  { %3912 = vmatpush.bf16.msrb.mxu2 %v7748_v17 }
  0x97   :  { %3627 = vmatmul.bf16.gmra.mxu1 %v8684_v46 }
  0x98   :  { %3594 = vmatmul.bf16.gmra.mxu0 %v8682_v45 }
  0x99   :  { %3693 = vmatmul.bf16.gmra.mxu3 %v8688_v52 }
  0x9c   :  { %3660 = vmatmul.bf16.gmra.mxu2 %v8686_v51 }
  0xa7   :  { %3632 = vmatmul.bf16.gmra.mxu1 %v8696_v25 }
  0xa8   :  { %3599 = vmatmul.bf16.gmra.mxu0 %v8694_v20 }
  0xa9   :  { %3698 = vmatmul.bf16.gmra.mxu3 %v8700_v27 }
  0xac   :  { %3665 = vmatmul.bf16.gmra.mxu2 %v8698_v26 }
  0xb4   :  { %v3491_v36 = vpop.f32.mrf.mxu1 }
  0xb5   :  { %v3458_v33 = vpop.f32.mrf.mxu0 }
  0xb6   :  { %v3492_v38 = vadd.f32 %v3491_v36, %v3458_v33  ;;  %v288_v33 = vld [vmem:[#allocation3 + $0x438] sm:$0xff] }
  0xb7   :  { %3637 = vmatmul.bf16.gmra.mxu1 %v8708_v34  ;;  %v8726_v61 = vpack.c.bf16 %v288_v33, %v288_v33  ;;  %v8359_v34 = vld [vmem:[#allocation6 + $0xe2c] sm:$0xf0] }
  0xb8   :  { %3604 = vmatmul.bf16.gmra.mxu0 %v8706_v32 }
  0xb9   :  { %3703 = vmatmul.bf16.gmra.mxu3 %v8712_v37  ;;  %9624 = vst [vmem:[#allocation30_spill] sm:$0xff] %v8726_v61 }
  0xbc   :  { %3670 = vmatmul.bf16.gmra.mxu2 %v8710_v35  ;;  %v3557_v2 = vpop.f32.mrf.mxu3  ;;  %v3493_v8 = vpop.f32.mrf.mxu1 }
  0xbd   :  { %v3524_v62 = vpop.f32.mrf.mxu2  ;;  %v3460_v7 = vpop.f32.mrf.mxu0 }
  0xbe   :  { %v3525_v1 = vadd.f32 %v3524_v62, %v3492_v38  ;;  %v3494_v10 = vadd.f32 %v3493_v8, %v3460_v7  ;;  %v8720_v38 = vpack.c.bf16 %v285_v16, %v285_v16  ;;  %v8411_v8 = vld [vmem:[#allocation6 + $0xfcc] sm:$0xf0] }
  0xc0   :  { %v8718_v9 = vadd.f32 %v3557_v2, %v3525_v1  ;;  %9621 = vst [vmem:[#allocation27_spill] sm:$0xff] %v8720_v38  ;;  %v8315_v1 = vld [vmem:[#allocation6 + $0xccc] sm:$0xf0]  ;;  %v7875_v2 = vld [vmem:[#allocation6 + $0xfc0] sm:$0xf] }
  0xc1   :  { %v7492_v7 = vor.u32 %v8315_v1, %v7491_v0  ;;  %v7876_v12 = vor.u32 %v8411_v8, %v7875_v2  ;;  %v8311_v1 = vld [vmem:[#allocation6 + $0xcac] sm:$0xf0]  ;;  %v7859_v2 = vld [vmem:[#allocation6 + $0xfa0] sm:$0xf] }
  0xc2   :  { %v8407_v8 = vld [vmem:[#allocation6 + $0xfac] sm:$0xf0] }
  0xc3   :  { %3846 = vmatpush.bf16.msrb.mxu0 %v7492_v7  ;;  %3945 = vmatpush.bf16.msrb.mxu3 %v7876_v12  ;;  %v162_v7 = vld [vmem:[#allocation3 + $0x48] sm:$0xff]  ;;  %v7603_v12 = vld [vmem:[#allocation6 + $0xda0] sm:$0xf] }
  0xc4   :  { %v3559_v40 = vpop.f32.mrf.mxu3  ;;  %v3496_v60 = vpop.f32.mrf.mxu1 }
  0xc5   :  { %v3526_v36 = vpop.f32.mrf.mxu2  ;;  %v3463_v41 = vpop.f32.mrf.mxu0 }
  0xc6   :  { %v3527_v39 = vadd.f32 %v3526_v36, %v3494_v10  ;;  %v3497_v63 = vadd.f32 %v3496_v60, %v3463_v41  ;;  %v7619_v10 = vld [vmem:[#allocation6 + $0xdc0] sm:$0xf]  ;;  %v8375_v41 = vld [vmem:[#allocation6 + $0xeac] sm:$0xf0] }
  0xc7   :  { %3642 = vmatmul.bf16.gmra.mxu1 %v8722_v42  ;;  %v7620_v13 = vor.u32 %v8347_v11, %v7619_v10  ;;  %v161_v36 = vld [vmem:[#allocation3 + $0x40] sm:$0xff]  ;;  %v7860_v11 = vor.u32 %v8407_v8, %v7859_v2 }
  0xc8   :  { %v8728_v62 = vadd.f32 %v3559_v40, %v3527_v39  ;;  %3609 = vmatmul.bf16.gmra.mxu0 %v8720_v38  ;;  %v177_v39 = vld [vmem:[#allocation3 + $0xc0] sm:$0xff] }
  0xc9   :  { %3708 = vmatmul.bf16.gmra.mxu3 %v8726_v61  ;;  %3879 = vmatpush.bf16.msrb.mxu1 %v7620_v13  ;;  %v7731_v40 = vld [vmem:[#allocation6 + $0xea0] sm:$0xf]  ;;  %v178_v13 = vld [vmem:[#allocation3 + $0xc8] sm:$0xff]  ;;  %v179_v61 = vld [vmem:[#allocation3 + $0xd0] sm:$0xff] }
  0xca   :  { %v7475_v60 = vld [vmem:[#allocation6 + $0xca0] sm:$0xf]  ;;  %v7732_v0 = vor.u32 %v8375_v41, %v7731_v40  ;;  %3946 = vmatpush.bf16.msrb.mxu3 %v7860_v11  ;;  %v8403_v11 = vld [vmem:[#allocation6 + $0xf8c] sm:$0xf0] }
  0xcb   :  { %v7476_v10 = vor.u32 %v8311_v1, %v7475_v60  ;;  %v8738_v60 = vpack.c.bf16 %v178_v13, %v162_v7  ;;  %v7843_v7 = vld [vmem:[#allocation6 + $0xf80] sm:$0xf] }
  0xcc   :  { %3675 = vmatmul.bf16.gmra.mxu2 %v8724_v44  ;;  %v3562_v16 = vpop.f32.mrf.mxu3  ;;  %v3498_v18 = vpop.f32.mrf.mxu1  ;;  %v8736_v44 = vpack.c.bf16 %v177_v39, %v161_v36  ;;  %v7587_v13 = vld [vmem:[#allocation6 + $0xd80] sm:$0xf] }
  0xcd   :  { %v3465_v17 = vpop.f32.mrf.mxu0  ;;  %3913 = vmatpush.bf16.msrb.mxu2 %v7732_v0  ;;  %3847 = vmatpush.bf16.msrb.mxu0 %v7476_v10  ;;  %9626 = vst [vmem:[#allocation32_spill] sm:$0xff] %v8738_v60  ;;  %v8371_v10 = vld [vmem:[#allocation6 + $0xe8c] sm:$0xf0] }
  0xce   :  { %v3499_v33 = vadd.f32 %v3498_v18, %v3465_v17  ;;  %v180_v17 = vld [vmem:[#allocation3 + $0xd8] sm:$0xff]  ;;  %9625 = vst [vmem:[#allocation31_spill] sm:$0xff] %v8736_v44 }
  0xcf   :  { %v3529_v14 = vpop.f32.mrf.mxu2 }
  0xd0   :  { %v3530_v15 = vadd.f32 %v3529_v14, %v3497_v63  ;;  %v8343_v63 = vld [vmem:[#allocation6 + $0xdac] sm:$0xf0] }
  0xd1   :  { %v163_v14 = vld [vmem:[#allocation3 + $0x50] sm:$0xff] }
  0xd2   :  { %v8734_v19 = vadd.f32 %v3562_v16, %v3530_v15  ;;  %v7604_v15 = vor.u32 %v8343_v63, %v7603_v12  ;;  %v164_v16 = vld [vmem:[#allocation3 + $0x58] sm:$0xff]  ;;  %v8740_v1 = vpack.c.bf16 %v179_v61, %v163_v14  ;;  %v7715_v63 = vld [vmem:[#allocation6 + $0xe80] sm:$0xf] }
  0xd3   :  { %v8742_v8 = vpack.c.bf16 %v180_v17, %v164_v16  ;;  %v7716_v36 = vor.u32 %v8371_v10, %v7715_v63  ;;  %v7459_v61 = vld [vmem:[#allocation6 + $0xc80] sm:$0xf] }
  0xd4   :  { %3880 = vmatpush.bf16.msrb.mxu1 %v7604_v15  ;;  %v3564_v41 = vpop.f32.mrf.mxu3  ;;  %9627 = vst [vmem:[#allocation33_spill] sm:$0xff] %v8740_v1  ;;  %v3501_v2 = vpop.f32.mrf.mxu1  ;;  %v8339_v15 = vld [vmem:[#allocation6 + $0xd8c] sm:$0xf0]  ;;  %v7699_v10 = vld [vmem:[#allocation6 + $0xe60] sm:$0xf] }
  0xd5   :  { %v3468_v42 = vpop.f32.mrf.mxu0  ;;  %9628 = vst [vmem:[#allocation34_spill] sm:$0xff] %v8742_v8  ;;  %3914 = vmatpush.bf16.msrb.mxu2 %v7716_v36  ;;  %v8367_v36 = vld [vmem:[#allocation6 + $0xe6c] sm:$0xf0] }
  0xd6   :  { %v3502_v12 = vadd.f32 %v3501_v2, %v3468_v42  ;;  %v7844_v42 = vor.u32 %v8403_v11, %v7843_v7  ;;  %v193_v7 = vld [vmem:[#allocation3 + $0x140] sm:$0xff] }
  0xd7   :  { %v3531_v18 = vpop.f32.mrf.mxu2  ;;  %3754 = vmatmul.bf16.vlgmr.msra.gmra.mxu1 %v8738_v60  ;;  %v8399_v60 = vld [vmem:[#allocation6 + $0xf6c] sm:$0xf0]  ;;  %v209_v11 = vld [vmem:[#allocation3 + $0x1c0] sm:$0xff] }
  0xd8   :  { %v3532_v40 = vadd.f32 %v3531_v18, %v3499_v33  ;;  %3721 = vmatmul.bf16.vlgmr.msra.gmra.mxu0 %v8736_v44  ;;  %v8307_v33 = vld [vmem:[#allocation6 + $0xc8c] sm:$0xf0]  ;;  %3947 = vmatpush.bf16.msrb.mxu3 %v7844_v42  ;;  %v196_v42 = vld [vmem:[#allocation3 + $0x158] sm:$0xff] }
  0xd9   :  { %3820 = vmatmul.bf16.vlgmr.msra.gmra.mxu3 %v8742_v8  ;;  %v7460_v39 = vor.u32 %v8307_v33, %v7459_v61  ;;  %v7443_v61 = vld [vmem:[#allocation6 + $0xc60] sm:$0xf]  ;;  %v7700_v33 = vor.u32 %v8367_v36, %v7699_v10  ;;  %v8303_v8 = vld [vmem:[#allocation6 + $0xc6c] sm:$0xf0] }
  0xda   :  { %v8744_v0 = vadd.f32 %v3564_v41, %v3532_v40  ;;  %v7588_v40 = vor.u32 %v8339_v15, %v7587_v13  ;;  %v195_v13 = vld [vmem:[#allocation3 + $0x150] sm:$0xff] }
  0xdb   :  { %3848 = vmatpush.bf16.msrb.mxu0 %v7460_v39  ;;  %v210_v39 = vld [vmem:[#allocation3 + $0x1c8] sm:$0xff]  ;;  %v211_v15 = vld [vmem:[#allocation3 + $0x1d0] sm:$0xff]  ;;  %3915 = vmatpush.bf16.msrb.mxu2 %v7700_v33 }
  0xdc   :  { %3787 = vmatmul.bf16.vlgmr.msra.gmra.mxu2 %v8740_v1  ;;  %v3567_v17 = vpop.f32.mrf.mxu3  ;;  %v3503_v41 = vpop.f32.mrf.mxu1  ;;  %3881 = vmatpush.bf16.msrb.mxu1 %v7588_v40  ;;  %v7827_v1 = vld [vmem:[#allocation6 + $0xf60] sm:$0xf]  ;;  %v8756_v38 = vpack.c.bf16 %v211_v15, %v195_v13 }
  0xdd   :  { %v3470_v18 = vpop.f32.mrf.mxu0  ;;  %v7828_v44 = vor.u32 %v8399_v60, %v7827_v1  ;;  %v8335_v60 = vld [vmem:[#allocation6 + $0xd6c] sm:$0xf0] }
  0xde   :  { %v3504_v63 = vadd.f32 %v3503_v41, %v3470_v18  ;;  %v8752_v18 = vpack.c.bf16 %v209_v11, %v193_v7  ;;  %9631 = vst [vmem:[#allocation37_spill] sm:$0xff] %v8756_v38 }
  0xdf   :  { %v3534_v14 = vpop.f32.mrf.mxu2  ;;  %3948 = vmatpush.bf16.msrb.mxu3 %v7828_v44  ;;  %v7683_v44 = vld [vmem:[#allocation6 + $0xe40] sm:$0xf] }
  0xe0   :  { %v3535_v16 = vadd.f32 %v3534_v14, %v3502_v12  ;;  %v194_v12 = vld [vmem:[#allocation3 + $0x148] sm:$0xff]  ;;  %v7444_v14 = vor.u32 %v8303_v8, %v7443_v61  ;;  %9629 = vst [vmem:[#allocation35_spill] sm:$0xff] %v8752_v18  ;;  %v7571_v8 = vld [vmem:[#allocation6 + $0xd60] sm:$0xf] }
  0xe1   :  { %v8754_v36 = vpack.c.bf16 %v210_v39, %v194_v12  ;;  %v7572_v33 = vor.u32 %v8335_v60, %v7571_v8  ;;  %v8395_v8 = vld [vmem:[#allocation6 + $0xf4c] sm:$0xf0]  ;;  %v7555_v60 = vld [vmem:[#allocation6 + $0xd40] sm:$0xf] }
  0xe2   :  { %v8750_v2 = vadd.f32 %v3567_v17, %v3535_v16  ;;  %v212_v16 = vld [vmem:[#allocation3 + $0x1d8] sm:$0xff]  ;;  %3849 = vmatpush.bf16.msrb.mxu0 %v7444_v14 }
  0xe3   :  { %9630 = vst [vmem:[#allocation36_spill] sm:$0xff] %v8754_v36  ;;  %v8758_v61 = vpack.c.bf16 %v212_v16, %v196_v42  ;;  %3882 = vmatpush.bf16.msrb.mxu1 %v7572_v33  ;;  %v225_v33 = vld [vmem:[#allocation3 + $0x240] sm:$0xff] }
  0xe4   :  { %v3569_v41 = vpop.f32.mrf.mxu3  ;;  %v3506_v1 = vpop.f32.mrf.mxu1 }
  0xe5   :  { %v3473_v10 = vpop.f32.mrf.mxu0  ;;  %9632 = vst [vmem:[#allocation38_spill] sm:$0xff] %v8758_v61 }
  0xe6   :  { %v3507_v14 = vadd.f32 %v3506_v1, %v3473_v10  ;;  %v8331_v1 = vld [vmem:[#allocation6 + $0xd4c] sm:$0xf0] }
  0xe7   :  { %v3536_v17 = vpop.f32.mrf.mxu2  ;;  %3759 = vmatmul.bf16.gmra.mxu1 %v8754_v36  ;;  %v243_v36 = vld [vmem:[#allocation3 + $0x2d0] sm:$0xff] }
  0xe8   :  { %v3537_v40 = vadd.f32 %v3536_v17, %v3504_v63  ;;  %3726 = vmatmul.bf16.gmra.mxu0 %v8752_v18  ;;  %v8363_v63 = vld [vmem:[#allocation6 + $0xe4c] sm:$0xf0]  ;;  %v7427_v17 = vld [vmem:[#allocation6 + $0xc40] sm:$0xf] }
  0xe9   :  { %3825 = vmatmul.bf16.gmra.mxu3 %v8758_v61  ;;  %v7684_v7 = vor.u32 %v8363_v63, %v7683_v44  ;;  %v241_v61 = vld [vmem:[#allocation3 + $0x2c0] sm:$0xff]  ;;  %v7556_v63 = vor.u32 %v8331_v1, %v7555_v60 }
  0xea   :  { %v8760_v37 = vadd.f32 %v3569_v41, %v3537_v40  ;;  %v8299_v40 = vld [vmem:[#allocation6 + $0xc4c] sm:$0xf0]  ;;  %v7811_v41 = vld [vmem:[#allocation6 + $0xf40] sm:$0xf] }
  0xeb   :  { %3916 = vmatpush.bf16.msrb.mxu2 %v7684_v7  ;;  %v7428_v10 = vor.u32 %v8299_v40, %v7427_v17  ;;  %v7812_v44 = vor.u32 %v8395_v8, %v7811_v41  ;;  %v228_v7 = vld [vmem:[#allocation3 + $0x258] sm:$0xff]  ;;  %3883 = vmatpush.bf16.msrb.mxu1 %v7556_v63  ;;  %v7667_v1 = vld [vmem:[#allocation6 + $0xe20] sm:$0xf] }
  0xec   :  { %3792 = vmatmul.bf16.gmra.mxu2 %v8756_v38  ;;  %v3572_v39 = vpop.f32.mrf.mxu3  ;;  %v3508_v15 = vpop.f32.mrf.mxu1  ;;  %v226_v38 = vld [vmem:[#allocation3 + $0x248] sm:$0xff] }
  0xed   :  { %v3475_v13 = vpop.f32.mrf.mxu0  ;;  %3850 = vmatpush.bf16.msrb.mxu0 %v7428_v10  ;;  %3949 = vmatpush.bf16.msrb.mxu3 %v7812_v44  ;;  %v7668_v44 = vor.u32 %v8359_v34, %v7667_v1  ;;  %v273_v1 = vld [vmem:[#allocation3 + $0x3c0] sm:$0xff] }
  0xee   :  { %v3509_v16 = vadd.f32 %v3508_v15, %v3475_v13  ;;  %v8768_v13 = vpack.c.bf16 %v241_v61, %v225_v33  ;;  %v7411_v61 = vld [vmem:[#allocation6 + $0xc20] sm:$0xf]  ;;  %v8295_v33 = vld [vmem:[#allocation6 + $0xc2c] sm:$0xf0] }
  0xef   :  { %v3539_v11 = vpop.f32.mrf.mxu2  ;;  %3917 = vmatpush.bf16.msrb.mxu2 %v7668_v44  ;;  %v7651_v44 = vld [vmem:[#allocation6 + $0xe00] sm:$0xf] }
  0xf0   :  { %v3540_v12 = vadd.f32 %v3539_v11, %v3507_v14  ;;  %v242_v14 = vld [vmem:[#allocation3 + $0x2c8] sm:$0xff]  ;;  %v227_v11 = vld [vmem:[#allocation3 + $0x250] sm:$0xff]  ;;  %9633 = vst [vmem:[#allocation39_spill] sm:$0xff] %v8768_v13 }
  0xf1   :  { %v8770_v18 = vpack.c.bf16 %v242_v14, %v226_v38  ;;  %v8772_v35 = vpack.c.bf16 %v243_v36, %v227_v11  ;;  %v7412_v38 = vor.u32 %v8295_v33, %v7411_v61  ;;  %v8391_v36 = vld [vmem:[#allocation6 + $0xf2c] sm:$0xf0]  ;;  %v7539_v14 = vld [vmem:[#allocation6 + $0xd20] sm:$0xf]  ;;  %v258_v61 = vld [vmem:[#allocation3 + $0x348] sm:$0xff] }
  0xf2   :  { %v8766_v42 = vadd.f32 %v3572_v39, %v3540_v12  ;;  %v244_v12 = vld [vmem:[#allocation3 + $0x2d8] sm:$0xff]  ;;  %v8327_v11 = vld [vmem:[#allocation6 + $0xd2c] sm:$0xf0]  ;;  %v274_v33 = vld [vmem:[#allocation3 + $0x3c8] sm:$0xff] }
  0xf3   :  { %9634 = vst [vmem:[#allocation40_spill] sm:$0xff] %v8770_v18  ;;  %v8774_v8 = vpack.c.bf16 %v244_v12, %v228_v7  ;;  %3851 = vmatpush.bf16.msrb.mxu0 %v7412_v38  ;;  %v7540_v7 = vor.u32 %v8327_v11, %v7539_v14  ;;  %v8291_v38 = vld [vmem:[#allocation6 + $0xc0c] sm:$0xf0]  ;;  %v7779_v14 = vld [vmem:[#allocation6 + $0xf00] sm:$0xf] }
  0xf4   :  { %v3574_v17 = vpop.f32.mrf.mxu3  ;;  %9635 = vst [vmem:[#allocation41_spill] sm:$0xff] %v8772_v35  ;;  %v3511_v41 = vpop.f32.mrf.mxu1  ;;  %v8387_v11 = vld [vmem:[#allocation6 + $0xf0c] sm:$0xf0] }
  0xf5   :  { %v3478_v40 = vpop.f32.mrf.mxu0  ;;  %9636 = vst [vmem:[#allocation42_spill] sm:$0xff] %v8774_v8  ;;  %3884 = vmatpush.bf16.msrb.mxu1 %v7540_v7  ;;  %v8323_v7 = vld [vmem:[#allocation6 + $0xd0c] sm:$0xf0] }
  0xf6   :  { %v3512_v10 = vadd.f32 %v3511_v41, %v3478_v40  ;;  %v257_v41 = vld [vmem:[#allocation3 + $0x340] sm:$0xff] }
  0xf7   :  { %v3541_v39 = vpop.f32.mrf.mxu2  ;;  %3764 = vmatmul.bf16.gmra.mxu1 %v8770_v18 }
  0xf8   :  { %v3542_v15 = vadd.f32 %v3541_v39, %v3509_v16  ;;  %3731 = vmatmul.bf16.gmra.mxu0 %v8768_v13  ;;  %v7795_v16 = vld [vmem:[#allocation6 + $0xf20] sm:$0xf]  ;;  %v8784_v13 = vpack.c.bf16 %v273_v1, %v257_v41  ;;  %v5973_v41 = vld [vmem:[#allocation6 + $0xf0] sm:$0xf0]  ;;  %v8029_v1 = vld [vmem:[#allocation6 + $0x3e4] sm:$0xf] }
  0xf9   :  { %3830 = vmatmul.bf16.gmra.mxu3 %v8774_v8  ;;  %v7796_v63 = vor.u32 %v8391_v36, %v7795_v16  ;;  %v259_v8 = vld [vmem:[#allocation3 + $0x350] sm:$0xff]  ;;  %v7395_v36 = vld [vmem:[#allocation6 + $0xc00] sm:$0xf] }
  0xfa   :  { %v8776_v60 = vadd.f32 %v3574_v17, %v3542_v15  ;;  %v8355_v16 = vld [vmem:[#allocation6 + $0xe0c] sm:$0xf0]  ;;  %9637 = vst [vmem:[#allocation43_spill] sm:$0xff] %v8784_v13 }
  0xfb   :  { %3950 = vmatpush.bf16.msrb.mxu3 %v7796_v63  ;;  %v275_v63 = vld [vmem:[#allocation3 + $0x3d0] sm:$0xff] }
  0xfc   :  { %3797 = vmatmul.bf16.gmra.mxu2 %v8772_v35  ;;  %v3577_v39 = vpop.f32.mrf.mxu3  ;;  %v3513_v17 = vpop.f32.mrf.mxu1  ;;  %v7652_v35 = vor.u32 %v8355_v16, %v7651_v44  ;;  %v8786_v44 = vpack.c.bf16 %v274_v33, %v258_v61  ;;  %v8788_v16 = vpack.c.bf16 %v275_v63, %v259_v8  ;;  %v6357_v61 = vld [vmem:[#allocation6 + $0x3f0] sm:$0xf0] }
  0xfd   :  { %v3480_v15 = vpop.f32.mrf.mxu0  ;;  %v260_v17 = vld [vmem:[#allocation3 + $0x358] sm:$0xff]  ;;  %v6360_v33 = vor.u32 %v8029_v1, %v6357_v61 }
  0xfe   :  { %v7523_v15 = vld [vmem:[#allocation6 + $0xd00] sm:$0xf]  ;;  %3918 = vmatpush.bf16.msrb.mxu2 %v7652_v35  ;;  %9638 = vst [vmem:[#allocation44_spill] sm:$0xff] %v8786_v44  ;;  %v6229_v35 = vld [vmem:[#allocation6 + $0x2f0] sm:$0xf0]  ;;  %v292_v1 = vld [vmem:[#allocation3 + $0x458] sm:$0xff] }
  0xff   :  { %v3544_v12 = vpop.f32.mrf.mxu2  ;;  %9639 = vst [vmem:[#allocation45_spill] sm:$0xff] %v8788_v16 }
 0x100   :  { %v3545_v34 = vadd.f32 %v3544_v12, %v3512_v10  ;;  %v7396_v10 = vor.u32 %v8291_v38, %v7395_v36  ;;  %v7780_v12 = vor.u32 %v8387_v11, %v7779_v14 }
 0x102   :  { %v8782_v40 = vadd.f32 %v3577_v39, %v3545_v34  ;;  %v276_v34 = vld [vmem:[#allocation3 + $0x3d8] sm:$0xff]  ;;  %v7524_v39 = vor.u32 %v8323_v7, %v7523_v15  ;;  %3852 = vmatpush.bf16.msrb.mxu0 %v7396_v10  ;;  %3951 = vmatpush.bf16.msrb.mxu3 %v7780_v12 }
 0x103   :  { %v8791_v14 = vpack.c.bf16 %v276_v34, %v260_v17  ;;  %v7965_v34 = vld [vmem:[#allocation6 + $0x1e4] sm:$0xf] }
 0x104   :  { %v3579_v32 = vpop.f32.mrf.mxu3  ;;  %3885 = vmatpush.bf16.msrb.mxu1 %v7524_v39  ;;  %v3623_v38 = vpop.f32.mrf.mxu1  ;;  %v6101_v39 = vld [vmem:[#allocation6 + $0x1f0] sm:$0xf0] }
 0x105   :  { %v3590_v27 = vpop.f32.mrf.mxu0  ;;  %9640 = vst [vmem:[#allocation46_spill] sm:$0xff] %v8791_v14  ;;  %v7997_v32 = vld [vmem:[#allocation6 + $0x2e4] sm:$0xf] }
 0x106   :  { %v3591_v36 = vadd.f32 %v3590_v27, %v8718_v9  ;;  %v6232_v8 = vor.u32 %v7997_v32, %v6229_v35  ;;  %4076 = vmatpush.bf16.msra.mxu3 %v6360_v33  ;;  %v7993_v32 = vld [vmem:[#allocation6 + $0x2c4] sm:$0xf]  ;;  %v6213_v35 = vld [vmem:[#allocation6 + $0x2d0] sm:$0xf0] }
 0x107   :  { %v3546_v18 = vpop.f32.mrf.mxu2  ;;  %3769 = vmatmul.bf16.gmra.mxu1 %v8786_v44 }
 0x108   :  { %v3624_v11 = vadd.f32 %v3623_v38, %v3591_v36  ;;  %3736 = vmatmul.bf16.gmra.mxu0 %v8784_v13  ;;  %v7933_v18 = vld [vmem:[#allocation6 + $0xe4] sm:$0xf]  ;;  %4043 = vmatpush.bf16.msra.mxu2 %v6232_v8  ;;  %v6104_v38 = vor.u32 %v7965_v34, %v6101_v39  ;;  %v5957_v39 = vld [vmem:[#allocation6 + $0xd0] sm:$0xf0] }
 0x109   :  { %3835 = vmatmul.bf16.gmra.mxu3 %v8791_v14  ;;  %v5976_v9 = vor.u32 %v7933_v18, %v5973_v41  ;;  %v289_v14 = vld [vmem:[#allocation3 + $0x440] sm:$0xff]  ;;  %v6216_v18 = vor.u32 %v7993_v32, %v6213_v35  ;;  %v290_v41 = vld [vmem:[#allocation3 + $0x448] sm:$0xff] }
 0x10a   :  { %4010 = vmatpush.bf16.msra.mxu1 %v6104_v38  ;;  %v8802_v33 = vpack.c.bf16 %v290_v41, %v290_v41  ;;  %v7929_v34 = vld [vmem:[#allocation6 + $0xc4] sm:$0xf] }
 0x10b   :  { %3977 = vmatpush.bf16.msra.mxu0 %v5976_v9  ;;  %v8025_v38 = vld [vmem:[#allocation6 + $0x3c4] sm:$0xf] }
 0x10c   :  { %3802 = vmatmul.bf16.gmra.mxu2 %v8788_v16  ;;  %v3689_v10 = vpop.f32.mrf.mxu3  ;;  %v3625_v7 = vpop.f32.mrf.mxu1  ;;  %9642 = vst [vmem:[#allocation48_spill] sm:$0xff] %v8802_v33  ;;  %v7961_v35 = vld [vmem:[#allocation6 + $0x1c4] sm:$0xf]  ;;  %v184_v16 = vld [vmem:[#allocation3 + $0xf8] sm:$0xff] }
 0x10d   :  { %v3592_v12 = vpop.f32.mrf.mxu0  ;;  %4044 = vmatpush.bf16.msra.mxu2 %v6216_v18  ;;  %v6085_v18 = vld [vmem:[#allocation6 + $0x1d0] sm:$0xf0] }
 0x10e   :  { %v3593_v15 = vadd.f32 %v3592_v12, %v8728_v62  ;;  %v8800_v62 = vpack.c.bf16 %v289_v14, %v289_v14  ;;  %v5960_v14 = vor.u32 %v7929_v34, %v5957_v39  ;;  %v6088_v41 = vor.u32 %v7961_v35, %v6085_v18  ;;  %v181_v34 = vld [vmem:[#allocation3 + $0xe0] sm:$0xff] }
 0x10f   :  { %v3656_v27 = vpop.f32.mrf.mxu2  ;;  %v7989_v39 = vld [vmem:[#allocation6 + $0x2a4] sm:$0xf] }
 0x110   :  { %v3657_v63 = vadd.f32 %v3656_v27, %v3624_v11  ;;  %v3626_v36 = vadd.f32 %v3625_v7, %v3593_v15  ;;  %v291_v11 = vld [vmem:[#allocation3 + $0x450] sm:$0xff]  ;;  %9641 = vst [vmem:[#allocation47_spill] sm:$0xff] %v8800_v62  ;;  %v8807_v15 = vpack.c.bf16 %v292_v1, %v292_v1  ;;  %3978 = vmatpush.bf16.msra.mxu0 %v5960_v14  ;;  %v7925_v18 = vld [vmem:[#allocation6 + $0xa4] sm:$0xf] }
 0x111   :  { %4011 = vmatpush.bf16.msra.mxu1 %v6088_v41  ;;  %v5941_v14 = vld [vmem:[#allocation6 + $0xb0] sm:$0xf0] }
 0x112   :  { %v8798_v17 = vadd.f32 %v3689_v10, %v3657_v63  ;;  %v8804_v63 = vpack.c.bf16 %v291_v11, %v291_v11  ;;  %9644 = vst [vmem:[#allocation50_spill] sm:$0xff] %v8807_v15  ;;  %v5944_v41 = vor.u32 %v7925_v18, %v5941_v14 }
 0x114   :  { %v3691_v27 = vpop.f32.mrf.mxu3  ;;  %9643 = vst [vmem:[#allocation49_spill] sm:$0xff] %v8804_v63  ;;  %v3628_v12 = vpop.f32.mrf.mxu1  ;;  %3979 = vmatpush.bf16.msra.mxu0 %v5944_v41 }
 0x115   :  { %v3595_v9 = vpop.f32.mrf.mxu0 }
 0x116   :  { %v3596_v10 = vadd.f32 %v3595_v9, %v8734_v19 }
 0x117   :  { %v3658_v8 = vpop.f32.mrf.mxu2  ;;  %3774 = vmatmul.bf16.gmra.mxu1 %v8802_v33  ;;  %v182_v33 = vld [vmem:[#allocation3 + $0xe8] sm:$0xff] }
 0x118   :  { %v3659_v61 = vadd.f32 %v3658_v8, %v3626_v36  ;;  %v3629_v32 = vadd.f32 %v3628_v12, %v3596_v10  ;;  %3741 = vmatmul.bf16.gmra.mxu0 %v8800_v62  ;;  %v6341_v36 = vld [vmem:[#allocation6 + $0x3d0] sm:$0xf0]  ;;  %v165_v12 = vld [vmem:[#allocation3 + $0x60] sm:$0xff] }
 0x119   :  { %v6344_v19 = vor.u32 %v8025_v38, %v6341_v36  ;;  %3840 = vmatmul.bf16.gmra.mxu3 %v8807_v15  ;;  %v166_v36 = vld [vmem:[#allocation3 + $0x68] sm:$0xff]  ;;  %v6325_v15 = vld [vmem:[#allocation6 + $0x3b0] sm:$0xf0] }
 0x11a   :  { %v8809_v7 = vadd.f32 %v3691_v27, %v3659_v61  ;;  %v167_v62 = vld [vmem:[#allocation3 + $0x70] sm:$0xff]  ;;  %v8820_v18 = vpack.c.bf16 %v182_v33, %v166_v36  ;;  %v7953_v36 = vld [vmem:[#allocation6 + $0x184] sm:$0xf] }
 0x11b   :  { %4077 = vmatpush.bf16.msra.mxu3 %v6344_v19  ;;  %v8021_v19 = vld [vmem:[#allocation6 + $0x3a4] sm:$0xf]  ;;  %v5925_v33 = vld [vmem:[#allocation6 + $0x90] sm:$0xf0] }
 0x11c   :  { %3807 = vmatmul.bf16.gmra.mxu2 %v8804_v63  ;;  %v3694_v8 = vpop.f32.mrf.mxu3  ;;  %v3630_v9 = vpop.f32.mrf.mxu1  ;;  %v6197_v63 = vld [vmem:[#allocation6 + $0x2b0] sm:$0xf0]  ;;  %9646 = vst [vmem:[#allocation52_spill] sm:$0xff] %v8820_v18 }
 0x11d   :  { %v3597_v61 = vpop.f32.mrf.mxu0  ;;  %v6200_v35 = vor.u32 %v7989_v39, %v6197_v63 }
 0x11e   :  { %v3598_v27 = vadd.f32 %v3597_v61, %v8744_v0  ;;  %v183_v0 = vld [vmem:[#allocation3 + $0xf0] sm:$0xff]  ;;  %v168_v61 = vld [vmem:[#allocation3 + $0x78] sm:$0xff] }
 0x11f   :  { %v3661_v11 = vpop.f32.mrf.mxu2  ;;  %4045 = vmatpush.bf16.msra.mxu2 %v6200_v35  ;;  %v8822_v14 = vpack.c.bf16 %v183_v0, %v167_v62  ;;  %v7921_v62 = vld [vmem:[#allocation6 + $0x84] sm:$0xf] }
 0x120   :  { %v3662_v1 = vadd.f32 %v3661_v11, %v3629_v32  ;;  %v3631_v38 = vadd.f32 %v3630_v9, %v3598_v27  ;;  %v7957_v32 = vld [vmem:[#allocation6 + $0x1a4] sm:$0xf]  ;;  %v6069_v11 = vld [vmem:[#allocation6 + $0x1b0] sm:$0xf0]  ;;  %v8818_v27 = vpack.c.bf16 %v181_v34, %v165_v12 }
 0x121   :  { %9647 = vst [vmem:[#allocation53_spill] sm:$0xff] %v8822_v14  ;;  %v7985_v12 = vld [vmem:[#allocation6 + $0x284] sm:$0xf]  ;;  %v6181_v34 = vld [vmem:[#allocation6 + $0x290] sm:$0xf0] }
 0x122   :  { %v8816_v10 = vadd.f32 %v3694_v8, %v3662_v1  ;;  %v6328_v1 = vor.u32 %v8021_v19, %v6325_v15  ;;  %v6072_v8 = vor.u32 %v7957_v32, %v6069_v11  ;;  %9645 = vst [vmem:[#allocation51_spill] sm:$0xff] %v8818_v27  ;;  %v8825_v15 = vpack.c.bf16 %v184_v16, %v168_v61  ;;  %v8017_v16 = vld [vmem:[#allocation6 + $0x384] sm:$0xf]  ;;  %v6053_v11 = vld [vmem:[#allocation6 + $0x190] sm:$0xf0] }
 0x123   :  { %v6056_v61 = vor.u32 %v7953_v36, %v6053_v11  ;;  %v214_v11 = vld [vmem:[#allocation3 + $0x1e8] sm:$0xff] }
 0x124   :  { %4078 = vmatpush.bf16.msra.mxu3 %v6328_v1  ;;  %4012 = vmatpush.bf16.msra.mxu1 %v6072_v8  ;;  %v3696_v9 = vpop.f32.mrf.mxu3  ;;  %v3633_v35 = vpop.f32.mrf.mxu1  ;;  %9648 = vst [vmem:[#allocation54_spill] sm:$0xff] %v8825_v15 }
 0x125   :  { %v3600_v39 = vpop.f32.mrf.mxu0 }
 0x126   :  { %v3601_v13 = vadd.f32 %v3600_v39, %v8750_v2  ;;  %v5928_v2 = vor.u32 %v7921_v62, %v5925_v33  ;;  %v5909_v33 = vld [vmem:[#allocation6 + $0x70] sm:$0xf0] }
 0x127   :  { %v3663_v44 = vpop.f32.mrf.mxu2  ;;  %3886 = vmatmul.bf16.vlgmr.msrb.gmra.mxu1 %v8820_v18 }
 0x128   :  { %v3664_v63 = vadd.f32 %v3663_v44, %v3631_v38  ;;  %v3634_v41 = vadd.f32 %v3633_v35, %v3601_v13  ;;  %3853 = vmatmul.bf16.vlgmr.msrb.gmra.mxu0 %v8818_v27  ;;  %v6184_v44 = vor.u32 %v7985_v12, %v6181_v34  ;;  %v6309_v38 = vld [vmem:[#allocation6 + $0x390] sm:$0xf0]  ;;  %4013 = vmatpush.bf16.msra.mxu1 %v6056_v61  ;;  %v7981_v35 = vld [vmem:[#allocation6 + $0x264] sm:$0xf] }
 0x129   :  { %3952 = vmatmul.bf16.vlgmr.msrb.gmra.mxu3 %v8825_v15  ;;  %v6312_v13 = vor.u32 %v8017_v16, %v6309_v38  ;;  %3980 = vmatpush.bf16.msra.mxu0 %v5928_v2  ;;  %v6165_v12 = vld [vmem:[#allocation6 + $0x270] sm:$0xf0]  ;;  %v7917_v34 = vld [vmem:[#allocation6 + $0x64] sm:$0xf]  ;;  %v198_v15 = vld [vmem:[#allocation3 + $0x168] sm:$0xff] }
 0x12a   :  { %v8827_v19 = vadd.f32 %v3696_v9, %v3664_v63  ;;  %4046 = vmatpush.bf16.msra.mxu2 %v6184_v44  ;;  %v6168_v62 = vor.u32 %v7981_v35, %v6165_v12  ;;  %v8013_v16 = vld [vmem:[#allocation6 + $0x364] sm:$0xf]  ;;  %v6293_v38 = vld [vmem:[#allocation6 + $0x370] sm:$0xf0]  ;;  %v5912_v2 = vor.u32 %v7917_v34, %v5909_v33  ;;  %v8838_v12 = vpack.c.bf16 %v214_v11, %v198_v15 }
 0x12b   :  { %4079 = vmatpush.bf16.msra.mxu3 %v6312_v13  ;;  %v6296_v36 = vor.u32 %v8013_v16, %v6293_v38  ;;  %v200_v13 = vld [vmem:[#allocation3 + $0x178] sm:$0xff]  ;;  %v7949_v34 = vld [vmem:[#allocation6 + $0x164] sm:$0xf]  ;;  %v6037_v33 = vld [vmem:[#allocation6 + $0x170] sm:$0xf0] }
 0x12c   :  { %3919 = vmatmul.bf16.vlgmr.msrb.gmra.mxu2 %v8822_v14  ;;  %v3699_v1 = vpop.f32.mrf.mxu3  ;;  %v3635_v9 = vpop.f32.mrf.mxu1  ;;  %9650 = vst [vmem:[#allocation56_spill] sm:$0xff] %v8838_v12  ;;  %v6040_v18 = vor.u32 %v7949_v34, %v6037_v33  ;;  %v7977_v15 = vld [vmem:[#allocation6 + $0x244] sm:$0xf]  ;;  %v6277_v34 = vld [vmem:[#allocation6 + $0x350] sm:$0xf0] }
 0x12d   :  { %v3602_v8 = vpop.f32.mrf.mxu0  ;;  %3981 = vmatpush.bf16.msra.mxu0 %v5912_v2  ;;  %v7945_v33 = vld [vmem:[#allocation6 + $0x144] sm:$0xf] }
 0x12e   :  { %v3603_v63 = vadd.f32 %v3602_v8, %v8760_v37  ;;  %v199_v37 = vld [vmem:[#allocation3 + $0x170] sm:$0xff]  ;;  %4047 = vmatpush.bf16.msra.mxu2 %v6168_v62  ;;  %4014 = vmatpush.bf16.msra.mxu1 %v6040_v18  ;;  %v7913_v18 = vld [vmem:[#allocation6 + $0x44] sm:$0xf] }
 0x12f   :  { %v3666_v32 = vpop.f32.mrf.mxu2  ;;  %v215_v8 = vld [vmem:[#allocation3 + $0x1f0] sm:$0xff]  ;;  %4080 = vmatpush.bf16.msra.mxu3 %v6296_v36 }
 0x130   :  { %v3667_v0 = vadd.f32 %v3666_v32, %v3634_v41  ;;  %v3636_v44 = vadd.f32 %v3635_v9, %v3603_v63  ;;  %v197_v41 = vld [vmem:[#allocation3 + $0x160] sm:$0xff]  ;;  %v8840_v14 = vpack.c.bf16 %v215_v8, %v199_v37 }
 0x131   :  { %v213_v32 = vld [vmem:[#allocation3 + $0x1e0] sm:$0xff] }
 0x132   :  { %v8834_v39 = vadd.f32 %v3699_v1, %v3667_v0  ;;  %v216_v0 = vld [vmem:[#allocation3 + $0x1f8] sm:$0xff]  ;;  %v8836_v61 = vpack.c.bf16 %v213_v32, %v197_v41  ;;  %9651 = vst [vmem:[#allocation57_spill] sm:$0xff] %v8840_v14 }
 0x133   :  { %v8843_v62 = vpack.c.bf16 %v216_v0, %v200_v13 }
 0x134   :  { %9649 = vst [vmem:[#allocation55_spill] sm:$0xff] %v8836_v61  ;;  %v3701_v9 = vpop.f32.mrf.mxu3  ;;  %v3638_v38 = vpop.f32.mrf.mxu1 }
 0x135   :  { %v3605_v35 = vpop.f32.mrf.mxu0  ;;  %9652 = vst [vmem:[#allocation58_spill] sm:$0xff] %v8843_v62 }
 0x136   :  { %v3606_v16 = vadd.f32 %v3605_v35, %v8766_v42 }
 0x137   :  { %v3668_v1 = vpop.f32.mrf.mxu2  ;;  %3891 = vmatmul.bf16.gmra.mxu1 %v8838_v12 }
 0x138   :  { %v3669_v63 = vadd.f32 %v3668_v1, %v3636_v44  ;;  %v3639_v36 = vadd.f32 %v3638_v38, %v3606_v16  ;;  %3858 = vmatmul.bf16.gmra.mxu0 %v8836_v61  ;;  %v6149_v44 = vld [vmem:[#allocation6 + $0x250] sm:$0xf0]  ;;  %v229_v38 = vld [vmem:[#allocation3 + $0x260] sm:$0xff] }
 0x139   :  { %3957 = vmatmul.bf16.gmra.mxu3 %v8843_v62  ;;  %v6152_v41 = vor.u32 %v7977_v15, %v6149_v44  ;;  %v5893_v1 = vld [vmem:[#allocation6 + $0x50] sm:$0xf0]  ;;  %v245_v15 = vld [vmem:[#allocation3 + $0x2e0] sm:$0xff]  ;;  %v230_v44 = vld [vmem:[#allocation3 + $0x268] sm:$0xff] }
 0x13a   :  { %v8845_v2 = vadd.f32 %v3701_v9, %v3669_v63  ;;  %v8009_v63 = vld [vmem:[#allocation6 + $0x344] sm:$0xf]  ;;  %v5896_v35 = vor.u32 %v7913_v18, %v5893_v1  ;;  %v6021_v16 = vld [vmem:[#allocation6 + $0x150] sm:$0xf0]  ;;  %v246_v62 = vld [vmem:[#allocation3 + $0x2e8] sm:$0xff] }
 0x13b   :  { %4048 = vmatpush.bf16.msra.mxu2 %v6152_v41  ;;  %v231_v41 = vld [vmem:[#allocation3 + $0x270] sm:$0xff]  ;;  %v8856_v1 = vpack.c.bf16 %v246_v62, %v230_v44  ;;  %v7941_v44 = vld [vmem:[#allocation6 + $0x124] sm:$0xf] }
 0x13c   :  { %3924 = vmatmul.bf16.gmra.mxu2 %v8840_v14  ;;  %v3704_v11 = vpop.f32.mrf.mxu3  ;;  %v3640_v13 = vpop.f32.mrf.mxu1  ;;  %v247_v14 = vld [vmem:[#allocation3 + $0x2f0] sm:$0xff]  ;;  %3982 = vmatpush.bf16.msra.mxu0 %v5896_v35 }
 0x13d   :  { %v3607_v37 = vpop.f32.mrf.mxu0  ;;  %9654 = vst [vmem:[#allocation60_spill] sm:$0xff] %v8856_v1  ;;  %v8858_v12 = vpack.c.bf16 %v247_v14, %v231_v41  ;;  %v6005_v41 = vld [vmem:[#allocation6 + $0x130] sm:$0xf0] }
 0x13e   :  { %v3608_v8 = vadd.f32 %v3607_v37, %v8776_v60  ;;  %v232_v60 = vld [vmem:[#allocation3 + $0x278] sm:$0xff]  ;;  %v8854_v37 = vpack.c.bf16 %v245_v15, %v229_v38  ;;  %v5877_v15 = vld [vmem:[#allocation6 + $0x30] sm:$0xf0] }
 0x13f   :  { %v3671_v42 = vpop.f32.mrf.mxu2  ;;  %9655 = vst [vmem:[#allocation61_spill] sm:$0xff] %v8858_v12 }
 0x140   :  { %v3672_v32 = vadd.f32 %v3671_v42, %v3639_v36  ;;  %v3641_v9 = vadd.f32 %v3640_v13, %v3608_v8  ;;  %v6280_v36 = vor.u32 %v8009_v63, %v6277_v34  ;;  %v6024_v42 = vor.u32 %v7945_v33, %v6021_v16  ;;  %9653 = vst [vmem:[#allocation59_spill] sm:$0xff] %v8854_v37  ;;  %v7973_v16 = vld [vmem:[#allocation6 + $0x224] sm:$0xf] }
 0x142   :  { %v8852_v0 = vadd.f32 %v3704_v11, %v3672_v32  ;;  %v248_v32 = vld [vmem:[#allocation3 + $0x2f8] sm:$0xff]  ;;  %4081 = vmatpush.bf16.msra.mxu3 %v6280_v36  ;;  %4015 = vmatpush.bf16.msra.mxu1 %v6024_v42  ;;  %v6133_v36 = vld [vmem:[#allocation6 + $0x230] sm:$0xf0] }
 0x143   :  { %v8861_v33 = vpack.c.bf16 %v248_v32, %v232_v60  ;;  %v6136_v38 = vor.u32 %v7973_v16, %v6133_v36  ;;  %v6008_v60 = vor.u32 %v7941_v44, %v6005_v41  ;;  %v261_v16 = vld [vmem:[#allocation3 + $0x360] sm:$0xff]  ;;  %v6245_v41 = vld [vmem:[#allocation6 + $0x310] sm:$0xf0] }
 0x144   :  { %v3706_v13 = vpop.f32.mrf.mxu3  ;;  %v3643_v34 = vpop.f32.mrf.mxu1  ;;  %v277_v36 = vld [vmem:[#allocation3 + $0x3e0] sm:$0xff] }
 0x145   :  { %v3610_v18 = vpop.f32.mrf.mxu0  ;;  %9656 = vst [vmem:[#allocation62_spill] sm:$0xff] %v8861_v33  ;;  %4049 = vmatpush.bf16.msra.mxu2 %v6136_v38  ;;  %v7969_v38 = vld [vmem:[#allocation6 + $0x204] sm:$0xf] }
 0x146   :  { %v3611_v63 = vadd.f32 %v3610_v18, %v8782_v40  ;;  %v6261_v40 = vld [vmem:[#allocation6 + $0x330] sm:$0xf0]  ;;  %4016 = vmatpush.bf16.msra.mxu1 %v6008_v60  ;;  %v8001_v44 = vld [vmem:[#allocation6 + $0x304] sm:$0xf] }
 0x147   :  { %v3673_v11 = vpop.f32.mrf.mxu2  ;;  %3896 = vmatmul.bf16.gmra.mxu1 %v8856_v1  ;;  %v5989_v60 = vld [vmem:[#allocation6 + $0x110] sm:$0xf0] }
 0x148   :  { %v3674_v8 = vadd.f32 %v3673_v11, %v3641_v9  ;;  %v3644_v42 = vadd.f32 %v3643_v34, %v3611_v63  ;;  %3863 = vmatmul.bf16.gmra.mxu0 %v8854_v37  ;;  %v7909_v9 = vld [vmem:[#allocation6 + $0x24] sm:$0xf]  ;;  %v8871_v37 = vpack.c.bf16 %v277_v36, %v261_v16  ;;  %v6485_v16 = vld [vmem:[#allocation6 + $0x4f0] sm:$0xf0] }
 0x149   :  { %v8005_v11 = vld [vmem:[#allocation6 + $0x324] sm:$0xf]  ;;  %v5880_v14 = vor.u32 %v7909_v9, %v5877_v15  ;;  %3962 = vmatmul.bf16.gmra.mxu3 %v8861_v33  ;;  %v262_v9 = vld [vmem:[#allocation3 + $0x368] sm:$0xff]  ;;  %v263_v33 = vld [vmem:[#allocation3 + $0x370] sm:$0xff] }
 0x14a   :  { %v8863_v35 = vadd.f32 %v3706_v13, %v3674_v8  ;;  %v6264_v62 = vor.u32 %v8005_v11, %v6261_v40  ;;  %v278_v15 = vld [vmem:[#allocation3 + $0x3e8] sm:$0xff]  ;;  %v6117_v11 = vld [vmem:[#allocation6 + $0x210] sm:$0xf0]  ;;  %v7905_v40 = vld [vmem:[#allocation6 + $0x4] sm:$0xf] }
 0x14b   :  { %3983 = vmatpush.bf16.msra.mxu0 %v5880_v14  ;;  %v5861_v14 = vld [vmem:[#allocation6 + $0x10] sm:$0xf0]  ;;  %v8157_v36 = vld [vmem:[#allocation6 + $0x7e4] sm:$0xf] }
 0x14c   :  { %3929 = vmatmul.bf16.gmra.mxu2 %v8858_v12  ;;  %4082 = vmatpush.bf16.msra.mxu3 %v6264_v62  ;;  %v3709_v13 = vpop.f32.mrf.mxu3  ;;  %v3645_v63 = vpop.f32.mrf.mxu1  ;;  %v6120_v12 = vor.u32 %v7969_v38, %v6117_v11  ;;  %v279_v62 = vld [vmem:[#allocation3 + $0x3f0] sm:$0xff]  ;;  %v8873_v38 = vpack.c.bf16 %v278_v15, %v262_v9 }
 0x14d   :  { %v3612_v18 = vpop.f32.mrf.mxu0  ;;  %v264_v63 = vld [vmem:[#allocation3 + $0x378] sm:$0xff]  ;;  %v8875_v11 = vpack.c.bf16 %v279_v62, %v263_v33  ;;  %v6869_v9 = vld [vmem:[#allocation6 + $0x7f0] sm:$0xf0] }
 0x14e   :  { %v7937_v18 = vld [vmem:[#allocation6 + $0x104] sm:$0xf]  ;;  %4050 = vmatpush.bf16.msra.mxu2 %v6120_v12  ;;  %9657 = vst [vmem:[#allocation63_spill] sm:$0xff] %v8873_v38  ;;  %v6741_v12 = vld [vmem:[#allocation6 + $0x6f0] sm:$0xf0]  ;;  %v6872_v15 = vor.u32 %v8157_v36, %v6869_v9  ;;  %v296_v36 = vld [vmem:[#allocation3 + $0x478] sm:$0xff] }
 0x14f   :  { %v3676_v32 = vpop.f32.mrf.mxu2  ;;  %9658 = vst [vmem:[#allocation64_spill] sm:$0xff] %v8875_v11 }
 0x150   :  { %v3677_v8 = vadd.f32 %v3676_v32, %v3644_v42  ;;  %v5864_v42 = vor.u32 %v7905_v40, %v5861_v14  ;;  %v6248_v32 = vor.u32 %v8001_v44, %v6245_v41 }
 0x152   :  { %v8869_v34 = vadd.f32 %v3709_v13, %v3677_v8  ;;  %v280_v8 = vld [vmem:[#allocation3 + $0x3f8] sm:$0xff]  ;;  %v5992_v13 = vor.u32 %v7937_v18, %v5989_v60  ;;  %3984 = vmatpush.bf16.msra.mxu0 %v5864_v42  ;;  %4083 = vmatpush.bf16.msra.mxu3 %v6248_v32 }
 0x153   :  { %v8878_v44 = vpack.c.bf16 %v280_v8, %v264_v63  ;;  %v8093_v8 = vld [vmem:[#allocation6 + $0x5e4] sm:$0xf] }
 0x154   :  { %v3711_v61 = vpop.f32.mrf.mxu3  ;;  %4017 = vmatpush.bf16.msra.mxu1 %v5992_v13  ;;  %v3755_v14 = vpop.f32.mrf.mxu1  ;;  %v6613_v13 = vld [vmem:[#allocation6 + $0x5f0] sm:$0xf0] }
 0x155   :  { %v3722_v27 = vpop.f32.mrf.mxu0  ;;  %9659 = vst [vmem:[#allocation65_spill] sm:$0xff] %v8878_v44  ;;  %v8125_v61 = vld [vmem:[#allocation6 + $0x6e4] sm:$0xf] }
 0x156   :  { %v3723_v40 = vadd.f32 %v3722_v27, %v8798_v17  ;;  %v6744_v33 = vor.u32 %v8125_v61, %v6741_v12  ;;  %4208 = vmatpush.bf16.msrb.mxu3 %v6872_v15  ;;  %v8121_v61 = vld [vmem:[#allocation6 + $0x6c4] sm:$0xf]  ;;  %v6725_v12 = vld [vmem:[#allocation6 + $0x6d0] sm:$0xf0] }
 0x157   :  { %v3678_v1 = vpop.f32.mrf.mxu2  ;;  %3901 = vmatmul.bf16.gmra.mxu1 %v8873_v38 }
 0x158   :  { %v3756_v41 = vadd.f32 %v3755_v14, %v3723_v40  ;;  %3868 = vmatmul.bf16.gmra.mxu0 %v8871_v37  ;;  %v8061_v1 = vld [vmem:[#allocation6 + $0x4e4] sm:$0xf]  ;;  %4175 = vmatpush.bf16.msrb.mxu2 %v6744_v33  ;;  %v6616_v14 = vor.u32 %v8093_v8, %v6613_v13  ;;  %v6469_v13 = vld [vmem:[#allocation6 + $0x4d0] sm:$0xf0] }
 0x159   :  { %3967 = vmatmul.bf16.gmra.mxu3 %v8878_v44  ;;  %v6488_v27 = vor.u32 %v8061_v1, %v6485_v16  ;;  %v293_v44 = vld [vmem:[#allocation3 + $0x460] sm:$0xff]  ;;  %v6728_v1 = vor.u32 %v8121_v61, %v6725_v12  ;;  %v294_v16 = vld [vmem:[#allocation3 + $0x468] sm:$0xff] }
 0x15a   :  { %4142 = vmatpush.bf16.msrb.mxu1 %v6616_v14  ;;  %v8889_v15 = vpack.c.bf16 %v294_v16, %v294_v16  ;;  %v8057_v8 = vld [vmem:[#allocation6 + $0x4c4] sm:$0xf] }
 0x15b   :  { %4109 = vmatpush.bf16.msrb.mxu0 %v6488_v27  ;;  %v8153_v14 = vld [vmem:[#allocation6 + $0x7c4] sm:$0xf] }
 0x15c   :  { %3934 = vmatmul.bf16.gmra.mxu2 %v8875_v11  ;;  %v3821_v42 = vpop.f32.mrf.mxu3  ;;  %v3757_v60 = vpop.f32.mrf.mxu1  ;;  %v8089_v12 = vld [vmem:[#allocation6 + $0x5c4] sm:$0xf] }
 0x15d   :  { %v3724_v32 = vpop.f32.mrf.mxu0  ;;  %4176 = vmatpush.bf16.msrb.mxu2 %v6728_v1  ;;  %v6597_v1 = vld [vmem:[#allocation6 + $0x5d0] sm:$0xf0] }
 0x15e   :  { %v3725_v18 = vadd.f32 %v3724_v32, %v8809_v7  ;;  %v8887_v7 = vpack.c.bf16 %v293_v44, %v293_v44  ;;  %v6472_v44 = vor.u32 %v8057_v8, %v6469_v13  ;;  %v6600_v16 = vor.u32 %v8089_v12, %v6597_v1  ;;  %v6709_v8 = vld [vmem:[#allocation6 + $0x6b0] sm:$0xf0]  ;;  %v8149_v12 = vld [vmem:[#allocation6 + $0x7a4] sm:$0xf] }
 0x15f   :  { %v3788_v17 = vpop.f32.mrf.mxu2 }
 0x160   :  { %v3789_v62 = vadd.f32 %v3788_v17, %v3756_v41  ;;  %v3758_v40 = vadd.f32 %v3757_v60, %v3725_v18  ;;  %v295_v41 = vld [vmem:[#allocation3 + $0x470] sm:$0xff]  ;;  %v8894_v18 = vpack.c.bf16 %v296_v36, %v296_v36  ;;  %4110 = vmatpush.bf16.msrb.mxu0 %v6472_v44  ;;  %4143 = vmatpush.bf16.msrb.mxu1 %v6600_v16 }
 0x161   :  { %v6837_v44 = vld [vmem:[#allocation6 + $0x7b0] sm:$0xf0] }
 0x162   :  { %v8885_v63 = vadd.f32 %v3821_v42, %v3789_v62  ;;  %v8891_v62 = vpack.c.bf16 %v295_v41, %v295_v41  ;;  %9661 = vst [vmem:[#allocation67_spill] sm:$0xff] %v8894_v18  ;;  %v6581_v16 = vld [vmem:[#allocation6 + $0x5b0] sm:$0xf0] }
 0x164   :  { %v3823_v17 = vpop.f32.mrf.mxu3  ;;  %9660 = vst [vmem:[#allocation66_spill] sm:$0xff] %v8891_v62  ;;  %v3760_v32 = vpop.f32.mrf.mxu1 }
 0x165   :  { %v3727_v27 = vpop.f32.mrf.mxu0 }
 0x166   :  { %v3728_v42 = vadd.f32 %v3727_v27, %v8816_v10 }
 0x167   :  { %v3790_v33 = vpop.f32.mrf.mxu2  ;;  %3906 = vmatmul.bf16.gmra.mxu1 %v8889_v15 }
 0x168   :  { %v3791_v9 = vadd.f32 %v3790_v33, %v3758_v40  ;;  %v3761_v61 = vadd.f32 %v3760_v32, %v3728_v42  ;;  %3873 = vmatmul.bf16.gmra.mxu0 %v8887_v7  ;;  %v6853_v40 = vld [vmem:[#allocation6 + $0x7d0] sm:$0xf0]  ;;  %v8117_v32 = vld [vmem:[#allocation6 + $0x6a4] sm:$0xf] }
 0x169   :  { %v6856_v10 = vor.u32 %v8153_v14, %v6853_v40  ;;  %3972 = vmatmul.bf16.gmra.mxu3 %v8894_v18  ;;  %v8053_v14 = vld [vmem:[#allocation6 + $0x4a4] sm:$0xf]  ;;  %v6453_v40 = vld [vmem:[#allocation6 + $0x4b0] sm:$0xf0] }
 0x16a   :  { %v8896_v60 = vadd.f32 %v3823_v17, %v3791_v9  ;;  %v6456_v1 = vor.u32 %v8053_v14, %v6453_v40  ;;  %v6693_v14 = vld [vmem:[#allocation6 + $0x690] sm:$0xf0]  ;;  %v8145_v40 = vld [vmem:[#allocation6 + $0x784] sm:$0xf] }
 0x16b   :  { %4209 = vmatpush.bf16.msrb.mxu3 %v6856_v10  ;;  %v8085_v10 = vld [vmem:[#allocation6 + $0x5a4] sm:$0xf] }
 0x16c   :  { %3939 = vmatmul.bf16.gmra.mxu2 %v8891_v62  ;;  %v3826_v33 = vpop.f32.mrf.mxu3  ;;  %v3762_v27 = vpop.f32.mrf.mxu1  ;;  %v6712_v62 = vor.u32 %v8117_v32, %v6709_v8  ;;  %4111 = vmatpush.bf16.msrb.mxu0 %v6456_v1  ;;  %v8113_v8 = vld [vmem:[#allocation6 + $0x684] sm:$0xf] }
 0x16d   :  { %v3729_v9 = vpop.f32.mrf.mxu0  ;;  %v8081_v1 = vld [vmem:[#allocation6 + $0x584] sm:$0xf] }
 0x16e   :  { %v3730_v17 = vadd.f32 %v3729_v9, %v8827_v19  ;;  %4177 = vmatpush.bf16.msrb.mxu2 %v6712_v62  ;;  %v6696_v62 = vor.u32 %v8113_v8, %v6693_v14  ;;  %v8109_v8 = vld [vmem:[#allocation6 + $0x664] sm:$0xf]  ;;  %v6677_v14 = vld [vmem:[#allocation6 + $0x670] sm:$0xf0] }
 0x16f   :  { %v3793_v41 = vpop.f32.mrf.mxu2 }
 0x170   :  { %v3794_v36 = vadd.f32 %v3793_v41, %v3761_v61  ;;  %v3763_v13 = vadd.f32 %v3762_v27, %v3730_v17  ;;  %v6840_v61 = vor.u32 %v8149_v12, %v6837_v44  ;;  %v6584_v41 = vor.u32 %v8085_v10, %v6581_v16  ;;  %v6821_v12 = vld [vmem:[#allocation6 + $0x790] sm:$0xf0] }
 0x171   :  { %v6565_v44 = vld [vmem:[#allocation6 + $0x590] sm:$0xf0]  ;;  %v6824_v16 = vor.u32 %v8145_v40, %v6821_v12 }
 0x172   :  { %v8903_v42 = vadd.f32 %v3826_v33, %v3794_v36  ;;  %4210 = vmatpush.bf16.msrb.mxu3 %v6840_v61  ;;  %4144 = vmatpush.bf16.msrb.mxu1 %v6584_v41  ;;  %v6568_v61 = vor.u32 %v8081_v1, %v6565_v44  ;;  %v6805_v40 = vld [vmem:[#allocation6 + $0x770] sm:$0xf0] }
 0x173   :  { %4178 = vmatpush.bf16.msrb.mxu2 %v6696_v62  ;;  %v8045_v62 = vld [vmem:[#allocation6 + $0x464] sm:$0xf] }
 0x174   :  { %v3828_v36 = vpop.f32.mrf.mxu3  ;;  %v3765_v17 = vpop.f32.mrf.mxu1 }
 0x175   :  { %v3732_v33 = vpop.f32.mrf.mxu0 }
 0x176   :  { %v3733_v9 = vadd.f32 %v3732_v33, %v8834_v39  ;;  %4211 = vmatpush.bf16.msrb.mxu3 %v6824_v16  ;;  %4145 = vmatpush.bf16.msrb.mxu1 %v6568_v61  ;;  %v6549_v16 = vld [vmem:[#allocation6 + $0x570] sm:$0xf0] }
 0x177   :  { %v3795_v18 = vpop.f32.mrf.mxu2  ;;  %4018 = vmatmul.bf16.vlgmr.msra.gmra.mxu1 %v8612_v53 }
 0x178   :  { %v3796_v19 = vadd.f32 %v3795_v18, %v3763_v13  ;;  %v3766_v32 = vadd.f32 %v3765_v17, %v3733_v9  ;;  %3985 = vmatmul.bf16.vlgmr.msra.gmra.mxu0 %v8610_v48  ;;  %v8049_v18 = vld [vmem:[#allocation6 + $0x484] sm:$0xf]  ;;  %v6437_v13 = vld [vmem:[#allocation6 + $0x490] sm:$0xf0] }
 0x179   :  { %4084 = vmatmul.bf16.vlgmr.msra.gmra.mxu3 %v8616_v57  ;;  %v6440_v39 = vor.u32 %v8049_v18, %v6437_v13  ;;  %v6680_v13 = vor.u32 %v8109_v8, %v6677_v14  ;;  %v6421_v57 = vld [vmem:[#allocation6 + $0x470] sm:$0xf0] }
 0x17a   :  { %v8906_v27 = vadd.f32 %v3828_v36, %v3796_v19  ;;  %v6424_v12 = vor.u32 %v8045_v62, %v6421_v57  ;;  %v6661_v57 = vld [vmem:[#allocation6 + $0x650] sm:$0xf0] }
 0x17b   :  { %4112 = vmatpush.bf16.msrb.mxu0 %v6440_v39  ;;  %4179 = vmatpush.bf16.msrb.mxu2 %v6680_v13 }
 0x17c   :  { %4051 = vmatmul.bf16.vlgmr.msra.gmra.mxu2 %v8614_v54  ;;  %v3831_v19 = vpop.f32.mrf.mxu3  ;;  %v3767_v9 = vpop.f32.mrf.mxu1  ;;  %v8141_v54 = vld [vmem:[#allocation6 + $0x764] sm:$0xf] }
 0x17d   :  { %v3734_v36 = vpop.f32.mrf.mxu0 }
 0x17e   :  { %v3735_v33 = vadd.f32 %v3734_v36, %v8845_v2 }
 0x17f   :  { %v3798_v10 = vpop.f32.mrf.mxu2  ;;  %4113 = vmatpush.bf16.msrb.mxu0 %v6424_v12 }
 0x180   :  { %v3799_v41 = vadd.f32 %v3798_v10, %v3766_v32  ;;  %v3768_v18 = vadd.f32 %v3767_v9, %v3735_v33  ;;  %v6808_v32 = vor.u32 %v8141_v54, %v6805_v40  ;;  %v8077_v10 = vld [vmem:[#allocation6 + $0x564] sm:$0xf] }
 0x181   :  { %v8105_v54 = vld [vmem:[#allocation6 + $0x644] sm:$0xf] }
 0x182   :  { %v8913_v17 = vadd.f32 %v3831_v19, %v3799_v41  ;;  %4212 = vmatpush.bf16.msrb.mxu3 %v6808_v32  ;;  %v6552_v19 = vor.u32 %v8077_v10, %v6549_v16  ;;  %v6664_v9 = vor.u32 %v8105_v54, %v6661_v57  ;;  %v6789_v54 = vld [vmem:[#allocation6 + $0x750] sm:$0xf0]  ;;  %v8073_v57 = vld [vmem:[#allocation6 + $0x544] sm:$0xf] }
 0x184   :  { %v3833_v1 = vpop.f32.mrf.mxu3  ;;  %v3770_v41 = vpop.f32.mrf.mxu1  ;;  %4146 = vmatpush.bf16.msrb.mxu1 %v6552_v19  ;;  %4180 = vmatpush.bf16.msrb.mxu2 %v6664_v9  ;;  %v8137_v19 = vld [vmem:[#allocation6 + $0x744] sm:$0xf]  ;;  %v6533_v9 = vld [vmem:[#allocation6 + $0x550] sm:$0xf0] }
 0x185   :  { %v3737_v44 = vpop.f32.mrf.mxu0 }
 0x186   :  { %v3738_v61 = vadd.f32 %v3737_v44, %v8852_v0 }
 0x187   :  { %v3800_v39 = vpop.f32.mrf.mxu2  ;;  %4023 = vmatmul.bf16.gmra.mxu1 %v8624_v47 }
 0x188   :  { %v3801_v2 = vadd.f32 %v3800_v39, %v3768_v18  ;;  %v3771_v33 = vadd.f32 %v3770_v41, %v3738_v61  ;;  %3990 = vmatmul.bf16.gmra.mxu0 %v8622_v43  ;;  %v8041_v61 = vld [vmem:[#allocation6 + $0x444] sm:$0xf]  ;;  %v6405_v41 = vld [vmem:[#allocation6 + $0x450] sm:$0xf0] }
 0x189   :  { %4089 = vmatmul.bf16.gmra.mxu3 %v8628_v50 }
 0x18a   :  { %v8916_v36 = vadd.f32 %v3833_v1, %v3801_v2 }
 0x18c   :  { %4056 = vmatmul.bf16.gmra.mxu2 %v8626_v49  ;;  %v3836_v0 = vpop.f32.mrf.mxu3  ;;  %v3772_v13 = vpop.f32.mrf.mxu1 }
 0x18d   :  { %v3739_v62 = vpop.f32.mrf.mxu0 }
 0x18e   :  { %v3740_v18 = vadd.f32 %v3739_v62, %v8863_v35  ;;  %v6408_v35 = vor.u32 %v8041_v61, %v6405_v41  ;;  %v6773_v61 = vld [vmem:[#allocation6 + $0x730] sm:$0xf0] }
 0x18f   :  { %v3803_v8 = vpop.f32.mrf.mxu2 }
 0x190   :  { %v3804_v14 = vadd.f32 %v3803_v8, %v3771_v33  ;;  %v3773_v12 = vadd.f32 %v3772_v13, %v3740_v18  ;;  %v6792_v8 = vor.u32 %v8137_v19, %v6789_v54  ;;  %4114 = vmatpush.bf16.msrb.mxu0 %v6408_v35  ;;  %v8069_v54 = vld [vmem:[#allocation6 + $0x524] sm:$0xf]  ;;  %v6517_v35 = vld [vmem:[#allocation6 + $0x530] sm:$0xf0] }
 0x192   :  { %v8923_v40 = vadd.f32 %v3836_v0, %v3804_v14  ;;  %v6536_v14 = vor.u32 %v8073_v57, %v6533_v9  ;;  %4213 = vmatpush.bf16.msrb.mxu3 %v6792_v8  ;;  %v6520_v57 = vor.u32 %v8069_v54, %v6517_v35  ;;  %v8097_v9 = vld [vmem:[#allocation6 + $0x604] sm:$0xf]  ;;  %v6629_v8 = vld [vmem:[#allocation6 + $0x610] sm:$0xf0] }
 0x193   :  { %v5718_v35 = vld [vmem:[#allocation9] sm:$0xf] }
 0x194   :  { %v3838_v2 = vpop.f32.mrf.mxu3  ;;  %v3775_v10 = vpop.f32.mrf.mxu1  ;;  %4147 = vmatpush.bf16.msrb.mxu1 %v6536_v14  ;;  %v8033_v14 = vld [vmem:[#allocation6 + $0x404] sm:$0xf] }
 0x195   :  { %v3742_v1 = vpop.f32.mrf.mxu0 }
 0x196   :  { %v3743_v44 = vadd.f32 %v3742_v1, %v8869_v34 }
 0x197   :  { %v3805_v32 = vpop.f32.mrf.mxu2  ;;  %4028 = vmatmul.bf16.gmra.mxu1 %v8636_v22 }
 0x198   :  { %v3806_v39 = vadd.f32 %v3805_v32, %v3773_v12  ;;  %v3776_v33 = vadd.f32 %v3775_v10, %v3743_v44  ;;  %3995 = vmatmul.bf16.gmra.mxu0 %v8634_v21  ;;  %v8101_v32 = vld [vmem:[#allocation6 + $0x624] sm:$0xf]  ;;  %v6389_v44 = vld [vmem:[#allocation6 + $0x430] sm:$0xf0]  ;;  %4148 = vmatpush.bf16.msrb.mxu1 %v6520_v57 }
 0x199   :  { %4094 = vmatmul.bf16.gmra.mxu3 %v8640_v24  ;;  %v8133_v10 = vld [vmem:[#allocation6 + $0x724] sm:$0xf] }
 0x19a   :  { %v8926_v16 = vadd.f32 %v3838_v2, %v3806_v39  ;;  %v6645_v39 = vld [vmem:[#allocation6 + $0x630] sm:$0xf0]  ;;  %v8037_v2 = vld [vmem:[#allocation6 + $0x424] sm:$0xf]  ;;  %v6776_v19 = vor.u32 %v8133_v10, %v6773_v61 }
 0x19b   :  { %v6648_v1 = vor.u32 %v8101_v32, %v6645_v39  ;;  %v6392_v41 = vor.u32 %v8037_v2, %v6389_v44  ;;  %v6757_v32 = vld [vmem:[#allocation6 + $0x710] sm:$0xf0]  ;;  %v8065_v10 = vld [vmem:[#allocation6 + $0x504] sm:$0xf] }
 0x19c   :  { %4061 = vmatmul.bf16.gmra.mxu2 %v8638_v23  ;;  %v3841_v62 = vpop.f32.mrf.mxu3  ;;  %v3777_v13 = vpop.f32.mrf.mxu1  ;;  %4214 = vmatpush.bf16.msrb.mxu3 %v6776_v19  ;;  %v6501_v61 = vld [vmem:[#allocation6 + $0x510] sm:$0xf0]  ;;  %v5672_v19 = vld [vmem:[#allocation8] sm:$0xf] }
 0x19d   :  { %v3744_v18 = vpop.f32.mrf.mxu0  ;;  %4181 = vmatpush.bf16.msrb.mxu2 %v6648_v1  ;;  %4115 = vmatpush.bf16.msrb.mxu0 %v6392_v41  ;;  %v8129_v13 = vld [vmem:[#allocation6 + $0x704] sm:$0xf]  ;;  %v6504_v41 = vor.u32 %v8065_v10, %v6501_v61  ;;  %v7381_v10 = vld [vmem:[#allocation6 + $0xbf0] sm:$0xf0] }
 0x19e   :  { %v6373_v18 = vld [vmem:[#allocation6 + $0x410] sm:$0xf0]  ;;  %v6760_v44 = vor.u32 %v8129_v13, %v6757_v32  ;;  %v8189_v32 = vld [vmem:[#allocation6 + $0x8e4] sm:$0xf] }
 0x19f   :  { %v3808_v34 = vpop.f32.mrf.mxu2  ;;  %v6376_v2 = vor.u32 %v8033_v14, %v6373_v18  ;;  %4149 = vmatpush.bf16.msrb.mxu1 %v6504_v41  ;;  %v8941_v14 = vperm.slane %v5718_v35, 0  ;;  %v8253_v18 = vld [vmem:[#allocation6 + $0xae4] sm:$0xf]  ;;  %v7253_v13 = vld [vmem:[#allocation6 + $0xaf0] sm:$0xf0] }
 0x1a0   :  { %v3809_v0 = vadd.f32 %v3808_v34, %v3776_v33  ;;  %4215 = vmatpush.bf16.msrb.mxu3 %v6760_v44  ;;  %v7256_v44 = vor.u32 %v8253_v18, %v7253_v13 }
 0x1a1   :  { %4116 = vmatpush.bf16.msrb.mxu0 %v6376_v2  ;;  %v6997_v2 = vld [vmem:[#allocation6 + $0x8f0] sm:$0xf0] }
 0x1a2   :  { %v8932_v12 = vadd.f32 %v3841_v62, %v3809_v0  ;;  %v6632_v62 = vor.u32 %v8097_v9, %v6629_v8 }
 0x1a4   :  { %v3843_v34 = vpop.f32.mrf.mxu3  ;;  %v3887_v39 = vpop.f32.mrf.mxu1  ;;  %4182 = vmatpush.bf16.msrb.mxu2 %v6632_v62 }
 0x1a5   :  { %v3854_v0 = vpop.f32.mrf.mxu0 }
 0x1a6   :  { %v3855_v1 = vadd.f32 %v3854_v0, %v8885_v63  ;;  %v8939_v63 = vperm.slane %v5672_v19, 0 }
 0x1a7   :  { %v3810_v33 = vpop.f32.mrf.mxu2  ;;  %4033 = vmatmul.bf16.gmra.mxu1 %v8648_v56 }
 0x1a8   :  { %4000 = vmatmul.bf16.gmra.mxu0 %v8646_v55  ;;  %v3888_v54 = vadd.f32 %v3887_v39, %v3855_v1  ;;  %v8285_v39 = vld [vmem:[#allocation6 + $0xbe4] sm:$0xf]  ;;  %v7000_v1 = vor.u32 %v8189_v32, %v6997_v2  ;;  %4307 = vmatpush.bf16.msra.mxu2 %v7256_v44  ;;  %v7237_v2 = vld [vmem:[#allocation6 + $0xad0] sm:$0xf0] }
 0x1a9   :  { %4099 = vmatmul.bf16.gmra.mxu3 %v8652_v59  ;;  %v7384_v41 = vor.u32 %v8285_v39, %v7381_v10  ;;  %v8221_v59 = vld [vmem:[#allocation6 + $0x9e4] sm:$0xf] }
 0x1aa   :  { %4241 = vmatpush.bf16.msra.mxu0 %v7000_v1  ;;  %v8249_v44 = vld [vmem:[#allocation6 + $0xac4] sm:$0xf] }
 0x1ab   :  { %4340 = vmatpush.bf16.msra.mxu3 %v7384_v41 }
 0x1ac   :  { %4066 = vmatmul.bf16.gmra.mxu2 %v8650_v58  ;;  %v3953_v9 = vpop.f32.mrf.mxu3  ;;  %v3889_v34 = vpop.f32.mrf.mxu1 }
 0x1ad   :  { %v3856_v8 = vpop.f32.mrf.mxu0 }
 0x1ae   :  { %v3857_v62 = vadd.f32 %v3856_v8, %v8896_v60 }
 0x1af   :  { %v3920_v57 = vpop.f32.mrf.mxu2 }
 0x1b0   :  { %v3921_v33 = vadd.f32 %v3920_v57, %v3888_v54  ;;  %v3890_v54 = vadd.f32 %v3889_v34, %v3857_v62  ;;  %v7240_v62 = vor.u32 %v8249_v44, %v7237_v2 }
 0x1b2   :  { %v3954_v0 = vadd.f32 %v3953_v9, %v3921_v33  ;;  %4308 = vmatpush.bf16.msra.mxu2 %v7240_v62 }
 0x1b4   :  { %v5682_v61 = vmul.f32 %v8939_v63, %v3954_v0  ;;  %v3955_v33 = vpop.f32.mrf.mxu3  ;;  %v3892_v8 = vpop.f32.mrf.mxu1  ;;  %v7125_v0 = vld [vmem:[#allocation6 + $0x9f0] sm:$0xf0] }
 0x1b5   :  { %v3859_v9 = vpop.f32.mrf.mxu0  ;;  %v7128_v32 = vor.u32 %v8221_v59, %v7125_v0  ;;  %v8217_v0 = vld [vmem:[#allocation6 + $0x9c4] sm:$0xf] }
 0x1b6   :  { %v5728_v19 = vadd.f32 %v8941_v14, %v5682_v61  ;;  %v3860_v13 = vadd.f32 %v3859_v9, %v8903_v42  ;;  %v8281_v9 = vld [vmem:[#allocation6 + $0xbc4] sm:$0xf] }
 0x1b7   :  { %v3922_v35 = vpop.f32.mrf.mxu2  ;;  %4038 = vmatmul.bf16.gmra.mxu1 %v8660_v29 }
 0x1b8   :  { %v5764_v57 = vmax.f32 %v5728_v19, 0.0  ;;  %v3923_v60 = vadd.f32 %v3922_v35, %v3890_v54  ;;  %4005 = vmatmul.bf16.gmra.mxu0 %v8658_v28  ;;  %4274 = vmatpush.bf16.msra.mxu1 %v7128_v32  ;;  %v3893_v42 = vadd.f32 %v3892_v8, %v3860_v13  ;;  %v7109_v13 = vld [vmem:[#allocation6 + $0x9d0] sm:$0xf0] }
 0x1b9   :  { %4104 = vmatmul.bf16.gmra.mxu3 %v8664_v31  ;;  %v7112_v44 = vor.u32 %v8217_v0, %v7109_v13  ;;  %v8213_v0 = vld [vmem:[#allocation6 + $0x9a4] sm:$0xf] }
 0x1ba   :  { %5800 = vst [vmem:[#allocation11] sm:$0xff] %v5764_v57  ;;  %v3956_v18 = vadd.f32 %v3955_v33, %v3923_v60  ;;  %v8185_v57 = vld [vmem:[#allocation6 + $0x8c4] sm:$0xf]  ;;  %v6981_v60 = vld [vmem:[#allocation6 + $0x8d0] sm:$0xf0] }
 0x1bb   :  { %v6984_v33 = vor.u32 %v8185_v57, %v6981_v60  ;;  %v8181_v60 = vld [vmem:[#allocation6 + $0x8a4] sm:$0xf] }
 0x1bc   :  { %v5686_v34 = vmul.f32 %v8939_v63, %v3956_v18  ;;  %4071 = vmatmul.bf16.gmra.mxu2 %v8662_v30  ;;  %v3958_v59 = vpop.f32.mrf.mxu3  ;;  %v3894_v19 = vpop.f32.mrf.mxu1  ;;  %v7365_v18 = vld [vmem:[#allocation6 + $0xbd0] sm:$0xf0]  ;;  %4275 = vmatpush.bf16.msra.mxu1 %v7112_v44 }
 0x1bd   :  { %v3861_v41 = vpop.f32.mrf.mxu0  ;;  %v7368_v8 = vor.u32 %v8281_v9, %v7365_v18  ;;  %4242 = vmatpush.bf16.msra.mxu0 %v6984_v33  ;;  %v6965_v33 = vld [vmem:[#allocation6 + $0x8b0] sm:$0xf0] }
 0x1be   :  { %v5732_v39 = vadd.f32 %v8941_v14, %v5686_v34  ;;  %v3862_v35 = vadd.f32 %v3861_v41, %v8906_v27  ;;  %v8245_v41 = vld [vmem:[#allocation6 + $0xaa4] sm:$0xf]  ;;  %v6968_v9 = vor.u32 %v8181_v60, %v6965_v33  ;;  %v7349_v18 = vld [vmem:[#allocation6 + $0xbb0] sm:$0xf0] }
 0x1bf   :  { %v3925_v10 = vpop.f32.mrf.mxu2  ;;  %4341 = vmatpush.bf16.msra.mxu3 %v7368_v8  ;;  %v8177_v60 = vld [vmem:[#allocation6 + $0x884] sm:$0xf]  ;;  %v6949_v33 = vld [vmem:[#allocation6 + $0x890] sm:$0xf0] }
 0x1c0   :  { %v5768_v61 = vmax.f32 %v5732_v39, 0.0  ;;  %v3926_v1 = vadd.f32 %v3925_v10, %v3893_v42  ;;  %v3895_v34 = vadd.f32 %v3894_v19, %v3862_v35  ;;  %v8277_v19 = vld [vmem:[#allocation6 + $0xba4] sm:$0xf] }
 0x1c1   :  { %4243 = vmatpush.bf16.msra.mxu0 %v6968_v9  ;;  %v8209_v9 = vld [vmem:[#allocation6 + $0x984] sm:$0xf] }
 0x1c2   :  { %5804 = vst [vmem:[#allocation11 + $0x20] sm:$0xff] %v5768_v61  ;;  %v3959_v54 = vadd.f32 %v3958_v59, %v3926_v1 }
 0x1c4   :  { %v5690_v32 = vmul.f32 %v8939_v63, %v3959_v54  ;;  %v3960_v42 = vpop.f32.mrf.mxu3  ;;  %v3897_v61 = vpop.f32.mrf.mxu1  ;;  %v7221_v54 = vld [vmem:[#allocation6 + $0xab0] sm:$0xf0] }
 0x1c5   :  { %v3864_v10 = vpop.f32.mrf.mxu0  ;;  %v7224_v57 = vor.u32 %v8245_v41, %v7221_v54  ;;  %v8241_v41 = vld [vmem:[#allocation6 + $0xa84] sm:$0xf]  ;;  %v7205_v54 = vld [vmem:[#allocation6 + $0xa90] sm:$0xf0] }
 0x1c6   :  { %v5736_v2 = vadd.f32 %v8941_v14, %v5690_v32  ;;  %v3865_v59 = vadd.f32 %v3864_v10, %v8913_v17  ;;  %v7093_v32 = vld [vmem:[#allocation6 + $0x9b0] sm:$0xf0]  ;;  %v7352_v17 = vor.u32 %v8277_v19, %v7349_v18  ;;  %v8273_v19 = vld [vmem:[#allocation6 + $0xb84] sm:$0xf] }
 0x1c7   :  { %v3927_v62 = vpop.f32.mrf.mxu2  ;;  %4150 = vmatmul.bf16.vlgmr.msrb.gmra.mxu1 %v8672_v4  ;;  %4309 = vmatpush.bf16.msra.mxu2 %v7224_v57  ;;  %v7096_v8 = vor.u32 %v8213_v0, %v7093_v32  ;;  %v7208_v57 = vor.u32 %v8241_v41, %v7205_v54  ;;  %v7077_v18 = vld [vmem:[#allocation6 + $0x990] sm:$0xf0] }
 0x1c8   :  { %v5772_v39 = vmax.f32 %v5736_v2, 0.0  ;;  %v3928_v27 = vadd.f32 %v3927_v62, %v3895_v34  ;;  %4117 = vmatmul.bf16.vlgmr.msrb.gmra.mxu0 %v8670_v3  ;;  %v3898_v44 = vadd.f32 %v3897_v61, %v3865_v59  ;;  %4342 = vmatpush.bf16.msra.mxu3 %v7352_v17  ;;  %v6952_v59 = vor.u32 %v8177_v60, %v6949_v33  ;;  %v7189_v41 = vld [vmem:[#allocation6 + $0xa70] sm:$0xf0] }
 0x1c9   :  { %4216 = vmatmul.bf16.vlgmr.msrb.gmra.mxu3 %v8676_v6  ;;  %4276 = vmatpush.bf16.msra.mxu1 %v7096_v8  ;;  %v7080_v32 = vor.u32 %v8209_v9, %v7077_v18  ;;  %v8233_v9 = vld [vmem:[#allocation6 + $0xa44] sm:$0xf]  ;;  %v7173_v18 = vld [vmem:[#allocation6 + $0xa50] sm:$0xf0] }
 0x1ca   :  { %5808 = vst [vmem:[#allocation11 + $0x40] sm:$0xff] %v5772_v39  ;;  %v3961_v1 = vadd.f32 %v3960_v42, %v3928_v27  ;;  %4244 = vmatpush.bf16.msra.mxu0 %v6952_v59  ;;  %v7061_v59 = vld [vmem:[#allocation6 + $0x970] sm:$0xf0] }
 0x1cb   :  { %4310 = vmatpush.bf16.msra.mxu2 %v7208_v57  ;;  %v8173_v57 = vld [vmem:[#allocation6 + $0x864] sm:$0xf] }
 0x1cc   :  { %v5694_v35 = vmul.f32 %v8939_v63, %v3961_v1  ;;  %4183 = vmatmul.bf16.vlgmr.msrb.gmra.mxu2 %v8674_v5  ;;  %v3963_v39 = vpop.f32.mrf.mxu3  ;;  %v3899_v42 = vpop.f32.mrf.mxu1 }
 0x1cd   :  { %v3866_v27 = vpop.f32.mrf.mxu0  ;;  %4277 = vmatpush.bf16.msra.mxu1 %v7080_v32 }
 0x1ce   :  { %v5740_v13 = vadd.f32 %v8941_v14, %v5694_v35  ;;  %v3867_v1 = vadd.f32 %v3866_v27, %v8916_v36  ;;  %v7333_v35 = vld [vmem:[#allocation6 + $0xb90] sm:$0xf0] }
 0x1cf   :  { %v3930_v2 = vpop.f32.mrf.mxu2  ;;  %v7336_v0 = vor.u32 %v8273_v19, %v7333_v35  ;;  %v7317_v19 = vld [vmem:[#allocation6 + $0xb70] sm:$0xf0] }
 0x1d0   :  { %v5776_v34 = vmax.f32 %v5740_v13, 0.0  ;;  %v3931_v62 = vadd.f32 %v3930_v2, %v3898_v44  ;;  %v3900_v8 = vadd.f32 %v3899_v42, %v3867_v1  ;;  %v6933_v42 = vld [vmem:[#allocation6 + $0x870] sm:$0xf0]  ;;  %v8269_v1 = vld [vmem:[#allocation6 + $0xb64] sm:$0xf] }
 0x1d1   :  { %4343 = vmatpush.bf16.msra.mxu3 %v7336_v0  ;;  %v6936_v33 = vor.u32 %v8173_v57, %v6933_v42  ;;  %v8265_v42 = vld [vmem:[#allocation6 + $0xb44] sm:$0xf] }
 0x1d2   :  { %5812 = vst [vmem:[#allocation11 + $0x60] sm:$0xff] %v5776_v34  ;;  %v3964_v10 = vadd.f32 %v3963_v39, %v3931_v62 }
 0x1d3   :  { %4245 = vmatpush.bf16.msra.mxu0 %v6936_v33  ;;  %v7045_v33 = vld [vmem:[#allocation6 + $0x950] sm:$0xf0] }
 0x1d4   :  { %v5698_v61 = vmul.f32 %v8939_v63, %v3964_v10  ;;  %v3965_v2 = vpop.f32.mrf.mxu3  ;;  %v3902_v62 = vpop.f32.mrf.mxu1  ;;  %v8237_v10 = vld [vmem:[#allocation6 + $0xa64] sm:$0xf] }
 0x1d5   :  { %v3869_v34 = vpop.f32.mrf.mxu0  ;;  %v7192_v54 = vor.u32 %v8237_v10, %v7189_v41  ;;  %v8169_v41 = vld [vmem:[#allocation6 + $0x844] sm:$0xf] }
 0x1d6   :  { %v5744_v17 = vadd.f32 %v8941_v14, %v5698_v61  ;;  %v3870_v27 = vadd.f32 %v3869_v34, %v8923_v40  ;;  %v8205_v61 = vld [vmem:[#allocation6 + $0x964] sm:$0xf]  ;;  %v7320_v40 = vor.u32 %v8269_v1, %v7317_v19 }
 0x1d7   :  { %v3932_v36 = vpop.f32.mrf.mxu2  ;;  %4155 = vmatmul.bf16.gmra.mxu1 %v8684_v46  ;;  %4311 = vmatpush.bf16.msra.mxu2 %v7192_v54  ;;  %v7064_v35 = vor.u32 %v8205_v61, %v7061_v59  ;;  %v6917_v54 = vld [vmem:[#allocation6 + $0x850] sm:$0xf0] }
 0x1d8   :  { %v5780_v13 = vmax.f32 %v5744_v17, 0.0  ;;  %v3933_v44 = vadd.f32 %v3932_v36, %v3900_v8  ;;  %4122 = vmatmul.bf16.gmra.mxu0 %v8682_v45  ;;  %v3903_v32 = vadd.f32 %v3902_v62, %v3870_v27  ;;  %v7176_v17 = vor.u32 %v8233_v9, %v7173_v18  ;;  %4344 = vmatpush.bf16.msra.mxu3 %v7320_v40  ;;  %v7301_v62 = vld [vmem:[#allocation6 + $0xb50] sm:$0xf0]  ;;  %v8201_v27 = vld [vmem:[#allocation6 + $0x944] sm:$0xf] }
 0x1d9   :  { %4221 = vmatmul.bf16.gmra.mxu3 %v8688_v52  ;;  %4278 = vmatpush.bf16.msra.mxu1 %v7064_v35  ;;  %v6920_v57 = vor.u32 %v8169_v41, %v6917_v54  ;;  %v7048_v19 = vor.u32 %v8201_v27, %v7045_v33  ;;  %v7285_v41 = vld [vmem:[#allocation6 + $0xb30] sm:$0xf0]  ;;  %v9662_v54 = vld [vmem:[#allocation22_spill] sm:$0xff] }
 0x1da   :  { %5816 = vst [vmem:[#allocation11 + $0x80] sm:$0xff] %v5780_v13  ;;  %v3966_v39 = vadd.f32 %v3965_v2, %v3933_v44 }
 0x1db   :  { %4312 = vmatpush.bf16.msra.mxu2 %v7176_v17  ;;  %4246 = vmatpush.bf16.msra.mxu0 %v6920_v57  ;;  %v8197_v57 = vld [vmem:[#allocation6 + $0x924] sm:$0xf] }
 0x1dc   :  { %v5702_v60 = vmul.f32 %v8939_v63, %v3966_v39  ;;  %4188 = vmatmul.bf16.gmra.mxu2 %v8686_v51  ;;  %v3968_v44 = vpop.f32.mrf.mxu3  ;;  %v3904_v34 = vpop.f32.mrf.mxu1 }
 0x1dd   :  { %v3871_v2 = vpop.f32.mrf.mxu0  ;;  %4279 = vmatpush.bf16.msra.mxu1 %v7048_v19 }
 0x1de   :  { %v5748_v0 = vadd.f32 %v8941_v14, %v5702_v60  ;;  %v3872_v10 = vadd.f32 %v3871_v2, %v8926_v16  ;;  %v7304_v60 = vor.u32 %v8265_v42, %v7301_v62  ;;  %v6901_v2 = vld [vmem:[#allocation6 + $0x830] sm:$0xf0] }
 0x1df   :  { %v3935_v8 = vpop.f32.mrf.mxu2  ;;  %v7029_v42 = vld [vmem:[#allocation6 + $0x930] sm:$0xf0] }
 0x1e0   :  { %v5784_v36 = vmax.f32 %v5748_v0, 0.0  ;;  %v3936_v13 = vadd.f32 %v3935_v8, %v3903_v32  ;;  %v3905_v59 = vadd.f32 %v3904_v34, %v3872_v10  ;;  %4345 = vmatpush.bf16.msra.mxu3 %v7304_v60  ;;  %v8229_v8 = vld [vmem:[#allocation6 + $0xa24] sm:$0xf] }
 0x1e1   :  { %v8261_v34 = vld [vmem:[#allocation6 + $0xb24] sm:$0xf] }
 0x1e2   :  { %5820 = vst [vmem:[#allocation11 + $0xa0] sm:$0xff] %v5784_v36  ;;  %v3969_v39 = vadd.f32 %v3968_v44, %v3936_v13  ;;  %v7157_v36 = vld [vmem:[#allocation6 + $0xa30] sm:$0xf0]  ;;  %v8165_v44 = vld [vmem:[#allocation6 + $0x824] sm:$0xf] }
 0x1e3   :  { %v7160_v13 = vor.u32 %v8229_v8, %v7157_v36  ;;  %v6904_v10 = vor.u32 %v8165_v44, %v6901_v2  ;;  %v6885_v8 = vld [vmem:[#allocation6 + $0x810] sm:$0xf0]  ;;  %v8257_v36 = vld [vmem:[#allocation6 + $0xb04] sm:$0xf] }
 0x1e4   :  { %v5706_v1 = vmul.f32 %v8939_v63, %v3969_v39  ;;  %v3970_v9 = vpop.f32.mrf.mxu3  ;;  %v3907_v0 = vpop.f32.mrf.mxu1  ;;  %v8193_v44 = vld [vmem:[#allocation6 + $0x904] sm:$0xf]  ;;  %v7013_v2 = vld [vmem:[#allocation6 + $0x910] sm:$0xf0] }
 0x1e5   :  { %v3874_v18 = vpop.f32.mrf.mxu0  ;;  %4313 = vmatpush.bf16.msra.mxu2 %v7160_v13  ;;  %4247 = vmatpush.bf16.msra.mxu0 %v6904_v10  ;;  %v7269_v13 = vld [vmem:[#allocation6 + $0xb10] sm:$0xf0] }
 0x1e6   :  { %v5752_v61 = vadd.f32 %v8941_v14, %v5706_v1  ;;  %v3875_v17 = vadd.f32 %v3874_v18, %v8932_v12  ;;  %v7288_v12 = vor.u32 %v8261_v34, %v7285_v41  ;;  %v7032_v1 = vor.u32 %v8197_v57, %v7029_v42 }
 0x1e7   :  { %v3937_v40 = vpop.f32.mrf.mxu2  ;;  %4160 = vmatmul.bf16.gmra.mxu1 %v8696_v25  ;;  %v7272_v34 = vor.u32 %v8257_v36, %v7269_v13 }
 0x1e8   :  { %v5788_v35 = vmax.f32 %v5752_v61, 0.0  ;;  %v3938_v16 = vadd.f32 %v3937_v40, %v3905_v59  ;;  %4127 = vmatmul.bf16.gmra.mxu0 %v8694_v20  ;;  %v3908_v27 = vadd.f32 %v3907_v0, %v3875_v17  ;;  %4346 = vmatpush.bf16.msra.mxu3 %v7288_v12 }
 0x1e9   :  { %4226 = vmatmul.bf16.gmra.mxu3 %v9662_v54  ;;  %4280 = vmatpush.bf16.msra.mxu1 %v7032_v1  ;;  %v9664_v1 = vld [vmem:[#allocation24_spill] sm:$0xff] }
 0x1ea   :  { %5824 = vst [vmem:[#allocation11 + $0xc0] sm:$0xff] %v5788_v35  ;;  %v3971_v32 = vadd.f32 %v3970_v9, %v3938_v16  ;;  %v8225_v16 = vld [vmem:[#allocation6 + $0xa04] sm:$0xf]  ;;  %v7141_v9 = vld [vmem:[#allocation6 + $0xa10] sm:$0xf0] }
 0x1eb   :  { %v7144_v18 = vor.u32 %v8225_v16, %v7141_v9  ;;  %v7893_v16 = vld [vmem:[#allocation6 + $0xff0] sm:$0xf0] }
 0x1ec   :  { %v5710_v39 = vmul.f32 %v8939_v63, %v3971_v32  ;;  %4193 = vmatmul.bf16.gmra.mxu2 %v8698_v26  ;;  %v3973_v61 = vpop.f32.mrf.mxu3  ;;  %v3909_v40 = vpop.f32.mrf.mxu1  ;;  %v8161_v32 = vld [vmem:[#allocation6 + $0x804] sm:$0xf]  ;;  %4347 = vmatpush.bf16.msra.mxu3 %v7272_v34  ;;  %v7637_v34 = vld [vmem:[#allocation6 + $0xdf0] sm:$0xf0] }
 0x1ed   :  { %v3876_v59 = vpop.f32.mrf.mxu0  ;;  %v6888_v17 = vor.u32 %v8161_v32, %v6885_v8  ;;  %4314 = vmatpush.bf16.msra.mxu2 %v7144_v18  ;;  %v7509_v40 = vld [vmem:[#allocation6 + $0xcf0] sm:$0xf0] }
 0x1ee   :  { %v5756_v62 = vadd.f32 %v8941_v14, %v5710_v39  ;;  %v7016_v39 = vor.u32 %v8193_v44, %v7013_v2  ;;  %v8349_v2 = vld [vmem:[#allocation6 + $0xde4] sm:$0xf] }
 0x1ef   :  { %v3940_v60 = vpop.f32.mrf.mxu2  ;;  %4248 = vmatpush.bf16.msra.mxu0 %v6888_v17 }
 0x1f0   :  { %v5792_v33 = vmax.f32 %v5756_v62, 0.0  ;;  %v3941_v19 = vadd.f32 %v3940_v60, %v3908_v27  ;;  %4281 = vmatpush.bf16.msra.mxu1 %v7016_v39  ;;  %v9665_v60 = vld [vmem:[#allocation25_spill] sm:$0xff]  ;;  %v8377_v39 = vld [vmem:[#allocation6 + $0xec4] sm:$0xf] }
 0x1f2   :  { %5828 = vst [vmem:[#allocation11 + $0xe0] sm:$0xff] %v5792_v33  ;;  %v3974_v35 = vadd.f32 %v3973_v61, %v3941_v19  ;;  %v9666_v33 = vld [vmem:[#allocation26_spill] sm:$0xff]  ;;  %v8381_v19 = vld [vmem:[#allocation6 + $0xee4] sm:$0xf] }
 0x1f3   :  { %v8317_v61 = vld [vmem:[#allocation6 + $0xce4] sm:$0xf] }
 0x1f4   :  { %v5714_v0 = vmul.f32 %v8939_v63, %v3974_v35  ;;  %v3975_v57 = vpop.f32.mrf.mxu3  ;;  %v4019_v62 = vpop.f32.mrf.mxu1  ;;  %v9663_v63 = vld [vmem:[#allocation23_spill] sm:$0xff]  ;;  %v7512_v18 = vor.u32 %v8317_v61, %v7509_v40  ;;  %v7493_v40 = vld [vmem:[#allocation6 + $0xcd0] sm:$0xf0] }
 0x1f5   :  { %v3986_v42 = vpop.f32.mrf.mxu0  ;;  %v8413_v35 = vld [vmem:[#allocation6 + $0xfe4] sm:$0xf] }
 0x1f6   :  { %v5760_v10 = vadd.f32 %v8941_v14, %v5714_v0  ;;  %v4020_v27 = vadd.f32 %v4019_v62, %v3986_v42  ;;  %v7765_v14 = vld [vmem:[#allocation6 + $0xef0] sm:$0xf0]  ;;  %v7896_v32 = vor.u32 %v8413_v35, %v7893_v16  ;;  %4373 = vmatpush.bf16.msrb.mxu0 %v7512_v18  ;;  %v8409_v35 = vld [vmem:[#allocation6 + $0xfc4] sm:$0xf] }
 0x1f7   :  { %v3942_v41 = vpop.f32.mrf.mxu2  ;;  %4165 = vmatmul.bf16.gmra.mxu1 %v9664_v1  ;;  %v7768_v59 = vor.u32 %v8381_v19, %v7765_v14  ;;  %v9667_v16 = vld [vmem:[#allocation27_spill] sm:$0xff]  ;;  %v7877_v18 = vld [vmem:[#allocation6 + $0xfd0] sm:$0xf0] }
 0x1f8   :  { %v5796_v12 = vmax.f32 %v5760_v10, 0.0  ;;  %4132 = vmatmul.bf16.gmra.mxu0 %v9663_v63  ;;  %4472 = vmatpush.bf16.msrb.mxu3 %v7896_v32  ;;  %v7640_v10 = vor.u32 %v8349_v2, %v7637_v34  ;;  %v7749_v41 = vld [vmem:[#allocation6 + $0xed0] sm:$0xf0]  ;;  %v8345_v32 = vld [vmem:[#allocation6 + $0xdc4] sm:$0xf]  ;;  %v9670_v2 = vld [vmem:[#allocation30_spill] sm:$0xff] }
 0x1f9   :  { %4231 = vmatmul.bf16.gmra.mxu3 %v9666_v33  ;;  %4439 = vmatpush.bf16.msrb.mxu2 %v7768_v59  ;;  %v8313_v59 = vld [vmem:[#allocation6 + $0xcc4] sm:$0xf] }
 0x1fa   :  { %5832 = vst [vmem:[#allocation11 + $0x100] sm:$0xff] %v5796_v12  ;;  %v7752_v12 = vor.u32 %v8377_v39, %v7749_v41  ;;  %4406 = vmatpush.bf16.msrb.mxu1 %v7640_v10 }
 0x1fc   :  { %4198 = vmatmul.bf16.gmra.mxu2 %v9665_v60  ;;  %v4085_v36 = vpop.f32.mrf.mxu3  ;;  %v4021_v17 = vpop.f32.mrf.mxu1  ;;  %v7413_v60 = vld [vmem:[#allocation6 + $0xc30] sm:$0xf0] }
 0x1fd   :  { %v3988_v0 = vpop.f32.mrf.mxu0  ;;  %4440 = vmatpush.bf16.msrb.mxu2 %v7752_v12 }
 0x1fe   :  { %v4022_v44 = vadd.f32 %v4021_v17, %v3988_v0  ;;  %v9669_v0 = vld [vmem:[#allocation29_spill] sm:$0xff]  ;;  %v7880_v17 = vor.u32 %v8409_v35, %v7877_v18  ;;  %v8405_v35 = vld [vmem:[#allocation6 + $0xfa4] sm:$0xf] }
 0x1ff   :  { %v4052_v9 = vpop.f32.mrf.mxu2  ;;  %v7861_v18 = vld [vmem:[#allocation6 + $0xfb0] sm:$0xf0] }
 0x200   :  { %v4053_v8 = vadd.f32 %v4052_v9, %v4020_v27  ;;  %v7496_v9 = vor.u32 %v8313_v59, %v7493_v40  ;;  %4473 = vmatpush.bf16.msrb.mxu3 %v7880_v17  ;;  %v7477_v40 = vld [vmem:[#allocation6 + $0xcb0] sm:$0xf0] }
 0x201   :  { %v7605_v17 = vld [vmem:[#allocation6 + $0xdb0] sm:$0xf0] }
 0x202   :  { %v8989_v13 = vadd.f32 %v4085_v36, %v4053_v8  ;;  %v7621_v8 = vld [vmem:[#allocation6 + $0xdd0] sm:$0xf0]  ;;  %v9668_v36 = vld [vmem:[#allocation28_spill] sm:$0xff]  ;;  %4374 = vmatpush.bf16.msrb.mxu0 %v7496_v9  ;;  %v8341_v9 = vld [vmem:[#allocation6 + $0xda4] sm:$0xf] }
 0x204   :  { %v4087_v62 = vpop.f32.mrf.mxu3  ;;  %v4024_v19 = vpop.f32.mrf.mxu1 }
 0x205   :  { %v3991_v27 = vpop.f32.mrf.mxu0 }
 0x206   :  { %v4025_v61 = vadd.f32 %v4024_v19, %v3991_v27  ;;  %v7733_v27 = vld [vmem:[#allocation6 + $0xeb0] sm:$0xf0]  ;;  %v8309_v19 = vld [vmem:[#allocation6 + $0xca4] sm:$0xf] }
 0x207   :  { %v4054_v57 = vpop.f32.mrf.mxu2  ;;  %4170 = vmatmul.bf16.gmra.mxu1 %v9668_v36  ;;  %v8397_v36 = vld [vmem:[#allocation6 + $0xf64] sm:$0xf] }
 0x208   :  { %v4055_v42 = vadd.f32 %v4054_v57, %v4022_v44  ;;  %4137 = vmatmul.bf16.gmra.mxu0 %v9667_v16  ;;  %v7624_v44 = vor.u32 %v8345_v32, %v7621_v8  ;;  %v7480_v32 = vor.u32 %v8309_v19, %v7477_v40  ;;  %v7864_v8 = vor.u32 %v8405_v35, %v7861_v18  ;;  %v9672_v40 = vld [vmem:[#allocation32_spill] sm:$0xff]  ;;  %v9674_v35 = vld [vmem:[#allocation34_spill] sm:$0xff]  ;;  %v8305_v18 = vld [vmem:[#allocation6 + $0xc84] sm:$0xf] }
 0x209   :  { %4236 = vmatmul.bf16.gmra.mxu3 %v9670_v2  ;;  %v7717_v2 = vld [vmem:[#allocation6 + $0xe90] sm:$0xf0] }
 0x20a   :  { %v8991_v14 = vadd.f32 %v4087_v62, %v4055_v42  ;;  %4407 = vmatpush.bf16.msrb.mxu1 %v7624_v44  ;;  %v8373_v62 = vld [vmem:[#allocation6 + $0xea4] sm:$0xf]  ;;  %v7608_v44 = vor.u32 %v8341_v9, %v7605_v17  ;;  %4375 = vmatpush.bf16.msrb.mxu0 %v7480_v32  ;;  %v7845_v9 = vld [vmem:[#allocation6 + $0xf90] sm:$0xf0] }
 0x20b   :  { %v7736_v59 = vor.u32 %v8373_v62, %v7733_v27  ;;  %4474 = vmatpush.bf16.msrb.mxu3 %v7864_v8  ;;  %v8369_v27 = vld [vmem:[#allocation6 + $0xe84] sm:$0xf]  ;;  %v7829_v16 = vld [vmem:[#allocation6 + $0xf70] sm:$0xf0] }
 0x20c   :  { %4203 = vmatmul.bf16.gmra.mxu2 %v9669_v0  ;;  %v4090_v10 = vpop.f32.mrf.mxu3  ;;  %v4026_v12 = vpop.f32.mrf.mxu1  ;;  %v9671_v0 = vld [vmem:[#allocation31_spill] sm:$0xff]  ;;  %v7720_v19 = vor.u32 %v8369_v27, %v7717_v2 }
 0x20d   :  { %v3993_v41 = vpop.f32.mrf.mxu0  ;;  %4441 = vmatpush.bf16.msrb.mxu2 %v7736_v59  ;;  %v9673_v59 = vld [vmem:[#allocation33_spill] sm:$0xff]  ;;  %v8401_v32 = vld [vmem:[#allocation6 + $0xf84] sm:$0xf] }
 0x20e   :  { %v4027_v42 = vadd.f32 %v4026_v12, %v3993_v41  ;;  %4408 = vmatpush.bf16.msrb.mxu1 %v7608_v44  ;;  %v8337_v17 = vld [vmem:[#allocation6 + $0xd84] sm:$0xf]  ;;  %v7589_v44 = vld [vmem:[#allocation6 + $0xd90] sm:$0xf0] }
 0x20f   :  { %v4057_v34 = vpop.f32.mrf.mxu2 }
 0x210   :  { %v4058_v39 = vadd.f32 %v4057_v34, %v4025_v61 }
 0x211   :  { %4442 = vmatpush.bf16.msrb.mxu2 %v7720_v19 }
 0x212   :  { %v8997_v57 = vadd.f32 %v4090_v10, %v4058_v39 }
 0x214   :  { %v4092_v39 = vpop.f32.mrf.mxu3  ;;  %v4029_v41 = vpop.f32.mrf.mxu1 }
 0x215   :  { %v3996_v10 = vpop.f32.mrf.mxu0 }
 0x216   :  { %v4030_v62 = vadd.f32 %v4029_v41, %v3996_v10 }
 0x217   :  { %v4059_v61 = vpop.f32.mrf.mxu2  ;;  %4282 = vmatmul.bf16.vlgmr.msra.gmra.mxu1 %v9672_v40  ;;  %v7701_v40 = vld [vmem:[#allocation6 + $0xe70] sm:$0xf0] }
 0x218   :  { %v4060_v34 = vadd.f32 %v4059_v61, %v4027_v42  ;;  %4249 = vmatmul.bf16.vlgmr.msra.gmra.mxu0 %v9671_v0  ;;  %v7461_v42 = vld [vmem:[#allocation6 + $0xc90] sm:$0xf0]  ;;  %v8301_v0 = vld [vmem:[#allocation6 + $0xc64] sm:$0xf] }
 0x219   :  { %4348 = vmatmul.bf16.vlgmr.msra.gmra.mxu3 %v9674_v35  ;;  %v7464_v8 = vor.u32 %v8305_v18, %v7461_v42  ;;  %v8365_v35 = vld [vmem:[#allocation6 + $0xe64] sm:$0xf]  ;;  %v7445_v42 = vld [vmem:[#allocation6 + $0xc70] sm:$0xf0] }
 0x21a   :  { %v8999_v12 = vadd.f32 %v4092_v39, %v4060_v34  ;;  %v7848_v34 = vor.u32 %v8401_v32, %v7845_v9  ;;  %v7592_v39 = vor.u32 %v8337_v17, %v7589_v44  ;;  %v7704_v18 = vor.u32 %v8365_v35, %v7701_v40  ;;  %v8333_v44 = vld [vmem:[#allocation6 + $0xd64] sm:$0xf]  ;;  %v9676_v35 = vld [vmem:[#allocation36_spill] sm:$0xff] }
 0x21b   :  { %4376 = vmatpush.bf16.msrb.mxu0 %v7464_v8  ;;  %v7448_v33 = vor.u32 %v8301_v0, %v7445_v42  ;;  %v7832_v32 = vor.u32 %v8397_v36, %v7829_v16  ;;  %v9675_v40 = vld [vmem:[#allocation35_spill] sm:$0xff]  ;;  %v9677_v16 = vld [vmem:[#allocation37_spill] sm:$0xff] }
 0x21c   :  { %4315 = vmatmul.bf16.vlgmr.msra.gmra.mxu2 %v9673_v59  ;;  %v4095_v41 = vpop.f32.mrf.mxu3  ;;  %v4031_v27 = vpop.f32.mrf.mxu1  ;;  %4475 = vmatpush.bf16.msrb.mxu3 %v7848_v34  ;;  %v8361_v36 = vld [vmem:[#allocation6 + $0xe44] sm:$0xf]  ;;  %v7685_v0 = vld [vmem:[#allocation6 + $0xe50] sm:$0xf0] }
 0x21d   :  { %v3998_v2 = vpop.f32.mrf.mxu0  ;;  %4409 = vmatpush.bf16.msrb.mxu1 %v7592_v39  ;;  %4443 = vmatpush.bf16.msrb.mxu2 %v7704_v18 }
 0x21e   :  { %v4032_v19 = vadd.f32 %v4031_v27, %v3998_v2  ;;  %v7688_v2 = vor.u32 %v8361_v36, %v7685_v0 }
 0x21f   :  { %v4062_v61 = vpop.f32.mrf.mxu2  ;;  %4377 = vmatpush.bf16.msrb.mxu0 %v7448_v33  ;;  %v9678_v33 = vld [vmem:[#allocation38_spill] sm:$0xff] }
 0x220   :  { %v4063_v10 = vadd.f32 %v4062_v61, %v4030_v62  ;;  %4476 = vmatpush.bf16.msrb.mxu3 %v7832_v32  ;;  %v7573_v61 = vld [vmem:[#allocation6 + $0xd70] sm:$0xf0] }
 0x221   :  { %v7576_v39 = vor.u32 %v8333_v44, %v7573_v61  ;;  %4444 = vmatpush.bf16.msrb.mxu2 %v7688_v2  ;;  %v8393_v44 = vld [vmem:[#allocation6 + $0xf44] sm:$0xf] }
 0x222   :  { %v9005_v59 = vadd.f32 %v4095_v41, %v4063_v10 }
 0x223   :  { %4410 = vmatpush.bf16.msrb.mxu1 %v7576_v39  ;;  %v8329_v39 = vld [vmem:[#allocation6 + $0xd44] sm:$0xf] }
 0x224   :  { %v4097_v9 = vpop.f32.mrf.mxu3  ;;  %v4034_v34 = vpop.f32.mrf.mxu1 }
 0x225   :  { %v4001_v17 = vpop.f32.mrf.mxu0 }
 0x226   :  { %v4035_v41 = vadd.f32 %v4034_v34, %v4001_v17  ;;  %v7429_v17 = vld [vmem:[#allocation6 + $0xc50] sm:$0xf0] }
 0x227   :  { %v4064_v62 = vpop.f32.mrf.mxu2  ;;  %4287 = vmatmul.bf16.gmra.mxu1 %v9676_v35  ;;  %v7813_v34 = vld [vmem:[#allocation6 + $0xf50] sm:$0xf0] }
 0x228   :  { %v4065_v8 = vadd.f32 %v4064_v62, %v4032_v19  ;;  %4254 = vmatmul.bf16.gmra.mxu0 %v9675_v40  ;;  %v9679_v40 = vld [vmem:[#allocation39_spill] sm:$0xff] }
 0x229   :  { %4353 = vmatmul.bf16.gmra.mxu3 %v9678_v33  ;;  %v7816_v33 = vor.u32 %v8393_v44, %v7813_v34  ;;  %v8389_v44 = vld [vmem:[#allocation6 + $0xf24] sm:$0xf] }
 0x22a   :  { %v9007_v10 = vadd.f32 %v4097_v9, %v4065_v8  ;;  %v8297_v9 = vld [vmem:[#allocation6 + $0xc44] sm:$0xf] }
 0x22b   :  { %v7432_v61 = vor.u32 %v8297_v9, %v7429_v17  ;;  %4477 = vmatpush.bf16.msrb.mxu3 %v7816_v33  ;;  %v8293_v17 = vld [vmem:[#allocation6 + $0xc24] sm:$0xf]  ;;  %v9681_v33 = vld [vmem:[#allocation41_spill] sm:$0xff] }
 0x22c   :  { %4320 = vmatmul.bf16.gmra.mxu2 %v9677_v16  ;;  %v4100_v18 = vpop.f32.mrf.mxu3  ;;  %v4036_v32 = vpop.f32.mrf.mxu1  ;;  %v7557_v16 = vld [vmem:[#allocation6 + $0xd50] sm:$0xf0] }
 0x22d   :  { %v4003_v42 = vpop.f32.mrf.mxu0  ;;  %v7560_v35 = vor.u32 %v8329_v39, %v7557_v16  ;;  %4378 = vmatpush.bf16.msrb.mxu0 %v7432_v61  ;;  %v9680_v16 = vld [vmem:[#allocation40_spill] sm:$0xff]  ;;  %v9682_v61 = vld [vmem:[#allocation42_spill] sm:$0xff]  ;;  %v8325_v39 = vld [vmem:[#allocation6 + $0xd24] sm:$0xf] }
 0x22e   :  { %v4037_v8 = vadd.f32 %v4036_v32, %v4003_v42  ;;  %v8357_v42 = vld [vmem:[#allocation6 + $0xe24] sm:$0xf]  ;;  %v7669_v32 = vld [vmem:[#allocation6 + $0xe30] sm:$0xf0] }
 0x22f   :  { %v4067_v27 = vpop.f32.mrf.mxu2  ;;  %4411 = vmatpush.bf16.msrb.mxu1 %v7560_v35  ;;  %v7672_v9 = vor.u32 %v8357_v42, %v7669_v32  ;;  %v7416_v35 = vor.u32 %v8293_v17, %v7413_v60  ;;  %v7653_v60 = vld [vmem:[#allocation6 + $0xe10] sm:$0xf0]  ;;  %v8289_v17 = vld [vmem:[#allocation6 + $0xc04] sm:$0xf] }
 0x230   :  { %v4068_v19 = vadd.f32 %v4067_v27, %v4035_v41 }
 0x231   :  { %4445 = vmatpush.bf16.msrb.mxu2 %v7672_v9  ;;  %4379 = vmatpush.bf16.msrb.mxu0 %v7416_v35  ;;  %v8385_v9 = vld [vmem:[#allocation6 + $0xf04] sm:$0xf] }
 0x232   :  { %v9013_v62 = vadd.f32 %v4100_v18, %v4068_v19  ;;  %v8321_v35 = vld [vmem:[#allocation6 + $0xd04] sm:$0xf] }
 0x234   :  { %v4102_v0 = vpop.f32.mrf.mxu3  ;;  %v4039_v27 = vpop.f32.mrf.mxu1 }
 0x235   :  { %v4006_v2 = vpop.f32.mrf.mxu0 }
 0x236   :  { %v4040_v18 = vadd.f32 %v4039_v27, %v4006_v2 }
 0x237   :  { %v4069_v41 = vpop.f32.mrf.mxu2  ;;  %4292 = vmatmul.bf16.gmra.mxu1 %v9680_v16 }
 0x238   :  { %v4070_v36 = vadd.f32 %v4069_v41, %v4037_v8  ;;  %4259 = vmatmul.bf16.gmra.mxu0 %v9679_v40  ;;  %v7797_v8 = vld [vmem:[#allocation6 + $0xf30] sm:$0xf0] }
 0x239   :  { %4358 = vmatmul.bf16.gmra.mxu3 %v9682_v61  ;;  %v7800_v34 = vor.u32 %v8389_v44, %v7797_v8  ;;  %v7541_v41 = vld [vmem:[#allocation6 + $0xd30] sm:$0xf0] }
 0x23a   :  { %v9015_v19 = vadd.f32 %v4102_v0, %v4070_v36  ;;  %v7544_v36 = vor.u32 %v8325_v39, %v7541_v41  ;;  %v7397_v61 = vld [vmem:[#allocation6 + $0xc10] sm:$0xf0] }
 0x23b   :  { %4478 = vmatpush.bf16.msrb.mxu3 %v7800_v34  ;;  %v7781_v44 = vld [vmem:[#allocation6 + $0xf10] sm:$0xf0]  ;;  %v7400_v8 = vor.u32 %v8289_v17, %v7397_v61  ;;  %v5979_v17 = vld [vmem:[#allocation6 + $0xe8] sm:$0xf] }
 0x23c   :  { %4325 = vmatmul.bf16.gmra.mxu2 %v9681_v33  ;;  %v4105_v27 = vpop.f32.mrf.mxu3  ;;  %4412 = vmatpush.bf16.msrb.mxu1 %v7544_v36  ;;  %v4041_v32 = vpop.f32.mrf.mxu1  ;;  %v8353_v33 = vld [vmem:[#allocation6 + $0xe04] sm:$0xf]  ;;  %v7784_v1 = vor.u32 %v8385_v9, %v7781_v44  ;;  %v7525_v39 = vld [vmem:[#allocation6 + $0xd10] sm:$0xf0]  ;;  %v6363_v44 = vld [vmem:[#allocation6 + $0x3e8] sm:$0xf] }
 0x23d   :  { %v4008_v42 = vpop.f32.mrf.mxu0  ;;  %v7656_v40 = vor.u32 %v8353_v33, %v7653_v60  ;;  %v7528_v34 = vor.u32 %v8321_v35, %v7525_v39  ;;  %4380 = vmatpush.bf16.msrb.mxu0 %v7400_v8  ;;  %v9683_v33 = vld [vmem:[#allocation43_spill] sm:$0xff]  ;;  %v9685_v61 = vld [vmem:[#allocation45_spill] sm:$0xff]  ;;  %v9686_v32 = vld [vmem:[#allocation46_spill] sm:$0xff] }
 0x23e   :  { %v9684_v42 = vld [vmem:[#allocation44_spill] sm:$0xff]  ;;  %v8000_v60 = vld [vmem:[#allocation6 + $0x2f4] sm:$0xf0] }
 0x23f   :  { %v4072_v0 = vpop.f32.mrf.mxu2  ;;  %4446 = vmatpush.bf16.msrb.mxu2 %v7656_v40  ;;  %4479 = vmatpush.bf16.msrb.mxu3 %v7784_v1  ;;  %v6235_v40 = vld [vmem:[#allocation6 + $0x2e8] sm:$0xf]  ;;  %v7936_v1 = vld [vmem:[#allocation6 + $0xf4] sm:$0xf0] }
 0x240   :  { %v4073_v2 = vadd.f32 %v4072_v0, %v4040_v18  ;;  %4413 = vmatpush.bf16.msrb.mxu1 %v7528_v34  ;;  %v6236_v9 = vor.u32 %v8000_v60, %v6235_v40  ;;  %v8032_v8 = vld [vmem:[#allocation6 + $0x3f4] sm:$0xf0]  ;;  %v5980_v39 = vor.u32 %v7936_v1, %v5979_v17 }
 0x242   :  { %v9021_v16 = vadd.f32 %v4105_v27, %v4073_v2  ;;  %4505 = vmatpush.bf16.msra.mxu0 %v5980_v39  ;;  %v7932_v39 = vld [vmem:[#allocation6 + $0xd4] sm:$0xf0] }
 0x243   :  { %4571 = vmatpush.bf16.msra.mxu2 %v6236_v9 }
 0x244   :  { %v4107_v41 = vpop.f32.mrf.mxu3  ;;  %v4151_v2 = vpop.f32.mrf.mxu1 }
 0x245   :  { %v4118_v36 = vpop.f32.mrf.mxu0 }
 0x246   :  { %v4119_v0 = vadd.f32 %v4118_v36, %v8989_v13  ;;  %v6364_v13 = vor.u32 %v8032_v8, %v6363_v44 }
 0x247   :  { %v4074_v18 = vpop.f32.mrf.mxu2  ;;  %4297 = vmatmul.bf16.gmra.mxu1 %v9684_v42  ;;  %v6219_v42 = vld [vmem:[#allocation6 + $0x2c8] sm:$0xf] }
 0x248   :  { %v4152_v27 = vadd.f32 %v4151_v2, %v4119_v0  ;;  %4264 = vmatmul.bf16.gmra.mxu0 %v9683_v33  ;;  %4604 = vmatpush.bf16.msra.mxu3 %v6364_v13  ;;  %v7996_v33 = vld [vmem:[#allocation6 + $0x2d4] sm:$0xf0]  ;;  %v6347_v13 = vld [vmem:[#allocation6 + $0x3c8] sm:$0xf] }
 0x249   :  { %4363 = vmatmul.bf16.gmra.mxu3 %v9686_v32  ;;  %v6107_v32 = vld [vmem:[#allocation6 + $0x1e8] sm:$0xf]  ;;  %v6220_v63 = vor.u32 %v7996_v33, %v6219_v42  ;;  %v7964_v42 = vld [vmem:[#allocation6 + $0x1d4] sm:$0xf0] }
 0x24a   :  { %v6091_v33 = vld [vmem:[#allocation6 + $0x1c8] sm:$0xf] }
 0x24b   :  { %4572 = vmatpush.bf16.msra.mxu2 %v6220_v63  ;;  %v9688_v63 = vld [vmem:[#allocation48_spill] sm:$0xff] }
 0x24c   :  { %4330 = vmatmul.bf16.gmra.mxu2 %v9685_v61  ;;  %v4217_v18 = vpop.f32.mrf.mxu3  ;;  %v4153_v0 = vpop.f32.mrf.mxu1  ;;  %v7968_v61 = vld [vmem:[#allocation6 + $0x1f4] sm:$0xf0] }
 0x24d   :  { %v4120_v41 = vpop.f32.mrf.mxu0  ;;  %v6108_v60 = vor.u32 %v7968_v61, %v6107_v32  ;;  %v8028_v32 = vld [vmem:[#allocation6 + $0x3d4] sm:$0xf0] }
 0x24e   :  { %v4121_v36 = vadd.f32 %v4120_v41, %v8991_v14  ;;  %v9689_v41 = vld [vmem:[#allocation49_spill] sm:$0xff] }
 0x24f   :  { %v4184_v35 = vpop.f32.mrf.mxu2  ;;  %4538 = vmatpush.bf16.msra.mxu1 %v6108_v60 }
 0x250   :  { %v4185_v34 = vadd.f32 %v4184_v35, %v4152_v27  ;;  %v4154_v40 = vadd.f32 %v4153_v0, %v4121_v36  ;;  %v5963_v35 = vld [vmem:[#allocation6 + $0xc8] sm:$0xf]  ;;  %v6348_v36 = vor.u32 %v8028_v32, %v6347_v13  ;;  %v6092_v0 = vor.u32 %v7964_v42, %v6091_v33  ;;  %v7928_v32 = vld [vmem:[#allocation6 + $0xb4] sm:$0xf0] }
 0x251   :  { %v5964_v61 = vor.u32 %v7932_v39, %v5963_v35  ;;  %v7992_v35 = vld [vmem:[#allocation6 + $0x2b4] sm:$0xf0]  ;;  %v5947_v13 = vld [vmem:[#allocation6 + $0xa8] sm:$0xf] }
 0x252   :  { %v9029_v2 = vadd.f32 %v4217_v18, %v4185_v34  ;;  %v9687_v18 = vld [vmem:[#allocation47_spill] sm:$0xff]  ;;  %4605 = vmatpush.bf16.msra.mxu3 %v6348_v36  ;;  %v6331_v33 = vld [vmem:[#allocation6 + $0x3a8] sm:$0xf]  ;;  %v5948_v42 = vor.u32 %v7928_v32, %v5947_v13  ;;  %v7988_v32 = vld [vmem:[#allocation6 + $0x294] sm:$0xf0] }
 0x253   :  { %4506 = vmatpush.bf16.msra.mxu0 %v5964_v61  ;;  %4539 = vmatpush.bf16.msra.mxu1 %v6092_v0  ;;  %v8024_v61 = vld [vmem:[#allocation6 + $0x3b4] sm:$0xf0]  ;;  %v6075_v36 = vld [vmem:[#allocation6 + $0x1a8] sm:$0xf] }
 0x254   :  { %v4219_v1 = vpop.f32.mrf.mxu3  ;;  %v4156_v44 = vpop.f32.mrf.mxu1  ;;  %v7960_v0 = vld [vmem:[#allocation6 + $0x1b4] sm:$0xf0]  ;;  %v6187_v13 = vld [vmem:[#allocation6 + $0x288] sm:$0xf] }
 0x255   :  { %v4123_v9 = vpop.f32.mrf.mxu0 }
 0x256   :  { %v4124_v14 = vadd.f32 %v4123_v9, %v8997_v57  ;;  %v9690_v57 = vld [vmem:[#allocation50_spill] sm:$0xff] }
 0x257   :  { %v4186_v27 = vpop.f32.mrf.mxu2  ;;  %4302 = vmatmul.bf16.gmra.mxu1 %v9688_v63  ;;  %4507 = vmatpush.bf16.msra.mxu0 %v5948_v42  ;;  %v6188_v42 = vor.u32 %v7988_v32, %v6187_v13  ;;  %v7920_v63 = vld [vmem:[#allocation6 + $0x74] sm:$0xf0] }
 0x258   :  { %v4187_v17 = vadd.f32 %v4186_v27, %v4154_v40  ;;  %v4157_v34 = vadd.f32 %v4156_v44, %v4124_v14  ;;  %4269 = vmatmul.bf16.gmra.mxu0 %v9687_v18  ;;  %v6203_v44 = vld [vmem:[#allocation6 + $0x2a8] sm:$0xf] }
 0x259   :  { %4368 = vmatmul.bf16.gmra.mxu3 %v9690_v57  ;;  %v6299_v18 = vld [vmem:[#allocation6 + $0x368] sm:$0xf] }
 0x25a   :  { %v9032_v8 = vadd.f32 %v4219_v1, %v4187_v17 }
 0x25c   :  { %4335 = vmatmul.bf16.gmra.mxu2 %v9689_v41  ;;  %v4222_v27 = vpop.f32.mrf.mxu3  ;;  %v4158_v9 = vpop.f32.mrf.mxu1  ;;  %v6204_v41 = vor.u32 %v7992_v35, %v6203_v44  ;;  %v9691_v35 = vld [vmem:[#allocation51_spill] sm:$0xff] }
 0x25d   :  { %v4125_v17 = vpop.f32.mrf.mxu0 }
 0x25e   :  { %v4126_v1 = vadd.f32 %v4125_v17, %v8999_v12  ;;  %4573 = vmatpush.bf16.msra.mxu2 %v6204_v41  ;;  %v9692_v41 = vld [vmem:[#allocation52_spill] sm:$0xff] }
 0x25f   :  { %v4189_v40 = vpop.f32.mrf.mxu2 }
 0x260   :  { %v4190_v60 = vadd.f32 %v4189_v40, %v4157_v34  ;;  %v4159_v39 = vadd.f32 %v4158_v9, %v4126_v1  ;;  %v6332_v34 = vor.u32 %v8024_v61, %v6331_v33  ;;  %v6076_v40 = vor.u32 %v7960_v0, %v6075_v36  ;;  %v9693_v33 = vld [vmem:[#allocation53_spill] sm:$0xff]  ;;  %v9694_v61 = vld [vmem:[#allocation54_spill] sm:$0xff]  ;;  %v6315_v36 = vld [vmem:[#allocation6 + $0x388] sm:$0xf] }
 0x261   :  { %v8020_v0 = vld [vmem:[#allocation6 + $0x394] sm:$0xf0] }
 0x262   :  { %v9039_v14 = vadd.f32 %v4222_v27, %v4190_v60  ;;  %4606 = vmatpush.bf16.msra.mxu3 %v6332_v34  ;;  %4540 = vmatpush.bf16.msra.mxu1 %v6076_v40  ;;  %v6059_v34 = vld [vmem:[#allocation6 + $0x188] sm:$0xf]  ;;  %v7956_v40 = vld [vmem:[#allocation6 + $0x194] sm:$0xf0] }
 0x263   :  { %4574 = vmatpush.bf16.msra.mxu2 %v6188_v42  ;;  %v7984_v42 = vld [vmem:[#allocation6 + $0x274] sm:$0xf0] }
 0x264   :  { %v4224_v60 = vpop.f32.mrf.mxu3  ;;  %v4161_v1 = vpop.f32.mrf.mxu1 }
 0x265   :  { %v4128_v27 = vpop.f32.mrf.mxu0 }
 0x266   :  { %v4129_v17 = vadd.f32 %v4128_v27, %v9005_v59  ;;  %v6060_v27 = vor.u32 %v7956_v40, %v6059_v34  ;;  %v6043_v40 = vld [vmem:[#allocation6 + $0x168] sm:$0xf] }
 0x267   :  { %v4191_v57 = vpop.f32.mrf.mxu2  ;;  %4414 = vmatmul.bf16.vlgmr.msrb.gmra.mxu1 %v9692_v41 }
 0x268   :  { %v4192_v12 = vadd.f32 %v4191_v57, %v4159_v39  ;;  %v4162_v44 = vadd.f32 %v4161_v1, %v4129_v17  ;;  %4381 = vmatmul.bf16.vlgmr.msrb.gmra.mxu0 %v9691_v35  ;;  %v5931_v57 = vld [vmem:[#allocation6 + $0x88] sm:$0xf]  ;;  %v7924_v39 = vld [vmem:[#allocation6 + $0x94] sm:$0xf0]  ;;  %4541 = vmatpush.bf16.msra.mxu1 %v6060_v27 }
 0x269   :  { %4480 = vmatmul.bf16.vlgmr.msrb.gmra.mxu3 %v9694_v61  ;;  %v5932_v59 = vor.u32 %v7924_v39, %v5931_v57  ;;  %v6171_v61 = vld [vmem:[#allocation6 + $0x268] sm:$0xf] }
 0x26a   :  { %v9042_v9 = vadd.f32 %v4224_v60, %v4192_v12  ;;  %v6316_v60 = vor.u32 %v8020_v0, %v6315_v36  ;;  %v5915_v57 = vld [vmem:[#allocation6 + $0x68] sm:$0xf]  ;;  %v6172_v41 = vor.u32 %v7984_v42, %v6171_v61  ;;  %v8016_v36 = vld [vmem:[#allocation6 + $0x374] sm:$0xf0] }
 0x26b   :  { %4508 = vmatpush.bf16.msra.mxu0 %v5932_v59  ;;  %v5916_v0 = vor.u32 %v7920_v63, %v5915_v57  ;;  %v9697_v63 = vld [vmem:[#allocation57_spill] sm:$0xff]  ;;  %v7980_v42 = vld [vmem:[#allocation6 + $0x254] sm:$0xf0] }
 0x26c   :  { %4447 = vmatmul.bf16.vlgmr.msrb.gmra.mxu2 %v9693_v33  ;;  %v4227_v1 = vpop.f32.mrf.mxu3  ;;  %v4163_v13 = vpop.f32.mrf.mxu1  ;;  %4607 = vmatpush.bf16.msra.mxu3 %v6316_v60 }
 0x26d   :  { %v4130_v35 = vpop.f32.mrf.mxu0  ;;  %4575 = vmatpush.bf16.msra.mxu2 %v6172_v41  ;;  %v9698_v41 = vld [vmem:[#allocation58_spill] sm:$0xff] }
 0x26e   :  { %v4131_v33 = vadd.f32 %v4130_v35, %v9007_v10 }
 0x26f   :  { %v4194_v12 = vpop.f32.mrf.mxu2  ;;  %4509 = vmatpush.bf16.msra.mxu0 %v5916_v0 }
 0x270   :  { %v4195_v17 = vadd.f32 %v4194_v12, %v4162_v44  ;;  %v4164_v39 = vadd.f32 %v4163_v13, %v4131_v33  ;;  %v6300_v44 = vor.u32 %v8016_v36, %v6299_v18  ;;  %v7952_v12 = vld [vmem:[#allocation6 + $0x174] sm:$0xf0]  ;;  %v9696_v18 = vld [vmem:[#allocation56_spill] sm:$0xff] }
 0x271   :  { %v6155_v13 = vld [vmem:[#allocation6 + $0x248] sm:$0xf] }
 0x272   :  { %v9049_v32 = vadd.f32 %v4227_v1, %v4195_v17  ;;  %4608 = vmatpush.bf16.msra.mxu3 %v6300_v44  ;;  %v6044_v17 = vor.u32 %v7952_v12, %v6043_v40  ;;  %v9695_v1 = vld [vmem:[#allocation55_spill] sm:$0xff]  ;;  %v6156_v57 = vor.u32 %v7980_v42, %v6155_v13  ;;  %v6283_v40 = vld [vmem:[#allocation6 + $0x348] sm:$0xf] }
 0x274   :  { %v4229_v35 = vpop.f32.mrf.mxu3  ;;  %v4166_v27 = vpop.f32.mrf.mxu1  ;;  %4542 = vmatpush.bf16.msra.mxu1 %v6044_v17  ;;  %4576 = vmatpush.bf16.msra.mxu2 %v6156_v57  ;;  %v6027_v17 = vld [vmem:[#allocation6 + $0x148] sm:$0xf] }
 0x275   :  { %v4133_v34 = vpop.f32.mrf.mxu0 }
 0x276   :  { %v4134_v60 = vadd.f32 %v4133_v34, %v9013_v62  ;;  %v7916_v34 = vld [vmem:[#allocation6 + $0x54] sm:$0xf0] }
 0x277   :  { %v4196_v59 = vpop.f32.mrf.mxu2  ;;  %4419 = vmatmul.bf16.gmra.mxu1 %v9696_v18 }
 0x278   :  { %v4197_v10 = vadd.f32 %v4196_v59, %v4164_v39  ;;  %v4167_v61 = vadd.f32 %v4166_v27, %v4134_v60  ;;  %4386 = vmatmul.bf16.gmra.mxu0 %v9695_v1  ;;  %v8012_v27 = vld [vmem:[#allocation6 + $0x354] sm:$0xf0] }
 0x279   :  { %4485 = vmatmul.bf16.gmra.mxu3 %v9698_v41  ;;  %v7948_v41 = vld [vmem:[#allocation6 + $0x154] sm:$0xf0] }
 0x27a   :  { %v9052_v33 = vadd.f32 %v4229_v35, %v4197_v10  ;;  %v5899_v35 = vld [vmem:[#allocation6 + $0x48] sm:$0xf]  ;;  %v6028_v13 = vor.u32 %v7948_v41, %v6027_v17  ;;  %v7912_v41 = vld [vmem:[#allocation6 + $0x34] sm:$0xf0] }
 0x27b   :  { %v5900_v60 = vor.u32 %v7916_v34, %v5899_v35  ;;  %v9699_v35 = vld [vmem:[#allocation59_spill] sm:$0xff]  ;;  %v8008_v17 = vld [vmem:[#allocation6 + $0x334] sm:$0xf0] }
 0x27c   :  { %4452 = vmatmul.bf16.gmra.mxu2 %v9697_v63  ;;  %v4232_v62 = vpop.f32.mrf.mxu3  ;;  %v4168_v59 = vpop.f32.mrf.mxu1  ;;  %v6284_v63 = vor.u32 %v8012_v27, %v6283_v40  ;;  %4543 = vmatpush.bf16.msra.mxu1 %v6028_v13  ;;  %v5883_v40 = vld [vmem:[#allocation6 + $0x28] sm:$0xf]  ;;  %v9701_v27 = vld [vmem:[#allocation61_spill] sm:$0xff]  ;;  %v9702_v13 = vld [vmem:[#allocation62_spill] sm:$0xff] }
 0x27d   :  { %v4135_v0 = vpop.f32.mrf.mxu0  ;;  %4510 = vmatpush.bf16.msra.mxu0 %v5900_v60  ;;  %v6267_v60 = vld [vmem:[#allocation6 + $0x328] sm:$0xf] }
 0x27e   :  { %v4136_v44 = vadd.f32 %v4135_v0, %v9015_v19  ;;  %4609 = vmatpush.bf16.msra.mxu3 %v6284_v63  ;;  %v6139_v0 = vld [vmem:[#allocation6 + $0x228] sm:$0xf] }
 0x27f   :  { %v4199_v39 = vpop.f32.mrf.mxu2  ;;  %v9700_v63 = vld [vmem:[#allocation60_spill] sm:$0xff] }
 0x280   :  { %v4200_v36 = vadd.f32 %v4199_v39, %v4167_v61  ;;  %v4169_v12 = vadd.f32 %v4168_v59, %v4136_v44  ;;  %v7976_v44 = vld [vmem:[#allocation6 + $0x234] sm:$0xf0] }
 0x281   :  { %v6140_v34 = vor.u32 %v7976_v44, %v6139_v0 }
 0x282   :  { %v9059_v10 = vadd.f32 %v4232_v62, %v4200_v36 }
 0x283   :  { %4577 = vmatpush.bf16.msra.mxu2 %v6140_v34  ;;  %v6251_v34 = vld [vmem:[#allocation6 + $0x308] sm:$0xf] }
 0x284   :  { %v4234_v57 = vpop.f32.mrf.mxu3  ;;  %v4171_v36 = vpop.f32.mrf.mxu1 }
 0x285   :  { %v4138_v19 = vpop.f32.mrf.mxu0 }
 0x286   :  { %v4139_v39 = vadd.f32 %v4138_v19, %v9021_v16  ;;  %v6268_v16 = vor.u32 %v8008_v17, %v6267_v60  ;;  %v8004_v60 = vld [vmem:[#allocation6 + $0x314] sm:$0xf0] }
 0x287   :  { %v4201_v61 = vpop.f32.mrf.mxu2  ;;  %4424 = vmatmul.bf16.gmra.mxu1 %v9700_v63  ;;  %v6252_v18 = vor.u32 %v8004_v60, %v6251_v34 }
 0x288   :  { %v4202_v42 = vadd.f32 %v4201_v61, %v4169_v12  ;;  %v4172_v59 = vadd.f32 %v4171_v36, %v4139_v39  ;;  %4391 = vmatmul.bf16.gmra.mxu0 %v9699_v35  ;;  %v5884_v12 = vor.u32 %v7912_v41, %v5883_v40  ;;  %v6011_v61 = vld [vmem:[#allocation6 + $0x128] sm:$0xf]  ;;  %4610 = vmatpush.bf16.msra.mxu3 %v6268_v16  ;;  %v7972_v40 = vld [vmem:[#allocation6 + $0x214] sm:$0xf0] }
 0x289   :  { %4490 = vmatmul.bf16.gmra.mxu3 %v9702_v13  ;;  %v5867_v41 = vld [vmem:[#allocation6 + $0x8] sm:$0xf]  ;;  %v7908_v13 = vld [vmem:[#allocation6 + $0x14] sm:$0xf0] }
 0x28a   :  { %v9062_v62 = vadd.f32 %v4234_v57, %v4202_v42  ;;  %v7944_v42 = vld [vmem:[#allocation6 + $0x134] sm:$0xf0]  ;;  %4511 = vmatpush.bf16.msra.mxu0 %v5884_v12  ;;  %v5868_v17 = vor.u32 %v7908_v13, %v5867_v41  ;;  %v5995_v12 = vld [vmem:[#allocation6 + $0x108] sm:$0xf] }
 0x28b   :  { %v6012_v57 = vor.u32 %v7944_v42, %v6011_v61  ;;  %v7940_v61 = vld [vmem:[#allocation6 + $0x114] sm:$0xf0] }
 0x28c   :  { %4457 = vmatmul.bf16.gmra.mxu2 %v9701_v27  ;;  %v4237_v36 = vpop.f32.mrf.mxu3  ;;  %v4173_v44 = vpop.f32.mrf.mxu1  ;;  %v6123_v27 = vld [vmem:[#allocation6 + $0x208] sm:$0xf]  ;;  %v5996_v16 = vor.u32 %v7940_v61, %v5995_v12  ;;  %4611 = vmatpush.bf16.msra.mxu3 %v6252_v18  ;;  %v8128_v13 = vld [vmem:[#allocation6 + $0x6f4] sm:$0xf0] }
 0x28d   :  { %v4140_v0 = vpop.f32.mrf.mxu0  ;;  %4544 = vmatpush.bf16.msra.mxu1 %v6012_v57  ;;  %v6124_v35 = vor.u32 %v7972_v40, %v6123_v27  ;;  %v9703_v27 = vld [vmem:[#allocation65_spill] sm:$0xff]  ;;  %v8064_v18 = vld [vmem:[#allocation6 + $0x4f4] sm:$0xf0]  ;;  %v6875_v40 = vld [vmem:[#allocation6 + $0x7e8] sm:$0xf] }
 0x28e   :  { %4512 = vmatpush.bf16.msra.mxu0 %v5868_v17  ;;  %v6491_v0 = vld [vmem:[#allocation6 + $0x4e8] sm:$0xf]  ;;  %v8160_v41 = vld [vmem:[#allocation6 + $0x7f4] sm:$0xf0] }
 0x28f   :  { %v4204_v19 = vpop.f32.mrf.mxu2  ;;  %4578 = vmatpush.bf16.msra.mxu2 %v6124_v35  ;;  %v6747_v35 = vld [vmem:[#allocation6 + $0x6e8] sm:$0xf]  ;;  %v6492_v60 = vor.u32 %v8064_v18, %v6491_v0 }
 0x290   :  { %v4205_v39 = vadd.f32 %v4204_v19, %v4172_v59  ;;  %v6748_v44 = vor.u32 %v8128_v13, %v6747_v35  ;;  %v6731_v13 = vld [vmem:[#allocation6 + $0x6c8] sm:$0xf] }
 0x291   :  { %4545 = vmatpush.bf16.msra.mxu1 %v5996_v16 }
 0x292   :  { %v9068_v63 = vadd.f32 %v4237_v36, %v4205_v39  ;;  %4637 = vmatpush.bf16.msrb.mxu0 %v6492_v60  ;;  %v8060_v60 = vld [vmem:[#allocation6 + $0x4d4] sm:$0xf0] }
 0x293   :  { %4703 = vmatpush.bf16.msrb.mxu2 %v6748_v44 }
 0x294   :  { %v4239_v42 = vpop.f32.mrf.mxu3  ;;  %v4283_v39 = vpop.f32.mrf.mxu1 }
 0x295   :  { %v4250_v57 = vpop.f32.mrf.mxu0 }
 0x296   :  { %v4251_v19 = vadd.f32 %v4250_v57, %v9029_v2  ;;  %v6876_v2 = vor.u32 %v8160_v41, %v6875_v40  ;;  %v6619_v57 = vld [vmem:[#allocation6 + $0x5e8] sm:$0xf] }
 0x297   :  { %v4206_v59 = vpop.f32.mrf.mxu2  ;;  %4429 = vmatmul.bf16.gmra.mxu1 %v8873_v38 }
 0x298   :  { %v4284_v36 = vadd.f32 %v4283_v39, %v4251_v19  ;;  %4396 = vmatmul.bf16.gmra.mxu0 %v8871_v37  ;;  %4736 = vmatpush.bf16.msrb.mxu3 %v6876_v2  ;;  %v8096_v19 = vld [vmem:[#allocation6 + $0x5f4] sm:$0xf0]  ;;  %v6859_v2 = vld [vmem:[#allocation6 + $0x7c8] sm:$0xf] }
 0x299   :  { %4495 = vmatmul.bf16.gmra.mxu3 %v9703_v27  ;;  %v6620_v35 = vor.u32 %v8096_v19, %v6619_v57  ;;  %v8124_v27 = vld [vmem:[#allocation6 + $0x6d4] sm:$0xf0] }
 0x29b   :  { %4670 = vmatpush.bf16.msrb.mxu1 %v6620_v35 }
 0x29c   :  { %4462 = vmatmul.bf16.gmra.mxu2 %v8875_v11  ;;  %v4349_v12 = vpop.f32.mrf.mxu3  ;;  %v4285_v59 = vpop.f32.mrf.mxu1  ;;  %v6732_v11 = vor.u32 %v8124_v27, %v6731_v13  ;;  %v6603_v27 = vld [vmem:[#allocation6 + $0x5c8] sm:$0xf] }
 0x29d   :  { %v4252_v61 = vpop.f32.mrf.mxu0 }
 0x29e   :  { %v4253_v16 = vadd.f32 %v4252_v61, %v9032_v8  ;;  %4704 = vmatpush.bf16.msrb.mxu2 %v6732_v11  ;;  %v8156_v61 = vld [vmem:[#allocation6 + $0x7d4] sm:$0xf0] }
 0x29f   :  { %v4316_v34 = vpop.f32.mrf.mxu2  ;;  %v9704_v11 = vld [vmem:[#allocation66_spill] sm:$0xff] }
 0x2a0   :  { %v4317_v17 = vadd.f32 %v4316_v34, %v4284_v36  ;;  %v4286_v39 = vadd.f32 %v4285_v59, %v4253_v16  ;;  %v6475_v34 = vld [vmem:[#allocation6 + $0x4c8] sm:$0xf]  ;;  %v8092_v16 = vld [vmem:[#allocation6 + $0x5d4] sm:$0xf0]  ;;  %v6860_v59 = vor.u32 %v8156_v61, %v6859_v2 }
 0x2a1   :  { %v6604_v57 = vor.u32 %v8092_v16, %v6603_v27  ;;  %v8056_v2 = vld [vmem:[#allocation6 + $0x4b4] sm:$0xf0]  ;;  %v6843_v61 = vld [vmem:[#allocation6 + $0x7a8] sm:$0xf] }
 0x2a2   :  { %v9076_v42 = vadd.f32 %v4349_v12, %v4317_v17  ;;  %v6476_v12 = vor.u32 %v8060_v60, %v6475_v34  ;;  %4737 = vmatpush.bf16.msrb.mxu3 %v6860_v59  ;;  %v6459_v60 = vld [vmem:[#allocation6 + $0x4a8] sm:$0xf]  ;;  %v8088_v59 = vld [vmem:[#allocation6 + $0x5b4] sm:$0xf0] }
 0x2a3   :  { %4671 = vmatpush.bf16.msrb.mxu1 %v6604_v57  ;;  %v6460_v27 = vor.u32 %v8056_v2, %v6459_v60  ;;  %v6587_v16 = vld [vmem:[#allocation6 + $0x5a8] sm:$0xf]  ;;  %v8116_v60 = vld [vmem:[#allocation6 + $0x694] sm:$0xf0] }
 0x2a4   :  { %v4351_v18 = vpop.f32.mrf.mxu3  ;;  %v4288_v40 = vpop.f32.mrf.mxu1  ;;  %4638 = vmatpush.bf16.msrb.mxu0 %v6476_v12  ;;  %v8152_v12 = vld [vmem:[#allocation6 + $0x7b4] sm:$0xf0]  ;;  %v6588_v57 = vor.u32 %v8088_v59, %v6587_v16  ;;  %v6571_v59 = vld [vmem:[#allocation6 + $0x588] sm:$0xf] }
 0x2a5   :  { %v4255_v44 = vpop.f32.mrf.mxu0  ;;  %v8148_v16 = vld [vmem:[#allocation6 + $0x794] sm:$0xf0] }
 0x2a6   :  { %v4256_v8 = vadd.f32 %v4255_v44, %v9039_v14  ;;  %v9705_v14 = vld [vmem:[#allocation67_spill] sm:$0xff]  ;;  %v6715_v44 = vld [vmem:[#allocation6 + $0x6a8] sm:$0xf] }
 0x2a7   :  { %v4318_v36 = vpop.f32.mrf.mxu2  ;;  %4434 = vmatmul.bf16.gmra.mxu1 %v8889_v15 }
 0x2a8   :  { %v4319_v0 = vadd.f32 %v4318_v36, %v4286_v39  ;;  %v4289_v17 = vadd.f32 %v4288_v40, %v4256_v8  ;;  %4401 = vmatmul.bf16.gmra.mxu0 %v8887_v7  ;;  %v8120_v8 = vld [vmem:[#allocation6 + $0x6b4] sm:$0xf0]  ;;  %4672 = vmatpush.bf16.msrb.mxu1 %v6588_v57 }
 0x2a9   :  { %4500 = vmatmul.bf16.gmra.mxu3 %v9705_v14  ;;  %v6716_v34 = vor.u32 %v8120_v8, %v6715_v44  ;;  %4639 = vmatpush.bf16.msrb.mxu0 %v6460_v27  ;;  %v6699_v8 = vld [vmem:[#allocation6 + $0x688] sm:$0xf]  ;;  %v8052_v27 = vld [vmem:[#allocation6 + $0x494] sm:$0xf0] }
 0x2aa   :  { %v9079_v41 = vadd.f32 %v4351_v18, %v4319_v0  ;;  %v6700_v2 = vor.u32 %v8116_v60, %v6699_v8 }
 0x2ab   :  { %4705 = vmatpush.bf16.msrb.mxu2 %v6716_v34  ;;  %v9706_v34 = vld [vmem:[#allocation18_spill] sm:$0xff] }
 0x2ac   :  { %4467 = vmatmul.bf16.gmra.mxu2 %v9704_v11  ;;  %v4354_v35 = vpop.f32.mrf.mxu3  ;;  %v4290_v0 = vpop.f32.mrf.mxu1 }
 0x2ad   :  { %v4257_v13 = vpop.f32.mrf.mxu0 }
 0x2ae   :  { %v4258_v36 = vadd.f32 %v4257_v13, %v9042_v9 }
 0x2af   :  { %v4321_v19 = vpop.f32.mrf.mxu2  ;;  %4706 = vmatpush.bf16.msrb.mxu2 %v6700_v2  ;;  %v8112_v2 = vld [vmem:[#allocation6 + $0x674] sm:$0xf0] }
 0x2b0   :  { %v4322_v39 = vadd.f32 %v4321_v19, %v4289_v17  ;;  %v4291_v40 = vadd.f32 %v4290_v0, %v4258_v36  ;;  %v6844_v17 = vor.u32 %v8152_v12, %v6843_v61  ;;  %v9707_v61 = vld [vmem:[#allocation19_spill] sm:$0xff]  ;;  %v6827_v12 = vld [vmem:[#allocation6 + $0x788] sm:$0xf] }
 0x2b2   :  { %v9086_v18 = vadd.f32 %v4354_v35, %v4322_v39  ;;  %4738 = vmatpush.bf16.msrb.mxu3 %v6844_v17  ;;  %v8084_v17 = vld [vmem:[#allocation6 + $0x594] sm:$0xf0] }
 0x2b4   :  { %v4356_v39 = vpop.f32.mrf.mxu3  ;;  %v4293_v36 = vpop.f32.mrf.mxu1 }
 0x2b5   :  { %v4260_v35 = vpop.f32.mrf.mxu0 }
 0x2b6   :  { %v4261_v13 = vadd.f32 %v4260_v35, %v9049_v32 }
 0x2b7   :  { %v4323_v19 = vpop.f32.mrf.mxu2  ;;  %4546 = vmatmul.bf16.vlgmr.msra.gmra.mxu1 %v8612_v53  ;;  %v8048_v53 = vld [vmem:[#allocation6 + $0x474] sm:$0xf0] }
 0x2b8   :  { %v4324_v9 = vadd.f32 %v4323_v19, %v4291_v40  ;;  %v4294_v44 = vadd.f32 %v4293_v36, %v4261_v13  ;;  %4513 = vmatmul.bf16.vlgmr.msra.gmra.mxu0 %v8610_v48  ;;  %v6443_v40 = vld [vmem:[#allocation6 + $0x488] sm:$0xf]  ;;  %v6828_v19 = vor.u32 %v8148_v16, %v6827_v12  ;;  %v8144_v12 = vld [vmem:[#allocation6 + $0x774] sm:$0xf0] }
 0x2b9   :  { %4612 = vmatmul.bf16.vlgmr.msra.gmra.mxu3 %v9707_v61  ;;  %v6444_v32 = vor.u32 %v8052_v27, %v6443_v40  ;;  %v6683_v61 = vld [vmem:[#allocation6 + $0x668] sm:$0xf] }
 0x2ba   :  { %v9089_v0 = vadd.f32 %v4356_v39, %v4324_v9  ;;  %v6572_v9 = vor.u32 %v8084_v17, %v6571_v59  ;;  %4739 = vmatpush.bf16.msrb.mxu3 %v6828_v19  ;;  %v6427_v40 = vld [vmem:[#allocation6 + $0x468] sm:$0xf]  ;;  %v8080_v19 = vld [vmem:[#allocation6 + $0x574] sm:$0xf0] }
 0x2bb   :  { %4640 = vmatpush.bf16.msrb.mxu0 %v6444_v32  ;;  %v6811_v48 = vld [vmem:[#allocation6 + $0x768] sm:$0xf]  ;;  %v6428_v16 = vor.u32 %v8048_v53, %v6427_v40  ;;  %v8108_v53 = vld [vmem:[#allocation6 + $0x654] sm:$0xf0] }
 0x2bc   :  { %4579 = vmatmul.bf16.vlgmr.msra.gmra.mxu2 %v9706_v34  ;;  %v4359_v35 = vpop.f32.mrf.mxu3  ;;  %v4295_v8 = vpop.f32.mrf.mxu1  ;;  %4673 = vmatpush.bf16.msrb.mxu1 %v6572_v9  ;;  %v6684_v34 = vor.u32 %v8112_v2, %v6683_v61 }
 0x2bd   :  { %v4262_v13 = vpop.f32.mrf.mxu0 }
 0x2be   :  { %v4263_v36 = vadd.f32 %v4262_v13, %v9052_v33  ;;  %4707 = vmatpush.bf16.msrb.mxu2 %v6684_v34 }
 0x2bf   :  { %v4326_v57 = vpop.f32.mrf.mxu2  ;;  %4641 = vmatpush.bf16.msrb.mxu0 %v6428_v16 }
 0x2c0   :  { %v4327_v39 = vadd.f32 %v4326_v57, %v4294_v44  ;;  %v4296_v27 = vadd.f32 %v4295_v8, %v4263_v36  ;;  %v6812_v44 = vor.u32 %v8144_v12, %v6811_v48  ;;  %v6555_v57 = vld [vmem:[#allocation6 + $0x568] sm:$0xf] }
 0x2c1   :  { %v6667_v48 = vld [vmem:[#allocation6 + $0x648] sm:$0xf] }
 0x2c2   :  { %v9096_v60 = vadd.f32 %v4359_v35, %v4327_v39  ;;  %4740 = vmatpush.bf16.msrb.mxu3 %v6812_v44  ;;  %v6556_v35 = vor.u32 %v8080_v19, %v6555_v57  ;;  %v6668_v34 = vor.u32 %v8108_v53, %v6667_v48  ;;  %v8140_v48 = vld [vmem:[#allocation6 + $0x754] sm:$0xf0]  ;;  %v6539_v53 = vld [vmem:[#allocation6 + $0x548] sm:$0xf] }
 0x2c4   :  { %v4361_v59 = vpop.f32.mrf.mxu3  ;;  %v4298_v39 = vpop.f32.mrf.mxu1  ;;  %4674 = vmatpush.bf16.msrb.mxu1 %v6556_v35  ;;  %4708 = vmatpush.bf16.msrb.mxu2 %v6668_v34  ;;  %v6795_v35 = vld [vmem:[#allocation6 + $0x748] sm:$0xf]  ;;  %v8076_v34 = vld [vmem:[#allocation6 + $0x554] sm:$0xf0] }
 0x2c5   :  { %v4265_v17 = vpop.f32.mrf.mxu0 }
 0x2c6   :  { %v4266_v9 = vadd.f32 %v4265_v17, %v9059_v10 }
 0x2c7   :  { %v4328_v32 = vpop.f32.mrf.mxu2  ;;  %4551 = vmatmul.bf16.gmra.mxu1 %v8624_v47 }
 0x2c8   :  { %v4329_v33 = vadd.f32 %v4328_v32, %v4296_v27  ;;  %v4299_v61 = vadd.f32 %v4298_v39, %v4266_v9  ;;  %4518 = vmatmul.bf16.gmra.mxu0 %v8622_v43  ;;  %v6411_v9 = vld [vmem:[#allocation6 + $0x448] sm:$0xf]  ;;  %v8044_v39 = vld [vmem:[#allocation6 + $0x454] sm:$0xf0] }
 0x2c9   :  { %4617 = vmatmul.bf16.gmra.mxu3 %v8628_v50 }
 0x2ca   :  { %v9099_v13 = vadd.f32 %v4361_v59, %v4329_v33 }
 0x2cc   :  { %4584 = vmatmul.bf16.gmra.mxu2 %v8626_v49  ;;  %v4364_v10 = vpop.f32.mrf.mxu3  ;;  %v4300_v27 = vpop.f32.mrf.mxu1 }
 0x2cd   :  { %v4267_v2 = vpop.f32.mrf.mxu0 }
 0x2ce   :  { %v4268_v40 = vadd.f32 %v4267_v2, %v9062_v62  ;;  %v6412_v62 = vor.u32 %v8044_v39, %v6411_v9  ;;  %v8136_v9 = vld [vmem:[#allocation6 + $0x734] sm:$0xf0] }
 0x2cf   :  { %v4331_v36 = vpop.f32.mrf.mxu2 }
 0x2d0   :  { %v4332_v8 = vadd.f32 %v4331_v36, %v4299_v61  ;;  %v4301_v16 = vadd.f32 %v4300_v27, %v4268_v40  ;;  %v6796_v36 = vor.u32 %v8140_v48, %v6795_v35  ;;  %4642 = vmatpush.bf16.msrb.mxu0 %v6412_v62  ;;  %v6523_v48 = vld [vmem:[#allocation6 + $0x528] sm:$0xf]  ;;  %v8072_v62 = vld [vmem:[#allocation6 + $0x534] sm:$0xf0] }
 0x2d2   :  { %v9106_v12 = vadd.f32 %v4364_v10, %v4332_v8  ;;  %v6540_v8 = vor.u32 %v8076_v34, %v6539_v53  ;;  %4741 = vmatpush.bf16.msrb.mxu3 %v6796_v36  ;;  %v6524_v53 = vor.u32 %v8072_v62, %v6523_v48  ;;  %v6635_v34 = vld [vmem:[#allocation6 + $0x608] sm:$0xf]  ;;  %v8100_v36 = vld [vmem:[#allocation6 + $0x614] sm:$0xf0] }
 0x2d4   :  { %v4366_v33 = vpop.f32.mrf.mxu3  ;;  %v4303_v57 = vpop.f32.mrf.mxu1  ;;  %4675 = vmatpush.bf16.msrb.mxu1 %v6540_v8  ;;  %v6379_v8 = vld [vmem:[#allocation6 + $0x408] sm:$0xf] }
 0x2d5   :  { %v4270_v59 = vpop.f32.mrf.mxu0 }
 0x2d6   :  { %v4271_v17 = vadd.f32 %v4270_v59, %v9068_v63 }
 0x2d7   :  { %v4333_v44 = vpop.f32.mrf.mxu2  ;;  %4556 = vmatmul.bf16.gmra.mxu1 %v8636_v22 }
 0x2d8   :  { %v4334_v32 = vadd.f32 %v4333_v44, %v4301_v16  ;;  %v4304_v61 = vadd.f32 %v4303_v57, %v4271_v17  ;;  %4523 = vmatmul.bf16.gmra.mxu0 %v8634_v21  ;;  %v6651_v44 = vld [vmem:[#allocation6 + $0x628] sm:$0xf]  ;;  %v8040_v17 = vld [vmem:[#allocation6 + $0x434] sm:$0xf0]  ;;  %4676 = vmatpush.bf16.msrb.mxu1 %v6524_v53 }
 0x2d9   :  { %4622 = vmatmul.bf16.gmra.mxu3 %v8640_v24  ;;  %v6779_v57 = vld [vmem:[#allocation6 + $0x728] sm:$0xf] }
 0x2da   :  { %v9109_v19 = vadd.f32 %v4366_v33, %v4334_v32  ;;  %v8104_v32 = vld [vmem:[#allocation6 + $0x634] sm:$0xf0]  ;;  %v6395_v33 = vld [vmem:[#allocation6 + $0x428] sm:$0xf]  ;;  %v6780_v35 = vor.u32 %v8136_v9, %v6779_v57 }
 0x2db   :  { %v6652_v59 = vor.u32 %v8104_v32, %v6651_v44  ;;  %v6396_v39 = vor.u32 %v8040_v17, %v6395_v33  ;;  %v8132_v44 = vld [vmem:[#allocation6 + $0x714] sm:$0xf0]  ;;  %v6507_v57 = vld [vmem:[#allocation6 + $0x508] sm:$0xf] }
 0x2dc   :  { %4589 = vmatmul.bf16.gmra.mxu2 %v8638_v23  ;;  %v4369_v2 = vpop.f32.mrf.mxu3  ;;  %v4305_v27 = vpop.f32.mrf.mxu1  ;;  %4742 = vmatpush.bf16.msrb.mxu3 %v6780_v35  ;;  %v8068_v9 = vld [vmem:[#allocation6 + $0x514] sm:$0xf0]  ;;  %v9708_v35 = vld [vmem:[#allocation21_spill] sm:$0xff] }
 0x2dd   :  { %v4272_v40 = vpop.f32.mrf.mxu0  ;;  %4709 = vmatpush.bf16.msrb.mxu2 %v6652_v59  ;;  %4643 = vmatpush.bf16.msrb.mxu0 %v6396_v39  ;;  %v6763_v27 = vld [vmem:[#allocation6 + $0x708] sm:$0xf]  ;;  %v6508_v39 = vor.u32 %v8068_v9, %v6507_v57  ;;  %v8288_v9 = vld [vmem:[#allocation6 + $0xbf4] sm:$0xf0] }
 0x2de   :  { %v8036_v40 = vld [vmem:[#allocation6 + $0x414] sm:$0xf0]  ;;  %v6764_v17 = vor.u32 %v8132_v44, %v6763_v27  ;;  %v7259_v27 = vld [vmem:[#allocation6 + $0xae8] sm:$0xf] }
 0x2df   :  { %v4336_v63 = vpop.f32.mrf.mxu2  ;;  %v6380_v33 = vor.u32 %v8036_v40, %v6379_v8  ;;  %4677 = vmatpush.bf16.msrb.mxu1 %v6508_v39  ;;  %v8429_v8 = vld [vmem:[#allocation9] sm:$0xf]  ;;  %v8256_v44 = vld [vmem:[#allocation6 + $0xaf4] sm:$0xf0]  ;;  %v7387_v57 = vld [vmem:[#allocation6 + $0xbe8] sm:$0xf] }
 0x2e0   :  { %v4337_v10 = vadd.f32 %v4336_v63, %v4304_v61  ;;  %4743 = vmatpush.bf16.msrb.mxu3 %v6764_v17  ;;  %v7003_v17 = vld [vmem:[#allocation6 + $0x8e8] sm:$0xf] }
 0x2e1   :  { %4644 = vmatpush.bf16.msrb.mxu0 %v6380_v33  ;;  %v7260_v33 = vor.u32 %v8256_v44, %v7259_v27 }
 0x2e2   :  { %v9115_v16 = vadd.f32 %v4369_v2, %v4337_v10  ;;  %v6636_v2 = vor.u32 %v8100_v36, %v6635_v34  ;;  %v8428_v34 = vld [vmem:[#allocation8] sm:$0xf] }
 0x2e3   :  { %v9122_v36 = vperm.slane %v8428_v34, 1 }
 0x2e4   :  { %v4371_v63 = vpop.f32.mrf.mxu3  ;;  %v4415_v32 = vpop.f32.mrf.mxu1  ;;  %4710 = vmatpush.bf16.msrb.mxu2 %v6636_v2 }
 0x2e5   :  { %v4382_v10 = vpop.f32.mrf.mxu0  ;;  %v9124_v63 = vperm.slane %v8429_v8, 1 }
 0x2e6   :  { %v4383_v59 = vadd.f32 %v4382_v10, %v9076_v42 }
 0x2e7   :  { %v4338_v61 = vpop.f32.mrf.mxu2  ;;  %4561 = vmatmul.bf16.gmra.mxu1 %v8648_v56 }
 0x2e8   :  { %4528 = vmatmul.bf16.gmra.mxu0 %v8646_v55  ;;  %v4416_v48 = vadd.f32 %v4415_v32, %v4383_v59  ;;  %v8192_v32 = vld [vmem:[#allocation6 + $0x8f4] sm:$0xf0]  ;;  %4835 = vmatpush.bf16.msra.mxu2 %v7260_v33  ;;  %v7243_v33 = vld [vmem:[#allocation6 + $0xac8] sm:$0xf] }
 0x2e9   :  { %4627 = vmatmul.bf16.gmra.mxu3 %v9708_v35  ;;  %v7004_v39 = vor.u32 %v8192_v32, %v7003_v17  ;;  %v8252_v32 = vld [vmem:[#allocation6 + $0xad4] sm:$0xf0] }
 0x2eb   :  { %4769 = vmatpush.bf16.msra.mxu0 %v7004_v39 }
 0x2ec   :  { %4594 = vmatmul.bf16.gmra.mxu2 %v8650_v58  ;;  %v4481_v61 = vpop.f32.mrf.mxu3  ;;  %v4417_v10 = vpop.f32.mrf.mxu1  ;;  %v7131_v58 = vld [vmem:[#allocation6 + $0x9e8] sm:$0xf] }
 0x2ed   :  { %v4384_v42 = vpop.f32.mrf.mxu0 }
 0x2ee   :  { %v4385_v40 = vadd.f32 %v4384_v42, %v9079_v41 }
 0x2ef   :  { %v4448_v62 = vpop.f32.mrf.mxu2 }
 0x2f0   :  { %v4449_v53 = vadd.f32 %v4448_v62, %v4416_v48  ;;  %v7388_v48 = vor.u32 %v8288_v9, %v7387_v57  ;;  %v4418_v34 = vadd.f32 %v4417_v10, %v4385_v40  ;;  %v7244_v40 = vor.u32 %v8252_v32, %v7243_v33 }
 0x2f2   :  { %v4482_v2 = vadd.f32 %v4481_v61, %v4449_v53  ;;  %4868 = vmatpush.bf16.msra.mxu3 %v7388_v48  ;;  %4836 = vmatpush.bf16.msra.mxu2 %v7244_v40 }
 0x2f4   :  { %v5683_v59 = vmul.f32 %v9122_v36, %v4482_v2  ;;  %v4483_v42 = vpop.f32.mrf.mxu3  ;;  %v4420_v35 = vpop.f32.mrf.mxu1  ;;  %v8224_v2 = vld [vmem:[#allocation6 + $0x9f4] sm:$0xf0] }
 0x2f5   :  { %v4387_v8 = vpop.f32.mrf.mxu0  ;;  %v7132_v17 = vor.u32 %v8224_v2, %v7131_v58  ;;  %v7115_v2 = vld [vmem:[#allocation6 + $0x9c8] sm:$0xf] }
 0x2f6   :  { %v5729_v62 = vadd.f32 %v9124_v63, %v5683_v59  ;;  %v4388_v44 = vadd.f32 %v4387_v8, %v9086_v18  ;;  %v7371_v8 = vld [vmem:[#allocation6 + $0xbc8] sm:$0xf] }
 0x2f7   :  { %v4450_v53 = vpop.f32.mrf.mxu2  ;;  %4566 = vmatmul.bf16.gmra.mxu1 %v8660_v29 }
 0x2f8   :  { %v5765_v61 = vmax.f32 %v5729_v62, 0.0  ;;  %v4451_v41 = vadd.f32 %v4450_v53, %v4418_v34  ;;  %4533 = vmatmul.bf16.gmra.mxu0 %v8658_v28  ;;  %4802 = vmatpush.bf16.msra.mxu1 %v7132_v17  ;;  %v4421_v18 = vadd.f32 %v4420_v35, %v4388_v44  ;;  %v8220_v44 = vld [vmem:[#allocation6 + $0x9d4] sm:$0xf0] }
 0x2f9   :  { %4632 = vmatmul.bf16.gmra.mxu3 %v8664_v31  ;;  %v7116_v33 = vor.u32 %v8220_v44, %v7115_v2  ;;  %v7099_v2 = vld [vmem:[#allocation6 + $0x9a8] sm:$0xf] }
 0x2fa   :  { %5801 = vst [vmem:[#allocation11 + $0x8] sm:$0xff] %v5765_v61  ;;  %v4484_v27 = vadd.f32 %v4483_v42, %v4451_v41  ;;  %v6987_v61 = vld [vmem:[#allocation6 + $0x8c8] sm:$0xf]  ;;  %v8188_v41 = vld [vmem:[#allocation6 + $0x8d4] sm:$0xf0] }
 0x2fb   :  { %v6988_v42 = vor.u32 %v8188_v41, %v6987_v61  ;;  %v6971_v41 = vld [vmem:[#allocation6 + $0x8a8] sm:$0xf] }
 0x2fc   :  { %v5687_v10 = vmul.f32 %v9122_v36, %v4484_v27  ;;  %4599 = vmatmul.bf16.gmra.mxu2 %v8662_v30  ;;  %v4486_v58 = vpop.f32.mrf.mxu3  ;;  %v4422_v62 = vpop.f32.mrf.mxu1  ;;  %v8284_v27 = vld [vmem:[#allocation6 + $0xbd4] sm:$0xf0]  ;;  %4803 = vmatpush.bf16.msra.mxu1 %v7116_v33 }
 0x2fd   :  { %v4389_v48 = vpop.f32.mrf.mxu0  ;;  %v7372_v35 = vor.u32 %v8284_v27, %v7371_v8  ;;  %4770 = vmatpush.bf16.msra.mxu0 %v6988_v42  ;;  %v8184_v42 = vld [vmem:[#allocation6 + $0x8b4] sm:$0xf0] }
 0x2fe   :  { %v5733_v57 = vadd.f32 %v9124_v63, %v5687_v10  ;;  %v4390_v53 = vadd.f32 %v4389_v48, %v9089_v0  ;;  %v7227_v48 = vld [vmem:[#allocation6 + $0xaa8] sm:$0xf]  ;;  %v6972_v8 = vor.u32 %v8184_v42, %v6971_v41  ;;  %v8280_v27 = vld [vmem:[#allocation6 + $0xbb4] sm:$0xf0] }
 0x2ff   :  { %v4453_v9 = vpop.f32.mrf.mxu2  ;;  %4869 = vmatpush.bf16.msra.mxu3 %v7372_v35  ;;  %v6955_v41 = vld [vmem:[#allocation6 + $0x888] sm:$0xf]  ;;  %v8180_v42 = vld [vmem:[#allocation6 + $0x894] sm:$0xf0] }
 0x300   :  { %v5769_v59 = vmax.f32 %v5733_v57, 0.0  ;;  %v4454_v39 = vadd.f32 %v4453_v9, %v4421_v18  ;;  %v4423_v10 = vadd.f32 %v4422_v62, %v4390_v53  ;;  %v7355_v62 = vld [vmem:[#allocation6 + $0xba8] sm:$0xf] }
 0x301   :  { %4771 = vmatpush.bf16.msra.mxu0 %v6972_v8  ;;  %v7083_v8 = vld [vmem:[#allocation6 + $0x988] sm:$0xf] }
 0x302   :  { %5805 = vst [vmem:[#allocation11 + $0x28] sm:$0xff] %v5769_v59  ;;  %v4487_v34 = vadd.f32 %v4486_v58, %v4454_v39 }
 0x304   :  { %v5691_v17 = vmul.f32 %v9122_v36, %v4487_v34  ;;  %v4488_v18 = vpop.f32.mrf.mxu3  ;;  %v4425_v59 = vpop.f32.mrf.mxu1  ;;  %v8248_v34 = vld [vmem:[#allocation6 + $0xab4] sm:$0xf0] }
 0x305   :  { %v4392_v9 = vpop.f32.mrf.mxu0  ;;  %v7228_v61 = vor.u32 %v8248_v34, %v7227_v48  ;;  %v7211_v48 = vld [vmem:[#allocation6 + $0xa88] sm:$0xf]  ;;  %v8244_v34 = vld [vmem:[#allocation6 + $0xa94] sm:$0xf0] }
 0x306   :  { %v5737_v32 = vadd.f32 %v9124_v63, %v5691_v17  ;;  %v4393_v58 = vadd.f32 %v4392_v9, %v9096_v60  ;;  %v8216_v17 = vld [vmem:[#allocation6 + $0x9b4] sm:$0xf0]  ;;  %v7356_v60 = vor.u32 %v8280_v27, %v7355_v62  ;;  %v7339_v62 = vld [vmem:[#allocation6 + $0xb88] sm:$0xf] }
 0x307   :  { %v4455_v40 = vpop.f32.mrf.mxu2  ;;  %4678 = vmatmul.bf16.vlgmr.msrb.gmra.mxu1 %v8672_v4  ;;  %4837 = vmatpush.bf16.msra.mxu2 %v7228_v61  ;;  %v7100_v35 = vor.u32 %v8216_v17, %v7099_v2  ;;  %v7212_v61 = vor.u32 %v8244_v34, %v7211_v48  ;;  %v8212_v27 = vld [vmem:[#allocation6 + $0x994] sm:$0xf0] }
 0x308   :  { %v5773_v57 = vmax.f32 %v5737_v32, 0.0  ;;  %v4456_v0 = vadd.f32 %v4455_v40, %v4423_v10  ;;  %4645 = vmatmul.bf16.vlgmr.msrb.gmra.mxu0 %v8670_v3  ;;  %v4426_v33 = vadd.f32 %v4425_v59, %v4393_v58  ;;  %4870 = vmatpush.bf16.msra.mxu3 %v7356_v60  ;;  %v6956_v58 = vor.u32 %v8180_v42, %v6955_v41  ;;  %v8240_v48 = vld [vmem:[#allocation6 + $0xa74] sm:$0xf0] }
 0x309   :  { %4744 = vmatmul.bf16.vlgmr.msrb.gmra.mxu3 %v8676_v6  ;;  %4804 = vmatpush.bf16.msra.mxu1 %v7100_v35  ;;  %v7084_v17 = vor.u32 %v8212_v27, %v7083_v8  ;;  %v7179_v8 = vld [vmem:[#allocation6 + $0xa48] sm:$0xf]  ;;  %v8236_v27 = vld [vmem:[#allocation6 + $0xa54] sm:$0xf0] }
 0x30a   :  { %5809 = vst [vmem:[#allocation11 + $0x48] sm:$0xff] %v5773_v57  ;;  %v4489_v39 = vadd.f32 %v4488_v18, %v4456_v0  ;;  %4772 = vmatpush.bf16.msra.mxu0 %v6956_v58  ;;  %v8208_v58 = vld [vmem:[#allocation6 + $0x974] sm:$0xf0] }
 0x30b   :  { %4838 = vmatpush.bf16.msra.mxu2 %v7212_v61  ;;  %v6939_v61 = vld [vmem:[#allocation6 + $0x868] sm:$0xf] }
 0x30c   :  { %v5695_v53 = vmul.f32 %v9122_v36, %v4489_v39  ;;  %4711 = vmatmul.bf16.vlgmr.msrb.gmra.mxu2 %v8674_v5  ;;  %v4491_v57 = vpop.f32.mrf.mxu3  ;;  %v4427_v18 = vpop.f32.mrf.mxu1 }
 0x30d   :  { %v4394_v0 = vpop.f32.mrf.mxu0  ;;  %4805 = vmatpush.bf16.msra.mxu1 %v7084_v17 }
 0x30e   :  { %v5741_v44 = vadd.f32 %v9124_v63, %v5695_v53  ;;  %v4395_v39 = vadd.f32 %v4394_v0, %v9099_v13  ;;  %v8276_v53 = vld [vmem:[#allocation6 + $0xb94] sm:$0xf0] }
 0x30f   :  { %v4458_v32 = vpop.f32.mrf.mxu2  ;;  %v7340_v2 = vor.u32 %v8276_v53, %v7339_v62  ;;  %v8272_v62 = vld [vmem:[#allocation6 + $0xb74] sm:$0xf0] }
 0x310   :  { %v5777_v10 = vmax.f32 %v5741_v44, 0.0  ;;  %v4459_v40 = vadd.f32 %v4458_v32, %v4426_v33  ;;  %v4428_v35 = vadd.f32 %v4427_v18, %v4395_v39  ;;  %v8176_v18 = vld [vmem:[#allocation6 + $0x874] sm:$0xf0]  ;;  %v7323_v39 = vld [vmem:[#allocation6 + $0xb68] sm:$0xf] }
 0x311   :  { %4871 = vmatpush.bf16.msra.mxu3 %v7340_v2  ;;  %v6940_v42 = vor.u32 %v8176_v18, %v6939_v61  ;;  %v7307_v18 = vld [vmem:[#allocation6 + $0xb48] sm:$0xf] }
 0x312   :  { %5813 = vst [vmem:[#allocation11 + $0x68] sm:$0xff] %v5777_v10  ;;  %v4492_v9 = vadd.f32 %v4491_v57, %v4459_v40 }
 0x313   :  { %4773 = vmatpush.bf16.msra.mxu0 %v6940_v42  ;;  %v8204_v42 = vld [vmem:[#allocation6 + $0x954] sm:$0xf0] }
 0x314   :  { %v5699_v59 = vmul.f32 %v9122_v36, %v4492_v9  ;;  %v4493_v32 = vpop.f32.mrf.mxu3  ;;  %v4430_v40 = vpop.f32.mrf.mxu1  ;;  %v7195_v9 = vld [vmem:[#allocation6 + $0xa68] sm:$0xf] }
 0x315   :  { %v4397_v10 = vpop.f32.mrf.mxu0  ;;  %v7196_v34 = vor.u32 %v8240_v48, %v7195_v9  ;;  %v6923_v48 = vld [vmem:[#allocation6 + $0x848] sm:$0xf] }
 0x316   :  { %v5745_v60 = vadd.f32 %v9124_v63, %v5699_v59  ;;  %v4398_v0 = vadd.f32 %v4397_v10, %v9106_v12  ;;  %v7067_v59 = vld [vmem:[#allocation6 + $0x968] sm:$0xf]  ;;  %v7324_v12 = vor.u32 %v8272_v62, %v7323_v39 }
 0x317   :  { %v4460_v13 = vpop.f32.mrf.mxu2  ;;  %4683 = vmatmul.bf16.gmra.mxu1 %v8684_v46  ;;  %4839 = vmatpush.bf16.msra.mxu2 %v7196_v34  ;;  %v7068_v53 = vor.u32 %v8208_v58, %v7067_v59  ;;  %v8172_v34 = vld [vmem:[#allocation6 + $0x854] sm:$0xf0] }
 0x318   :  { %v5781_v44 = vmax.f32 %v5745_v60, 0.0  ;;  %v4461_v33 = vadd.f32 %v4460_v13, %v4428_v35  ;;  %4650 = vmatmul.bf16.gmra.mxu0 %v8682_v45  ;;  %v4431_v17 = vadd.f32 %v4430_v40, %v4398_v0  ;;  %v7180_v60 = vor.u32 %v8236_v27, %v7179_v8  ;;  %4872 = vmatpush.bf16.msra.mxu3 %v7324_v12  ;;  %v8268_v40 = vld [vmem:[#allocation6 + $0xb54] sm:$0xf0]  ;;  %v7051_v0 = vld [vmem:[#allocation6 + $0x948] sm:$0xf] }
 0x319   :  { %4749 = vmatmul.bf16.gmra.mxu3 %v8688_v52  ;;  %4806 = vmatpush.bf16.msra.mxu1 %v7068_v53  ;;  %v6924_v61 = vor.u32 %v8172_v34, %v6923_v48  ;;  %v7052_v62 = vor.u32 %v8204_v42, %v7051_v0  ;;  %v8264_v48 = vld [vmem:[#allocation6 + $0xb34] sm:$0xf0]  ;;  %v7035_v34 = vld [vmem:[#allocation6 + $0x928] sm:$0xf] }
 0x31a   :  { %5817 = vst [vmem:[#allocation11 + $0x88] sm:$0xff] %v5781_v44  ;;  %v4494_v57 = vadd.f32 %v4493_v32, %v4461_v33 }
 0x31b   :  { %4840 = vmatpush.bf16.msra.mxu2 %v7180_v60  ;;  %4774 = vmatpush.bf16.msra.mxu0 %v6924_v61  ;;  %v8200_v61 = vld [vmem:[#allocation6 + $0x934] sm:$0xf0] }
 0x31c   :  { %v5703_v41 = vmul.f32 %v9122_v36, %v4494_v57  ;;  %4716 = vmatmul.bf16.gmra.mxu2 %v8686_v51  ;;  %v4496_v33 = vpop.f32.mrf.mxu3  ;;  %v4432_v10 = vpop.f32.mrf.mxu1  ;;  %v7036_v0 = vor.u32 %v8200_v61, %v7035_v34 }
 0x31d   :  { %v4399_v32 = vpop.f32.mrf.mxu0  ;;  %4807 = vmatpush.bf16.msra.mxu1 %v7052_v62 }
 0x31e   :  { %v5749_v2 = vadd.f32 %v9124_v63, %v5703_v41  ;;  %v4400_v9 = vadd.f32 %v4399_v32, %v9109_v19  ;;  %v7308_v41 = vor.u32 %v8268_v40, %v7307_v18  ;;  %v8168_v32 = vld [vmem:[#allocation6 + $0x834] sm:$0xf0] }
 0x31f   :  { %v4463_v35 = vpop.f32.mrf.mxu2 }
 0x320   :  { %v5785_v13 = vmax.f32 %v5749_v2, 0.0  ;;  %v4464_v44 = vadd.f32 %v4463_v35, %v4431_v17  ;;  %v4433_v58 = vadd.f32 %v4432_v10, %v4400_v9  ;;  %4873 = vmatpush.bf16.msra.mxu3 %v7308_v41  ;;  %v7163_v35 = vld [vmem:[#allocation6 + $0xa28] sm:$0xf] }
 0x321   :  { %v7291_v10 = vld [vmem:[#allocation6 + $0xb28] sm:$0xf]  ;;  %4808 = vmatpush.bf16.msra.mxu1 %v7036_v0  ;;  %v9711_v0 = vld [vmem:[#allocation25_spill] sm:$0xff] }
 0x322   :  { %5821 = vst [vmem:[#allocation11 + $0xa8] sm:$0xff] %v5785_v13  ;;  %v4497_v57 = vadd.f32 %v4496_v33, %v4464_v44  ;;  %v8232_v13 = vld [vmem:[#allocation6 + $0xa34] sm:$0xf0]  ;;  %v6907_v33 = vld [vmem:[#allocation6 + $0x828] sm:$0xf] }
 0x323   :  { %v7164_v44 = vor.u32 %v8232_v13, %v7163_v35  ;;  %v6908_v9 = vor.u32 %v8168_v32, %v6907_v33  ;;  %v7275_v35 = vld [vmem:[#allocation6 + $0xb08] sm:$0xf]  ;;  %v8260_v13 = vld [vmem:[#allocation6 + $0xb14] sm:$0xf0] }
 0x324   :  { %v5707_v39 = vmul.f32 %v9122_v36, %v4497_v57  ;;  %v4498_v8 = vpop.f32.mrf.mxu3  ;;  %v4435_v2 = vpop.f32.mrf.mxu1  ;;  %v8196_v33 = vld [vmem:[#allocation6 + $0x914] sm:$0xf0]  ;;  %v7276_v32 = vor.u32 %v8260_v13, %v7275_v35 }
 0x325   :  { %v4402_v27 = vpop.f32.mrf.mxu0  ;;  %4841 = vmatpush.bf16.msra.mxu2 %v7164_v44  ;;  %4775 = vmatpush.bf16.msra.mxu0 %v6908_v9  ;;  %v7019_v44 = vld [vmem:[#allocation6 + $0x908] sm:$0xf] }
 0x326   :  { %v5753_v59 = vadd.f32 %v9124_v63, %v5707_v39  ;;  %v4403_v60 = vadd.f32 %v4402_v27, %v9115_v16  ;;  %v7292_v16 = vor.u32 %v8264_v48, %v7291_v10  ;;  %v6891_v27 = vld [vmem:[#allocation6 + $0x808] sm:$0xf]  ;;  %v7020_v10 = vor.u32 %v8196_v33, %v7019_v44  ;;  %v8352_v33 = vld [vmem:[#allocation6 + $0xdf4] sm:$0xf0] }
 0x327   :  { %v4465_v12 = vpop.f32.mrf.mxu2  ;;  %4688 = vmatmul.bf16.gmra.mxu1 %v8696_v25  ;;  %v7643_v44 = vld [vmem:[#allocation6 + $0xde8] sm:$0xf] }
 0x328   :  { %v5789_v53 = vmax.f32 %v5753_v59, 0.0  ;;  %v4466_v19 = vadd.f32 %v4465_v12, %v4433_v58  ;;  %4655 = vmatmul.bf16.gmra.mxu0 %v8694_v20  ;;  %v4436_v40 = vadd.f32 %v4435_v2, %v4403_v60  ;;  %4874 = vmatpush.bf16.msra.mxu3 %v7292_v16 }
 0x329   :  { %4754 = vmatmul.bf16.gmra.mxu3 %v9662_v54  ;;  %4809 = vmatpush.bf16.msra.mxu1 %v7020_v10  ;;  %v7644_v10 = vor.u32 %v8352_v33, %v7643_v44 }
 0x32a   :  { %5825 = vst [vmem:[#allocation11 + $0xc8] sm:$0xff] %v5789_v53  ;;  %v4499_v17 = vadd.f32 %v4498_v8, %v4466_v19  ;;  %v7147_v53 = vld [vmem:[#allocation6 + $0xa08] sm:$0xf]  ;;  %v8228_v19 = vld [vmem:[#allocation6 + $0xa14] sm:$0xf0] }
 0x32b   :  { %v7148_v8 = vor.u32 %v8228_v19, %v7147_v53 }
 0x32c   :  { %v5711_v57 = vmul.f32 %v9122_v36, %v4499_v17  ;;  %4721 = vmatmul.bf16.gmra.mxu2 %v8698_v26  ;;  %v4501_v62 = vpop.f32.mrf.mxu3  ;;  %v4437_v58 = vpop.f32.mrf.mxu1  ;;  %v8164_v17 = vld [vmem:[#allocation6 + $0x814] sm:$0xf0]  ;;  %4875 = vmatpush.bf16.msra.mxu3 %v7276_v32  ;;  %v7755_v32 = vld [vmem:[#allocation6 + $0xec8] sm:$0xf] }
 0x32d   :  { %v4404_v59 = vpop.f32.mrf.mxu0  ;;  %v6892_v60 = vor.u32 %v8164_v17, %v6891_v27  ;;  %4842 = vmatpush.bf16.msra.mxu2 %v7148_v8  ;;  %v7899_v58 = vld [vmem:[#allocation6 + $0xfe8] sm:$0xf]  ;;  %4934 = vmatpush.bf16.msrb.mxu1 %v7644_v10 }
 0x32e   :  { %v5757_v18 = vadd.f32 %v9124_v63, %v5711_v57  ;;  %v8320_v59 = vld [vmem:[#allocation6 + $0xcf4] sm:$0xf0] }
 0x32f   :  { %v4468_v39 = vpop.f32.mrf.mxu2  ;;  %4776 = vmatpush.bf16.msra.mxu0 %v6892_v60 }
 0x330   :  { %v5793_v41 = vmax.f32 %v5757_v18, 0.0  ;;  %v4469_v42 = vadd.f32 %v4468_v39, %v4436_v40  ;;  %v9710_v40 = vld [vmem:[#allocation24_spill] sm:$0xff]  ;;  %v9712_v39 = vld [vmem:[#allocation26_spill] sm:$0xff] }
 0x332   :  { %5829 = vst [vmem:[#allocation11 + $0xe8] sm:$0xff] %v5793_v41  ;;  %v4502_v12 = vadd.f32 %v4501_v62, %v4469_v42  ;;  %v7771_v41 = vld [vmem:[#allocation6 + $0xee8] sm:$0xf] }
 0x333   :  { %v7515_v42 = vld [vmem:[#allocation6 + $0xce8] sm:$0xf] }
 0x334   :  { %v5715_v2 = vmul.f32 %v9122_v36, %v4502_v12  ;;  %v4503_v16 = vpop.f32.mrf.mxu3  ;;  %v4547_v61 = vpop.f32.mrf.mxu1  ;;  %v9709_v36 = vld [vmem:[#allocation23_spill] sm:$0xff]  ;;  %v8416_v12 = vld [vmem:[#allocation6 + $0xff4] sm:$0xf0]  ;;  %v7516_v19 = vor.u32 %v8320_v59, %v7515_v42  ;;  %v7499_v42 = vld [vmem:[#allocation6 + $0xcc8] sm:$0xf] }
 0x335   :  { %v4514_v34 = vpop.f32.mrf.mxu0  ;;  %v7900_v8 = vor.u32 %v8416_v12, %v7899_v58  ;;  %v7883_v59 = vld [vmem:[#allocation6 + $0xfc8] sm:$0xf]  ;;  %v9713_v58 = vld [vmem:[#allocation27_spill] sm:$0xff] }
 0x336   :  { %v5761_v57 = vadd.f32 %v9124_v63, %v5715_v2  ;;  %v4548_v18 = vadd.f32 %v4547_v61, %v4514_v34  ;;  %v8384_v63 = vld [vmem:[#allocation6 + $0xef4] sm:$0xf0]  ;;  %4901 = vmatpush.bf16.msrb.mxu0 %v7516_v19  ;;  %v7627_v19 = vld [vmem:[#allocation6 + $0xdc8] sm:$0xf] }
 0x337   :  { %v4470_v9 = vpop.f32.mrf.mxu2  ;;  %4693 = vmatmul.bf16.gmra.mxu1 %v9710_v40  ;;  %v7772_v62 = vor.u32 %v8384_v63, %v7771_v41  ;;  %5000 = vmatpush.bf16.msrb.mxu3 %v7900_v8  ;;  %v8348_v8 = vld [vmem:[#allocation6 + $0xdd4] sm:$0xf0] }
 0x338   :  { %v5797_v48 = vmax.f32 %v5761_v57, 0.0  ;;  %4660 = vmatmul.bf16.gmra.mxu0 %v9709_v36  ;;  %v8380_v57 = vld [vmem:[#allocation6 + $0xed4] sm:$0xf0] }
 0x339   :  { %4759 = vmatmul.bf16.gmra.mxu3 %v9712_v39  ;;  %4967 = vmatpush.bf16.msrb.mxu2 %v7772_v62  ;;  %v7756_v9 = vor.u32 %v8380_v57, %v7755_v32  ;;  %v8316_v62 = vld [vmem:[#allocation6 + $0xcd4] sm:$0xf0] }
 0x33a   :  { %5833 = vst [vmem:[#allocation11 + $0x108] sm:$0xff] %v5797_v48  ;;  %v7500_v12 = vor.u32 %v8316_v62, %v7499_v42  ;;  %v8312_v42 = vld [vmem:[#allocation6 + $0xcb4] sm:$0xf0]  ;;  %v7867_v62 = vld [vmem:[#allocation6 + $0xfa8] sm:$0xf] }
 0x33b   :  { %v8296_v39 = vld [vmem:[#allocation6 + $0xc34] sm:$0xf0] }
 0x33c   :  { %4726 = vmatmul.bf16.gmra.mxu2 %v9711_v0  ;;  %v4613_v17 = vpop.f32.mrf.mxu3  ;;  %v4549_v2 = vpop.f32.mrf.mxu1  ;;  %4902 = vmatpush.bf16.msrb.mxu0 %v7500_v12  ;;  %v7611_v12 = vld [vmem:[#allocation6 + $0xda8] sm:$0xf] }
 0x33d   :  { %v4516_v35 = vpop.f32.mrf.mxu0  ;;  %4968 = vmatpush.bf16.msrb.mxu2 %v7756_v9 }
 0x33e   :  { %v4550_v13 = vadd.f32 %v4549_v2, %v4516_v35  ;;  %v7628_v2 = vor.u32 %v8348_v8, %v7627_v19  ;;  %v8344_v8 = vld [vmem:[#allocation6 + $0xdb4] sm:$0xf0] }
 0x33f   :  { %v4580_v53 = vpop.f32.mrf.mxu2 }
 0x340   :  { %v4581_v27 = vadd.f32 %v4580_v53, %v4548_v18  ;;  %v8412_v53 = vld [vmem:[#allocation6 + $0xfd4] sm:$0xf0]  ;;  %4935 = vmatpush.bf16.msrb.mxu1 %v7628_v2 }
 0x341   :  { %v7884_v35 = vor.u32 %v8412_v53, %v7883_v59  ;;  %v8408_v59 = vld [vmem:[#allocation6 + $0xfb4] sm:$0xf0] }
 0x342   :  { %v9172_v60 = vadd.f32 %v4613_v17, %v4581_v27  ;;  %v9714_v27 = vld [vmem:[#allocation28_spill] sm:$0xff]  ;;  %v9715_v17 = vld [vmem:[#allocation29_spill] sm:$0xff]  ;;  %v7868_v19 = vor.u32 %v8408_v59, %v7867_v62  ;;  %v9720_v62 = vld [vmem:[#allocation34_spill] sm:$0xff] }
 0x343   :  { %5001 = vmatpush.bf16.msrb.mxu3 %v7884_v35  ;;  %v7612_v35 = vor.u32 %v8344_v8, %v7611_v12  ;;  %v7467_v59 = vld [vmem:[#allocation6 + $0xc88] sm:$0xf]  ;;  %v8404_v12 = vld [vmem:[#allocation6 + $0xf94] sm:$0xf0] }
 0x344   :  { %v4615_v34 = vpop.f32.mrf.mxu3  ;;  %v4552_v18 = vpop.f32.mrf.mxu1  ;;  %v7595_v8 = vld [vmem:[#allocation6 + $0xd88] sm:$0xf] }
 0x345   :  { %v4519_v61 = vpop.f32.mrf.mxu0  ;;  %4936 = vmatpush.bf16.msrb.mxu1 %v7612_v35  ;;  %v8340_v35 = vld [vmem:[#allocation6 + $0xd94] sm:$0xf0] }
 0x346   :  { %v4553_v63 = vadd.f32 %v4552_v18, %v4519_v61  ;;  %v7483_v61 = vld [vmem:[#allocation6 + $0xca8] sm:$0xf] }
 0x347   :  { %v4582_v48 = vpop.f32.mrf.mxu2  ;;  %4698 = vmatmul.bf16.gmra.mxu1 %v9714_v27  ;;  %v7484_v53 = vor.u32 %v8312_v42, %v7483_v61  ;;  %5002 = vmatpush.bf16.msrb.mxu3 %v7868_v19  ;;  %v9718_v42 = vld [vmem:[#allocation32_spill] sm:$0xff]  ;;  %v8400_v27 = vld [vmem:[#allocation6 + $0xf74] sm:$0xf0] }
 0x348   :  { %v4583_v16 = vadd.f32 %v4582_v48, %v4550_v13  ;;  %4665 = vmatmul.bf16.gmra.mxu0 %v9713_v58  ;;  %v9716_v13 = vld [vmem:[#allocation30_spill] sm:$0xff] }
 0x349   :  { %4764 = vmatmul.bf16.gmra.mxu3 %v9716_v13  ;;  %4903 = vmatpush.bf16.msrb.mxu0 %v7484_v53  ;;  %v9717_v13 = vld [vmem:[#allocation31_spill] sm:$0xff]  ;;  %v7851_v53 = vld [vmem:[#allocation6 + $0xf88] sm:$0xf] }
 0x34a   :  { %v9174_v41 = vadd.f32 %v4615_v34, %v4583_v16  ;;  %v7739_v16 = vld [vmem:[#allocation6 + $0xea8] sm:$0xf]  ;;  %v8376_v34 = vld [vmem:[#allocation6 + $0xeb4] sm:$0xf0] }
 0x34b   :  { %v7740_v18 = vor.u32 %v8376_v34, %v7739_v16  ;;  %v7723_v16 = vld [vmem:[#allocation6 + $0xe88] sm:$0xf]  ;;  %v8372_v34 = vld [vmem:[#allocation6 + $0xe94] sm:$0xf0] }
 0x34c   :  { %4731 = vmatmul.bf16.gmra.mxu2 %v9715_v17  ;;  %v4618_v32 = vpop.f32.mrf.mxu3  ;;  %v4554_v57 = vpop.f32.mrf.mxu1  ;;  %v7724_v61 = vor.u32 %v8372_v34, %v7723_v16  ;;  %v7835_v17 = vld [vmem:[#allocation6 + $0xf68] sm:$0xf] }
 0x34d   :  { %v4521_v10 = vpop.f32.mrf.mxu0  ;;  %4969 = vmatpush.bf16.msrb.mxu2 %v7740_v18  ;;  %v9719_v18 = vld [vmem:[#allocation33_spill] sm:$0xff] }
 0x34e   :  { %v4555_v48 = vadd.f32 %v4554_v57, %v4521_v10 }
 0x34f   :  { %v4585_v44 = vpop.f32.mrf.mxu2 }
 0x350   :  { %v4586_v33 = vadd.f32 %v4585_v44, %v4553_v63 }
 0x351   :  { %4970 = vmatpush.bf16.msrb.mxu2 %v7724_v61 }
 0x352   :  { %v9180_v9 = vadd.f32 %v4618_v32, %v4586_v33 }
 0x354   :  { %v4620_v44 = vpop.f32.mrf.mxu3  ;;  %v4557_v32 = vpop.f32.mrf.mxu1 }
 0x355   :  { %v4524_v33 = vpop.f32.mrf.mxu0 }
 0x356   :  { %v4558_v57 = vadd.f32 %v4557_v32, %v4524_v33 }
 0x357   :  { %v4587_v63 = vpop.f32.mrf.mxu2  ;;  %4810 = vmatmul.bf16.vlgmr.msra.gmra.mxu1 %v9718_v42  ;;  %v8368_v42 = vld [vmem:[#allocation6 + $0xe74] sm:$0xf0] }
 0x358   :  { %v4588_v2 = vadd.f32 %v4587_v63, %v4555_v48  ;;  %4777 = vmatmul.bf16.vlgmr.msra.gmra.mxu0 %v9717_v13  ;;  %v8308_v48 = vld [vmem:[#allocation6 + $0xc94] sm:$0xf0]  ;;  %v7451_v13 = vld [vmem:[#allocation6 + $0xc68] sm:$0xf] }
 0x359   :  { %4876 = vmatmul.bf16.vlgmr.msra.gmra.mxu3 %v9720_v62  ;;  %v7468_v19 = vor.u32 %v8308_v48, %v7467_v59  ;;  %v7707_v62 = vld [vmem:[#allocation6 + $0xe68] sm:$0xf]  ;;  %v8304_v48 = vld [vmem:[#allocation6 + $0xc74] sm:$0xf0] }
 0x35a   :  { %v9182_v10 = vadd.f32 %v4620_v44, %v4588_v2  ;;  %v7852_v2 = vor.u32 %v8404_v12, %v7851_v53  ;;  %v7596_v44 = vor.u32 %v8340_v35, %v7595_v8  ;;  %v7708_v59 = vor.u32 %v8368_v42, %v7707_v62  ;;  %v7579_v35 = vld [vmem:[#allocation6 + $0xd68] sm:$0xf]  ;;  %v9721_v42 = vld [vmem:[#allocation35_spill] sm:$0xff] }
 0x35b   :  { %4904 = vmatpush.bf16.msrb.mxu0 %v7468_v19  ;;  %v7452_v58 = vor.u32 %v8304_v48, %v7451_v13  ;;  %v7836_v53 = vor.u32 %v8400_v27, %v7835_v17  ;;  %v9722_v62 = vld [vmem:[#allocation36_spill] sm:$0xff]  ;;  %v9723_v27 = vld [vmem:[#allocation37_spill] sm:$0xff]  ;;  %v8364_v13 = vld [vmem:[#allocation6 + $0xe54] sm:$0xf0] }
 0x35c   :  { %4843 = vmatmul.bf16.vlgmr.msra.gmra.mxu2 %v9719_v18  ;;  %v4623_v32 = vpop.f32.mrf.mxu3  ;;  %v4559_v34 = vpop.f32.mrf.mxu1  ;;  %5003 = vmatpush.bf16.msrb.mxu3 %v7852_v2  ;;  %v7691_v17 = vld [vmem:[#allocation6 + $0xe48] sm:$0xf] }
 0x35d   :  { %v4526_v16 = vpop.f32.mrf.mxu0  ;;  %4937 = vmatpush.bf16.msrb.mxu1 %v7596_v44  ;;  %4971 = vmatpush.bf16.msrb.mxu2 %v7708_v59 }
 0x35e   :  { %v4560_v61 = vadd.f32 %v4559_v34, %v4526_v16  ;;  %v7692_v16 = vor.u32 %v8364_v13, %v7691_v17 }
 0x35f   :  { %v4590_v63 = vpop.f32.mrf.mxu2  ;;  %4905 = vmatpush.bf16.msrb.mxu0 %v7452_v58  ;;  %v9724_v58 = vld [vmem:[#allocation38_spill] sm:$0xff] }
 0x360   :  { %v4591_v33 = vadd.f32 %v4590_v63, %v4558_v57  ;;  %5004 = vmatpush.bf16.msrb.mxu3 %v7836_v53  ;;  %v8336_v63 = vld [vmem:[#allocation6 + $0xd74] sm:$0xf0] }
 0x361   :  { %v7580_v44 = vor.u32 %v8336_v63, %v7579_v35  ;;  %4972 = vmatpush.bf16.msrb.mxu2 %v7692_v16  ;;  %v7819_v35 = vld [vmem:[#allocation6 + $0xf48] sm:$0xf] }
 0x362   :  { %v9188_v18 = vadd.f32 %v4623_v32, %v4591_v33 }
 0x363   :  { %4938 = vmatpush.bf16.msrb.mxu1 %v7580_v44  ;;  %v7563_v44 = vld [vmem:[#allocation6 + $0xd48] sm:$0xf] }
 0x364   :  { %v4625_v12 = vpop.f32.mrf.mxu3  ;;  %v4562_v2 = vpop.f32.mrf.mxu1 }
 0x365   :  { %v4529_v8 = vpop.f32.mrf.mxu0 }
 0x366   :  { %v4563_v32 = vadd.f32 %v4562_v2, %v4529_v8  ;;  %v8300_v8 = vld [vmem:[#allocation6 + $0xc54] sm:$0xf0] }
 0x367   :  { %v4592_v57 = vpop.f32.mrf.mxu2  ;;  %4815 = vmatmul.bf16.gmra.mxu1 %v9722_v62  ;;  %v8396_v2 = vld [vmem:[#allocation6 + $0xf54] sm:$0xf0] }
 0x368   :  { %v4593_v19 = vadd.f32 %v4592_v57, %v4560_v61  ;;  %4782 = vmatmul.bf16.gmra.mxu0 %v9721_v42  ;;  %v9725_v42 = vld [vmem:[#allocation39_spill] sm:$0xff] }
 0x369   :  { %4881 = vmatmul.bf16.gmra.mxu3 %v9724_v58  ;;  %v7820_v58 = vor.u32 %v8396_v2, %v7819_v35  ;;  %v7803_v35 = vld [vmem:[#allocation6 + $0xf28] sm:$0xf] }
 0x36a   :  { %v9190_v33 = vadd.f32 %v4625_v12, %v4593_v19  ;;  %v7435_v12 = vld [vmem:[#allocation6 + $0xc48] sm:$0xf] }
 0x36b   :  { %v7436_v63 = vor.u32 %v8300_v8, %v7435_v12  ;;  %5005 = vmatpush.bf16.msrb.mxu3 %v7820_v58  ;;  %v7419_v8 = vld [vmem:[#allocation6 + $0xc28] sm:$0xf]  ;;  %v9727_v58 = vld [vmem:[#allocation41_spill] sm:$0xff] }
 0x36c   :  { %4848 = vmatmul.bf16.gmra.mxu2 %v9723_v27  ;;  %v4628_v59 = vpop.f32.mrf.mxu3  ;;  %v4564_v53 = vpop.f32.mrf.mxu1  ;;  %v8332_v27 = vld [vmem:[#allocation6 + $0xd54] sm:$0xf0] }
 0x36d   :  { %v4531_v48 = vpop.f32.mrf.mxu0  ;;  %v7564_v62 = vor.u32 %v8332_v27, %v7563_v44  ;;  %4906 = vmatpush.bf16.msrb.mxu0 %v7436_v63  ;;  %v9726_v27 = vld [vmem:[#allocation40_spill] sm:$0xff]  ;;  %v9728_v63 = vld [vmem:[#allocation42_spill] sm:$0xff] }
 0x36e   :  { %v4565_v19 = vadd.f32 %v4564_v53, %v4531_v48  ;;  %v7675_v48 = vld [vmem:[#allocation6 + $0xe28] sm:$0xf]  ;;  %v8360_v53 = vld [vmem:[#allocation6 + $0xe34] sm:$0xf0] }
 0x36f   :  { %v4595_v34 = vpop.f32.mrf.mxu2  ;;  %4939 = vmatpush.bf16.msrb.mxu1 %v7564_v62  ;;  %v7676_v12 = vor.u32 %v8360_v53, %v7675_v48  ;;  %v7420_v62 = vor.u32 %v8296_v39, %v7419_v8  ;;  %v7547_v44 = vld [vmem:[#allocation6 + $0xd28] sm:$0xf]  ;;  %v8356_v39 = vld [vmem:[#allocation6 + $0xe14] sm:$0xf0] }
 0x370   :  { %v4596_v61 = vadd.f32 %v4595_v34, %v4563_v32  ;;  %v7403_v8 = vld [vmem:[#allocation6 + $0xc08] sm:$0xf] }
 0x371   :  { %4973 = vmatpush.bf16.msrb.mxu2 %v7676_v12  ;;  %4907 = vmatpush.bf16.msrb.mxu0 %v7420_v62  ;;  %v7787_v12 = vld [vmem:[#allocation6 + $0xf08] sm:$0xf] }
 0x372   :  { %v9196_v57 = vadd.f32 %v4628_v59, %v4596_v61  ;;  %v7531_v62 = vld [vmem:[#allocation6 + $0xd08] sm:$0xf] }
 0x374   :  { %v4630_v13 = vpop.f32.mrf.mxu3  ;;  %v4567_v34 = vpop.f32.mrf.mxu1 }
 0x375   :  { %v4534_v16 = vpop.f32.mrf.mxu0 }
 0x376   :  { %v4568_v59 = vadd.f32 %v4567_v34, %v4534_v16 }
 0x377   :  { %v4597_v32 = vpop.f32.mrf.mxu2  ;;  %4820 = vmatmul.bf16.gmra.mxu1 %v9726_v27 }
 0x378   :  { %v4598_v17 = vadd.f32 %v4597_v32, %v4565_v19  ;;  %4787 = vmatmul.bf16.gmra.mxu0 %v9725_v42  ;;  %v8392_v19 = vld [vmem:[#allocation6 + $0xf34] sm:$0xf0] }
 0x379   :  { %4886 = vmatmul.bf16.gmra.mxu3 %v9728_v63  ;;  %v7804_v2 = vor.u32 %v8392_v19, %v7803_v35  ;;  %v8328_v32 = vld [vmem:[#allocation6 + $0xd34] sm:$0xf0] }
 0x37a   :  { %v9198_v61 = vadd.f32 %v4630_v13, %v4598_v17  ;;  %v7548_v17 = vor.u32 %v8328_v32, %v7547_v44  ;;  %v8292_v63 = vld [vmem:[#allocation6 + $0xc14] sm:$0xf0] }
 0x37b   :  { %5006 = vmatpush.bf16.msrb.mxu3 %v7804_v2  ;;  %v8388_v35 = vld [vmem:[#allocation6 + $0xf14] sm:$0xf0]  ;;  %v7404_v19 = vor.u32 %v8292_v63, %v7403_v8  ;;  %v9731_v63 = vld [vmem:[#allocation45_spill] sm:$0xff]  ;;  %v7934_v8 = vld [vmem:[#allocation6 + $0xec] sm:$0xf] }
 0x37c   :  { %4853 = vmatmul.bf16.gmra.mxu2 %v9727_v58  ;;  %v4633_v34 = vpop.f32.mrf.mxu3  ;;  %4940 = vmatpush.bf16.msrb.mxu1 %v7548_v17  ;;  %v4569_v53 = vpop.f32.mrf.mxu1  ;;  %v7659_v58 = vld [vmem:[#allocation6 + $0xe08] sm:$0xf]  ;;  %v7788_v0 = vor.u32 %v8388_v35, %v7787_v12  ;;  %v8324_v44 = vld [vmem:[#allocation6 + $0xd14] sm:$0xf0]  ;;  %v8030_v35 = vld [vmem:[#allocation6 + $0x3ec] sm:$0xf] }
 0x37d   :  { %v4536_v48 = vpop.f32.mrf.mxu0  ;;  %v7660_v42 = vor.u32 %v8356_v39, %v7659_v58  ;;  %v7532_v2 = vor.u32 %v8324_v44, %v7531_v62  ;;  %4908 = vmatpush.bf16.msrb.mxu0 %v7404_v19  ;;  %v9729_v58 = vld [vmem:[#allocation43_spill] sm:$0xff]  ;;  %v9732_v53 = vld [vmem:[#allocation46_spill] sm:$0xff] }
 0x37e   :  { %v9730_v48 = vld [vmem:[#allocation44_spill] sm:$0xff]  ;;  %v6237_v39 = vld [vmem:[#allocation6 + $0x2f8] sm:$0xf0] }
 0x37f   :  { %v4600_v13 = vpop.f32.mrf.mxu2  ;;  %4974 = vmatpush.bf16.msrb.mxu2 %v7660_v42  ;;  %5007 = vmatpush.bf16.msrb.mxu3 %v7788_v0  ;;  %v7998_v42 = vld [vmem:[#allocation6 + $0x2ec] sm:$0xf]  ;;  %v5981_v0 = vld [vmem:[#allocation6 + $0xf8] sm:$0xf0] }
 0x380   :  { %v4601_v16 = vadd.f32 %v4600_v13, %v4568_v59  ;;  %4941 = vmatpush.bf16.msrb.mxu1 %v7532_v2  ;;  %v6240_v12 = vor.u32 %v7998_v42, %v6237_v39  ;;  %v6365_v19 = vld [vmem:[#allocation6 + $0x3f8] sm:$0xf0]  ;;  %v5984_v44 = vor.u32 %v7934_v8, %v5981_v0 }
 0x382   :  { %v9204_v27 = vadd.f32 %v4633_v34, %v4601_v16  ;;  %5033 = vmatpush.bf16.msra.mxu0 %v5984_v44  ;;  %v5965_v44 = vld [vmem:[#allocation6 + $0xd8] sm:$0xf0] }
 0x383   :  { %5099 = vmatpush.bf16.msra.mxu2 %v6240_v12 }
 0x384   :  { %v4635_v32 = vpop.f32.mrf.mxu3  ;;  %v4679_v16 = vpop.f32.mrf.mxu1 }
 0x385   :  { %v4646_v17 = vpop.f32.mrf.mxu0 }
 0x386   :  { %v4647_v13 = vadd.f32 %v4646_v17, %v9172_v60  ;;  %v6368_v60 = vor.u32 %v8030_v35, %v6365_v19 }
 0x387   :  { %v4602_v59 = vpop.f32.mrf.mxu2  ;;  %4825 = vmatmul.bf16.gmra.mxu1 %v9730_v48  ;;  %v7994_v48 = vld [vmem:[#allocation6 + $0x2cc] sm:$0xf] }
 0x388   :  { %v4680_v34 = vadd.f32 %v4679_v16, %v4647_v13  ;;  %4792 = vmatmul.bf16.gmra.mxu0 %v9729_v58  ;;  %5132 = vmatpush.bf16.msra.mxu3 %v6368_v60  ;;  %v6221_v58 = vld [vmem:[#allocation6 + $0x2d8] sm:$0xf0]  ;;  %v8026_v60 = vld [vmem:[#allocation6 + $0x3cc] sm:$0xf] }
 0x389   :  { %4891 = vmatmul.bf16.gmra.mxu3 %v9732_v53  ;;  %v7966_v53 = vld [vmem:[#allocation6 + $0x1ec] sm:$0xf]  ;;  %v6224_v40 = vor.u32 %v7994_v48, %v6221_v58  ;;  %v6093_v48 = vld [vmem:[#allocation6 + $0x1d8] sm:$0xf0] }
 0x38a   :  { %v7962_v58 = vld [vmem:[#allocation6 + $0x1cc] sm:$0xf] }
 0x38b   :  { %5100 = vmatpush.bf16.msra.mxu2 %v6224_v40  ;;  %v9734_v40 = vld [vmem:[#allocation48_spill] sm:$0xff] }
 0x38c   :  { %4858 = vmatmul.bf16.gmra.mxu2 %v9731_v63  ;;  %v4745_v59 = vpop.f32.mrf.mxu3  ;;  %v4681_v13 = vpop.f32.mrf.mxu1  ;;  %v6109_v63 = vld [vmem:[#allocation6 + $0x1f8] sm:$0xf0] }
 0x38d   :  { %v4648_v32 = vpop.f32.mrf.mxu0  ;;  %v6112_v39 = vor.u32 %v7966_v53, %v6109_v63  ;;  %v6349_v53 = vld [vmem:[#allocation6 + $0x3d8] sm:$0xf0] }
 0x38e   :  { %v4649_v17 = vadd.f32 %v4648_v32, %v9174_v41  ;;  %v9735_v32 = vld [vmem:[#allocation49_spill] sm:$0xff] }
 0x38f   :  { %v4712_v62 = vpop.f32.mrf.mxu2  ;;  %5066 = vmatpush.bf16.msra.mxu1 %v6112_v39 }
 0x390   :  { %v4713_v2 = vadd.f32 %v4712_v62, %v4680_v34  ;;  %v4682_v42 = vadd.f32 %v4681_v13, %v4649_v17  ;;  %v7930_v62 = vld [vmem:[#allocation6 + $0xcc] sm:$0xf]  ;;  %v6352_v17 = vor.u32 %v8026_v60, %v6349_v53  ;;  %v6096_v13 = vor.u32 %v7962_v58, %v6093_v48  ;;  %v5949_v53 = vld [vmem:[#allocation6 + $0xb8] sm:$0xf0] }
 0x391   :  { %v5968_v63 = vor.u32 %v7930_v62, %v5965_v44  ;;  %v6205_v62 = vld [vmem:[#allocation6 + $0x2b8] sm:$0xf0]  ;;  %v7926_v60 = vld [vmem:[#allocation6 + $0xac] sm:$0xf] }
 0x392   :  { %v9212_v16 = vadd.f32 %v4745_v59, %v4713_v2  ;;  %v9733_v59 = vld [vmem:[#allocation47_spill] sm:$0xff]  ;;  %5133 = vmatpush.bf16.msra.mxu3 %v6352_v17  ;;  %v8022_v58 = vld [vmem:[#allocation6 + $0x3ac] sm:$0xf]  ;;  %v5952_v48 = vor.u32 %v7926_v60, %v5949_v53  ;;  %v6189_v53 = vld [vmem:[#allocation6 + $0x298] sm:$0xf0] }
 0x393   :  { %5034 = vmatpush.bf16.msra.mxu0 %v5968_v63  ;;  %5067 = vmatpush.bf16.msra.mxu1 %v6096_v13  ;;  %v6333_v63 = vld [vmem:[#allocation6 + $0x3b8] sm:$0xf0]  ;;  %v7958_v17 = vld [vmem:[#allocation6 + $0x1ac] sm:$0xf] }
 0x394   :  { %v4747_v0 = vpop.f32.mrf.mxu3  ;;  %v4684_v35 = vpop.f32.mrf.mxu1  ;;  %v6077_v13 = vld [vmem:[#allocation6 + $0x1b8] sm:$0xf0]  ;;  %v7986_v60 = vld [vmem:[#allocation6 + $0x28c] sm:$0xf] }
 0x395   :  { %v4651_v12 = vpop.f32.mrf.mxu0 }
 0x396   :  { %v4652_v41 = vadd.f32 %v4651_v12, %v9180_v9  ;;  %v9736_v9 = vld [vmem:[#allocation50_spill] sm:$0xff] }
 0x397   :  { %v4714_v34 = vpop.f32.mrf.mxu2  ;;  %4830 = vmatmul.bf16.gmra.mxu1 %v9734_v40  ;;  %5035 = vmatpush.bf16.msra.mxu0 %v5952_v48  ;;  %v6192_v48 = vor.u32 %v7986_v60, %v6189_v53  ;;  %v5917_v40 = vld [vmem:[#allocation6 + $0x78] sm:$0xf0] }
 0x398   :  { %v4715_v8 = vadd.f32 %v4714_v34, %v4682_v42  ;;  %v4685_v2 = vadd.f32 %v4684_v35, %v4652_v41  ;;  %4797 = vmatmul.bf16.gmra.mxu0 %v9733_v59  ;;  %v7990_v35 = vld [vmem:[#allocation6 + $0x2ac] sm:$0xf] }
 0x399   :  { %4896 = vmatmul.bf16.gmra.mxu3 %v9736_v9  ;;  %v8014_v59 = vld [vmem:[#allocation6 + $0x36c] sm:$0xf] }
 0x39a   :  { %v9215_v19 = vadd.f32 %v4747_v0, %v4715_v8 }
 0x39c   :  { %4863 = vmatmul.bf16.gmra.mxu2 %v9735_v32  ;;  %v4750_v34 = vpop.f32.mrf.mxu3  ;;  %v4686_v12 = vpop.f32.mrf.mxu1  ;;  %v6208_v32 = vor.u32 %v7990_v35, %v6205_v62  ;;  %v9737_v62 = vld [vmem:[#allocation51_spill] sm:$0xff] }
 0x39d   :  { %v4653_v8 = vpop.f32.mrf.mxu0 }
 0x39e   :  { %v4654_v0 = vadd.f32 %v4653_v8, %v9182_v10  ;;  %5101 = vmatpush.bf16.msra.mxu2 %v6208_v32  ;;  %v9738_v32 = vld [vmem:[#allocation52_spill] sm:$0xff] }
 0x39f   :  { %v4717_v42 = vpop.f32.mrf.mxu2 }
 0x3a0   :  { %v4718_v39 = vadd.f32 %v4717_v42, %v4685_v2  ;;  %v4687_v44 = vadd.f32 %v4686_v12, %v4654_v0  ;;  %v6336_v2 = vor.u32 %v8022_v58, %v6333_v63  ;;  %v6080_v42 = vor.u32 %v7958_v17, %v6077_v13  ;;  %v9739_v58 = vld [vmem:[#allocation53_spill] sm:$0xff]  ;;  %v9740_v63 = vld [vmem:[#allocation54_spill] sm:$0xff]  ;;  %v8018_v17 = vld [vmem:[#allocation6 + $0x38c] sm:$0xf] }
 0x3a1   :  { %v6317_v13 = vld [vmem:[#allocation6 + $0x398] sm:$0xf0] }
 0x3a2   :  { %v9222_v41 = vadd.f32 %v4750_v34, %v4718_v39  ;;  %5134 = vmatpush.bf16.msra.mxu3 %v6336_v2  ;;  %5068 = vmatpush.bf16.msra.mxu1 %v6080_v42  ;;  %v7954_v2 = vld [vmem:[#allocation6 + $0x18c] sm:$0xf]  ;;  %v6061_v42 = vld [vmem:[#allocation6 + $0x198] sm:$0xf0] }
 0x3a3   :  { %5102 = vmatpush.bf16.msra.mxu2 %v6192_v48  ;;  %v6173_v48 = vld [vmem:[#allocation6 + $0x278] sm:$0xf0] }
 0x3a4   :  { %v4752_v39 = vpop.f32.mrf.mxu3  ;;  %v4689_v0 = vpop.f32.mrf.mxu1 }
 0x3a5   :  { %v4656_v34 = vpop.f32.mrf.mxu0 }
 0x3a6   :  { %v4657_v8 = vadd.f32 %v4656_v34, %v9188_v18  ;;  %v6064_v34 = vor.u32 %v7954_v2, %v6061_v42  ;;  %v7950_v42 = vld [vmem:[#allocation6 + $0x16c] sm:$0xf] }
 0x3a7   :  { %v4719_v9 = vpop.f32.mrf.mxu2  ;;  %4942 = vmatmul.bf16.vlgmr.msrb.gmra.mxu1 %v9738_v32 }
 0x3a8   :  { %v4720_v10 = vadd.f32 %v4719_v9, %v4687_v44  ;;  %v4690_v35 = vadd.f32 %v4689_v0, %v4657_v8  ;;  %4909 = vmatmul.bf16.vlgmr.msrb.gmra.mxu0 %v9737_v62  ;;  %v7922_v9 = vld [vmem:[#allocation6 + $0x8c] sm:$0xf]  ;;  %v5933_v44 = vld [vmem:[#allocation6 + $0x98] sm:$0xf0]  ;;  %5069 = vmatpush.bf16.msra.mxu1 %v6064_v34 }
 0x3a9   :  { %5008 = vmatmul.bf16.vlgmr.msrb.gmra.mxu3 %v9740_v63  ;;  %v5936_v18 = vor.u32 %v7922_v9, %v5933_v44  ;;  %v7982_v63 = vld [vmem:[#allocation6 + $0x26c] sm:$0xf] }
 0x3aa   :  { %v9225_v12 = vadd.f32 %v4752_v39, %v4720_v10  ;;  %v6320_v39 = vor.u32 %v8018_v17, %v6317_v13  ;;  %v7918_v9 = vld [vmem:[#allocation6 + $0x6c] sm:$0xf]  ;;  %v6176_v32 = vor.u32 %v7982_v63, %v6173_v48  ;;  %v6301_v17 = vld [vmem:[#allocation6 + $0x378] sm:$0xf0] }
 0x3ab   :  { %5036 = vmatpush.bf16.msra.mxu0 %v5936_v18  ;;  %v5920_v13 = vor.u32 %v7918_v9, %v5917_v40  ;;  %v9742_v40 = vld [vmem:[#allocation57_spill] sm:$0xff] }
 0x3ac   :  { %4975 = vmatmul.bf16.vlgmr.msrb.gmra.mxu2 %v9739_v58  ;;  %v4755_v0 = vpop.f32.mrf.mxu3  ;;  %v4691_v60 = vpop.f32.mrf.mxu1  ;;  %5135 = vmatpush.bf16.msra.mxu3 %v6320_v39 }
 0x3ad   :  { %v4658_v62 = vpop.f32.mrf.mxu0  ;;  %5103 = vmatpush.bf16.msra.mxu2 %v6176_v32  ;;  %v9743_v32 = vld [vmem:[#allocation58_spill] sm:$0xff] }
 0x3ae   :  { %v4659_v58 = vadd.f32 %v4658_v62, %v9190_v33 }
 0x3af   :  { %v4722_v10 = vpop.f32.mrf.mxu2  ;;  %5037 = vmatpush.bf16.msra.mxu0 %v5920_v13 }
 0x3b0   :  { %v4723_v8 = vadd.f32 %v4722_v10, %v4690_v35  ;;  %v4692_v44 = vadd.f32 %v4691_v60, %v4659_v58  ;;  %v6304_v35 = vor.u32 %v8014_v59, %v6301_v17  ;;  %v6045_v10 = vld [vmem:[#allocation6 + $0x178] sm:$0xf0]  ;;  %v9741_v59 = vld [vmem:[#allocation56_spill] sm:$0xff] }
 0x3b1   :  { %v6157_v60 = vld [vmem:[#allocation6 + $0x258] sm:$0xf0] }
 0x3b2   :  { %v9232_v53 = vadd.f32 %v4755_v0, %v4723_v8  ;;  %5136 = vmatpush.bf16.msra.mxu3 %v6304_v35  ;;  %v6048_v8 = vor.u32 %v7950_v42, %v6045_v10  ;;  %v7978_v0 = vld [vmem:[#allocation6 + $0x24c] sm:$0xf] }
 0x3b3   :  { %v6160_v48 = vor.u32 %v7978_v0, %v6157_v60 }
 0x3b4   :  { %v4757_v62 = vpop.f32.mrf.mxu3  ;;  %v4694_v34 = vpop.f32.mrf.mxu1  ;;  %5070 = vmatpush.bf16.msra.mxu1 %v6048_v8  ;;  %v6029_v8 = vld [vmem:[#allocation6 + $0x158] sm:$0xf0] }
 0x3b5   :  { %v4661_v2 = vpop.f32.mrf.mxu0  ;;  %5104 = vmatpush.bf16.msra.mxu2 %v6160_v48 }
 0x3b6   :  { %v4662_v39 = vadd.f32 %v4661_v2, %v9196_v57  ;;  %v8010_v2 = vld [vmem:[#allocation6 + $0x34c] sm:$0xf] }
 0x3b7   :  { %v4724_v18 = vpop.f32.mrf.mxu2  ;;  %4947 = vmatmul.bf16.gmra.mxu1 %v9741_v59 }
 0x3b8   :  { %v4725_v33 = vadd.f32 %v4724_v18, %v4692_v44  ;;  %v4695_v63 = vadd.f32 %v4694_v34, %v4662_v39  ;;  %4914 = vmatmul.bf16.gmra.mxu0 %v9695_v1  ;;  %v6285_v39 = vld [vmem:[#allocation6 + $0x358] sm:$0xf0]  ;;  %v7946_v34 = vld [vmem:[#allocation6 + $0x14c] sm:$0xf] }
 0x3b9   :  { %5013 = vmatmul.bf16.gmra.mxu3 %v9743_v32  ;;  %v6288_v32 = vor.u32 %v8010_v2, %v6285_v39  ;;  %v6032_v0 = vor.u32 %v7946_v34, %v6029_v8  ;;  %v7910_v2 = vld [vmem:[#allocation6 + $0x2c] sm:$0xf]  ;;  %v5885_v39 = vld [vmem:[#allocation6 + $0x38] sm:$0xf0]  ;;  %v9746_v34 = vld [vmem:[#allocation61_spill] sm:$0xff] }
 0x3ba   :  { %v9235_v58 = vadd.f32 %v4757_v62, %v4725_v33  ;;  %v7914_v33 = vld [vmem:[#allocation6 + $0x4c] sm:$0xf]  ;;  %v5901_v62 = vld [vmem:[#allocation6 + $0x58] sm:$0xf0] }
 0x3bb   :  { %v5904_v10 = vor.u32 %v7914_v33, %v5901_v62  ;;  %5137 = vmatpush.bf16.msra.mxu3 %v6288_v32  ;;  %5071 = vmatpush.bf16.msra.mxu1 %v6032_v0  ;;  %v9744_v33 = vld [vmem:[#allocation59_spill] sm:$0xff]  ;;  %v9745_v32 = vld [vmem:[#allocation60_spill] sm:$0xff]  ;;  %v6269_v8 = vld [vmem:[#allocation6 + $0x338] sm:$0xf0] }
 0x3bc   :  { %4980 = vmatmul.bf16.gmra.mxu2 %v9742_v40  ;;  %v4760_v57 = vpop.f32.mrf.mxu3  ;;  %v4696_v35 = vpop.f32.mrf.mxu1  ;;  %v9747_v0 = vld [vmem:[#allocation62_spill] sm:$0xff] }
 0x3bd   :  { %v4663_v17 = vpop.f32.mrf.mxu0  ;;  %5038 = vmatpush.bf16.msra.mxu0 %v5904_v10  ;;  %v8006_v10 = vld [vmem:[#allocation6 + $0x32c] sm:$0xf] }
 0x3be   :  { %v4664_v13 = vadd.f32 %v4663_v17, %v9198_v61  ;;  %v7974_v17 = vld [vmem:[#allocation6 + $0x22c] sm:$0xf] }
 0x3bf   :  { %v4727_v9 = vpop.f32.mrf.mxu2 }
 0x3c0   :  { %v4728_v44 = vadd.f32 %v4727_v9, %v4695_v63  ;;  %v4697_v42 = vadd.f32 %v4696_v35, %v4664_v13  ;;  %v6141_v13 = vld [vmem:[#allocation6 + $0x238] sm:$0xf0] }
 0x3c1   :  { %v6144_v62 = vor.u32 %v7974_v17, %v6141_v13 }
 0x3c2   :  { %v9242_v18 = vadd.f32 %v4760_v57, %v4728_v44 }
 0x3c3   :  { %5105 = vmatpush.bf16.msra.mxu2 %v6144_v62  ;;  %v8002_v62 = vld [vmem:[#allocation6 + $0x30c] sm:$0xf] }
 0x3c4   :  { %v4762_v48 = vpop.f32.mrf.mxu3  ;;  %v4699_v44 = vpop.f32.mrf.mxu1 }
 0x3c5   :  { %v4666_v61 = vpop.f32.mrf.mxu0 }
 0x3c6   :  { %v4667_v9 = vadd.f32 %v4666_v61, %v9204_v27  ;;  %v6272_v27 = vor.u32 %v8006_v10, %v6269_v8  ;;  %v6253_v10 = vld [vmem:[#allocation6 + $0x318] sm:$0xf0] }
 0x3c7   :  { %v4729_v63 = vpop.f32.mrf.mxu2  ;;  %4952 = vmatmul.bf16.gmra.mxu1 %v9745_v32  ;;  %v6256_v40 = vor.u32 %v8002_v62, %v6253_v10  ;;  %v6877_v62 = vld [vmem:[#allocation6 + $0x7f8] sm:$0xf0] }
 0x3c8   :  { %v4730_v60 = vadd.f32 %v4729_v63, %v4697_v42  ;;  %v4700_v35 = vadd.f32 %v4699_v44, %v4667_v9  ;;  %4919 = vmatmul.bf16.gmra.mxu0 %v9744_v33  ;;  %v5888_v42 = vor.u32 %v7910_v2, %v5885_v39  ;;  %v7942_v63 = vld [vmem:[#allocation6 + $0x12c] sm:$0xf]  ;;  %5138 = vmatpush.bf16.msra.mxu3 %v6272_v27  ;;  %v6125_v2 = vld [vmem:[#allocation6 + $0x218] sm:$0xf0] }
 0x3c9   :  { %5018 = vmatmul.bf16.gmra.mxu3 %v9747_v0  ;;  %v7906_v39 = vld [vmem:[#allocation6 + $0xc] sm:$0xf]  ;;  %v5869_v0 = vld [vmem:[#allocation6 + $0x18] sm:$0xf0] }
 0x3ca   :  { %v9245_v57 = vadd.f32 %v4762_v48, %v4730_v60  ;;  %v6013_v60 = vld [vmem:[#allocation6 + $0x138] sm:$0xf0]  ;;  %5039 = vmatpush.bf16.msra.mxu0 %v5888_v42  ;;  %v5872_v8 = vor.u32 %v7906_v39, %v5869_v0  ;;  %v7938_v42 = vld [vmem:[#allocation6 + $0x10c] sm:$0xf]  ;;  %v9749_v0 = vld [vmem:[#allocation65_spill] sm:$0xff] }
 0x3cb   :  { %v6016_v48 = vor.u32 %v7942_v63, %v6013_v60  ;;  %v5997_v63 = vld [vmem:[#allocation6 + $0x118] sm:$0xf0]  ;;  %v8158_v39 = vld [vmem:[#allocation6 + $0x7ec] sm:$0xf] }
 0x3cc   :  { %4985 = vmatmul.bf16.gmra.mxu2 %v9746_v34  ;;  %v4765_v44 = vpop.f32.mrf.mxu3  ;;  %v4701_v13 = vpop.f32.mrf.mxu1  ;;  %v7970_v34 = vld [vmem:[#allocation6 + $0x20c] sm:$0xf]  ;;  %v6000_v27 = vor.u32 %v7938_v42, %v5997_v63  ;;  %5139 = vmatpush.bf16.msra.mxu3 %v6256_v40  ;;  %v6493_v40 = vld [vmem:[#allocation6 + $0x4f8] sm:$0xf0] }
 0x3cd   :  { %v4668_v17 = vpop.f32.mrf.mxu0  ;;  %5072 = vmatpush.bf16.msra.mxu1 %v6016_v48  ;;  %v6128_v33 = vor.u32 %v7970_v34, %v6125_v2  ;;  %v9748_v34 = vld [vmem:[#allocation64_spill] sm:$0xff] }
 0x3ce   :  { %5040 = vmatpush.bf16.msra.mxu0 %v5872_v8  ;;  %v6749_v17 = vld [vmem:[#allocation6 + $0x6f8] sm:$0xf0]  ;;  %v8062_v13 = vld [vmem:[#allocation6 + $0x4ec] sm:$0xf] }
 0x3cf   :  { %v4732_v61 = vpop.f32.mrf.mxu2  ;;  %5106 = vmatpush.bf16.msra.mxu2 %v6128_v33  ;;  %v8126_v33 = vld [vmem:[#allocation6 + $0x6ec] sm:$0xf]  ;;  %v6496_v8 = vor.u32 %v8062_v13, %v6493_v40 }
 0x3d0   :  { %v4733_v9 = vadd.f32 %v4732_v61, %v4700_v35  ;;  %v6752_v2 = vor.u32 %v8126_v33, %v6749_v17 }
 0x3d1   :  { %5073 = vmatpush.bf16.msra.mxu1 %v6000_v27 }
 0x3d2   :  { %v9251_v32 = vadd.f32 %v4765_v44, %v4733_v9  ;;  %5165 = vmatpush.bf16.msrb.mxu0 %v6496_v8  ;;  %v6477_v8 = vld [vmem:[#allocation6 + $0x4d8] sm:$0xf0] }
 0x3d3   :  { %5231 = vmatpush.bf16.msrb.mxu2 %v6752_v2 }
 0x3d4   :  { %v4767_v60 = vpop.f32.mrf.mxu3  ;;  %v4811_v9 = vpop.f32.mrf.mxu1 }
 0x3d5   :  { %v4778_v48 = vpop.f32.mrf.mxu0 }
 0x3d6   :  { %v4779_v61 = vadd.f32 %v4778_v48, %v9212_v16  ;;  %v6880_v16 = vor.u32 %v8158_v39, %v6877_v62 }
 0x3d7   :  { %v4734_v35 = vpop.f32.mrf.mxu2  ;;  %4957 = vmatmul.bf16.gmra.mxu1 %v8873_v38 }
 0x3d8   :  { %v4812_v44 = vadd.f32 %v4811_v9, %v4779_v61  ;;  %4924 = vmatmul.bf16.gmra.mxu0 %v8871_v37  ;;  %5264 = vmatpush.bf16.msrb.mxu3 %v6880_v16  ;;  %v8094_v61 = vld [vmem:[#allocation6 + $0x5ec] sm:$0xf]  ;;  %v6621_v9 = vld [vmem:[#allocation6 + $0x5f8] sm:$0xf0] }
 0x3d9   :  { %5023 = vmatmul.bf16.gmra.mxu3 %v9749_v0  ;;  %v6624_v17 = vor.u32 %v8094_v61, %v6621_v9  ;;  %v8122_v0 = vld [vmem:[#allocation6 + $0x6cc] sm:$0xf] }
 0x3da   :  { %v8154_v16 = vld [vmem:[#allocation6 + $0x7cc] sm:$0xf] }
 0x3db   :  { %5198 = vmatpush.bf16.msrb.mxu1 %v6624_v17 }
 0x3dc   :  { %4990 = vmatmul.bf16.gmra.mxu2 %v9748_v34  ;;  %v4877_v63 = vpop.f32.mrf.mxu3  ;;  %v4813_v60 = vpop.f32.mrf.mxu1  ;;  %v6733_v34 = vld [vmem:[#allocation6 + $0x6d8] sm:$0xf0] }
 0x3dd   :  { %v4780_v27 = vpop.f32.mrf.mxu0  ;;  %v6736_v38 = vor.u32 %v8122_v0, %v6733_v34  ;;  %v8090_v34 = vld [vmem:[#allocation6 + $0x5cc] sm:$0xf]  ;;  %v6605_v0 = vld [vmem:[#allocation6 + $0x5d8] sm:$0xf0] }
 0x3de   :  { %v4781_v35 = vadd.f32 %v4780_v27, %v9215_v19  ;;  %v6861_v27 = vld [vmem:[#allocation6 + $0x7d8] sm:$0xf0] }
 0x3df   :  { %v4844_v10 = vpop.f32.mrf.mxu2  ;;  %5232 = vmatpush.bf16.msrb.mxu2 %v6736_v38  ;;  %v6864_v38 = vor.u32 %v8154_v16, %v6861_v27  ;;  %v8086_v27 = vld [vmem:[#allocation6 + $0x5ac] sm:$0xf] }
 0x3e0   :  { %v4845_v42 = vadd.f32 %v4844_v10, %v4812_v44  ;;  %v4814_v33 = vadd.f32 %v4813_v60, %v4781_v35  ;;  %v8058_v10 = vld [vmem:[#allocation6 + $0x4cc] sm:$0xf]  ;;  %v6608_v35 = vor.u32 %v8090_v34, %v6605_v0  ;;  %v6589_v34 = vld [vmem:[#allocation6 + $0x5b8] sm:$0xf0] }
 0x3e1   :  { %5265 = vmatpush.bf16.msrb.mxu3 %v6864_v38  ;;  %v6592_v0 = vor.u32 %v8086_v27, %v6589_v34  ;;  %v6829_v27 = vld [vmem:[#allocation6 + $0x798] sm:$0xf0]  ;;  %v8082_v34 = vld [vmem:[#allocation6 + $0x58c] sm:$0xf] }
 0x3e2   :  { %v9259_v48 = vadd.f32 %v4877_v63, %v4845_v42  ;;  %v6480_v63 = vor.u32 %v8058_v10, %v6477_v8  ;;  %5199 = vmatpush.bf16.msrb.mxu1 %v6608_v35  ;;  %v6461_v10 = vld [vmem:[#allocation6 + $0x4b8] sm:$0xf0]  ;;  %v8150_v8 = vld [vmem:[#allocation6 + $0x7ac] sm:$0xf] }
 0x3e4   :  { %v4879_v40 = vpop.f32.mrf.mxu3  ;;  %v4816_v39 = vpop.f32.mrf.mxu1  ;;  %5166 = vmatpush.bf16.msrb.mxu0 %v6480_v63  ;;  %v6845_v63 = vld [vmem:[#allocation6 + $0x7b8] sm:$0xf0] }
 0x3e5   :  { %v4783_v2 = vpop.f32.mrf.mxu0 }
 0x3e6   :  { %v4784_v19 = vadd.f32 %v4783_v2, %v9222_v41  ;;  %5200 = vmatpush.bf16.msrb.mxu1 %v6592_v0 }
 0x3e7   :  { %v4846_v44 = vpop.f32.mrf.mxu2  ;;  %4962 = vmatmul.bf16.gmra.mxu1 %v8889_v15 }
 0x3e8   :  { %v4847_v13 = vadd.f32 %v4846_v44, %v4814_v33  ;;  %v4817_v42 = vadd.f32 %v4816_v39, %v4784_v19  ;;  %4929 = vmatmul.bf16.gmra.mxu0 %v8887_v7  ;;  %v8054_v39 = vld [vmem:[#allocation6 + $0x4ac] sm:$0xf] }
 0x3e9   :  { %5028 = vmatmul.bf16.gmra.mxu3 %v9705_v14  ;;  %v6464_v16 = vor.u32 %v8054_v39, %v6461_v10  ;;  %v9752_v39 = vld [vmem:[#allocation18_spill] sm:$0xff] }
 0x3ea   :  { %v9262_v62 = vadd.f32 %v4879_v40, %v4847_v13  ;;  %v8118_v13 = vld [vmem:[#allocation6 + $0x6ac] sm:$0xf]  ;;  %v6717_v40 = vld [vmem:[#allocation6 + $0x6b8] sm:$0xf0] }
 0x3eb   :  { %v6720_v19 = vor.u32 %v8118_v13, %v6717_v40  ;;  %5167 = vmatpush.bf16.msrb.mxu0 %v6464_v16  ;;  %v8114_v13 = vld [vmem:[#allocation6 + $0x68c] sm:$0xf]  ;;  %v6701_v40 = vld [vmem:[#allocation6 + $0x698] sm:$0xf0] }
 0x3ec   :  { %4995 = vmatmul.bf16.gmra.mxu2 %v9704_v11  ;;  %v4882_v61 = vpop.f32.mrf.mxu3  ;;  %v4818_v17 = vpop.f32.mrf.mxu1  ;;  %v6704_v10 = vor.u32 %v8114_v13, %v6701_v40  ;;  %v6445_v16 = vld [vmem:[#allocation6 + $0x498] sm:$0xf0]  ;;  %v8110_v40 = vld [vmem:[#allocation6 + $0x66c] sm:$0xf] }
 0x3ed   :  { %v4785_v9 = vpop.f32.mrf.mxu0  ;;  %5233 = vmatpush.bf16.msrb.mxu2 %v6720_v19  ;;  %v9751_v19 = vld [vmem:[#allocation17_spill] sm:$0xff] }
 0x3ee   :  { %v4786_v33 = vadd.f32 %v4785_v9, %v9225_v12 }
 0x3ef   :  { %v4849_v41 = vpop.f32.mrf.mxu2 }
 0x3f0   :  { %v4850_v60 = vadd.f32 %v4849_v41, %v4817_v42  ;;  %v4819_v2 = vadd.f32 %v4818_v17, %v4786_v33  ;;  %v6848_v42 = vor.u32 %v8150_v8, %v6845_v63  ;;  %v9750_v17 = vld [vmem:[#allocation16_spill] sm:$0xff]  ;;  %v9753_v8 = vld [vmem:[#allocation19_spill] sm:$0xff] }
 0x3f1   :  { %v8146_v63 = vld [vmem:[#allocation6 + $0x78c] sm:$0xf]  ;;  %5234 = vmatpush.bf16.msrb.mxu2 %v6704_v10 }
 0x3f2   :  { %v9269_v44 = vadd.f32 %v4882_v61, %v4850_v60  ;;  %5266 = vmatpush.bf16.msrb.mxu3 %v6848_v42  ;;  %v6573_v42 = vld [vmem:[#allocation6 + $0x598] sm:$0xf0] }
 0x3f4   :  { %v4884_v35 = vpop.f32.mrf.mxu3  ;;  %v4821_v61 = vpop.f32.mrf.mxu1 }
 0x3f5   :  { %v4788_v41 = vpop.f32.mrf.mxu0 }
 0x3f6   :  { %v4789_v60 = vadd.f32 %v4788_v41, %v9232_v53 }
 0x3f7   :  { %v4851_v38 = vpop.f32.mrf.mxu2  ;;  %5074 = vmatmul.bf16.vlgmr.msra.gmra.mxu1 %v9751_v19  ;;  %v6685_v19 = vld [vmem:[#allocation6 + $0x678] sm:$0xf0] }
 0x3f8   :  { %v4852_v12 = vadd.f32 %v4851_v38, %v4819_v2  ;;  %v4822_v33 = vadd.f32 %v4821_v61, %v4789_v60  ;;  %5041 = vmatmul.bf16.vlgmr.msra.gmra.mxu0 %v9750_v17  ;;  %v8050_v2 = vld [vmem:[#allocation6 + $0x48c] sm:$0xf]  ;;  %v6832_v38 = vor.u32 %v8146_v63, %v6829_v27  ;;  %v6813_v63 = vld [vmem:[#allocation6 + $0x778] sm:$0xf0] }
 0x3f9   :  { %5140 = vmatmul.bf16.vlgmr.msra.gmra.mxu3 %v9753_v8  ;;  %v6448_v53 = vor.u32 %v8050_v2, %v6445_v16  ;;  %v6688_v8 = vor.u32 %v8110_v40, %v6685_v19  ;;  %v6429_v2 = vld [vmem:[#allocation6 + $0x478] sm:$0xf0]  ;;  %v8142_v16 = vld [vmem:[#allocation6 + $0x76c] sm:$0xf] }
 0x3fa   :  { %v9272_v9 = vadd.f32 %v4884_v35, %v4852_v12  ;;  %v6576_v12 = vor.u32 %v8082_v34, %v6573_v42  ;;  %5267 = vmatpush.bf16.msrb.mxu3 %v6832_v38  ;;  %v6557_v38 = vld [vmem:[#allocation6 + $0x578] sm:$0xf0] }
 0x3fb   :  { %5168 = vmatpush.bf16.msrb.mxu0 %v6448_v53  ;;  %5235 = vmatpush.bf16.msrb.mxu2 %v6688_v8  ;;  %v6669_v40 = vld [vmem:[#allocation6 + $0x658] sm:$0xf0] }
 0x3fc   :  { %5107 = vmatmul.bf16.vlgmr.msra.gmra.mxu2 %v9752_v39  ;;  %v4887_v41 = vpop.f32.mrf.mxu3  ;;  %v4823_v17 = vpop.f32.mrf.mxu1  ;;  %5201 = vmatpush.bf16.msrb.mxu1 %v6576_v12  ;;  %v8046_v39 = vld [vmem:[#allocation6 + $0x46c] sm:$0xf] }
 0x3fd   :  { %v4790_v60 = vpop.f32.mrf.mxu0  ;;  %v6432_v27 = vor.u32 %v8046_v39, %v6429_v2 }
 0x3fe   :  { %v4791_v61 = vadd.f32 %v4790_v60, %v9235_v58 }
 0x3ff   :  { %v4854_v0 = vpop.f32.mrf.mxu2  ;;  %5169 = vmatpush.bf16.msrb.mxu0 %v6432_v27 }
 0x400   :  { %v4855_v35 = vadd.f32 %v4854_v0, %v4822_v33  ;;  %v4824_v10 = vadd.f32 %v4823_v17, %v4791_v61  ;;  %v6816_v33 = vor.u32 %v8142_v16, %v6813_v63  ;;  %v8078_v0 = vld [vmem:[#allocation6 + $0x56c] sm:$0xf] }
 0x401   :  { %v8106_v17 = vld [vmem:[#allocation6 + $0x64c] sm:$0xf] }
 0x402   :  { %v9279_v13 = vadd.f32 %v4887_v41, %v4855_v35  ;;  %5268 = vmatpush.bf16.msrb.mxu3 %v6816_v33  ;;  %v6560_v41 = vor.u32 %v8078_v0, %v6557_v38  ;;  %v6672_v19 = vor.u32 %v8106_v17, %v6669_v40  ;;  %v8138_v0 = vld [vmem:[#allocation6 + $0x74c] sm:$0xf] }
 0x404   :  { %v4889_v34 = vpop.f32.mrf.mxu3  ;;  %v4826_v35 = vpop.f32.mrf.mxu1  ;;  %5202 = vmatpush.bf16.msrb.mxu1 %v6560_v41  ;;  %5236 = vmatpush.bf16.msrb.mxu2 %v6672_v19  ;;  %v6541_v41 = vld [vmem:[#allocation6 + $0x558] sm:$0xf0] }
 0x405   :  { %v4793_v42 = vpop.f32.mrf.mxu0 }
 0x406   :  { %v4794_v12 = vadd.f32 %v4793_v42, %v9242_v18  ;;  %v6413_v42 = vld [vmem:[#allocation6 + $0x458] sm:$0xf0] }
 0x407   :  { %v4856_v53 = vpop.f32.mrf.mxu2  ;;  %5079 = vmatmul.bf16.gmra.mxu1 %v8624_v47 }
 0x408   :  { %v4857_v58 = vadd.f32 %v4856_v53, %v4824_v10  ;;  %v4827_v61 = vadd.f32 %v4826_v35, %v4794_v12  ;;  %5046 = vmatmul.bf16.gmra.mxu0 %v8622_v43  ;;  %v6797_v12 = vld [vmem:[#allocation6 + $0x758] sm:$0xf0]  ;;  %v8074_v35 = vld [vmem:[#allocation6 + $0x54c] sm:$0xf] }
 0x409   :  { %5145 = vmatmul.bf16.gmra.mxu3 %v8628_v50  ;;  %v6544_v17 = vor.u32 %v8074_v35, %v6541_v41  ;;  %v8130_v35 = vld [vmem:[#allocation6 + $0x70c] sm:$0xf]  ;;  %v6765_v41 = vld [vmem:[#allocation6 + $0x718] sm:$0xf0] }
 0x40a   :  { %v9282_v60 = vadd.f32 %v4889_v34, %v4857_v58  ;;  %v8042_v34 = vld [vmem:[#allocation6 + $0x44c] sm:$0xf] }
 0x40b   :  { %5203 = vmatpush.bf16.msrb.mxu1 %v6544_v17 }
 0x40c   :  { %5112 = vmatmul.bf16.gmra.mxu2 %v8626_v49  ;;  %v4892_v18 = vpop.f32.mrf.mxu3  ;;  %v4828_v16 = vpop.f32.mrf.mxu1 }
 0x40d   :  { %v4795_v8 = vpop.f32.mrf.mxu0 }
 0x40e   :  { %v4796_v2 = vadd.f32 %v4795_v8, %v9245_v57  ;;  %v6416_v57 = vor.u32 %v8042_v34, %v6413_v42  ;;  %v6653_v8 = vld [vmem:[#allocation6 + $0x638] sm:$0xf0]  ;;  %v8034_v42 = vld [vmem:[#allocation6 + $0x40c] sm:$0xf] }
 0x40f   :  { %v4859_v39 = vpop.f32.mrf.mxu2  ;;  %v6637_v34 = vld [vmem:[#allocation6 + $0x618] sm:$0xf0] }
 0x410   :  { %v4860_v10 = vadd.f32 %v4859_v39, %v4827_v61  ;;  %v4829_v43 = vadd.f32 %v4828_v16, %v4796_v2  ;;  %v6800_v61 = vor.u32 %v8138_v0, %v6797_v12  ;;  %5170 = vmatpush.bf16.msrb.mxu0 %v6416_v57  ;;  %v8038_v2 = vld [vmem:[#allocation6 + $0x42c] sm:$0xf]  ;;  %v6397_v16 = vld [vmem:[#allocation6 + $0x438] sm:$0xf0] }
 0x411   :  { %v6381_v12 = vld [vmem:[#allocation6 + $0x418] sm:$0xf0] }
 0x412   :  { %v9289_v63 = vadd.f32 %v4892_v18, %v4860_v10  ;;  %5269 = vmatpush.bf16.msrb.mxu3 %v6800_v61  ;;  %v8102_v18 = vld [vmem:[#allocation6 + $0x62c] sm:$0xf]  ;;  %v6384_v17 = vor.u32 %v8034_v42, %v6381_v12  ;;  %v7005_v42 = vld [vmem:[#allocation6 + $0x8f8] sm:$0xf0] }
 0x414   :  { %v4894_v33 = vpop.f32.mrf.mxu3  ;;  %v4831_v53 = vpop.f32.mrf.mxu1 }
 0x415   :  { %v4798_v49 = vpop.f32.mrf.mxu0 }
 0x416   :  { %v4799_v50 = vadd.f32 %v4798_v49, %v9251_v32 }
 0x417   :  { %v4861_v27 = vpop.f32.mrf.mxu2  ;;  %5084 = vmatmul.bf16.gmra.mxu1 %v8636_v22  ;;  %v6656_v22 = vor.u32 %v8102_v18, %v6653_v8  ;;  %v9754_v18 = vld [vmem:[#allocation20_spill] sm:$0xff]  ;;  %v9755_v8 = vld [vmem:[#allocation21_spill] sm:$0xff] }
 0x418   :  { %v4862_v47 = vadd.f32 %v4861_v27, %v4829_v43  ;;  %v4832_v38 = vadd.f32 %v4831_v53, %v4799_v50  ;;  %5051 = vmatmul.bf16.gmra.mxu0 %v8634_v21  ;;  %v6781_v43 = vld [vmem:[#allocation6 + $0x738] sm:$0xf0]  ;;  %v6400_v27 = vor.u32 %v8038_v2, %v6397_v16  ;;  %v8098_v53 = vld [vmem:[#allocation6 + $0x60c] sm:$0xf] }
 0x419   :  { %5150 = vmatmul.bf16.gmra.mxu3 %v8640_v24  ;;  %v8070_v24 = vld [vmem:[#allocation6 + $0x52c] sm:$0xf]  ;;  %5237 = vmatpush.bf16.msrb.mxu2 %v6656_v22  ;;  %v6640_v57 = vor.u32 %v8098_v53, %v6637_v34 }
 0x41a   :  { %v9292_v58 = vadd.f32 %v4894_v33, %v4862_v47  ;;  %v6525_v33 = vld [vmem:[#allocation6 + $0x538] sm:$0xf0]  ;;  %5171 = vmatpush.bf16.msrb.mxu0 %v6400_v27  ;;  %v8190_v53 = vld [vmem:[#allocation6 + $0x8ec] sm:$0xf] }
 0x41b   :  { %v6528_v49 = vor.u32 %v8070_v24, %v6525_v33  ;;  %v7008_v12 = vor.u32 %v8190_v53, %v7005_v42 }
 0x41c   :  { %5117 = vmatmul.bf16.gmra.mxu2 %v8638_v23  ;;  %v4897_v19 = vpop.f32.mrf.mxu3  ;;  %v4833_v21 = vpop.f32.mrf.mxu1  ;;  %v8134_v23 = vld [vmem:[#allocation6 + $0x72c] sm:$0xf] }
 0x41d   :  { %v4800_v39 = vpop.f32.mrf.mxu0  ;;  %v6784_v47 = vor.u32 %v8134_v23, %v6781_v43  ;;  %5204 = vmatpush.bf16.msrb.mxu1 %v6528_v49  ;;  %5238 = vmatpush.bf16.msrb.mxu2 %v6640_v57  ;;  %v8430_v43 = vld [vmem:[#allocation8] sm:$0xf]  ;;  %v8254_v49 = vld [vmem:[#allocation6 + $0xaec] sm:$0xf] }
 0x41e   :  { %5172 = vmatpush.bf16.msrb.mxu0 %v6384_v17  ;;  %v9305_v27 = vperm.slane %v8430_v43, 2 }
 0x41f   :  { %v4864_v32 = vpop.f32.mrf.mxu2  ;;  %5270 = vmatpush.bf16.msrb.mxu3 %v6784_v47  ;;  %v8431_v47 = vld [vmem:[#allocation9] sm:$0xf] }
 0x420   :  { %v4865_v40 = vadd.f32 %v4864_v32, %v4832_v38  ;;  %v6768_v32 = vor.u32 %v8130_v35, %v6765_v41  ;;  %v9307_v24 = vperm.slane %v8431_v47, 2 }
 0x422   :  { %v9298_v10 = vadd.f32 %v4897_v19, %v4865_v40  ;;  %v8066_v40 = vld [vmem:[#allocation6 + $0x50c] sm:$0xf]  ;;  %v6509_v19 = vld [vmem:[#allocation6 + $0x518] sm:$0xf0]  ;;  %5297 = vmatpush.bf16.msra.mxu0 %v7008_v12 }
 0x423   :  { %v6512_v21 = vor.u32 %v8066_v40, %v6509_v19  ;;  %5271 = vmatpush.bf16.msrb.mxu3 %v6768_v32 }
 0x424   :  { %v4899_v0 = vpop.f32.mrf.mxu3  ;;  %v4943_v61 = vpop.f32.mrf.mxu1 }
 0x425   :  { %v4910_v38 = vpop.f32.mrf.mxu0  ;;  %5205 = vmatpush.bf16.msrb.mxu1 %v6512_v21  ;;  %v8286_v0 = vld [vmem:[#allocation6 + $0xbec] sm:$0xf] }
 0x426   :  { %v4911_v39 = vadd.f32 %v4910_v38, %v9259_v48  ;;  %v7389_v38 = vld [vmem:[#allocation6 + $0xbf8] sm:$0xf0] }
 0x427   :  { %v4866_v50 = vpop.f32.mrf.mxu2  ;;  %5089 = vmatmul.bf16.gmra.mxu1 %v8648_v56  ;;  %v7392_v35 = vor.u32 %v8286_v0, %v7389_v38  ;;  %v8282_v0 = vld [vmem:[#allocation6 + $0xbcc] sm:$0xf] }
 0x428   :  { %5056 = vmatmul.bf16.gmra.mxu0 %v8646_v55  ;;  %v4944_v2 = vadd.f32 %v4943_v61, %v4911_v39  ;;  %v7261_v50 = vld [vmem:[#allocation6 + $0xaf8] sm:$0xf0]  ;;  %v8218_v38 = vld [vmem:[#allocation6 + $0x9cc] sm:$0xf] }
 0x429   :  { %5155 = vmatmul.bf16.gmra.mxu3 %v9755_v8  ;;  %v7264_v34 = vor.u32 %v8254_v49, %v7261_v50  ;;  %v8222_v8 = vld [vmem:[#allocation6 + $0x9ec] sm:$0xf] }
 0x42a   :  { %5396 = vmatpush.bf16.msra.mxu3 %v7392_v35  ;;  %v7117_v35 = vld [vmem:[#allocation6 + $0x9d8] sm:$0xf0] }
 0x42b   :  { %5363 = vmatpush.bf16.msra.mxu2 %v7264_v34  ;;  %v8186_v34 = vld [vmem:[#allocation6 + $0x8cc] sm:$0xf] }
 0x42c   :  { %5122 = vmatmul.bf16.gmra.mxu2 %v9754_v18  ;;  %v5009_v23 = vpop.f32.mrf.mxu3  ;;  %v4945_v55 = vpop.f32.mrf.mxu1 }
 0x42d   :  { %v4912_v48 = vpop.f32.mrf.mxu0 }
 0x42e   :  { %v4913_v56 = vadd.f32 %v4912_v48, %v9262_v62 }
 0x42f   :  { %v4976_v22 = vpop.f32.mrf.mxu2 }
 0x430   :  { %v4977_v16 = vadd.f32 %v4976_v22, %v4944_v2  ;;  %v4946_v61 = vadd.f32 %v4945_v55, %v4913_v56  ;;  %v7133_v2 = vld [vmem:[#allocation6 + $0x9f8] sm:$0xf0] }
 0x431   :  { %v7136_v22 = vor.u32 %v8222_v8, %v7133_v2  ;;  %v8246_v8 = vld [vmem:[#allocation6 + $0xaac] sm:$0xf]  ;;  %v7229_v2 = vld [vmem:[#allocation6 + $0xab8] sm:$0xf0] }
 0x432   :  { %v5010_v33 = vadd.f32 %v5009_v23, %v4977_v16  ;;  %v8250_v16 = vld [vmem:[#allocation6 + $0xacc] sm:$0xf]  ;;  %v7245_v23 = vld [vmem:[#allocation6 + $0xad8] sm:$0xf0] }
 0x433   :  { %v7248_v48 = vor.u32 %v8250_v16, %v7245_v23  ;;  %5330 = vmatpush.bf16.msra.mxu1 %v7136_v22  ;;  %v7232_v22 = vor.u32 %v8246_v8, %v7229_v2  ;;  %v8182_v16 = vld [vmem:[#allocation6 + $0x8ac] sm:$0xf]  ;;  %v6973_v23 = vld [vmem:[#allocation6 + $0x8b8] sm:$0xf0] }
 0x434   :  { %v5684_v57 = vmul.f32 %v9305_v27, %v5010_v33  ;;  %v5011_v40 = vpop.f32.mrf.mxu3  ;;  %v4948_v39 = vpop.f32.mrf.mxu1 }
 0x435   :  { %v4915_v19 = vpop.f32.mrf.mxu0  ;;  %5364 = vmatpush.bf16.msra.mxu2 %v7248_v48 }
 0x436   :  { %v5730_v41 = vadd.f32 %v9307_v24, %v5684_v57  ;;  %v4916_v18 = vadd.f32 %v4915_v19, %v9269_v44 }
 0x437   :  { %v4978_v17 = vpop.f32.mrf.mxu2  ;;  %5094 = vmatmul.bf16.gmra.mxu1 %v8660_v29 }
 0x438   :  { %v5766_v32 = vmax.f32 %v5730_v41, 0.0  ;;  %v4979_v62 = vadd.f32 %v4978_v17, %v4946_v61  ;;  %5061 = vmatmul.bf16.gmra.mxu0 %v8658_v28  ;;  %v4949_v44 = vadd.f32 %v4948_v39, %v4916_v18  ;;  %v7120_v41 = vor.u32 %v8218_v38, %v7117_v35  ;;  %v6957_v38 = vld [vmem:[#allocation6 + $0x898] sm:$0xf0] }
 0x439   :  { %5160 = vmatmul.bf16.gmra.mxu3 %v8664_v31  ;;  %v7373_v31 = vld [vmem:[#allocation6 + $0xbd8] sm:$0xf0]  ;;  %5365 = vmatpush.bf16.msra.mxu2 %v7232_v22 }
 0x43a   :  { %5802 = vst [vmem:[#allocation11 + $0x10] sm:$0xff] %v5766_v32  ;;  %v5012_v21 = vadd.f32 %v5011_v40, %v4979_v62  ;;  %v7376_v12 = vor.u32 %v8282_v0, %v7373_v31  ;;  %5331 = vmatpush.bf16.msra.mxu1 %v7120_v41  ;;  %v8178_v31 = vld [vmem:[#allocation6 + $0x88c] sm:$0xf]  ;;  %v7341_v41 = vld [vmem:[#allocation6 + $0xb98] sm:$0xf0] }
 0x43b   :  { %v6960_v35 = vor.u32 %v8178_v31, %v6957_v38  ;;  %v8266_v38 = vld [vmem:[#allocation6 + $0xb4c] sm:$0xf] }
 0x43c   :  { %v5688_v43 = vmul.f32 %v9305_v27, %v5012_v21  ;;  %5127 = vmatmul.bf16.gmra.mxu2 %v8662_v30  ;;  %v5014_v56 = vpop.f32.mrf.mxu3  ;;  %v4950_v50 = vpop.f32.mrf.mxu1  ;;  %v6989_v30 = vld [vmem:[#allocation6 + $0x8d8] sm:$0xf0]  ;;  %5397 = vmatpush.bf16.msra.mxu3 %v7376_v12 }
 0x43d   :  { %v4917_v49 = vpop.f32.mrf.mxu0  ;;  %v6992_v42 = vor.u32 %v8186_v34, %v6989_v30 }
 0x43e   :  { %v5734_v47 = vadd.f32 %v9307_v24, %v5688_v43  ;;  %v4918_v29 = vadd.f32 %v4917_v49, %v9272_v9  ;;  %v8278_v43 = vld [vmem:[#allocation6 + $0xbac] sm:$0xf] }
 0x43f   :  { %v4981_v55 = vpop.f32.mrf.mxu2  ;;  %5298 = vmatpush.bf16.msra.mxu0 %v6992_v42  ;;  %v7213_v42 = vld [vmem:[#allocation6 + $0xa98] sm:$0xf0] }
 0x440   :  { %v5770_v33 = vmax.f32 %v5734_v47, 0.0  ;;  %v4982_v28 = vadd.f32 %v4981_v55, %v4949_v44  ;;  %v4951_v17 = vadd.f32 %v4950_v50, %v4918_v29  ;;  %v6976_v47 = vor.u32 %v8182_v16, %v6973_v23  ;;  %v7357_v44 = vld [vmem:[#allocation6 + $0xbb8] sm:$0xf0]  ;;  %v8214_v55 = vld [vmem:[#allocation6 + $0x9ac] sm:$0xf] }
 0x441   :  { %v8238_v16 = vld [vmem:[#allocation6 + $0xa6c] sm:$0xf]  ;;  %v7197_v23 = vld [vmem:[#allocation6 + $0xa78] sm:$0xf0] }
 0x442   :  { %5806 = vst [vmem:[#allocation11 + $0x30] sm:$0xff] %v5770_v33  ;;  %v5015_v53 = vadd.f32 %v5014_v56, %v4982_v28  ;;  %v7101_v33 = vld [vmem:[#allocation6 + $0x9b8] sm:$0xf0] }
 0x443   :  { %v7104_v28 = vor.u32 %v8214_v55, %v7101_v33  ;;  %5299 = vmatpush.bf16.msra.mxu0 %v6976_v47  ;;  %v6941_v47 = vld [vmem:[#allocation6 + $0x878] sm:$0xf0] }
 0x444   :  { %v5692_v57 = vmul.f32 %v9305_v27, %v5015_v53  ;;  %v5016_v40 = vpop.f32.mrf.mxu3  ;;  %v4953_v39 = vpop.f32.mrf.mxu1 }
 0x445   :  { %v4920_v19 = vpop.f32.mrf.mxu0  ;;  %5332 = vmatpush.bf16.msra.mxu1 %v7104_v28  ;;  %v8206_v28 = vld [vmem:[#allocation6 + $0x96c] sm:$0xf] }
 0x446   :  { %v5738_v61 = vadd.f32 %v9307_v24, %v5692_v57  ;;  %v4921_v18 = vadd.f32 %v4920_v19, %v9279_v13  ;;  %v7360_v13 = vor.u32 %v8278_v43, %v7357_v44  ;;  %v8274_v57 = vld [vmem:[#allocation6 + $0xb8c] sm:$0xf]  ;;  %v7200_v43 = vor.u32 %v8238_v16, %v7197_v23  ;;  %v6909_v23 = vld [vmem:[#allocation6 + $0x838] sm:$0xf0] }
 0x447   :  { %v4983_v32 = vpop.f32.mrf.mxu2  ;;  %5206 = vmatmul.bf16.vlgmr.msrb.gmra.mxu1 %v8672_v4  ;;  %5300 = vmatpush.bf16.msra.mxu0 %v6960_v35  ;;  %v8270_v44 = vld [vmem:[#allocation6 + $0xb6c] sm:$0xf] }
 0x448   :  { %v5774_v62 = vmax.f32 %v5738_v61, 0.0  ;;  %v4984_v9 = vadd.f32 %v4983_v32, %v4951_v17  ;;  %5173 = vmatmul.bf16.vlgmr.msrb.gmra.mxu0 %v8670_v3  ;;  %v4954_v56 = vadd.f32 %v4953_v39, %v4921_v18  ;;  %5398 = vmatpush.bf16.msra.mxu3 %v7360_v13  ;;  %v8210_v61 = vld [vmem:[#allocation6 + $0x98c] sm:$0xf]  ;;  %v7085_v17 = vld [vmem:[#allocation6 + $0x998] sm:$0xf0]  ;;  %v7344_v32 = vor.u32 %v8274_v57, %v7341_v41 }
 0x449   :  { %5272 = vmatmul.bf16.vlgmr.msrb.gmra.mxu3 %v8676_v6  ;;  %v8242_v6 = vld [vmem:[#allocation6 + $0xa8c] sm:$0xf]  ;;  %v7325_v13 = vld [vmem:[#allocation6 + $0xb78] sm:$0xf0] }
 0x44a   :  { %5810 = vst [vmem:[#allocation11 + $0x50] sm:$0xff] %v5774_v62  ;;  %v5017_v21 = vadd.f32 %v5016_v40, %v4984_v9  ;;  %v7216_v0 = vor.u32 %v8242_v6, %v7213_v42  ;;  %v7088_v62 = vor.u32 %v8210_v61, %v7085_v17  ;;  %v8170_v42 = vld [vmem:[#allocation6 + $0x84c] sm:$0xf]  ;;  %v7309_v57 = vld [vmem:[#allocation6 + $0xb58] sm:$0xf0] }
 0x44b   :  { %v7312_v41 = vor.u32 %v8266_v38, %v7309_v57  ;;  %v7053_v61 = vld [vmem:[#allocation6 + $0x958] sm:$0xf0]  ;;  %v8166_v16 = vld [vmem:[#allocation6 + $0x82c] sm:$0xf] }
 0x44c   :  { %v5696_v48 = vmul.f32 %v9305_v27, %v5017_v21  ;;  %5239 = vmatmul.bf16.vlgmr.msrb.gmra.mxu2 %v8674_v5  ;;  %v5019_v53 = vpop.f32.mrf.mxu3  ;;  %v4955_v29 = vpop.f32.mrf.mxu1  ;;  %5399 = vmatpush.bf16.msra.mxu3 %v7344_v32 }
 0x44d   :  { %v4922_v5 = vpop.f32.mrf.mxu0  ;;  %5366 = vmatpush.bf16.msra.mxu2 %v7216_v0  ;;  %5333 = vmatpush.bf16.msra.mxu1 %v7088_v62  ;;  %v6925_v0 = vld [vmem:[#allocation6 + $0x858] sm:$0xf0] }
 0x44e   :  { %v5742_v3 = vadd.f32 %v9307_v24, %v5696_v48  ;;  %v4923_v30 = vadd.f32 %v4922_v5, %v9282_v60  ;;  %v8174_v48 = vld [vmem:[#allocation6 + $0x86c] sm:$0xf]  ;;  %v6928_v31 = vor.u32 %v8170_v42, %v6925_v0 }
 0x44f   :  { %v4986_v49 = vpop.f32.mrf.mxu2  ;;  %v6944_v33 = vor.u32 %v8174_v48, %v6941_v47  ;;  %v6912_v47 = vor.u32 %v8166_v16, %v6909_v23  ;;  %v8350_v23 = vld [vmem:[#allocation6 + $0xdec] sm:$0xf] }
 0x450   :  { %v5778_v50 = vmax.f32 %v5742_v3, 0.0  ;;  %v4987_v4 = vadd.f32 %v4986_v49, %v4954_v56  ;;  %v4956_v40 = vadd.f32 %v4955_v29, %v4923_v30  ;;  %v7069_v3 = vld [vmem:[#allocation6 + $0x978] sm:$0xf0] }
 0x451   :  { %5367 = vmatpush.bf16.msra.mxu2 %v7200_v43  ;;  %v7072_v56 = vor.u32 %v8206_v28, %v7069_v3  ;;  %v7181_v49 = vld [vmem:[#allocation6 + $0xa58] sm:$0xf0]  ;;  %5301 = vmatpush.bf16.msra.mxu0 %v6944_v33  ;;  %v8262_v43 = vld [vmem:[#allocation6 + $0xb2c] sm:$0xf] }
 0x452   :  { %5814 = vst [vmem:[#allocation11 + $0x70] sm:$0xff] %v5778_v50  ;;  %v5020_v34 = vadd.f32 %v5019_v53, %v4987_v4  ;;  %v7037_v33 = vld [vmem:[#allocation6 + $0x938] sm:$0xf0] }
 0x453   :  { %5334 = vmatpush.bf16.msra.mxu1 %v7072_v56 }
 0x454   :  { %v5700_v12 = vmul.f32 %v9305_v27, %v5020_v34  ;;  %v5021_v21 = vpop.f32.mrf.mxu3  ;;  %v4958_v8 = vpop.f32.mrf.mxu1 }
 0x455   :  { %v4925_v18 = vpop.f32.mrf.mxu0  ;;  %5302 = vmatpush.bf16.msra.mxu0 %v6928_v31 }
 0x456   :  { %v5746_v9 = vadd.f32 %v9307_v24, %v5700_v12  ;;  %v4926_v22 = vadd.f32 %v4925_v18, %v9289_v63  ;;  %v7328_v63 = vor.u32 %v8270_v44, %v7325_v13  ;;  %v8202_v12 = vld [vmem:[#allocation6 + $0x94c] sm:$0xf]  ;;  %v7293_v44 = vld [vmem:[#allocation6 + $0xb38] sm:$0xf0] }
 0x457   :  { %v4988_v60 = vpop.f32.mrf.mxu2  ;;  %5211 = vmatmul.bf16.gmra.mxu1 %v8684_v46  ;;  %v7056_v17 = vor.u32 %v8202_v12, %v7053_v61  ;;  %v9757_v61 = vld [vmem:[#allocation25_spill] sm:$0xff] }
 0x458   :  { %v5782_v19 = vmax.f32 %v5746_v9, 0.0  ;;  %v4989_v39 = vadd.f32 %v4988_v60, %v4956_v40  ;;  %5178 = vmatmul.bf16.gmra.mxu0 %v8682_v45  ;;  %v8234_v45 = vld [vmem:[#allocation6 + $0xa4c] sm:$0xf]  ;;  %v4959_v4 = vadd.f32 %v4958_v8, %v4926_v22  ;;  %5400 = vmatpush.bf16.msra.mxu3 %v7328_v63 }
 0x459   :  { %5277 = vmatmul.bf16.gmra.mxu3 %v8688_v52  ;;  %v7184_v53 = vor.u32 %v8234_v45, %v7181_v49  ;;  %5335 = vmatpush.bf16.msra.mxu1 %v7056_v17  ;;  %v8230_v8 = vld [vmem:[#allocation6 + $0xa2c] sm:$0xf]  ;;  %v9758_v17 = vld [vmem:[#allocation26_spill] sm:$0xff] }
 0x45a   :  { %5818 = vst [vmem:[#allocation11 + $0x90] sm:$0xff] %v5782_v19  ;;  %v5022_v2 = vadd.f32 %v5021_v21, %v4989_v39  ;;  %5303 = vmatpush.bf16.msra.mxu0 %v6912_v47 }
 0x45b   :  { %5368 = vmatpush.bf16.msra.mxu2 %v7184_v53  ;;  %v8162_v53 = vld [vmem:[#allocation6 + $0x80c] sm:$0xf] }
 0x45c   :  { %v5704_v55 = vmul.f32 %v9305_v27, %v5022_v2  ;;  %5244 = vmatmul.bf16.gmra.mxu2 %v8686_v51  ;;  %v5024_v29 = vpop.f32.mrf.mxu3  ;;  %v4960_v30 = vpop.f32.mrf.mxu1  ;;  %5401 = vmatpush.bf16.msra.mxu3 %v7312_v41  ;;  %v7165_v2 = vld [vmem:[#allocation6 + $0xa38] sm:$0xf0] }
 0x45d   :  { %v4927_v34 = vpop.f32.mrf.mxu0  ;;  %v7168_v22 = vor.u32 %v8230_v8, %v7165_v2 }
 0x45e   :  { %v5750_v50 = vadd.f32 %v9307_v24, %v5704_v55  ;;  %v4928_v6 = vadd.f32 %v4927_v34, %v9292_v58  ;;  %v8198_v55 = vld [vmem:[#allocation6 + $0x92c] sm:$0xf]  ;;  %v7277_v34 = vld [vmem:[#allocation6 + $0xb18] sm:$0xf0] }
 0x45f   :  { %v4991_v5 = vpop.f32.mrf.mxu2  ;;  %5369 = vmatpush.bf16.msra.mxu2 %v7168_v22  ;;  %v7040_v28 = vor.u32 %v8198_v55, %v7037_v33 }
 0x460   :  { %v5786_v46 = vmax.f32 %v5750_v50, 0.0  ;;  %v4992_v51 = vadd.f32 %v4991_v5, %v4959_v4  ;;  %v4961_v62 = vadd.f32 %v4960_v30, %v4928_v6  ;;  %v7149_v50 = vld [vmem:[#allocation6 + $0xa18] sm:$0xf0]  ;;  %v8194_v30 = vld [vmem:[#allocation6 + $0x90c] sm:$0xf] }
 0x461   :  { %5336 = vmatpush.bf16.msra.mxu1 %v7040_v28  ;;  %v6893_v5 = vld [vmem:[#allocation6 + $0x818] sm:$0xf0] }
 0x462   :  { %5822 = vst [vmem:[#allocation11 + $0xb0] sm:$0xff] %v5786_v46  ;;  %v5025_v52 = vadd.f32 %v5024_v29, %v4992_v51  ;;  %v8258_v46 = vld [vmem:[#allocation6 + $0xb0c] sm:$0xf]  ;;  %v6896_v29 = vor.u32 %v8162_v53, %v6893_v5  ;;  %v9761_v5 = vld [vmem:[#allocation29_spill] sm:$0xff] }
 0x463   :  { %v7280_v6 = vor.u32 %v8258_v46, %v7277_v34  ;;  %v9760_v53 = vld [vmem:[#allocation28_spill] sm:$0xff] }
 0x464   :  { %v5708_v35 = vmul.f32 %v9305_v27, %v5025_v52  ;;  %v5026_v60 = vpop.f32.mrf.mxu3  ;;  %v4963_v39 = vpop.f32.mrf.mxu1  ;;  %v7021_v52 = vld [vmem:[#allocation6 + $0x918] sm:$0xf0]  ;;  %5304 = vmatpush.bf16.msra.mxu0 %v6896_v29 }
 0x465   :  { %v4930_v19 = vpop.f32.mrf.mxu0  ;;  %v7024_v42 = vor.u32 %v8194_v30, %v7021_v52  ;;  %v9762_v29 = vld [vmem:[#allocation30_spill] sm:$0xff] }
 0x466   :  { %v5754_v32 = vadd.f32 %v9307_v24, %v5708_v35  ;;  %v4931_v18 = vadd.f32 %v4930_v19, %v9298_v10  ;;  %v7296_v10 = vor.u32 %v8262_v43, %v7293_v44  ;;  %v7645_v43 = vld [vmem:[#allocation6 + $0xdf8] sm:$0xf0] }
 0x467   :  { %v4993_v9 = vpop.f32.mrf.mxu2  ;;  %5216 = vmatmul.bf16.gmra.mxu1 %v8696_v25  ;;  %v7648_v47 = vor.u32 %v8350_v23, %v7645_v43  ;;  %v7757_v44 = vld [vmem:[#allocation6 + $0xed8] sm:$0xf0]  ;;  %v9764_v23 = vld [vmem:[#allocation32_spill] sm:$0xff]  ;;  %v9765_v43 = vld [vmem:[#allocation33_spill] sm:$0xff] }
 0x468   :  { %v5790_v40 = vmax.f32 %v5754_v32, 0.0  ;;  %v4994_v58 = vadd.f32 %v4993_v9, %v4961_v62  ;;  %5183 = vmatmul.bf16.gmra.mxu0 %v8694_v20  ;;  %v4964_v13 = vadd.f32 %v4963_v39, %v4931_v18  ;;  %5402 = vmatpush.bf16.msra.mxu3 %v7296_v10  ;;  %v8382_v32 = vld [vmem:[#allocation6 + $0xeec] sm:$0xf] }
 0x469   :  { %5282 = vmatmul.bf16.gmra.mxu3 %v9662_v54  ;;  %v8226_v54 = vld [vmem:[#allocation6 + $0xa0c] sm:$0xf]  ;;  %5337 = vmatpush.bf16.msra.mxu1 %v7024_v42 }
 0x46a   :  { %5826 = vst [vmem:[#allocation11 + $0xd0] sm:$0xff] %v5790_v40  ;;  %v5027_v21 = vadd.f32 %v5026_v60, %v4994_v58  ;;  %v7152_v4 = vor.u32 %v8226_v54, %v7149_v50  ;;  %v8318_v62 = vld [vmem:[#allocation6 + $0xcec] sm:$0xf]  ;;  %v7517_v40 = vld [vmem:[#allocation6 + $0xcf8] sm:$0xf0] }
 0x46b   :  { %v8414_v58 = vld [vmem:[#allocation6 + $0xfec] sm:$0xf]  ;;  %v7901_v60 = vld [vmem:[#allocation6 + $0xff8] sm:$0xf0]  ;;  %v7520_v39 = vor.u32 %v8318_v62, %v7517_v40 }
 0x46c   :  { %v5712_v48 = vmul.f32 %v9305_v27, %v5027_v21  ;;  %5249 = vmatmul.bf16.gmra.mxu2 %v8698_v26  ;;  %v5029_v25 = vpop.f32.mrf.mxu3  ;;  %v4965_v26 = vpop.f32.mrf.mxu1  ;;  %5403 = vmatpush.bf16.msra.mxu3 %v7280_v6  ;;  %v7904_v21 = vor.u32 %v8414_v58, %v7901_v60  ;;  %v7885_v54 = vld [vmem:[#allocation6 + $0xfd8] sm:$0xf0]  ;;  %v8346_v50 = vld [vmem:[#allocation6 + $0xdcc] sm:$0xf] }
 0x46d   :  { %v4932_v45 = vpop.f32.mrf.mxu0  ;;  %5370 = vmatpush.bf16.msra.mxu2 %v7152_v4  ;;  %5429 = vmatpush.bf16.msrb.mxu0 %v7520_v39  ;;  %v9759_v26 = vld [vmem:[#allocation27_spill] sm:$0xff]  ;;  %v7629_v4 = vld [vmem:[#allocation6 + $0xdd8] sm:$0xf0] }
 0x46e   :  { %v5758_v20 = vadd.f32 %v9307_v24, %v5712_v48  ;;  %v8378_v48 = vld [vmem:[#allocation6 + $0xecc] sm:$0xf]  ;;  %5462 = vmatpush.bf16.msrb.mxu1 %v7648_v47  ;;  %v7613_v62 = vld [vmem:[#allocation6 + $0xdb8] sm:$0xf0] }
 0x46f   :  { %v4996_v3 = vpop.f32.mrf.mxu2  ;;  %v7760_v10 = vor.u32 %v8378_v48, %v7757_v44  ;;  %v8410_v45 = vld [vmem:[#allocation6 + $0xfcc] sm:$0xf]  ;;  %v9766_v48 = vld [vmem:[#allocation34_spill] sm:$0xff] }
 0x470   :  { %v5794_v63 = vmax.f32 %v5758_v20, 0.0  ;;  %v4997_v56 = vadd.f32 %v4996_v3, %v4964_v13  ;;  %5528 = vmatpush.bf16.msrb.mxu3 %v7904_v21  ;;  %v7888_v46 = vor.u32 %v8410_v45, %v7885_v54  ;;  %v8306_v47 = vld [vmem:[#allocation6 + $0xc8c] sm:$0xf]  ;;  %v7469_v44 = vld [vmem:[#allocation6 + $0xc98] sm:$0xf0] }
 0x472   :  { %5830 = vst [vmem:[#allocation11 + $0xf0] sm:$0xff] %v5794_v63  ;;  %v5030_v49 = vadd.f32 %v5029_v25, %v4997_v56  ;;  %v8314_v56 = vld [vmem:[#allocation6 + $0xccc] sm:$0xf]  ;;  %v7501_v25 = vld [vmem:[#allocation6 + $0xcd8] sm:$0xf0] }
 0x474   :  { %v5716_v51 = vmul.f32 %v9305_v27, %v5030_v49  ;;  %v5031_v57 = vpop.f32.mrf.mxu3  ;;  %v5075_v35 = vpop.f32.mrf.mxu1  ;;  %v9756_v27 = vld [vmem:[#allocation24_spill] sm:$0xff]  ;;  %v7504_v49 = vor.u32 %v8314_v56, %v7501_v25  ;;  %5529 = vmatpush.bf16.msrb.mxu3 %v7888_v46 }
 0x475   :  { %v5042_v12 = vpop.f32.mrf.mxu0  ;;  %v7741_v57 = vld [vmem:[#allocation6 + $0xeb8] sm:$0xf0] }
 0x476   :  { %v5762_v0 = vadd.f32 %v9307_v24, %v5716_v51  ;;  %v5076_v41 = vadd.f32 %v5075_v35, %v5042_v12  ;;  %v7773_v24 = vld [vmem:[#allocation6 + $0xef8] sm:$0xf0]  ;;  %v7632_v51 = vor.u32 %v8346_v50, %v7629_v4  ;;  %5430 = vmatpush.bf16.msrb.mxu0 %v7504_v49  ;;  %v8310_v12 = vld [vmem:[#allocation6 + $0xcac] sm:$0xf] }
 0x477   :  { %v4998_v31 = vpop.f32.mrf.mxu2  ;;  %5221 = vmatmul.bf16.gmra.mxu1 %v9756_v27  ;;  %v7776_v9 = vor.u32 %v8382_v32, %v7773_v24  ;;  %v8406_v27 = vld [vmem:[#allocation6 + $0xfac] sm:$0xf] }
 0x478   :  { %v5798_v38 = vmax.f32 %v5762_v0, 0.0  ;;  %5188 = vmatmul.bf16.gmra.mxu0 %v9709_v36  ;;  %5463 = vmatpush.bf16.msrb.mxu1 %v7632_v51  ;;  %v8342_v24 = vld [vmem:[#allocation6 + $0xdac] sm:$0xf]  ;;  %v7453_v51 = vld [vmem:[#allocation6 + $0xc78] sm:$0xf0] }
 0x479   :  { %5287 = vmatmul.bf16.gmra.mxu3 %v9758_v17  ;;  %5495 = vmatpush.bf16.msrb.mxu2 %v7776_v9  ;;  %v7616_v9 = vor.u32 %v8342_v24, %v7613_v62  ;;  %v8366_v4 = vld [vmem:[#allocation6 + $0xe6c] sm:$0xf]  ;;  %v9769_v24 = vld [vmem:[#allocation37_spill] sm:$0xff]  ;;  %v9770_v62 = vld [vmem:[#allocation38_spill] sm:$0xff] }
 0x47a   :  { %5834 = vst [vmem:[#allocation11 + $0x110] sm:$0xff] %v5798_v38  ;;  %v8374_v38 = vld [vmem:[#allocation6 + $0xeac] sm:$0xf] }
 0x47b   :  { %v7744_v35 = vor.u32 %v8374_v38, %v7741_v57  ;;  %v8334_v57 = vld [vmem:[#allocation6 + $0xd6c] sm:$0xf] }
 0x47c   :  { %5254 = vmatmul.bf16.gmra.mxu2 %v9757_v61  ;;  %v5141_v8 = vpop.f32.mrf.mxu3  ;;  %v5077_v36 = vpop.f32.mrf.mxu1  ;;  %v7869_v61 = vld [vmem:[#allocation6 + $0xfb8] sm:$0xf0]  ;;  %5464 = vmatpush.bf16.msrb.mxu1 %v7616_v9  ;;  %v8362_v9 = vld [vmem:[#allocation6 + $0xe4c] sm:$0xf] }
 0x47d   :  { %v5044_v2 = vpop.f32.mrf.mxu0  ;;  %5496 = vmatpush.bf16.msrb.mxu2 %v7760_v10  ;;  %v7872_v32 = vor.u32 %v8406_v27, %v7869_v61  ;;  %v8402_v10 = vld [vmem:[#allocation6 + $0xf8c] sm:$0xf] }
 0x47e   :  { %v5078_v16 = vadd.f32 %v5077_v36, %v5044_v2  ;;  %v7725_v2 = vld [vmem:[#allocation6 + $0xe98] sm:$0xf0]  ;;  %v9763_v36 = vld [vmem:[#allocation31_spill] sm:$0xff] }
 0x47f   :  { %v5108_v19 = vpop.f32.mrf.mxu2  ;;  %5530 = vmatpush.bf16.msrb.mxu3 %v7872_v32  ;;  %v9768_v32 = vld [vmem:[#allocation36_spill] sm:$0xff] }
 0x480   :  { %v5109_v18 = vadd.f32 %v5108_v19, %v5076_v41  ;;  %v7485_v41 = vld [vmem:[#allocation6 + $0xcb8] sm:$0xf0] }
 0x481   :  { %v7488_v17 = vor.u32 %v8310_v12, %v7485_v41  ;;  %5497 = vmatpush.bf16.msrb.mxu2 %v7744_v35  ;;  %v7581_v12 = vld [vmem:[#allocation6 + $0xd78] sm:$0xf0] }
 0x482   :  { %v9355_v22 = vadd.f32 %v5141_v8, %v5109_v18  ;;  %v8370_v8 = vld [vmem:[#allocation6 + $0xe8c] sm:$0xf]  ;;  %v7584_v41 = vor.u32 %v8334_v57, %v7581_v12 }
 0x483   :  { %5431 = vmatpush.bf16.msrb.mxu0 %v7488_v17  ;;  %v9767_v17 = vld [vmem:[#allocation35_spill] sm:$0xff] }
 0x484   :  { %v5143_v20 = vpop.f32.mrf.mxu3  ;;  %v5080_v28 = vpop.f32.mrf.mxu1 }
 0x485   :  { %v5047_v13 = vpop.f32.mrf.mxu0 }
 0x486   :  { %v5081_v63 = vadd.f32 %v5080_v28, %v5047_v13  ;;  %v7597_v13 = vld [vmem:[#allocation6 + $0xd98] sm:$0xf0] }
 0x487   :  { %v5110_v55 = vpop.f32.mrf.mxu2  ;;  %5226 = vmatmul.bf16.gmra.mxu1 %v9760_v53  ;;  %v7709_v53 = vld [vmem:[#allocation6 + $0xe78] sm:$0xf0] }
 0x488   :  { %v5111_v33 = vadd.f32 %v5110_v55, %v5078_v16  ;;  %5193 = vmatmul.bf16.gmra.mxu0 %v9759_v26  ;;  %v7728_v16 = vor.u32 %v8370_v8, %v7725_v2  ;;  %v7472_v55 = vor.u32 %v8306_v47, %v7469_v44  ;;  %v7712_v46 = vor.u32 %v8366_v4, %v7709_v53  ;;  %v7821_v47 = vld [vmem:[#allocation6 + $0xf58] sm:$0xf0]  ;;  %v8330_v44 = vld [vmem:[#allocation6 + $0xd4c] sm:$0xf] }
 0x489   :  { %5292 = vmatmul.bf16.gmra.mxu3 %v9762_v29  ;;  %v8398_v29 = vld [vmem:[#allocation6 + $0xf6c] sm:$0xf] }
 0x48a   :  { %v9357_v3 = vadd.f32 %v5143_v20, %v5111_v33  ;;  %5498 = vmatpush.bf16.msrb.mxu2 %v7728_v16  ;;  %v7853_v33 = vld [vmem:[#allocation6 + $0xf98] sm:$0xf0]  ;;  %v8338_v20 = vld [vmem:[#allocation6 + $0xd8c] sm:$0xf]  ;;  %5432 = vmatpush.bf16.msrb.mxu0 %v7472_v55 }
 0x48b   :  { %v7600_v56 = vor.u32 %v8338_v20, %v7597_v13  ;;  %v8298_v16 = vld [vmem:[#allocation6 + $0xc4c] sm:$0xf] }
 0x48c   :  { %5259 = vmatmul.bf16.gmra.mxu2 %v9761_v5  ;;  %v5146_v52 = vpop.f32.mrf.mxu3  ;;  %v5082_v42 = vpop.f32.mrf.mxu1  ;;  %v8302_v5 = vld [vmem:[#allocation6 + $0xc6c] sm:$0xf] }
 0x48d   :  { %v5049_v6 = vpop.f32.mrf.mxu0  ;;  %5465 = vmatpush.bf16.msrb.mxu1 %v7600_v56  ;;  %v8294_v53 = vld [vmem:[#allocation6 + $0xc2c] sm:$0xf] }
 0x48e   :  { %v5083_v31 = vadd.f32 %v5082_v42, %v5049_v6  ;;  %5499 = vmatpush.bf16.msrb.mxu2 %v7712_v46  ;;  %v8390_v46 = vld [vmem:[#allocation6 + $0xf2c] sm:$0xf] }
 0x48f   :  { %v5113_v34 = vpop.f32.mrf.mxu2 }
 0x490   :  { %v5114_v30 = vadd.f32 %v5113_v34, %v5081_v63  ;;  %v7856_v63 = vor.u32 %v8402_v10, %v7853_v33  ;;  %v7837_v34 = vld [vmem:[#allocation6 + $0xf78] sm:$0xf0] }
 0x491   :  { %5466 = vmatpush.bf16.msrb.mxu1 %v7584_v41  ;;  %v7565_v10 = vld [vmem:[#allocation6 + $0xd58] sm:$0xf0] }
 0x492   :  { %v9363_v0 = vadd.f32 %v5146_v52, %v5114_v30  ;;  %5531 = vmatpush.bf16.msrb.mxu3 %v7856_v63  ;;  %v7456_v30 = vor.u32 %v8302_v5, %v7453_v51  ;;  %v7840_v52 = vor.u32 %v8398_v29, %v7837_v34  ;;  %v7568_v33 = vor.u32 %v8330_v44, %v7565_v10  ;;  %v7421_v5 = vld [vmem:[#allocation6 + $0xc38] sm:$0xf0]  ;;  %v9772_v51 = vld [vmem:[#allocation40_spill] sm:$0xff]  ;;  %v9773_v29 = vld [vmem:[#allocation41_spill] sm:$0xff] }
 0x493   :  { %v7424_v34 = vor.u32 %v8294_v53, %v7421_v5  ;;  %v9775_v10 = vld [vmem:[#allocation43_spill] sm:$0xff] }
 0x494   :  { %v5148_v60 = vpop.f32.mrf.mxu3  ;;  %v5085_v39 = vpop.f32.mrf.mxu1  ;;  %5433 = vmatpush.bf16.msrb.mxu0 %v7456_v30  ;;  %v7805_v30 = vld [vmem:[#allocation6 + $0xf38] sm:$0xf0] }
 0x495   :  { %v5052_v19 = vpop.f32.mrf.mxu0  ;;  %5467 = vmatpush.bf16.msrb.mxu1 %v7568_v33  ;;  %v9777_v33 = vld [vmem:[#allocation45_spill] sm:$0xff] }
 0x496   :  { %v5086_v18 = vadd.f32 %v5085_v39, %v5052_v19  ;;  %5532 = vmatpush.bf16.msrb.mxu3 %v7840_v52  ;;  %v9774_v52 = vld [vmem:[#allocation42_spill] sm:$0xff] }
 0x497   :  { %v5115_v40 = vpop.f32.mrf.mxu2  ;;  %5338 = vmatmul.bf16.vlgmr.msra.gmra.mxu1 %v9764_v23  ;;  %v7437_v23 = vld [vmem:[#allocation6 + $0xc58] sm:$0xf0] }
 0x498   :  { %v5116_v58 = vadd.f32 %v5115_v40, %v5083_v31  ;;  %5305 = vmatmul.bf16.vlgmr.msra.gmra.mxu0 %v9763_v36  ;;  %v7693_v40 = vld [vmem:[#allocation6 + $0xe58] sm:$0xf0] }
 0x499   :  { %5404 = vmatmul.bf16.vlgmr.msra.gmra.mxu3 %v9766_v48  ;;  %v7440_v48 = vor.u32 %v8298_v16, %v7437_v23 }
 0x49a   :  { %v9365_v21 = vadd.f32 %v5148_v60, %v5116_v58  ;;  %v7696_v58 = vor.u32 %v8362_v9, %v7693_v40  ;;  %v7405_v40 = vld [vmem:[#allocation6 + $0xc18] sm:$0xf0] }
 0x49b   :  { %5434 = vmatpush.bf16.msrb.mxu0 %v7440_v48 }
 0x49c   :  { %5371 = vmatmul.bf16.vlgmr.msra.gmra.mxu2 %v9765_v43  ;;  %v5151_v45 = vpop.f32.mrf.mxu3  ;;  %v5087_v49 = vpop.f32.mrf.mxu1  ;;  %v8394_v43 = vld [vmem:[#allocation6 + $0xf4c] sm:$0xf] }
 0x49d   :  { %v5054_v26 = vpop.f32.mrf.mxu0  ;;  %5500 = vmatpush.bf16.msrb.mxu2 %v7696_v58  ;;  %v7824_v55 = vor.u32 %v8394_v43, %v7821_v47  ;;  %v8386_v58 = vld [vmem:[#allocation6 + $0xf0c] sm:$0xf] }
 0x49e   :  { %v5088_v50 = vadd.f32 %v5087_v49, %v5054_v26  ;;  %v8358_v26 = vld [vmem:[#allocation6 + $0xe2c] sm:$0xf]  ;;  %v7677_v49 = vld [vmem:[#allocation6 + $0xe38] sm:$0xf0] }
 0x49f   :  { %v5118_v28 = vpop.f32.mrf.mxu2  ;;  %5533 = vmatpush.bf16.msrb.mxu3 %v7824_v55  ;;  %v7680_v4 = vor.u32 %v8358_v26, %v7677_v49  ;;  %5435 = vmatpush.bf16.msrb.mxu0 %v7424_v34  ;;  %v9776_v55 = vld [vmem:[#allocation44_spill] sm:$0xff] }
 0x4a0   :  { %v5119_v25 = vadd.f32 %v5118_v28, %v5086_v18 }
 0x4a1   :  { %5501 = vmatpush.bf16.msrb.mxu2 %v7680_v4 }
 0x4a2   :  { %v9371_v54 = vadd.f32 %v5151_v45, %v5119_v25 }
 0x4a4   :  { %v5153_v31 = vpop.f32.mrf.mxu3  ;;  %v5090_v35 = vpop.f32.mrf.mxu1 }
 0x4a5   :  { %v5057_v38 = vpop.f32.mrf.mxu0 }
 0x4a6   :  { %v5091_v61 = vadd.f32 %v5090_v35, %v5057_v38 }
 0x4a7   :  { %v5120_v6 = vpop.f32.mrf.mxu2  ;;  %5343 = vmatmul.bf16.gmra.mxu1 %v9768_v32  ;;  %v8354_v32 = vld [vmem:[#allocation6 + $0xe0c] sm:$0xf] }
 0x4a8   :  { %v5121_v42 = vadd.f32 %v5120_v6, %v5088_v50  ;;  %5310 = vmatmul.bf16.gmra.mxu0 %v9767_v17  ;;  %v9771_v50 = vld [vmem:[#allocation39_spill] sm:$0xff]  ;;  %v7808_v6 = vor.u32 %v8390_v46, %v7805_v30 }
 0x4a9   :  { %5409 = vmatmul.bf16.gmra.mxu3 %v9770_v62  ;;  %v8290_v62 = vld [vmem:[#allocation6 + $0xc0c] sm:$0xf]  ;;  %v9779_v30 = vld [vmem:[#allocation47_spill] sm:$0xff] }
 0x4aa   :  { %v9373_v27 = vadd.f32 %v5153_v31, %v5121_v42  ;;  %v8326_v42 = vld [vmem:[#allocation6 + $0xd2c] sm:$0xf]  ;;  %v7549_v31 = vld [vmem:[#allocation6 + $0xd38] sm:$0xf0]  ;;  %5534 = vmatpush.bf16.msrb.mxu3 %v7808_v6  ;;  %v9781_v6 = vld [vmem:[#allocation49_spill] sm:$0xff] }
 0x4ab   :  { %v7552_v38 = vor.u32 %v8326_v42, %v7549_v31 }
 0x4ac   :  { %5376 = vmatmul.bf16.gmra.mxu2 %v9769_v24  ;;  %v5156_v39 = vpop.f32.mrf.mxu3  ;;  %v5092_v8 = vpop.f32.mrf.mxu1  ;;  %v7661_v24 = vld [vmem:[#allocation6 + $0xe18] sm:$0xf0] }
 0x4ad   :  { %v5059_v18 = vpop.f32.mrf.mxu0  ;;  %5468 = vmatpush.bf16.msrb.mxu1 %v7552_v38  ;;  %v7664_v9 = vor.u32 %v8354_v32, %v7661_v24 }
 0x4ae   :  { %v5093_v36 = vadd.f32 %v5092_v8, %v5059_v18  ;;  %v8322_v18 = vld [vmem:[#allocation6 + $0xd0c] sm:$0xf]  ;;  %v7533_v8 = vld [vmem:[#allocation6 + $0xd18] sm:$0xf0] }
 0x4af   :  { %v5123_v60 = vpop.f32.mrf.mxu2  ;;  %5502 = vmatpush.bf16.msrb.mxu2 %v7664_v9 }
 0x4b0   :  { %v5124_v19 = vadd.f32 %v5123_v60, %v5091_v61  ;;  %v7789_v60 = vld [vmem:[#allocation6 + $0xf18] sm:$0xf0] }
 0x4b2   :  { %v9379_v2 = vadd.f32 %v5156_v39, %v5124_v19  ;;  %v7408_v19 = vor.u32 %v8290_v62, %v7405_v40  ;;  %v7792_v39 = vor.u32 %v8386_v58, %v7789_v60 }
 0x4b4   :  { %v5158_v28 = vpop.f32.mrf.mxu3  ;;  %v5095_v56 = vpop.f32.mrf.mxu1  ;;  %5436 = vmatpush.bf16.msrb.mxu0 %v7408_v19  ;;  %5535 = vmatpush.bf16.msrb.mxu3 %v7792_v39  ;;  %v9783_v19 = vld [vmem:[#allocation51_spill] sm:$0xff]  ;;  %v9784_v39 = vld [vmem:[#allocation52_spill] sm:$0xff] }
 0x4b5   :  { %v5062_v63 = vpop.f32.mrf.mxu0 }
 0x4b6   :  { %v5096_v45 = vadd.f32 %v5095_v56, %v5062_v63 }
 0x4b7   :  { %v5125_v20 = vpop.f32.mrf.mxu2  ;;  %5348 = vmatmul.bf16.gmra.mxu1 %v9772_v51 }
 0x4b8   :  { %v5126_v13 = vadd.f32 %v5125_v20, %v5093_v36  ;;  %5315 = vmatmul.bf16.gmra.mxu0 %v9771_v50  ;;  %v7536_v36 = vor.u32 %v8322_v18, %v7533_v8  ;;  %v9778_v20 = vld [vmem:[#allocation46_spill] sm:$0xff]  ;;  %v9785_v18 = vld [vmem:[#allocation53_spill] sm:$0xff] }
 0x4b9   :  { %5414 = vmatmul.bf16.gmra.mxu3 %v9774_v52  ;;  %v9780_v52 = vld [vmem:[#allocation48_spill] sm:$0xff] }
 0x4ba   :  { %v9381_v25 = vadd.f32 %v5158_v28, %v5126_v13  ;;  %5469 = vmatpush.bf16.msrb.mxu1 %v7536_v36 }
 0x4bc   :  { %5381 = vmatmul.bf16.gmra.mxu2 %v9773_v29  ;;  %v5161_v35 = vpop.f32.mrf.mxu3  ;;  %v5097_v61 = vpop.f32.mrf.mxu1 }
 0x4bd   :  { %v5064_v41 = vpop.f32.mrf.mxu0 }
 0x4bf   :  { %v5128_v57 = vpop.f32.mrf.mxu2 }
 0x4c0   :  { %v5129_v12 = vadd.f32 %v5128_v57, %v5096_v45 }
 0x4c2   :  { %v9387_v17 = vadd.f32 %v5161_v35, %v5129_v12 }
 0x4c4   :  { %v5163_v23 = vpop.f32.mrf.mxu3  ;;  %v5207_v47 = vpop.f32.mrf.mxu1 }
 0x4c5   :  { %v5174_v43 = vpop.f32.mrf.mxu0 }
 0x4c6   :  { %v5175_v48 = vadd.f32 %v5174_v43, %v9355_v22 }
 0x4c7   :  { %v5130_v16 = vpop.f32.mrf.mxu2  ;;  %5353 = vmatmul.bf16.gmra.mxu1 %v9776_v55 }
 0x4c8   :  { %v5208_v44 = vadd.f32 %v5207_v47, %v5175_v48  ;;  %5320 = vmatmul.bf16.gmra.mxu0 %v9775_v10 }
 0x4c9   :  { %5419 = vmatmul.bf16.gmra.mxu3 %v9778_v20 }
 0x4cc   :  { %5386 = vmatmul.bf16.gmra.mxu2 %v9777_v33  ;;  %v5273_v63 = vpop.f32.mrf.mxu3  ;;  %v5209_v26 = vpop.f32.mrf.mxu1 }
 0x4cd   :  { %v5176_v56 = vpop.f32.mrf.mxu0 }
 0x4ce   :  { %v5177_v45 = vadd.f32 %v5176_v56, %v9357_v3  ;;  %v9782_v3 = vld [vmem:[#allocation50_spill] sm:$0xff]  ;;  %v9787_v56 = vld [vmem:[#allocation57_spill] sm:$0xff] }
 0x4cf   :  { %v5240_v13 = vpop.f32.mrf.mxu2 }
 0x4d0   :  { %v5241_v28 = vadd.f32 %v5240_v13, %v5208_v44  ;;  %v5210_v22 = vadd.f32 %v5209_v26, %v5177_v45 }
 0x4d2   :  { %v9395_v49 = vadd.f32 %v5273_v63, %v5241_v28 }
 0x4d4   :  { %v5275_v53 = vpop.f32.mrf.mxu3  ;;  %v5212_v51 = vpop.f32.mrf.mxu1 }
 0x4d5   :  { %v5179_v5 = vpop.f32.mrf.mxu0 }
 0x4d6   :  { %v5180_v46 = vadd.f32 %v5179_v5, %v9363_v0 }
 0x4d7   :  { %v5242_v50 = vpop.f32.mrf.mxu2  ;;  %5358 = vmatmul.bf16.gmra.mxu1 %v9780_v52 }
 0x4d8   :  { %v5243_v4 = vadd.f32 %v5242_v50, %v5210_v22  ;;  %v5213_v34 = vadd.f32 %v5212_v51, %v5180_v46  ;;  %5325 = vmatmul.bf16.gmra.mxu0 %v9779_v30 }
 0x4d9   :  { %5424 = vmatmul.bf16.gmra.mxu3 %v9782_v3  ;;  %v9789_v3 = vld [vmem:[#allocation59_spill] sm:$0xff] }
 0x4da   :  { %v9398_v29 = vadd.f32 %v5275_v53, %v5243_v4 }
 0x4dc   :  { %5391 = vmatmul.bf16.gmra.mxu2 %v9781_v6  ;;  %v5278_v38 = vpop.f32.mrf.mxu3  ;;  %v5214_v35 = vpop.f32.mrf.mxu1 }
 0x4dd   :  { %v5181_v57 = vpop.f32.mrf.mxu0 }
 0x4de   :  { %v5182_v12 = vadd.f32 %v5181_v57, %v9365_v21  ;;  %v9786_v21 = vld [vmem:[#allocation54_spill] sm:$0xff] }
 0x4df   :  { %v5245_v42 = vpop.f32.mrf.mxu2 }
 0x4e0   :  { %v5246_v31 = vadd.f32 %v5245_v42, %v5213_v34  ;;  %v5215_v41 = vadd.f32 %v5214_v35, %v5182_v12  ;;  %v9790_v42 = vld [vmem:[#allocation60_spill] sm:$0xff] }
 0x4e2   :  { %v9405_v0 = vadd.f32 %v5278_v38, %v5246_v31  ;;  %v9791_v31 = vld [vmem:[#allocation61_spill] sm:$0xff] }
 0x4e4   :  { %v5280_v24 = vpop.f32.mrf.mxu3  ;;  %v5217_v40 = vpop.f32.mrf.mxu1 }
 0x4e5   :  { %v5184_v62 = vpop.f32.mrf.mxu0 }
 0x4e6   :  { %v5185_v9 = vadd.f32 %v5184_v62, %v9371_v54 }
 0x4e7   :  { %v5247_v61 = vpop.f32.mrf.mxu2  ;;  %5470 = vmatmul.bf16.vlgmr.msrb.gmra.mxu1 %v9784_v39  ;;  %v9795_v39 = vld [vmem:[#allocation65_spill] sm:$0xff] }
 0x4e8   :  { %v5248_v32 = vadd.f32 %v5247_v61, %v5215_v41  ;;  %v5218_v60 = vadd.f32 %v5217_v40, %v5185_v9  ;;  %5437 = vmatmul.bf16.vlgmr.msrb.gmra.mxu0 %v9783_v19  ;;  %v9794_v19 = vld [vmem:[#allocation64_spill] sm:$0xff] }
 0x4e9   :  { %5536 = vmatmul.bf16.vlgmr.msrb.gmra.mxu3 %v9786_v21 }
 0x4ea   :  { %v9408_v58 = vadd.f32 %v5280_v24, %v5248_v32 }
 0x4ec   :  { %5503 = vmatmul.bf16.vlgmr.msrb.gmra.mxu2 %v9785_v18  ;;  %v5283_v16 = vpop.f32.mrf.mxu3  ;;  %v5219_v48 = vpop.f32.mrf.mxu1 }
 0x4ed   :  { %v5186_v23 = vpop.f32.mrf.mxu0 }
 0x4ee   :  { %v5187_v43 = vadd.f32 %v5186_v23, %v9373_v27  ;;  %v9788_v27 = vld [vmem:[#allocation58_spill] sm:$0xff] }
 0x4ef   :  { %v5250_v8 = vpop.f32.mrf.mxu2 }
 0x4f0   :  { %v5251_v36 = vadd.f32 %v5250_v8, %v5218_v60  ;;  %v5220_v47 = vadd.f32 %v5219_v48, %v5187_v43  ;;  %v9793_v60 = vld [vmem:[#allocation63_spill] sm:$0xff] }
 0x4f2   :  { %v9415_v54 = vadd.f32 %v5283_v16, %v5251_v36 }
 0x4f4   :  { %v5285_v55 = vpop.f32.mrf.mxu3  ;;  %v5222_v13 = vpop.f32.mrf.mxu1 }
 0x4f5   :  { %v5189_v33 = vpop.f32.mrf.mxu0 }
 0x4f6   :  { %v5190_v20 = vadd.f32 %v5189_v33, %v9379_v2 }
 0x4f7   :  { %v5252_v44 = vpop.f32.mrf.mxu2  ;;  %5475 = vmatmul.bf16.gmra.mxu1 %v9741_v59 }
 0x4f8   :  { %v5253_v10 = vadd.f32 %v5252_v44, %v5220_v47  ;;  %v5223_v63 = vadd.f32 %v5222_v13, %v5190_v20  ;;  %5442 = vmatmul.bf16.gmra.mxu0 %v9695_v1 }
 0x4f9   :  { %5541 = vmatmul.bf16.gmra.mxu3 %v9788_v27 }
 0x4fa   :  { %v9418_v28 = vadd.f32 %v5285_v55, %v5253_v10 }
 0x4fc   :  { %5508 = vmatmul.bf16.gmra.mxu2 %v9787_v56  ;;  %v5288_v22 = vpop.f32.mrf.mxu3  ;;  %v5224_v53 = vpop.f32.mrf.mxu1 }
 0x4fd   :  { %v5191_v50 = vpop.f32.mrf.mxu0 }
 0x4fe   :  { %v5192_v4 = vadd.f32 %v5191_v50, %v9381_v25  ;;  %v9792_v25 = vld [vmem:[#allocation62_spill] sm:$0xff] }
 0x4ff   :  { %v5255_v45 = vpop.f32.mrf.mxu2 }
 0x500   :  { %v5256_v26 = vadd.f32 %v5255_v45, %v5223_v63  ;;  %v5225_v5 = vadd.f32 %v5224_v53, %v5192_v4 }
 0x502   :  { %v9425_v2 = vadd.f32 %v5288_v22, %v5256_v26 }
 0x504   :  { %v5290_v34 = vpop.f32.mrf.mxu3  ;;  %v5227_v30 = vpop.f32.mrf.mxu1 }
 0x505   :  { %v5194_v1 = vpop.f32.mrf.mxu0 }
 0x506   :  { %v5195_v59 = vadd.f32 %v5194_v1, %v9387_v17 }
 0x507   :  { %v5257_v46 = vpop.f32.mrf.mxu2  ;;  %5480 = vmatmul.bf16.gmra.mxu1 %v9790_v42 }
 0x508   :  { %v5258_v51 = vadd.f32 %v5257_v46, %v5225_v5  ;;  %v5228_v6 = vadd.f32 %v5227_v30, %v5195_v59  ;;  %5447 = vmatmul.bf16.gmra.mxu0 %v9789_v3 }
 0x509   :  { %5546 = vmatmul.bf16.gmra.mxu3 %v9792_v25 }
 0x50a   :  { %v9428_v52 = vadd.f32 %v5290_v34, %v5258_v51 }
 0x50c   :  { %5513 = vmatmul.bf16.gmra.mxu2 %v9791_v31  ;;  %v5293_v12 = vpop.f32.mrf.mxu3  ;;  %v5229_v41 = vpop.f32.mrf.mxu1 }
 0x50d   :  { %v5196_v35 = vpop.f32.mrf.mxu0 }
 0x50f   :  { %v5260_v38 = vpop.f32.mrf.mxu2 }
 0x510   :  { %v5261_v57 = vadd.f32 %v5260_v38, %v5228_v6 }
 0x512   :  { %v9434_v61 = vadd.f32 %v5293_v12, %v5261_v57 }
 0x514   :  { %v5295_v32 = vpop.f32.mrf.mxu3  ;;  %v5339_v9 = vpop.f32.mrf.mxu1 }
 0x515   :  { %v5306_v24 = vpop.f32.mrf.mxu0 }
 0x516   :  { %v5307_v62 = vadd.f32 %v5306_v24, %v9395_v49 }
 0x517   :  { %v5262_v17 = vpop.f32.mrf.mxu2  ;;  %5485 = vmatmul.bf16.gmra.mxu1 %v9793_v60 }
 0x518   :  { %v5340_v40 = vadd.f32 %v5339_v9, %v5307_v62  ;;  %5452 = vmatmul.bf16.gmra.mxu0 %v8871_v37 }
 0x519   :  { %5551 = vmatmul.bf16.gmra.mxu3 %v9795_v39 }
 0x51c   :  { %5518 = vmatmul.bf16.gmra.mxu2 %v9794_v19  ;;  %v5405_v8 = vpop.f32.mrf.mxu3  ;;  %v5341_v23 = vpop.f32.mrf.mxu1 }
 0x51d   :  { %v5308_v36 = vpop.f32.mrf.mxu0 }
 0x51e   :  { %v5309_v16 = vadd.f32 %v5308_v36, %v9398_v29 }
 0x51f   :  { %v5372_v18 = vpop.f32.mrf.mxu2 }
 0x520   :  { %v5373_v21 = vadd.f32 %v5372_v18, %v5340_v40  ;;  %v5342_v49 = vadd.f32 %v5341_v23, %v5309_v16 }
 0x522   :  { %v9442_v43 = vadd.f32 %v5405_v8, %v5373_v21 }
 0x524   :  { %v5407_v44 = vpop.f32.mrf.mxu3  ;;  %v5344_v55 = vpop.f32.mrf.mxu1 }
 0x525   :  { %v5311_v37 = vpop.f32.mrf.mxu0 }
 0x526   :  { %v5312_v10 = vadd.f32 %v5311_v37, %v9405_v0 }
 0x527   :  { %v5374_v48 = vpop.f32.mrf.mxu2  ;;  %5490 = vmatmul.bf16.gmra.mxu1 %v8889_v15 }
 0x528   :  { %v5375_v47 = vadd.f32 %v5374_v48, %v5342_v49  ;;  %v5345_v20 = vadd.f32 %v5344_v55, %v5312_v10  ;;  %5457 = vmatmul.bf16.gmra.mxu0 %v8887_v7 }
 0x529   :  { %5556 = vmatmul.bf16.gmra.mxu3 %v9705_v14 }
 0x52a   :  { %v9445_v33 = vadd.f32 %v5407_v44, %v5375_v47 }
 0x52c   :  { %5523 = vmatmul.bf16.gmra.mxu2 %v9704_v11  ;;  %v5410_v63 = vpop.f32.mrf.mxu3  ;;  %v5346_v45 = vpop.f32.mrf.mxu1 }
 0x52d   :  { %v5313_v56 = vpop.f32.mrf.mxu0 }
 0x52e   :  { %v5314_v27 = vadd.f32 %v5313_v56, %v9408_v58 }
 0x52f   :  { %v5377_v29 = vpop.f32.mrf.mxu2 }
 0x530   :  { %v5378_v13 = vadd.f32 %v5377_v29, %v5345_v20  ;;  %v5347_v26 = vadd.f32 %v5346_v45, %v5314_v27 }
 0x532   :  { %v9452_v0 = vadd.f32 %v5410_v63, %v5378_v13  ;;  %v8432_v13 = vld [vmem:[#allocation8] sm:$0xf] }
 0x533   :  { %v9472_v63 = vperm.slane %v8432_v13, 3 }
 0x534   :  { %v5412_v4 = vpop.f32.mrf.mxu3  ;;  %v5349_v53 = vpop.f32.mrf.mxu1 }
 0x535   :  { %v5316_v7 = vpop.f32.mrf.mxu0 }
 0x536   :  { %v5317_v15 = vadd.f32 %v5316_v7, %v9415_v54 }
 0x537   :  { %v5379_v22 = vpop.f32.mrf.mxu2 }
 0x538   :  { %v5380_v50 = vadd.f32 %v5379_v22, %v5347_v26  ;;  %v5350_v14 = vadd.f32 %v5349_v53, %v5317_v15  ;;  %v8433_v26 = vld [vmem:[#allocation9] sm:$0xf] }
 0x539   :  { %v9474_v22 = vperm.slane %v8433_v26, 3 }
 0x53a   :  { %v9455_v11 = vadd.f32 %v5412_v4, %v5380_v50 }
 0x53c   :  { %v5415_v51 = vpop.f32.mrf.mxu3  ;;  %v5351_v1 = vpop.f32.mrf.mxu1 }
 0x53d   :  { %v5318_v34 = vpop.f32.mrf.mxu0 }
 0x53e   :  { %v5319_v58 = vadd.f32 %v5318_v34, %v9418_v28 }
 0x53f   :  { %v5382_v5 = vpop.f32.mrf.mxu2 }
 0x540   :  { %v5383_v46 = vadd.f32 %v5382_v5, %v5350_v14  ;;  %v5352_v30 = vadd.f32 %v5351_v1, %v5319_v58 }
 0x542   :  { %v9458_v59 = vadd.f32 %v5415_v51, %v5383_v46 }
 0x544   :  { %v5417_v42 = vpop.f32.mrf.mxu3  ;;  %v5354_v25 = vpop.f32.mrf.mxu1 }
 0x545   :  { %v5321_v31 = vpop.f32.mrf.mxu0 }
 0x546   :  { %v5322_v54 = vadd.f32 %v5321_v31, %v9425_v2 }
 0x547   :  { %v5384_v6 = vpop.f32.mrf.mxu2 }
 0x548   :  { %v5385_v3 = vadd.f32 %v5384_v6, %v5352_v30  ;;  %v5355_v57 = vadd.f32 %v5354_v25, %v5322_v54 }
 0x54a   :  { %v9461_v38 = vadd.f32 %v5417_v42, %v5385_v3 }
 0x54c   :  { %v5420_v41 = vpop.f32.mrf.mxu3  ;;  %v5356_v32 = vpop.f32.mrf.mxu1 }
 0x54d   :  { %v5323_v17 = vpop.f32.mrf.mxu0 }
 0x54e   :  { %v5324_v28 = vadd.f32 %v5323_v17, %v9428_v52 }
 0x54f   :  { %v5387_v12 = vpop.f32.mrf.mxu2 }
 0x550   :  { %v5388_v35 = vadd.f32 %v5387_v12, %v5355_v57  ;;  %v5357_v62 = vadd.f32 %v5356_v32, %v5324_v28 }
 0x552   :  { %v9464_v24 = vadd.f32 %v5420_v41, %v5388_v35 }
 0x554   :  { %v5422_v60 = vpop.f32.mrf.mxu3  ;;  %v5359_v39 = vpop.f32.mrf.mxu1 }
 0x555   :  { %v5326_v19 = vpop.f32.mrf.mxu0 }
 0x556   :  { %v5327_v2 = vadd.f32 %v5326_v19, %v9434_v61 }
 0x557   :  { %v5389_v9 = vpop.f32.mrf.mxu2 }
 0x558   :  { %v5390_v40 = vadd.f32 %v5389_v9, %v5357_v62  ;;  %v5360_v21 = vadd.f32 %v5359_v39, %v5327_v2 }
 0x55a   :  { %v9467_v18 = vadd.f32 %v5422_v60, %v5390_v40 }
 0x55c   :  { %v5425_v16 = vpop.f32.mrf.mxu3  ;;  %v5361_v49 = vpop.f32.mrf.mxu1 }
 0x55d   :  { %v5328_v23 = vpop.f32.mrf.mxu0 }
 0x55f   :  { %v5392_v8 = vpop.f32.mrf.mxu2 }
 0x560   :  { %v5393_v36 = vadd.f32 %v5392_v8, %v5360_v21 }
 0x562   :  { %v9469_v52 = vadd.f32 %v5425_v16, %v5393_v36 }
 0x564   :  { %v5427_v47 = vpop.f32.mrf.mxu3  ;;  %v5471_v37 = vpop.f32.mrf.mxu1 }
 0x565   :  { %v5438_v44 = vpop.f32.mrf.mxu0 }
 0x566   :  { %v5439_v10 = vadd.f32 %v5438_v44, %v9442_v43 }
 0x567   :  { %v5394_v48 = vpop.f32.mrf.mxu2 }
 0x568   :  { %v5472_v55 = vadd.f32 %v5471_v37, %v5439_v10 }
 0x56c   :  { %v5537_v29 = vpop.f32.mrf.mxu3  ;;  %v5473_v27 = vpop.f32.mrf.mxu1 }
 0x56d   :  { %v5440_v56 = vpop.f32.mrf.mxu0 }
 0x56e   :  { %v5441_v50 = vadd.f32 %v5440_v56, %v9445_v33 }
 0x56f   :  { %v5504_v20 = vpop.f32.mrf.mxu2 }
 0x570   :  { %v5505_v61 = vadd.f32 %v5504_v20, %v5472_v55  ;;  %v5474_v43 = vadd.f32 %v5473_v27, %v5441_v50 }
 0x572   :  { %v5538_v45 = vadd.f32 %v5537_v29, %v5505_v61 }
 0x574   :  { %v5685_v4 = vmul.f32 %v9472_v63, %v5538_v45  ;;  %v5539_v5 = vpop.f32.mrf.mxu3  ;;  %v5476_v51 = vpop.f32.mrf.mxu1 }
 0x575   :  { %v5443_v46 = vpop.f32.mrf.mxu0 }
 0x576   :  { %v5731_v7 = vadd.f32 %v9474_v22, %v5685_v4  ;;  %v5444_v58 = vadd.f32 %v5443_v46, %v9452_v0 }
 0x577   :  { %v5506_v15 = vpop.f32.mrf.mxu2 }
 0x578   :  { %v5767_v53 = vmax.f32 %v5731_v7, 0.0  ;;  %v5507_v14 = vadd.f32 %v5506_v15, %v5474_v43  ;;  %v5477_v33 = vadd.f32 %v5476_v51, %v5444_v58 }
 0x57a   :  { %5803 = vst [vmem:[#allocation11 + $0x18] sm:$0xff] %v5767_v53  ;;  %v5540_v34 = vadd.f32 %v5539_v5, %v5507_v14 }
 0x57c   :  { %v5689_v1 = vmul.f32 %v9472_v63, %v5540_v34  ;;  %v5542_v31 = vpop.f32.mrf.mxu3  ;;  %v5478_v25 = vpop.f32.mrf.mxu1 }
 0x57d   :  { %v5445_v54 = vpop.f32.mrf.mxu0 }
 0x57e   :  { %v5735_v30 = vadd.f32 %v9474_v22, %v5689_v1  ;;  %v5446_v12 = vadd.f32 %v5445_v54, %v9455_v11 }
 0x57f   :  { %v5509_v6 = vpop.f32.mrf.mxu2 }
 0x580   :  { %v5771_v3 = vmax.f32 %v5735_v30, 0.0  ;;  %v5510_v42 = vadd.f32 %v5509_v6, %v5477_v33  ;;  %v5479_v0 = vadd.f32 %v5478_v25, %v5446_v12 }
 0x582   :  { %5807 = vst [vmem:[#allocation11 + $0x38] sm:$0xff] %v5771_v3  ;;  %v5543_v57 = vadd.f32 %v5542_v31, %v5510_v42 }
 0x584   :  { %v5693_v35 = vmul.f32 %v9472_v63, %v5543_v57  ;;  %v5544_v62 = vpop.f32.mrf.mxu3  ;;  %v5481_v40 = vpop.f32.mrf.mxu1 }
 0x585   :  { %v5448_v9 = vpop.f32.mrf.mxu0 }
 0x586   :  { %v5739_v41 = vadd.f32 %v9474_v22, %v5693_v35  ;;  %v5449_v19 = vadd.f32 %v5448_v9, %v9458_v59 }
 0x587   :  { %v5511_v17 = vpop.f32.mrf.mxu2 }
 0x588   :  { %v5775_v28 = vmax.f32 %v5739_v41, 0.0  ;;  %v5512_v32 = vadd.f32 %v5511_v17, %v5479_v0  ;;  %v5482_v11 = vadd.f32 %v5481_v40, %v5449_v19 }
 0x58a   :  { %5811 = vst [vmem:[#allocation11 + $0x58] sm:$0xff] %v5775_v28  ;;  %v5545_v60 = vadd.f32 %v5544_v62, %v5512_v32 }
 0x58c   :  { %v5697_v2 = vmul.f32 %v9472_v63, %v5545_v60  ;;  %v5547_v16 = vpop.f32.mrf.mxu3  ;;  %v5483_v49 = vpop.f32.mrf.mxu1 }
 0x58d   :  { %v5450_v23 = vpop.f32.mrf.mxu0 }
 0x58e   :  { %v5743_v39 = vadd.f32 %v9474_v22, %v5697_v2  ;;  %v5451_v47 = vadd.f32 %v5450_v23, %v9461_v38 }
 0x58f   :  { %v5514_v21 = vpop.f32.mrf.mxu2 }
 0x590   :  { %v5779_v8 = vmax.f32 %v5743_v39, 0.0  ;;  %v5515_v36 = vadd.f32 %v5514_v21, %v5482_v11  ;;  %v5484_v59 = vadd.f32 %v5483_v49, %v5451_v47 }
 0x592   :  { %5815 = vst [vmem:[#allocation11 + $0x78] sm:$0xff] %v5779_v8  ;;  %v5548_v48 = vadd.f32 %v5547_v16, %v5515_v36 }
 0x594   :  { %v5701_v44 = vmul.f32 %v9472_v63, %v5548_v48  ;;  %v5549_v61 = vpop.f32.mrf.mxu3  ;;  %v5486_v13 = vpop.f32.mrf.mxu1 }
 0x595   :  { %v5453_v29 = vpop.f32.mrf.mxu0 }
 0x596   :  { %v5747_v37 = vadd.f32 %v9474_v22, %v5701_v44  ;;  %v5454_v27 = vadd.f32 %v5453_v29, %v9464_v24 }
 0x597   :  { %v5516_v10 = vpop.f32.mrf.mxu2 }
 0x598   :  { %v5783_v55 = vmax.f32 %v5747_v37, 0.0  ;;  %v5517_v20 = vadd.f32 %v5516_v10, %v5484_v59  ;;  %v5487_v38 = vadd.f32 %v5486_v13, %v5454_v27 }
 0x59a   :  { %5819 = vst [vmem:[#allocation11 + $0x98] sm:$0xff] %v5783_v55  ;;  %v5550_v56 = vadd.f32 %v5549_v61, %v5517_v20 }
 0x59c   :  { %v5705_v45 = vmul.f32 %v9472_v63, %v5550_v56  ;;  %v5552_v43 = vpop.f32.mrf.mxu3  ;;  %v5488_v53 = vpop.f32.mrf.mxu1 }
 0x59d   :  { %v5455_v15 = vpop.f32.mrf.mxu0 }
 0x59e   :  { %v5751_v26 = vadd.f32 %v9474_v22, %v5705_v45  ;;  %v5456_v5 = vadd.f32 %v5455_v15, %v9467_v18 }
 0x59f   :  { %v5519_v50 = vpop.f32.mrf.mxu2 }
 0x5a0   :  { %v5787_v4 = vmax.f32 %v5751_v26, 0.0  ;;  %v5520_v7 = vadd.f32 %v5519_v50, %v5487_v38  ;;  %v5489_v24 = vadd.f32 %v5488_v53, %v5456_v5 }
 0x5a2   :  { %5823 = vst [vmem:[#allocation11 + $0xb8] sm:$0xff] %v5787_v4  ;;  %v5553_v14 = vadd.f32 %v5552_v43, %v5520_v7 }
 0x5a4   :  { %v5709_v46 = vmul.f32 %v9472_v63, %v5553_v14  ;;  %v5554_v30 = vpop.f32.mrf.mxu3  ;;  %v5491_v6 = vpop.f32.mrf.mxu1 }
 0x5a5   :  { %v5458_v33 = vpop.f32.mrf.mxu0 }
 0x5a6   :  { %v5755_v51 = vadd.f32 %v9474_v22, %v5709_v46  ;;  %v5459_v42 = vadd.f32 %v5458_v33, %v9469_v52 }
 0x5a7   :  { %v5521_v34 = vpop.f32.mrf.mxu2 }
 0x5a8   :  { %v5791_v58 = vmax.f32 %v5755_v51, 0.0  ;;  %v5522_v1 = vadd.f32 %v5521_v34, %v5489_v24  ;;  %v5492_v18 = vadd.f32 %v5491_v6, %v5459_v42 }
 0x5aa   :  { %5827 = vst [vmem:[#allocation11 + $0xd8] sm:$0xff] %v5791_v58  ;;  %v5555_v3 = vadd.f32 %v5554_v30, %v5522_v1 }
 0x5ac   :  { %v5713_v31 = vmul.f32 %v9472_v63, %v5555_v3  ;;  %v5557_v35 = vpop.f32.mrf.mxu3  ;;  %v5493_v0 = vpop.f32.mrf.mxu1 }
 0x5ad   :  { %v5460_v41 = vpop.f32.mrf.mxu0 }
 0x5ae   :  { %v5759_v54 = vadd.f32 %v9474_v22, %v5713_v31 }
 0x5af   :  { %v5524_v25 = vpop.f32.mrf.mxu2 }
 0x5b0   :  { %v5795_v57 = vmax.f32 %v5759_v54, 0.0  ;;  %v5525_v12 = vadd.f32 %v5524_v25, %v5492_v18 }
 0x5b2   :  { %5831 = vst [vmem:[#allocation11 + $0xf8] sm:$0xff] %v5795_v57  ;;  %v5558_v17 = vadd.f32 %v5557_v35, %v5525_v12 }
 0x5b4   :  { %v5717_v28 = vmul.f32 %v9472_v63, %v5558_v17  ;;  %v5559_v9 = vpop.f32.mrf.mxu3 }
 0x5b6   :  { %v5763_v52 = vadd.f32 %v9474_v22, %v5717_v28 }
 0x5b7   :  { %v5526_v32 = vpop.f32.mrf.mxu2 }
 0x5b8   :  { %v5799_v62 = vmax.f32 %v5763_v52, 0.0 }
 0x5ba   :  { %5835 = vst [vmem:[#allocation11 + $0x118] sm:$0xff] %v5799_v62 }
 0x5bb   :  { %5848 = dma.vmem_to_hbm [thread:$0]  %s5841_s3, 4608, %s5843_s13, [#allocation5], %s8571_s14, %s8571_s14, %s8572_s15  }
 0x5bc   :  { %8560 = dma.done.wait [#allocation5], 4608  }
 0x5bd   :  { %8561 = vsyncadd [#allocation5], 4294962688 }
 0x5be   :  { %5853 = vsyncpa [#allocation4], 1 }
 0x5bf   :  { %5854 = vsyncpa [#allocation7], 1 }
 0x5c0   :  { %5855 = vsyncpa [#allocation10], 1 }
 0x5c1   :  { %5856 = vsyncpa [#allocation5], 1 }

</bundles_post_ra>
